<compile_context>
chip_gen: v7x
topology: tpu7x:2x2x1
jax: 0.10.0
libtpu: 0.0.40
codegen_flags: <defaults>
</compile_context>

<pallas_src>
import functools
import math

import jax
import jax.numpy as jnp
from jax import lax
from jax.experimental import pallas as pl
from jax.experimental.pallas import tpu as pltpu

# ----------------------------- configuration --------------------------------
B = 2            # batch
N = 128          # sequence length (flattened feature map)
D = 64           # d_model
H = 4            # heads
BLOCK_EXP = 4    # MLP expansion
HID = BLOCK_EXP * D
DK = D // H
LOOPS = 1        # loops_num
LN_EPS = 1e-5


# ------------------------------- helpers -------------------------------------
def _layernorm(x, g, b):
    # x: (M, D) f32, g/b: (1, D) f32
    mu = jnp.mean(x, axis=-1, keepdims=True)
    xc = x - mu
    var = jnp.mean(xc * xc, axis=-1, keepdims=True)
    return xc * lax.rsqrt(var + LN_EPS) * g + b


def _gelu_tanh(x):
    c = math.sqrt(2.0 / math.pi)
    return 0.5 * x * (1.0 + jnp.tanh(c * (x + 0.044715 * x * x * x)))


# ------------------------------- kernel -------------------------------------
def cross_block_kernel(
    rgb_ref, ir_ref,
    ln1_g, ln1_b, ln2a_g, ln2a_b,            # attention LayerNorms
    wq_ref, bq_ref, wk_ref, bk_ref,          # dense Q/K proj (D,D) bf16 / (1,D) f32, scale folded
    wvo_ref, bvo_ref, bo_ref,                # folded V·Wo per head: (H,D,D) bf16 / (H,1,D) f32
    ln2b_g, ln2b_b,                          # block LayerNorm
    w1_ref, b1_ref, w2_ref, b2_ref,          # MLP
    coef_ref,                                # (1,4) f32 SMEM: c3, c4, c7, c8
    out_ref,
    *, bb, n, d, h, dk, loops,
):
    f32 = jnp.float32
    bf16 = jnp.bfloat16
    m = bb * n

    rgb = rgb_ref[...].reshape(m, d)          # (M, D) f32
    ir_cur = ir_ref[...].reshape(m, d)        # (M, D) f32

    # LearnableCoefficient scalars (forward: x * bias).
    c3 = coef_ref[0, 0]
    c4 = coef_ref[0, 1]
    c7 = coef_ref[0, 2]
    c8 = coef_ref[0, 3]

    # Hoisted, loop-invariant loads (matmul weights already bf16 from wrapper).
    g1 = ln1_g[...]; be1 = ln1_b[...]
    g2 = ln2a_g[...]; be2 = ln2a_b[...]
    g3 = ln2b_g[...]; be3 = ln2b_b[...]
    wq = wq_ref[...]; bq = bq_ref[...]
    wk = wk_ref[...]; bk = bk_ref[...]
    wvo = wvo_ref[...]; bvo = bvo_ref[...]
    bo = bo_ref[...]
    w1 = w1_ref[...]; b1 = b1_ref[...]
    w2 = w2_ref[...]; b2 = b2_ref[...]

    for _ in range(loops):
        # ---------------- cross attention (rgb queries ir) ----------------
        xq16 = _layernorm(rgb, g1, be1).astype(bf16)
        xkv16 = _layernorm(ir_cur, g2, be2).astype(bf16)

        # Dense Q/K projections; 1/sqrt(dk) already folded into wq/bq.
        q = (jnp.dot(xq16, wq, preferred_element_type=f32) + bq).astype(bf16)
        k = (jnp.dot(xkv16, wk, preferred_element_type=f32) + bk).astype(bf16)
        q3 = q.reshape(bb, n, d)
        k3 = k.reshape(bb, n, d)

        out_ir = jnp.zeros((bb, n, d), f32)
        for hh in range(h):
            # Folded V·Wo per head: contraction 64 / output 64.
            vwo = jnp.dot(xkv16, wvo[hh], preferred_element_type=f32) + bvo[hh]
            vwo3 = vwo.astype(bf16).reshape(bb, n, d)
            qh = q3[:, :, hh * dk:(hh + 1) * dk]           # (bb, n, dk)
            kh = k3[:, :, hh * dk:(hh + 1) * dk]
            s = jnp.einsum("bqc,bkc->bqk", qh, kh,
                           preferred_element_type=f32)     # (bb, n, n)
            s = s - jnp.max(s, axis=-1, keepdims=True)
            e = jnp.exp(s)
            p = (e * pl.reciprocal(jnp.sum(e, axis=-1, keepdims=True),
                                   approx=True)).astype(bf16)
            out_ir = out_ir + jnp.einsum("bqk,bkd->bqd", p, vwo3,
                                         preferred_element_type=f32)
        out_ir = out_ir.reshape(m, d) + bo                 # (M, D)

        # -------- residual mix (LearnableCoefficient: x * bias) + MLP --------
        ir_att = c3 * ir_cur + c4 * out_ir
        ln3_16 = _layernorm(ir_att, g3, be3).astype(bf16)
        hdn = _gelu_tanh(jnp.dot(ln3_16, w1, preferred_element_type=f32) + b1)
        mlp = jnp.dot(hdn.astype(bf16), w2, preferred_element_type=f32) + b2
        ir_cur = c7 * ir_att + c8 * mlp

    out_ref[...] = ir_cur.reshape(bb, n, d)


# ------------------------- device / grid selection ---------------------------
def _tensorcores_per_device():
    """Robust TC count: pltpu.get_tpu_info() first, device_kind as fallback."""
    try:
        info = pltpu.get_tpu_info()
        for attr in ("num_cores", "num_tensorcores", "tensorcore_count",
                     "cores_per_chip", "num_cores_per_chip", "core_count"):
            v = getattr(info, attr, None)
            if v is not None:
                v = int(v)
                if v > 0:
                    return v
    except Exception:
        pass
    try:
        kind = jax.devices()[0].device_kind.lower()
        if any(t in kind for t in ("v7", "v4", "v5p")):
            return 2
    except Exception:
        pass
    return 1


def _choose_batches_per_step(b_s):
    # Multi-TC chips: one batch per grid step (parallel grid across cores).
    # Single-TC chips: fold the whole batch into one grid step.
    return 1 if (_tensorcores_per_device() > 1 and b_s > 1) else b_s


# ------------------------------- wrapper -------------------------------------
@functools.partial(jax.jit, static_argnames=("batches_per_step",))
def cross_transformer_block(rgb, ir, pp, *, batches_per_step):
    b_s, n, d = rgb.shape
    h = pp["wvo"].shape[0]
    dk = d // h
    hid = pp["w1"].shape[1]
    bb = batches_per_step
    grid = (b_s // bb,)

    def full2(shape):
        return pl.BlockSpec(shape, lambda g: (0, 0))

    def full3(shape):
        return pl.BlockSpec(shape, lambda g: (0, 0, 0))

    seq_spec = pl.BlockSpec((bb, n, d), lambda g: (g, 0, 0))

    in_specs = [
        seq_spec, seq_spec,
        full2((1, d)), full2((1, d)), full2((1, d)), full2((1, d)),   # LN1, LN2 (attn)
        full2((d, d)), full2((1, d)),                                 # Wq (scaled), bq (scaled)
        full2((d, d)), full2((1, d)),                                 # Wk, bk
        full3((h, d, d)), full3((h, 1, d)), full2((1, d)),            # Wvo, bvo, bo
        full2((1, d)), full2((1, d)),                                 # LN (block)
        full2((d, hid)), full2((1, hid)),                             # W1, b1
        full2((hid, d)), full2((1, d)),                               # W2, b2
        pl.BlockSpec(memory_space=pltpu.MemorySpace.SMEM),            # coefficients
    ]

    grid_spec = pltpu.PrefetchScalarGridSpec(
        num_scalar_prefetch=0,
        grid=grid,
        in_specs=in_specs,
        out_specs=pl.BlockSpec((bb, n, d), lambda g: (g, 0, 0)),
    )

    kernel = functools.partial(
        cross_block_kernel, bb=bb, n=n, d=d, h=h, dk=dk, loops=LOOPS)

    fn = pl.pallas_call(
        kernel,
        out_shape=jax.ShapeDtypeStruct((b_s, n, d), jnp.float32),
        grid_spec=grid_spec,
        compiler_params=pltpu.CompilerParams(
            dimension_semantics=("parallel",) if bb == 1 else ("arbitrary",)),
    )
    return fn(
        rgb, ir,
        pp["ln1_g"], pp["ln1_b"], pp["ln2a_g"], pp["ln2a_b"],
        pp["wq"], pp["bq"], pp["wk"], pp["bk"],
        pp["wvo"], pp["bvo"], pp["bo"],
        pp["ln2b_g"], pp["ln2b_b"],
        pp["w1"], pp["b1"], pp["w2"], pp["b2"],
        pp["coeffs"],
    )


# --------------------- one-time host-side weight prep -------------------------
def prepare_params(p, *, h=H):
    """Fold Wv·Wo, bv·Wo and the 1/sqrt(dk) scale in f32, then cast once to bf16.
    Called once per model — out of the per-call hot path."""
    d = p["wq"].shape[0]
    dk = d // h
    scale = 1.0 / math.sqrt(dk)        # 0.25: exact power-of-two fold
    bf16 = jnp.bfloat16
    wv_h = p["wv"].reshape(d, h, dk).transpose(1, 0, 2)     # (h, d, dk)
    bv_h = p["bv"].reshape(1, h, dk).transpose(1, 0, 2)     # (h, 1, dk)
    wo_h = p["wo"].reshape(h, dk, d)                        # (h, dk, d)
    wvo = jnp.einsum("hij,hjk->hik", wv_h, wo_h)            # (h, d, d) f32 fold
    bvo = jnp.einsum("hij,hjk->hik", bv_h, wo_h)            # (h, 1, d) f32 fold
    return {
        "ln1_g": p["ln1_g"], "ln1_b": p["ln1_b"],
        "ln2a_g": p["ln2a_g"], "ln2a_b": p["ln2a_b"],
        "wq": (p["wq"] * scale).astype(bf16), "bq": p["bq"] * scale,
        "wk": p["wk"].astype(bf16), "bk": p["bk"],
        "wvo": wvo.astype(bf16), "bvo": bvo,
        "bo": p["bo"],
        "ln2b_g": p["ln2b_g"], "ln2b_b": p["ln2b_b"],
        "w1": p["w1"].astype(bf16), "b1": p["b1"],
        "w2": p["w2"].astype(bf16), "b2": p["b2"],
        "coeffs": p["coeffs"].reshape(1, 4),
    }


# --------------------------- pure-JAX reference -------------------------------
def reference(rgb, ir, p):
    def ln(x, g, b):
        mu = jnp.mean(x, -1, keepdims=True)
        var = jnp.mean((x - mu) ** 2, -1, keepdims=True)
        return (x - mu) / jnp.sqrt(var + LN_EPS) * g + b

    c3, c4, c7, c8 = (p["coeffs"][i] for i in range(4))
    ir_cur = ir
    for _ in range(LOOPS):
        ln_rgb = ln(rgb, p["ln1_g"], p["ln1_b"])
        ln_ir = ln(ir_cur, p["ln2a_g"], p["ln2a_b"])
        q = ln_rgb @ p["wq"] + p["bq"]
        k = ln_ir @ p["wk"] + p["bk"]
        v = ln_ir @ p["wv"] + p["bv"]
        b_s, n, _ = q.shape
        qh = q.reshape(b_s, n, H, DK).transpose(0, 2, 1, 3)
        kh = k.reshape(b_s, n, H, DK).transpose(0, 2, 3, 1)
        vh = v.reshape(b_s, n, H, DK).transpose(0, 2, 1, 3)
        att = jax.nn.softmax(qh @ kh / math.sqrt(DK), axis=-1)
        o = (att @ vh).transpose(0, 2, 1, 3).reshape(b_s, n, D)
        out_ir = o @ p["wo"] + p["bo"]
        ir_att = c3 * ir_cur + c4 * out_ir
        h1 = ln(ir_att, p["ln2b_g"], p["ln2b_b"]) @ p["w1"] + p["b1"]
        h1 = jax.nn.gelu(h1, approximate=True)
        mlp_out = h1 @ p["w2"] + p["b2"]
        ir_cur = c7 * ir_att + c8 * mlp_out
    return ir_cur


# --------------------------------- main ---------------------------------------
def make_params(key):
    # O(1) weights + non-zero biases + non-trivial coefficients so the
    # attention / MLP path meaningfully contributes (review: stronger self-test).
    ks = jax.random.split(key, 16)
    std = 0.1

    def w(i, shape):
        return std * jax.random.normal(ks[i], shape, jnp.float32)

    p = {
        "ln1_g": 1.0 + 0.1 * jax.random.normal(ks[10], (1, D), jnp.float32),
        "ln1_b": 0.1 * jax.random.normal(ks[11], (1, D), jnp.float32),
        "ln2a_g": 1.0 + 0.1 * jax.random.normal(ks[12], (1, D), jnp.float32),
        "ln2a_b": 0.1 * jax.random.normal(ks[13], (1, D), jnp.float32),
        "wq": w(0, (D, D)), "bq": w(6, (1, D)),
        "wk": w(1, (D, D)), "bk": w(7, (1, D)),
        "wv": w(2, (D, D)), "bv": w(8, (1, D)),
        "wo": w(3, (D, D)), "bo": w(9, (1, D)),
        "ln2b_g": 1.0 + 0.1 * jax.random.normal(ks[14], (1, D), jnp.float32),
        "ln2b_b": 0.1 * jax.random.normal(ks[15], (1, D), jnp.float32),
        "w1": w(4, (D, HID)), "b1": 0.1 * jax.random.normal(ks[5], (1, HID), jnp.float32),
        "w2": w(5, (HID, D)), "b2": 0.1 * jax.random.normal(ks[4], (1, D), jnp.float32),
        # LearnableCoefficient params c3, c4, c7, c8 (init 1.0 in the module;
        # non-trivial values here to actually exercise the x*bias forward).
        "coeffs": jnp.array([1.1, 0.9, 1.2, 0.8], jnp.float32),
    }
    return p


if __name__ == "__main__":
    key = jax.random.PRNGKey(0)
    k_rgb, k_ir, k_par = jax.random.split(key, 3)
    rgb = jax.random.normal(k_rgb, (B, N, D), jnp.float32)
    ir = jax.random.normal(k_ir, (B, N, D), jnp.float32)

    params = make_params(k_par)
    prepped = prepare_params(params)                     # one-time host-side prep
    bb = _choose_batches_per_step(B)

    out = cross_transformer_block(rgb, ir, prepped, batches_per_step=bb)
    out = jax.block_until_ready(out)

    ref = jax.block_until_ready(reference(rgb, ir, params))
    assert out.shape == (B, N, D)
    max_err = float(jnp.max(jnp.abs(out - ref)))
    # bf16 MXU operands + approx-reciprocal softmax vs f32 reference.
    assert jnp.allclose(out, ref, atol=6e-2, rtol=6e-2), f"max abs err {max_err}"

    print("KERNEL_OK")
</pallas_src>

<mosaic_0001>
module attributes {stable_mosaic.version = 11 : i64} {
  func.func @cross_block_kernel(%arg0: i32, %arg1: memref<2x128x64xf32, #tpu.memory_space<vmem>>, %arg2: memref<2x128x64xf32, #tpu.memory_space<vmem>>, %arg3: memref<1x64xf32, #tpu.memory_space<vmem>>, %arg4: memref<1x64xf32, #tpu.memory_space<vmem>>, %arg5: memref<1x64xf32, #tpu.memory_space<vmem>>, %arg6: memref<1x64xf32, #tpu.memory_space<vmem>>, %arg7: memref<64x64xbf16, #tpu.memory_space<vmem>>, %arg8: memref<1x64xf32, #tpu.memory_space<vmem>>, %arg9: memref<64x64xbf16, #tpu.memory_space<vmem>>, %arg10: memref<1x64xf32, #tpu.memory_space<vmem>>, %arg11: memref<4x64x64xbf16, #tpu.memory_space<vmem>>, %arg12: memref<4x1x64xf32, #tpu.memory_space<vmem>>, %arg13: memref<1x64xf32, #tpu.memory_space<vmem>>, %arg14: memref<1x64xf32, #tpu.memory_space<vmem>>, %arg15: memref<1x64xf32, #tpu.memory_space<vmem>>, %arg16: memref<64x256xbf16, #tpu.memory_space<vmem>>, %arg17: memref<1x256xf32, #tpu.memory_space<vmem>>, %arg18: memref<256x64xbf16, #tpu.memory_space<vmem>>, %arg19: memref<1x64xf32, #tpu.memory_space<vmem>>, %arg20: memref<1x4xf32, #tpu.memory_space<smem>>, %arg21: memref<2x128x64xf32, #tpu.memory_space<vmem>>) attributes {dimension_semantics = [#tpu.dimension_semantics<arbitrary>], iteration_bounds = array<i64: 1>, scalar_prefetch = 0 : i64, scratch_operands = 0 : i64, tpu.core_type = #tpu.core_type<tc>, window_params = [{transform_indices = @transform_0, window_bounds = array<i64: 2, 128, 64>}, {transform_indices = @transform_1, window_bounds = array<i64: 2, 128, 64>}, {pipeline_mode = #tpu.pipeline_mode<synchronous>, transform_indices = @transform_2, window_bounds = array<i64: 1, 64>}, {pipeline_mode = #tpu.pipeline_mode<synchronous>, transform_indices = @transform_3, window_bounds = array<i64: 1, 64>}, {pipeline_mode = #tpu.pipeline_mode<synchronous>, transform_indices = @transform_4, window_bounds = array<i64: 1, 64>}, {pipeline_mode = #tpu.pipeline_mode<synchronous>, transform_indices = @transform_5, window_bounds = array<i64: 1, 64>}, {pipeline_mode = #tpu.pipeline_mode<synchronous>, transform_indices = @transform_6, window_bounds = array<i64: 64, 64>}, {pipeline_mode = #tpu.pipeline_mode<synchronous>, transform_indices = @transform_7, window_bounds = array<i64: 1, 64>}, {pipeline_mode = #tpu.pipeline_mode<synchronous>, transform_indices = @transform_8, window_bounds = array<i64: 64, 64>}, {pipeline_mode = #tpu.pipeline_mode<synchronous>, transform_indices = @transform_9, window_bounds = array<i64: 1, 64>}, {pipeline_mode = #tpu.pipeline_mode<synchronous>, transform_indices = @transform_10, window_bounds = array<i64: 4, 64, 64>}, {pipeline_mode = #tpu.pipeline_mode<synchronous>, transform_indices = @transform_11, window_bounds = array<i64: 4, 1, 64>}, {pipeline_mode = #tpu.pipeline_mode<synchronous>, transform_indices = @transform_12, window_bounds = array<i64: 1, 64>}, {pipeline_mode = #tpu.pipeline_mode<synchronous>, transform_indices = @transform_13, window_bounds = array<i64: 1, 64>}, {pipeline_mode = #tpu.pipeline_mode<synchronous>, transform_indices = @transform_14, window_bounds = array<i64: 1, 64>}, {pipeline_mode = #tpu.pipeline_mode<synchronous>, transform_indices = @transform_15, window_bounds = array<i64: 64, 256>}, {pipeline_mode = #tpu.pipeline_mode<synchronous>, transform_indices = @transform_16, window_bounds = array<i64: 1, 256>}, {pipeline_mode = #tpu.pipeline_mode<synchronous>, transform_indices = @transform_17, window_bounds = array<i64: 256, 64>}, {pipeline_mode = #tpu.pipeline_mode<synchronous>, transform_indices = @transform_18, window_bounds = array<i64: 1, 64>}, {transform_indices = @transform_19, window_bounds = array<i64: 1, 4>}, {transform_indices = @transform_20, window_bounds = array<i64: 2, 128, 64>}]} {
    %c0 = arith.constant 0 : index
    %c0_0 = arith.constant 0 : index
    %c0_1 = arith.constant 0 : index
    %0 = vector.load %arg1[%c0, %c0_0, %c0_1] : memref<2x128x64xf32, #tpu.memory_space<vmem>>, vector<2x128x64xf32>
    %1 = vector.shape_cast %0 : vector<2x128x64xf32> to vector<256x64xf32>
    %c0_2 = arith.constant 0 : index
    %c0_3 = arith.constant 0 : index
    %c0_4 = arith.constant 0 : index
    %2 = vector.load %arg2[%c0_2, %c0_3, %c0_4] : memref<2x128x64xf32, #tpu.memory_space<vmem>>, vector<2x128x64xf32>
    %3 = vector.shape_cast %2 : vector<2x128x64xf32> to vector<256x64xf32>
    %c0_5 = arith.constant 0 : index
    %c0_6 = arith.constant 0 : index
    %4 = memref.load %arg20[%c0_5, %c0_6] : memref<1x4xf32, #tpu.memory_space<smem>>
    %c0_7 = arith.constant 0 : index
    %c1 = arith.constant 1 : index
    %5 = memref.load %arg20[%c0_7, %c1] : memref<1x4xf32, #tpu.memory_space<smem>>
    %c0_8 = arith.constant 0 : index
    %c2 = arith.constant 2 : index
    %6 = memref.load %arg20[%c0_8, %c2] : memref<1x4xf32, #tpu.memory_space<smem>>
    %c0_9 = arith.constant 0 : index
    %c3 = arith.constant 3 : index
    %7 = memref.load %arg20[%c0_9, %c3] : memref<1x4xf32, #tpu.memory_space<smem>>
    %c0_10 = arith.constant 0 : index
    %c0_11 = arith.constant 0 : index
    %8 = vector.load %arg3[%c0_10, %c0_11] : memref<1x64xf32, #tpu.memory_space<vmem>>, vector<1x64xf32>
    %c0_12 = arith.constant 0 : index
    %c0_13 = arith.constant 0 : index
    %9 = vector.load %arg4[%c0_12, %c0_13] : memref<1x64xf32, #tpu.memory_space<vmem>>, vector<1x64xf32>
    %c0_14 = arith.constant 0 : index
    %c0_15 = arith.constant 0 : index
    %10 = vector.load %arg5[%c0_14, %c0_15] : memref<1x64xf32, #tpu.memory_space<vmem>>, vector<1x64xf32>
    %c0_16 = arith.constant 0 : index
    %c0_17 = arith.constant 0 : index
    %11 = vector.load %arg6[%c0_16, %c0_17] : memref<1x64xf32, #tpu.memory_space<vmem>>, vector<1x64xf32>
    %c0_18 = arith.constant 0 : index
    %c0_19 = arith.constant 0 : index
    %12 = vector.load %arg14[%c0_18, %c0_19] : memref<1x64xf32, #tpu.memory_space<vmem>>, vector<1x64xf32>
    %c0_20 = arith.constant 0 : index
    %c0_21 = arith.constant 0 : index
    %13 = vector.load %arg15[%c0_20, %c0_21] : memref<1x64xf32, #tpu.memory_space<vmem>>, vector<1x64xf32>
    %c0_22 = arith.constant 0 : index
    %c0_23 = arith.constant 0 : index
    %14 = vector.load %arg7[%c0_22, %c0_23] : memref<64x64xbf16, #tpu.memory_space<vmem>>, vector<64x64xbf16>
    %c0_24 = arith.constant 0 : index
    %c0_25 = arith.constant 0 : index
    %15 = vector.load %arg8[%c0_24, %c0_25] : memref<1x64xf32, #tpu.memory_space<vmem>>, vector<1x64xf32>
    %c0_26 = arith.constant 0 : index
    %c0_27 = arith.constant 0 : index
    %16 = vector.load %arg9[%c0_26, %c0_27] : memref<64x64xbf16, #tpu.memory_space<vmem>>, vector<64x64xbf16>
    %c0_28 = arith.constant 0 : index
    %c0_29 = arith.constant 0 : index
    %17 = vector.load %arg10[%c0_28, %c0_29] : memref<1x64xf32, #tpu.memory_space<vmem>>, vector<1x64xf32>
    %c0_30 = arith.constant 0 : index
    %c0_31 = arith.constant 0 : index
    %c0_32 = arith.constant 0 : index
    %18 = vector.load %arg11[%c0_30, %c0_31, %c0_32] : memref<4x64x64xbf16, #tpu.memory_space<vmem>>, vector<4x64x64xbf16>
    %c0_33 = arith.constant 0 : index
    %c0_34 = arith.constant 0 : index
    %c0_35 = arith.constant 0 : index
    %19 = vector.load %arg12[%c0_33, %c0_34, %c0_35] : memref<4x1x64xf32, #tpu.memory_space<vmem>>, vector<4x1x64xf32>
    %c0_36 = arith.constant 0 : index
    %c0_37 = arith.constant 0 : index
    %20 = vector.load %arg13[%c0_36, %c0_37] : memref<1x64xf32, #tpu.memory_space<vmem>>, vector<1x64xf32>
    %c0_38 = arith.constant 0 : index
    %c0_39 = arith.constant 0 : index
    %21 = vector.load %arg16[%c0_38, %c0_39] : memref<64x256xbf16, #tpu.memory_space<vmem>>, vector<64x256xbf16>
    %c0_40 = arith.constant 0 : index
    %c0_41 = arith.constant 0 : index
    %22 = vector.load %arg17[%c0_40, %c0_41] : memref<1x256xf32, #tpu.memory_space<vmem>>, vector<1x256xf32>
    %c0_42 = arith.constant 0 : index
    %c0_43 = arith.constant 0 : index
    %23 = vector.load %arg18[%c0_42, %c0_43] : memref<256x64xbf16, #tpu.memory_space<vmem>>, vector<256x64xbf16>
    %c0_44 = arith.constant 0 : index
    %c0_45 = arith.constant 0 : index
    %24 = vector.load %arg19[%c0_44, %c0_45] : memref<1x64xf32, #tpu.memory_space<vmem>>, vector<1x64xf32>
    %cst = arith.constant dense<0.000000e+00> : vector<256xf32>
    %25 = vector.multi_reduction <add>, %1, %cst [1] : vector<256x64xf32> to vector<256xf32>
    %26 = vector.shape_cast %25 : vector<256xf32> to vector<256x1xf32>
    %cst_46 = arith.constant 6.400000e+01 : f32
    %27 = vector.broadcast %cst_46 : f32 to vector<256x1xf32>
    %28 = arith.divf %26, %27 : vector<256x1xf32>
    %29 = vector.broadcast %28 : vector<256x1xf32> to vector<256x64xf32>
    %30 = arith.subf %1, %29 : vector<256x64xf32>
    %31 = arith.mulf %30, %30 : vector<256x64xf32>
    %cst_47 = arith.constant dense<0.000000e+00> : vector<256xf32>
    %32 = vector.multi_reduction <add>, %31, %cst_47 [1] : vector<256x64xf32> to vector<256xf32>
    %33 = vector.shape_cast %32 : vector<256xf32> to vector<256x1xf32>
    %cst_48 = arith.constant 6.400000e+01 : f32
    %34 = vector.broadcast %cst_48 : f32 to vector<256x1xf32>
    %35 = arith.divf %33, %34 : vector<256x1xf32>
    %cst_49 = arith.constant 9.99999974E-6 : f32
    %36 = vector.broadcast %cst_49 : f32 to vector<256x1xf32>
    %37 = arith.addf %35, %36 : vector<256x1xf32>
    %38 = math.rsqrt %37 : vector<256x1xf32>
    %39 = vector.broadcast %38 : vector<256x1xf32> to vector<256x64xf32>
    %40 = arith.mulf %30, %39 : vector<256x64xf32>
    %41 = vector.broadcast %8 : vector<1x64xf32> to vector<256x64xf32>
    %42 = arith.mulf %40, %41 : vector<256x64xf32>
    %43 = vector.broadcast %9 : vector<1x64xf32> to vector<256x64xf32>
    %44 = arith.addf %42, %43 : vector<256x64xf32>
    %45 = arith.truncf %44 : vector<256x64xf32> to vector<256x64xbf16>
    %cst_50 = arith.constant dense<0.000000e+00> : vector<256xf32>
    %46 = vector.multi_reduction <add>, %3, %cst_50 [1] : vector<256x64xf32> to vector<256xf32>
    %47 = vector.shape_cast %46 : vector<256xf32> to vector<256x1xf32>
    %cst_51 = arith.constant 6.400000e+01 : f32
    %48 = vector.broadcast %cst_51 : f32 to vector<256x1xf32>
    %49 = arith.divf %47, %48 : vector<256x1xf32>
    %50 = vector.broadcast %49 : vector<256x1xf32> to vector<256x64xf32>
    %51 = arith.subf %3, %50 : vector<256x64xf32>
    %52 = arith.mulf %51, %51 : vector<256x64xf32>
    %cst_52 = arith.constant dense<0.000000e+00> : vector<256xf32>
    %53 = vector.multi_reduction <add>, %52, %cst_52 [1] : vector<256x64xf32> to vector<256xf32>
    %54 = vector.shape_cast %53 : vector<256xf32> to vector<256x1xf32>
    %cst_53 = arith.constant 6.400000e+01 : f32
    %55 = vector.broadcast %cst_53 : f32 to vector<256x1xf32>
    %56 = arith.divf %54, %55 : vector<256x1xf32>
    %cst_54 = arith.constant 9.99999974E-6 : f32
    %57 = vector.broadcast %cst_54 : f32 to vector<256x1xf32>
    %58 = arith.addf %56, %57 : vector<256x1xf32>
    %59 = math.rsqrt %58 : vector<256x1xf32>
    %60 = vector.broadcast %59 : vector<256x1xf32> to vector<256x64xf32>
    %61 = arith.mulf %51, %60 : vector<256x64xf32>
    %62 = vector.broadcast %10 : vector<1x64xf32> to vector<256x64xf32>
    %63 = arith.mulf %61, %62 : vector<256x64xf32>
    %64 = vector.broadcast %11 : vector<1x64xf32> to vector<256x64xf32>
    %65 = arith.addf %63, %64 : vector<256x64xf32>
    %66 = arith.truncf %65 : vector<256x64xf32> to vector<256x64xbf16>
    %cst_55 = arith.constant dense<0.000000e+00> : vector<256x64xf32>
    %67 = tpu.matmul %45, %14, %cst_55 {dimension_numbers = #tpu.dot_dimension_numbers<[1], [0], [0], [1], [0, 0, 1, 1], [], []>} : vector<256x64xbf16>, vector<64x64xbf16>, vector<256x64xf32> -> vector<256x64xf32>
    %68 = vector.broadcast %15 : vector<1x64xf32> to vector<256x64xf32>
    %69 = arith.addf %67, %68 : vector<256x64xf32>
    %70 = arith.truncf %69 : vector<256x64xf32> to vector<256x64xbf16>
    %cst_56 = arith.constant dense<0.000000e+00> : vector<256x64xf32>
    %71 = tpu.matmul %66, %16, %cst_56 {dimension_numbers = #tpu.dot_dimension_numbers<[1], [0], [0], [1], [0, 0, 1, 1], [], []>} : vector<256x64xbf16>, vector<64x64xbf16>, vector<256x64xf32> -> vector<256x64xf32>
    %72 = vector.broadcast %17 : vector<1x64xf32> to vector<256x64xf32>
    %73 = arith.addf %71, %72 : vector<256x64xf32>
    %74 = arith.truncf %73 : vector<256x64xf32> to vector<256x64xbf16>
    %75 = vector.shape_cast %70 : vector<256x64xbf16> to vector<2x128x64xbf16>
    %76 = vector.shape_cast %74 : vector<256x64xbf16> to vector<2x128x64xbf16>
    %cst_57 = arith.constant 0.000000e+00 : f32
    %77 = vector.broadcast %cst_57 : f32 to vector<2x128x64xf32>
    %78 = vector.extract_strided_slice %18 {offsets = [0, 0, 0], sizes = [1, 64, 64], strides = [1, 1, 1]} : vector<4x64x64xbf16> to vector<1x64x64xbf16>
    %79 = vector.shape_cast %78 : vector<1x64x64xbf16> to vector<64x64xbf16>
    %cst_58 = arith.constant dense<0.000000e+00> : vector<256x64xf32>
    %80 = tpu.matmul %66, %79, %cst_58 {dimension_numbers = #tpu.dot_dimension_numbers<[1], [0], [0], [1], [0, 0, 1, 1], [], []>} : vector<256x64xbf16>, vector<64x64xbf16>, vector<256x64xf32> -> vector<256x64xf32>
    %81 = vector.extract_strided_slice %19 {offsets = [0, 0, 0], sizes = [1, 1, 64], strides = [1, 1, 1]} : vector<4x1x64xf32> to vector<1x1x64xf32>
    %82 = vector.shape_cast %81 : vector<1x1x64xf32> to vector<1x64xf32>
    %83 = vector.broadcast %82 : vector<1x64xf32> to vector<256x64xf32>
    %84 = arith.addf %80, %83 : vector<256x64xf32>
    %85 = arith.truncf %84 : vector<256x64xf32> to vector<256x64xbf16>
    %86 = vector.shape_cast %85 : vector<256x64xbf16> to vector<2x128x64xbf16>
    %87 = vector.extract_strided_slice %75 {offsets = [0, 0, 0], sizes = [2, 128, 16], strides = [1, 1, 1]} : vector<2x128x64xbf16> to vector<2x128x16xbf16>
    %88 = vector.extract_strided_slice %76 {offsets = [0, 0, 0], sizes = [2, 128, 16], strides = [1, 1, 1]} : vector<2x128x64xbf16> to vector<2x128x16xbf16>
    "tpu.trace_start"() <{level = 10 : i32, message = "bqc,bkc->bqk"}> : () -> ()
    %cst_59 = arith.constant dense<0.000000e+00> : vector<2x128x128xf32>
    %89 = tpu.matmul %87, %88, %cst_59 {dimension_numbers = #tpu.dot_dimension_numbers<[2], [2], [1], [1], [0, 0, 0, 1, 1, 1], [0], [0]>} : vector<2x128x16xbf16>, vector<2x128x16xbf16>, vector<2x128x128xf32> -> vector<2x128x128xf32>
    "tpu.trace_stop"() : () -> ()
    %cst_60 = arith.constant dense<0xFF800000> : vector<2x128xf32>
    %90 = vector.multi_reduction <maximumf>, %89, %cst_60 [2] : vector<2x128x128xf32> to vector<2x128xf32>
    %91 = vector.shape_cast %90 : vector<2x128xf32> to vector<2x128x1xf32>
    %92 = vector.broadcast %91 : vector<2x128x1xf32> to vector<2x128x128xf32>
    %93 = arith.subf %89, %92 : vector<2x128x128xf32>
    %94 = math.exp %93 : vector<2x128x128xf32>
    %cst_61 = arith.constant dense<0.000000e+00> : vector<2x128xf32>
    %95 = vector.multi_reduction <add>, %94, %cst_61 [2] : vector<2x128x128xf32> to vector<2x128xf32>
    %96 = vector.shape_cast %95 : vector<2x128xf32> to vector<2x128x1xf32>
    %97 = tpu.reciprocal %96 {approx = true} : vector<2x128x1xf32> -> vector<2x128x1xf32>
    %98 = vector.broadcast %97 : vector<2x128x1xf32> to vector<2x128x128xf32>
    %99 = arith.mulf %94, %98 : vector<2x128x128xf32>
    %100 = arith.truncf %99 : vector<2x128x128xf32> to vector<2x128x128xbf16>
    "tpu.trace_start"() <{level = 10 : i32, message = "bqk,bkd->bqd"}> : () -> ()
    %cst_62 = arith.constant dense<0.000000e+00> : vector<2x128x64xf32>
    %101 = tpu.matmul %100, %86, %cst_62 {dimension_numbers = #tpu.dot_dimension_numbers<[2], [1], [1], [2], [0, 0, 0, 1, 1, 2], [0], [0]>} : vector<2x128x128xbf16>, vector<2x128x64xbf16>, vector<2x128x64xf32> -> vector<2x128x64xf32>
    "tpu.trace_stop"() : () -> ()
    %102 = arith.addf %77, %101 : vector<2x128x64xf32>
    %103 = vector.extract_strided_slice %18 {offsets = [1, 0, 0], sizes = [1, 64, 64], strides = [1, 1, 1]} : vector<4x64x64xbf16> to vector<1x64x64xbf16>
    %104 = vector.shape_cast %103 : vector<1x64x64xbf16> to vector<64x64xbf16>
    %cst_63 = arith.constant dense<0.000000e+00> : vector<256x64xf32>
    %105 = tpu.matmul %66, %104, %cst_63 {dimension_numbers = #tpu.dot_dimension_numbers<[1], [0], [0], [1], [0, 0, 1, 1], [], []>} : vector<256x64xbf16>, vector<64x64xbf16>, vector<256x64xf32> -> vector<256x64xf32>
    %106 = vector.extract_strided_slice %19 {offsets = [1, 0, 0], sizes = [1, 1, 64], strides = [1, 1, 1]} : vector<4x1x64xf32> to vector<1x1x64xf32>
    %107 = vector.shape_cast %106 : vector<1x1x64xf32> to vector<1x64xf32>
    %108 = vector.broadcast %107 : vector<1x64xf32> to vector<256x64xf32>
    %109 = arith.addf %105, %108 : vector<256x64xf32>
    %110 = arith.truncf %109 : vector<256x64xf32> to vector<256x64xbf16>
    %111 = vector.shape_cast %110 : vector<256x64xbf16> to vector<2x128x64xbf16>
    %112 = vector.extract_strided_slice %75 {offsets = [0, 0, 16], sizes = [2, 128, 16], strides = [1, 1, 1]} : vector<2x128x64xbf16> to vector<2x128x16xbf16>
    %113 = vector.extract_strided_slice %76 {offsets = [0, 0, 16], sizes = [2, 128, 16], strides = [1, 1, 1]} : vector<2x128x64xbf16> to vector<2x128x16xbf16>
    "tpu.trace_start"() <{level = 10 : i32, message = "bqc,bkc->bqk"}> : () -> ()
    %cst_64 = arith.constant dense<0.000000e+00> : vector<2x128x128xf32>
    %114 = tpu.matmul %112, %113, %cst_64 {dimension_numbers = #tpu.dot_dimension_numbers<[2], [2], [1], [1], [0, 0, 0, 1, 1, 1], [0], [0]>} : vector<2x128x16xbf16>, vector<2x128x16xbf16>, vector<2x128x128xf32> -> vector<2x128x128xf32>
    "tpu.trace_stop"() : () -> ()
    %cst_65 = arith.constant dense<0xFF800000> : vector<2x128xf32>
    %115 = vector.multi_reduction <maximumf>, %114, %cst_65 [2] : vector<2x128x128xf32> to vector<2x128xf32>
    %116 = vector.shape_cast %115 : vector<2x128xf32> to vector<2x128x1xf32>
    %117 = vector.broadcast %116 : vector<2x128x1xf32> to vector<2x128x128xf32>
    %118 = arith.subf %114, %117 : vector<2x128x128xf32>
    %119 = math.exp %118 : vector<2x128x128xf32>
    %cst_66 = arith.constant dense<0.000000e+00> : vector<2x128xf32>
    %120 = vector.multi_reduction <add>, %119, %cst_66 [2] : vector<2x128x128xf32> to vector<2x128xf32>
    %121 = vector.shape_cast %120 : vector<2x128xf32> to vector<2x128x1xf32>
    %122 = tpu.reciprocal %121 {approx = true} : vector<2x128x1xf32> -> vector<2x128x1xf32>
    %123 = vector.broadcast %122 : vector<2x128x1xf32> to vector<2x128x128xf32>
    %124 = arith.mulf %119, %123 : vector<2x128x128xf32>
    %125 = arith.truncf %124 : vector<2x128x128xf32> to vector<2x128x128xbf16>
    "tpu.trace_start"() <{level = 10 : i32, message = "bqk,bkd->bqd"}> : () -> ()
    %cst_67 = arith.constant dense<0.000000e+00> : vector<2x128x64xf32>
    %126 = tpu.matmul %125, %111, %cst_67 {dimension_numbers = #tpu.dot_dimension_numbers<[2], [1], [1], [2], [0, 0, 0, 1, 1, 2], [0], [0]>} : vector<2x128x128xbf16>, vector<2x128x64xbf16>, vector<2x128x64xf32> -> vector<2x128x64xf32>
    "tpu.trace_stop"() : () -> ()
    %127 = arith.addf %102, %126 : vector<2x128x64xf32>
    %128 = vector.extract_strided_slice %18 {offsets = [2, 0, 0], sizes = [1, 64, 64], strides = [1, 1, 1]} : vector<4x64x64xbf16> to vector<1x64x64xbf16>
    %129 = vector.shape_cast %128 : vector<1x64x64xbf16> to vector<64x64xbf16>
    %cst_68 = arith.constant dense<0.000000e+00> : vector<256x64xf32>
    %130 = tpu.matmul %66, %129, %cst_68 {dimension_numbers = #tpu.dot_dimension_numbers<[1], [0], [0], [1], [0, 0, 1, 1], [], []>} : vector<256x64xbf16>, vector<64x64xbf16>, vector<256x64xf32> -> vector<256x64xf32>
    %131 = vector.extract_strided_slice %19 {offsets = [2, 0, 0], sizes = [1, 1, 64], strides = [1, 1, 1]} : vector<4x1x64xf32> to vector<1x1x64xf32>
    %132 = vector.shape_cast %131 : vector<1x1x64xf32> to vector<1x64xf32>
    %133 = vector.broadcast %132 : vector<1x64xf32> to vector<256x64xf32>
    %134 = arith.addf %130, %133 : vector<256x64xf32>
    %135 = arith.truncf %134 : vector<256x64xf32> to vector<256x64xbf16>
    %136 = vector.shape_cast %135 : vector<256x64xbf16> to vector<2x128x64xbf16>
    %137 = vector.extract_strided_slice %75 {offsets = [0, 0, 32], sizes = [2, 128, 16], strides = [1, 1, 1]} : vector<2x128x64xbf16> to vector<2x128x16xbf16>
    %138 = vector.extract_strided_slice %76 {offsets = [0, 0, 32], sizes = [2, 128, 16], strides = [1, 1, 1]} : vector<2x128x64xbf16> to vector<2x128x16xbf16>
    "tpu.trace_start"() <{level = 10 : i32, message = "bqc,bkc->bqk"}> : () -> ()
    %cst_69 = arith.constant dense<0.000000e+00> : vector<2x128x128xf32>
    %139 = tpu.matmul %137, %138, %cst_69 {dimension_numbers = #tpu.dot_dimension_numbers<[2], [2], [1], [1], [0, 0, 0, 1, 1, 1], [0], [0]>} : vector<2x128x16xbf16>, vector<2x128x16xbf16>, vector<2x128x128xf32> -> vector<2x128x128xf32>
    "tpu.trace_stop"() : () -> ()
    %cst_70 = arith.constant dense<0xFF800000> : vector<2x128xf32>
    %140 = vector.multi_reduction <maximumf>, %139, %cst_70 [2] : vector<2x128x128xf32> to vector<2x128xf32>
    %141 = vector.shape_cast %140 : vector<2x128xf32> to vector<2x128x1xf32>
    %142 = vector.broadcast %141 : vector<2x128x1xf32> to vector<2x128x128xf32>
    %143 = arith.subf %139, %142 : vector<2x128x128xf32>
    %144 = math.exp %143 : vector<2x128x128xf32>
    %cst_71 = arith.constant dense<0.000000e+00> : vector<2x128xf32>
    %145 = vector.multi_reduction <add>, %144, %cst_71 [2] : vector<2x128x128xf32> to vector<2x128xf32>
    %146 = vector.shape_cast %145 : vector<2x128xf32> to vector<2x128x1xf32>
    %147 = tpu.reciprocal %146 {approx = true} : vector<2x128x1xf32> -> vector<2x128x1xf32>
    %148 = vector.broadcast %147 : vector<2x128x1xf32> to vector<2x128x128xf32>
    %149 = arith.mulf %144, %148 : vector<2x128x128xf32>
    %150 = arith.truncf %149 : vector<2x128x128xf32> to vector<2x128x128xbf16>
    "tpu.trace_start"() <{level = 10 : i32, message = "bqk,bkd->bqd"}> : () -> ()
    %cst_72 = arith.constant dense<0.000000e+00> : vector<2x128x64xf32>
    %151 = tpu.matmul %150, %136, %cst_72 {dimension_numbers = #tpu.dot_dimension_numbers<[2], [1], [1], [2], [0, 0, 0, 1, 1, 2], [0], [0]>} : vector<2x128x128xbf16>, vector<2x128x64xbf16>, vector<2x128x64xf32> -> vector<2x128x64xf32>
    "tpu.trace_stop"() : () -> ()
    %152 = arith.addf %127, %151 : vector<2x128x64xf32>
    %153 = vector.extract_strided_slice %18 {offsets = [3, 0, 0], sizes = [1, 64, 64], strides = [1, 1, 1]} : vector<4x64x64xbf16> to vector<1x64x64xbf16>
    %154 = vector.shape_cast %153 : vector<1x64x64xbf16> to vector<64x64xbf16>
    %cst_73 = arith.constant dense<0.000000e+00> : vector<256x64xf32>
    %155 = tpu.matmul %66, %154, %cst_73 {dimension_numbers = #tpu.dot_dimension_numbers<[1], [0], [0], [1], [0, 0, 1, 1], [], []>} : vector<256x64xbf16>, vector<64x64xbf16>, vector<256x64xf32> -> vector<256x64xf32>
    %156 = vector.extract_strided_slice %19 {offsets = [3, 0, 0], sizes = [1, 1, 64], strides = [1, 1, 1]} : vector<4x1x64xf32> to vector<1x1x64xf32>
    %157 = vector.shape_cast %156 : vector<1x1x64xf32> to vector<1x64xf32>
    %158 = vector.broadcast %157 : vector<1x64xf32> to vector<256x64xf32>
    %159 = arith.addf %155, %158 : vector<256x64xf32>
    %160 = arith.truncf %159 : vector<256x64xf32> to vector<256x64xbf16>
    %161 = vector.shape_cast %160 : vector<256x64xbf16> to vector<2x128x64xbf16>
    %162 = vector.extract_strided_slice %75 {offsets = [0, 0, 48], sizes = [2, 128, 16], strides = [1, 1, 1]} : vector<2x128x64xbf16> to vector<2x128x16xbf16>
    %163 = vector.extract_strided_slice %76 {offsets = [0, 0, 48], sizes = [2, 128, 16], strides = [1, 1, 1]} : vector<2x128x64xbf16> to vector<2x128x16xbf16>
    "tpu.trace_start"() <{level = 10 : i32, message = "bqc,bkc->bqk"}> : () -> ()
    %cst_74 = arith.constant dense<0.000000e+00> : vector<2x128x128xf32>
    %164 = tpu.matmul %162, %163, %cst_74 {dimension_numbers = #tpu.dot_dimension_numbers<[2], [2], [1], [1], [0, 0, 0, 1, 1, 1], [0], [0]>} : vector<2x128x16xbf16>, vector<2x128x16xbf16>, vector<2x128x128xf32> -> vector<2x128x128xf32>
    "tpu.trace_stop"() : () -> ()
    %cst_75 = arith.constant dense<0xFF800000> : vector<2x128xf32>
    %165 = vector.multi_reduction <maximumf>, %164, %cst_75 [2] : vector<2x128x128xf32> to vector<2x128xf32>
    %166 = vector.shape_cast %165 : vector<2x128xf32> to vector<2x128x1xf32>
    %167 = vector.broadcast %166 : vector<2x128x1xf32> to vector<2x128x128xf32>
    %168 = arith.subf %164, %167 : vector<2x128x128xf32>
    %169 = math.exp %168 : vector<2x128x128xf32>
    %cst_76 = arith.constant dense<0.000000e+00> : vector<2x128xf32>
    %170 = vector.multi_reduction <add>, %169, %cst_76 [2] : vector<2x128x128xf32> to vector<2x128xf32>
    %171 = vector.shape_cast %170 : vector<2x128xf32> to vector<2x128x1xf32>
    %172 = tpu.reciprocal %171 {approx = true} : vector<2x128x1xf32> -> vector<2x128x1xf32>
    %173 = vector.broadcast %172 : vector<2x128x1xf32> to vector<2x128x128xf32>
    %174 = arith.mulf %169, %173 : vector<2x128x128xf32>
    %175 = arith.truncf %174 : vector<2x128x128xf32> to vector<2x128x128xbf16>
    "tpu.trace_start"() <{level = 10 : i32, message = "bqk,bkd->bqd"}> : () -> ()
    %cst_77 = arith.constant dense<0.000000e+00> : vector<2x128x64xf32>
    %176 = tpu.matmul %175, %161, %cst_77 {dimension_numbers = #tpu.dot_dimension_numbers<[2], [1], [1], [2], [0, 0, 0, 1, 1, 2], [0], [0]>} : vector<2x128x128xbf16>, vector<2x128x64xbf16>, vector<2x128x64xf32> -> vector<2x128x64xf32>
    "tpu.trace_stop"() : () -> ()
    %177 = arith.addf %152, %176 : vector<2x128x64xf32>
    %178 = vector.shape_cast %177 : vector<2x128x64xf32> to vector<256x64xf32>
    %179 = vector.broadcast %20 : vector<1x64xf32> to vector<256x64xf32>
    %180 = arith.addf %178, %179 : vector<256x64xf32>
    %181 = vector.broadcast %4 : f32 to vector<256x64xf32>
    %182 = arith.mulf %181, %3 : vector<256x64xf32>
    %183 = vector.broadcast %5 : f32 to vector<256x64xf32>
    %184 = arith.mulf %183, %180 : vector<256x64xf32>
    %185 = arith.addf %182, %184 : vector<256x64xf32>
    %cst_78 = arith.constant dense<0.000000e+00> : vector<256xf32>
    %186 = vector.multi_reduction <add>, %185, %cst_78 [1] : vector<256x64xf32> to vector<256xf32>
    %187 = vector.shape_cast %186 : vector<256xf32> to vector<256x1xf32>
    %cst_79 = arith.constant 6.400000e+01 : f32
    %188 = vector.broadcast %cst_79 : f32 to vector<256x1xf32>
    %189 = arith.divf %187, %188 : vector<256x1xf32>
    %190 = vector.broadcast %189 : vector<256x1xf32> to vector<256x64xf32>
    %191 = arith.subf %185, %190 : vector<256x64xf32>
    %192 = arith.mulf %191, %191 : vector<256x64xf32>
    %cst_80 = arith.constant dense<0.000000e+00> : vector<256xf32>
    %193 = vector.multi_reduction <add>, %192, %cst_80 [1] : vector<256x64xf32> to vector<256xf32>
    %194 = vector.shape_cast %193 : vector<256xf32> to vector<256x1xf32>
    %cst_81 = arith.constant 6.400000e+01 : f32
    %195 = vector.broadcast %cst_81 : f32 to vector<256x1xf32>
    %196 = arith.divf %194, %195 : vector<256x1xf32>
    %cst_82 = arith.constant 9.99999974E-6 : f32
    %197 = vector.broadcast %cst_82 : f32 to vector<256x1xf32>
    %198 = arith.addf %196, %197 : vector<256x1xf32>
    %199 = math.rsqrt %198 : vector<256x1xf32>
    %200 = vector.broadcast %199 : vector<256x1xf32> to vector<256x64xf32>
    %201 = arith.mulf %191, %200 : vector<256x64xf32>
    %202 = vector.broadcast %12 : vector<1x64xf32> to vector<256x64xf32>
    %203 = arith.mulf %201, %202 : vector<256x64xf32>
    %204 = vector.broadcast %13 : vector<1x64xf32> to vector<256x64xf32>
    %205 = arith.addf %203, %204 : vector<256x64xf32>
    %206 = arith.truncf %205 : vector<256x64xf32> to vector<256x64xbf16>
    %cst_83 = arith.constant dense<0.000000e+00> : vector<256x256xf32>
    %207 = tpu.matmul %206, %21, %cst_83 {dimension_numbers = #tpu.dot_dimension_numbers<[1], [0], [0], [1], [0, 0, 1, 1], [], []>} : vector<256x64xbf16>, vector<64x256xbf16>, vector<256x256xf32> -> vector<256x256xf32>
    %208 = vector.broadcast %22 : vector<1x256xf32> to vector<256x256xf32>
    %209 = arith.addf %207, %208 : vector<256x256xf32>
    %cst_84 = arith.constant 5.000000e-01 : f32
    %210 = vector.broadcast %cst_84 : f32 to vector<256x256xf32>
    %211 = arith.mulf %210, %209 : vector<256x256xf32>
    %cst_85 = arith.constant 4.471500e-02 : f32
    %212 = vector.broadcast %cst_85 : f32 to vector<256x256xf32>
    %213 = arith.mulf %212, %209 : vector<256x256xf32>
    %214 = arith.mulf %213, %209 : vector<256x256xf32>
    %215 = arith.mulf %214, %209 : vector<256x256xf32>
    %216 = arith.addf %209, %215 : vector<256x256xf32>
    %cst_86 = arith.constant 0.797884583 : f32
    %217 = vector.broadcast %cst_86 : f32 to vector<256x256xf32>
    %218 = arith.mulf %217, %216 : vector<256x256xf32>
    %219 = math.tanh %218 : vector<256x256xf32>
    %cst_87 = arith.constant 1.000000e+00 : f32
    %220 = vector.broadcast %cst_87 : f32 to vector<256x256xf32>
    %221 = arith.addf %220, %219 : vector<256x256xf32>
    %222 = arith.mulf %211, %221 : vector<256x256xf32>
    %223 = arith.truncf %222 : vector<256x256xf32> to vector<256x256xbf16>
    %cst_88 = arith.constant dense<0.000000e+00> : vector<256x64xf32>
    %224 = tpu.matmul %223, %23, %cst_88 {dimension_numbers = #tpu.dot_dimension_numbers<[1], [0], [0], [1], [0, 0, 1, 1], [], []>} : vector<256x256xbf16>, vector<256x64xbf16>, vector<256x64xf32> -> vector<256x64xf32>
    %225 = vector.broadcast %24 : vector<1x64xf32> to vector<256x64xf32>
    %226 = arith.addf %224, %225 : vector<256x64xf32>
    %227 = vector.broadcast %6 : f32 to vector<256x64xf32>
    %228 = arith.mulf %227, %185 : vector<256x64xf32>
    %229 = vector.broadcast %7 : f32 to vector<256x64xf32>
    %230 = arith.mulf %229, %226 : vector<256x64xf32>
    %231 = arith.addf %228, %230 : vector<256x64xf32>
    %232 = vector.shape_cast %231 : vector<256x64xf32> to vector<2x128x64xf32>
    %c0_89 = arith.constant 0 : index
    %c0_90 = arith.constant 0 : index
    %c0_91 = arith.constant 0 : index
    %233 = vector.load %arg21[%c0_89, %c0_90, %c0_91] : memref<2x128x64xf32, #tpu.memory_space<vmem>>, vector<2x128x64xf32>
    tpu.vector_store %arg21[%c0_89, %c0_90, %c0_91], %232 {strides = array<i32>} : memref<2x128x64xf32, #tpu.memory_space<vmem>>, vector<2x128x64xf32>,
    return
  }
  func.func @transform_0(%arg0: i32) -> (i32, i32, i32) {
    %c0_i32 = arith.constant 0 : i32
    %c0_i32_0 = arith.constant 0 : i32
    %c0_i32_1 = arith.constant 0 : i32
    return %arg0, %c0_i32, %c0_i32_0 : i32, i32, i32
  }
  func.func @transform_1(%arg0: i32) -> (i32, i32, i32) {
    %c0_i32 = arith.constant 0 : i32
    %c0_i32_0 = arith.constant 0 : i32
    %c0_i32_1 = arith.constant 0 : i32
    return %arg0, %c0_i32, %c0_i32_0 : i32, i32, i32
  }
  func.func @transform_2(%arg0: i32) -> (i32, i32) {
    %c0_i32 = arith.constant 0 : i32
    %c0_i32_0 = arith.constant 0 : i32
    %c0_i32_1 = arith.constant 0 : i32
    return %c0_i32, %c0_i32_0 : i32, i32
  }
  func.func @transform_3(%arg0: i32) -> (i32, i32) {
    %c0_i32 = arith.constant 0 : i32
    %c0_i32_0 = arith.constant 0 : i32
    %c0_i32_1 = arith.constant 0 : i32
    return %c0_i32, %c0_i32_0 : i32, i32
  }
  func.func @transform_4(%arg0: i32) -> (i32, i32) {
    %c0_i32 = arith.constant 0 : i32
    %c0_i32_0 = arith.constant 0 : i32
    %c0_i32_1 = arith.constant 0 : i32
    return %c0_i32, %c0_i32_0 : i32, i32
  }
  func.func @transform_5(%arg0: i32) -> (i32, i32) {
    %c0_i32 = arith.constant 0 : i32
    %c0_i32_0 = arith.constant 0 : i32
    %c0_i32_1 = arith.constant 0 : i32
    return %c0_i32, %c0_i32_0 : i32, i32
  }
  func.func @transform_6(%arg0: i32) -> (i32, i32) {
    %c0_i32 = arith.constant 0 : i32
    %c0_i32_0 = arith.constant 0 : i32
    %c0_i32_1 = arith.constant 0 : i32
    return %c0_i32, %c0_i32_0 : i32, i32
  }
  func.func @transform_7(%arg0: i32) -> (i32, i32) {
    %c0_i32 = arith.constant 0 : i32
    %c0_i32_0 = arith.constant 0 : i32
    %c0_i32_1 = arith.constant 0 : i32
    return %c0_i32, %c0_i32_0 : i32, i32
  }
  func.func @transform_8(%arg0: i32) -> (i32, i32) {
    %c0_i32 = arith.constant 0 : i32
    %c0_i32_0 = arith.constant 0 : i32
    %c0_i32_1 = arith.constant 0 : i32
    return %c0_i32, %c0_i32_0 : i32, i32
  }
  func.func @transform_9(%arg0: i32) -> (i32, i32) {
    %c0_i32 = arith.constant 0 : i32
    %c0_i32_0 = arith.constant 0 : i32
    %c0_i32_1 = arith.constant 0 : i32
    return %c0_i32, %c0_i32_0 : i32, i32
  }
  func.func @transform_10(%arg0: i32) -> (i32, i32, i32) {
    %c0_i32 = arith.constant 0 : i32
    %c0_i32_0 = arith.constant 0 : i32
    %c0_i32_1 = arith.constant 0 : i32
    %c0_i32_2 = arith.constant 0 : i32
    return %c0_i32, %c0_i32_0, %c0_i32_1 : i32, i32, i32
  }
  func.func @transform_11(%arg0: i32) -> (i32, i32, i32) {
    %c0_i32 = arith.constant 0 : i32
    %c0_i32_0 = arith.constant 0 : i32
    %c0_i32_1 = arith.constant 0 : i32
    %c0_i32_2 = arith.constant 0 : i32
    return %c0_i32, %c0_i32_0, %c0_i32_1 : i32, i32, i32
  }
  func.func @transform_12(%arg0: i32) -> (i32, i32) {
    %c0_i32 = arith.constant 0 : i32
    %c0_i32_0 = arith.constant 0 : i32
    %c0_i32_1 = arith.constant 0 : i32
    return %c0_i32, %c0_i32_0 : i32, i32
  }
  func.func @transform_13(%arg0: i32) -> (i32, i32) {
    %c0_i32 = arith.constant 0 : i32
    %c0_i32_0 = arith.constant 0 : i32
    %c0_i32_1 = arith.constant 0 : i32
    return %c0_i32, %c0_i32_0 : i32, i32
  }
  func.func @transform_14(%arg0: i32) -> (i32, i32) {
    %c0_i32 = arith.constant 0 : i32
    %c0_i32_0 = arith.constant 0 : i32
    %c0_i32_1 = arith.constant 0 : i32
    return %c0_i32, %c0_i32_0 : i32, i32
  }
  func.func @transform_15(%arg0: i32) -> (i32, i32) {
    %c0_i32 = arith.constant 0 : i32
    %c0_i32_0 = arith.constant 0 : i32
    %c0_i32_1 = arith.constant 0 : i32
    return %c0_i32, %c0_i32_0 : i32, i32
  }
  func.func @transform_16(%arg0: i32) -> (i32, i32) {
    %c0_i32 = arith.constant 0 : i32
    %c0_i32_0 = arith.constant 0 : i32
    %c0_i32_1 = arith.constant 0 : i32
    return %c0_i32, %c0_i32_0 : i32, i32
  }
  func.func @transform_17(%arg0: i32) -> (i32, i32) {
    %c0_i32 = arith.constant 0 : i32
    %c0_i32_0 = arith.constant 0 : i32
    %c0_i32_1 = arith.constant 0 : i32
    return %c0_i32, %c0_i32_0 : i32, i32
  }
  func.func @transform_18(%arg0: i32) -> (i32, i32) {
    %c0_i32 = arith.constant 0 : i32
    %c0_i32_0 = arith.constant 0 : i32
    %c0_i32_1 = arith.constant 0 : i32
    return %c0_i32, %c0_i32_0 : i32, i32
  }
  func.func @transform_19(%arg0: i32) -> (i32, i32) {
    %c0_i32 = arith.constant 0 : i32
    %c0_i32_0 = arith.constant 0 : i32
    %c0_i32_1 = arith.constant 0 : i32
    return %c0_i32, %c0_i32_0 : i32, i32
  }
  func.func @transform_20(%arg0: i32) -> (i32, i32, i32) {
    %c0_i32 = arith.constant 0 : i32
    %c0_i32_0 = arith.constant 0 : i32
    %c0_i32_1 = arith.constant 0 : i32
    return %arg0, %c0_i32, %c0_i32_0 : i32, i32, i32
  }
}

</mosaic_0001>

<bundles_post_ra>
// kernel: cross_transformer_block.1
= control target key start
LH: loop header
LB: loop body
LE: loop exit
PB: predicated region body
PF: predicated region fallthrough
CT: control target
= control target key end

     0   :  { %s15504_s0 = inlined_call_operand.vmem [shape: f32[2,128,64], index: 0, kind: input, shape index: {}]   ;;  %s15505_s1 = inlined_call_operand.vmem [shape: f32[2,128,64], index: 1, kind: input, shape index: {}]   ;;  %s15506_s2 = inlined_call_operand.vmem [shape: f32[1,64], index: 2, kind: input, shape index: {}]   ;;  %s15507_s3 = inlined_call_operand.vmem [shape: f32[1,64], index: 3, kind: input, shape index: {}]   ;;  %s15508_s4 = inlined_call_operand.vmem [shape: f32[1,64], index: 4, kind: input, shape index: {}]   ;;  %s15509_s5 = inlined_call_operand.vmem [shape: f32[1,64], index: 5, kind: input, shape index: {}]   ;;  %s15510_s6 = inlined_call_operand.vmem [shape: bf16[64,64], index: 6, kind: input, shape index: {}]   ;;  %s15511_s7 = inlined_call_operand.vmem [shape: f32[1,64], index: 7, kind: input, shape index: {}]   ;;  %s15512_s8 = inlined_call_operand.vmem [shape: bf16[64,64], index: 8, kind: input, shape index: {}]   ;;  %s15513_s9 = inlined_call_operand.vmem [shape: f32[1,64], index: 9, kind: input, shape index: {}]   ;;  %s15514_s10 = inlined_call_operand.vmem [shape: bf16[4,64,64], index: 10, kind: input, shape index: {}]   ;;  %s15515_s11 = inlined_call_operand.vmem [shape: f32[4,1,64], index: 11, kind: input, shape index: {}]   ;;  %s15516_s12 = inlined_call_operand.vmem [shape: f32[1,64], index: 12, kind: input, shape index: {}]   ;;  %s15517_s13 = inlined_call_operand.vmem [shape: f32[1,64], index: 13, kind: input, shape index: {}]   ;;  %s15518_s14 = inlined_call_operand.vmem [shape: f32[1,64], index: 14, kind: input, shape index: {}]   ;;  %s15519_s15 = inlined_call_operand.vmem [shape: bf16[64,256], index: 15, kind: input, shape index: {}]   ;;  %s15520_s16 = inlined_call_operand.vmem [shape: f32[1,256], index: 16, kind: input, shape index: {}]   ;;  %s15521_s17 = inlined_call_operand.vmem [shape: bf16[256,64], index: 17, kind: input, shape index: {}]   ;;  %s15522_s18 = inlined_call_operand.vmem [shape: f32[1,64], index: 18, kind: input, shape index: {}]   ;;  %s15523_s19 = inlined_call_operand.vmem [shape: f32[1,4], index: 19, kind: input, shape index: {}]   ;;  %s15524_s20 = inlined_call_operand.vmem [shape: f32[2,128,64], index: 20, kind: output, shape index: {}]  }
   0x1   :  { %15741 = sst [smem:[#allocation111_spill]] %s15504_s0 }
   0x2   :  { %15742 = sst [smem:[#allocation112_spill]] %s15505_s1 }
   0x3   :  { %15743 = sst [smem:[#allocation113_spill]] %s15506_s2 }
   0x4   :  { %15744 = sst [smem:[#allocation114_spill]] %s15507_s3 }
   0x5   :  { %15745 = sst [smem:[#allocation115_spill]] %s15508_s4 }
   0x6   :  { %25 = vsyncpa [#allocation3], 0  ;;  %s70_s23 = sshll.u32 %s15523_s19, 4  ;;  %s71_s23 = int_to_ptr.vmem [resolvable:$true] %s70_s23 }
   0x7   :  { %s10561_s24 = scalar_lea.vmem %s71_s23, 16  ;;  %p10566_p1 = scmp.lt.s32.totalorder %s71_s23, %s71_s23 }
   0x8   :  { %p10562_p0 = scmp.ne.s32.totalorder %s71_s23, %s10561_s24  ;;  %p10567_p2 = scmp.lt.s32.totalorder %s10561_s24, %s10561_s24 }
   0xa   :  { %p10568_p3 = por %p10567_p2, %p10566_p1 }
   0xc   :  { %p10569_p4 = pnand %p10568_p3, %p10562_p0 }
   0xe   :  { %10572 = shalt.err (!%p10569_p4)
}
   0xf   :  { %s10575_s2 = smov [#allocation2]  }
  0x10   :  { %73 = dma.vmem_to_smem %s71_s23, 16, %s10575_s2, [#allocation3]  }
  0x11   :  { %10573 = dma.done.wait [#allocation3], 16  }
  0x12   :  { %10574 = vsyncadd [#allocation3], 4294967280 }
  0x13   :  { %77 = sfence }
  0x14   :  { %s15746_s26 = sld [smem:[#allocation111_spill]]  ;;  %vm250_vm0 = vcmask 523264   ;;  %s15747_s27 = sld [smem:[#allocation112_spill]]  ;;  %vm1985_vm1 = vcmask 130048  }
  0x15   :  { %s15785_s23 = sld [smem:[#allocation113_spill]]  ;;  %s15786_s25 = sld [smem:[#allocation114_spill]] }
  0x16   :  { %s15788_s4 = sld [smem:[#allocation115_spill]]  ;;  %s10577_s19 = smov 96  }
  0x17   :  { %s10578_s1 = smov 80   ;;  %s7989_s29 = sld [smem:[#allocation2 + $0x1]] }
  0x1a   :  { %v10691_v0 = vld [vmem:[%s15746_s26 + $0xc0] sm:$0xff]  ;;  %v10696_v1 = vld [vmem:[%s15746_s26 + $0xd0] sm:$0xff]  ;;  %v10701_v2 = vld [vmem:[%s15746_s26 + $0xc8] sm:$0xff] }
  0x1b   :  { %v323_v3 = vsel %vm250_vm0, %v10691_v0, 0.0  ;;  %v329_v4 = vsel %vm250_vm0, %v10696_v1, 0.0  ;;  %v10710_v5 = vld [vmem:[%s15746_s26 + $0xd8] sm:$0xff]  ;;  %v326_v6 = vsel %vm250_vm0, %v10701_v2, 0.0  ;;  %v10719_v8 = vld [vmem:[%s15746_s26 + $0xe0] sm:$0xff]  ;;  %v10724_v9 = vld [vmem:[%s15746_s26 + $0xe8] sm:$0xff] }
  0x1c   :  { %324 = vadd.xlane.f32.xlu0 %v323_v3  ;;  %330 = vadd.xlane.f32.xlu1 %v329_v4  ;;  %v332_v7 = vsel %vm250_vm0, %v10710_v5, 0.0  ;;  %v335_v10 = vsel %vm250_vm0, %v10719_v8, 0.0  ;;  %v338_v11 = vsel %vm250_vm0, %v10724_v9, 0.0  ;;  %v10733_v12 = vld [vmem:[%s15746_s26 + $0xf0] sm:$0xff]  ;;  %v10738_v13 = vld [vmem:[%s15746_s26 + $0xf8] sm:$0xff]  ;;  %v10747_v16 = vld [vmem:[%s15747_s27] sm:$0xff] }
  0x1d   :  { %v341_v14 = vsel %vm250_vm0, %v10733_v12, 0.0  ;;  %v344_v15 = vsel %vm250_vm0, %v10738_v13, 0.0  ;;  %v10752_v17 = vld [vmem:[%s15747_s27 + $0x8] sm:$0xff]  ;;  %v760_v18 = vsel %vm250_vm0, %v10747_v16, 0.0  ;;  %v10761_v20 = vld [vmem:[%s15747_s27 + $0x10] sm:$0xff]  ;;  %v10766_v21 = vld [vmem:[%s15747_s27 + $0x18] sm:$0xff] }
  0x1e   :  { %v763_v19 = vsel %vm250_vm0, %v10752_v17, 0.0  ;;  %v10771_v22 = vld [vmem:[%s15747_s27 + $0x20] sm:$0xff]  ;;  %v10776_v23 = vld [vmem:[%s15747_s27 + $0x28] sm:$0xff]  ;;  %v10781_v24 = vld [vmem:[%s15747_s27 + $0x30] sm:$0xff]  ;;  %v766_v25 = vsel %vm250_vm0, %v10761_v20, 0.0  ;;  %v769_v26 = vsel %vm250_vm0, %v10766_v21, 0.0 }
  0x1f   :  { %v10790_v27 = vld [vmem:[%s15747_s27 + $0x38] sm:$0xff]  ;;  %v10795_v28 = vld [vmem:[%s15747_s27 + $0x40] sm:$0xff]  ;;  %v10800_v29 = vld [vmem:[%s15747_s27 + $0x48] sm:$0xff]  ;;  %v772_v32 = vsel %vm250_vm0, %v10771_v22, 0.0  ;;  %v775_v33 = vsel %vm250_vm0, %v10776_v23, 0.0  ;;  %v778_v34 = vsel %vm250_vm0, %v10781_v24, 0.0 }
  0x20   :  { %327 = vadd.xlane.f32.xlu0 %v326_v6  ;;  %333 = vadd.xlane.f32.xlu1 %v332_v7  ;;  %v10805_v30 = vld [vmem:[%s15747_s27 + $0x50] sm:$0xff]  ;;  %v10810_v31 = vld [vmem:[%s15747_s27 + $0x58] sm:$0xff]  ;;  %v781_v35 = vsel %vm250_vm0, %v10790_v27, 0.0  ;;  %v784_v36 = vsel %vm250_vm0, %v10795_v28, 0.0  ;;  %v787_v37 = vsel %vm250_vm0, %v10800_v29, 0.0  ;;  %v10831_v40 = vld [vmem:[%s15747_s27 + $0x60] sm:$0xff] }
  0x21   :  { %v790_v38 = vsel %vm250_vm0, %v10805_v30, 0.0  ;;  %v793_v39 = vsel %vm250_vm0, %v10810_v31, 0.0  ;;  %v10836_v41 = vld [vmem:[%s15747_s27 + $0x68] sm:$0xff]  ;;  %v10841_v42 = vld [vmem:[%s15747_s27 + $0x70] sm:$0xff]  ;;  %v10846_v43 = vld [vmem:[%s15747_s27 + $0x78] sm:$0xff]  ;;  %v796_v46 = vsel %vm250_vm0, %v10831_v40, 0.0 }
  0x22   :  { %v10851_v44 = vld [vmem:[%s15747_s27 + $0x80] sm:$0xff]  ;;  %v10856_v45 = vld [vmem:[%s15747_s27 + $0x88] sm:$0xff]  ;;  %v799_v47 = vsel %vm250_vm0, %v10836_v41, 0.0  ;;  %v802_v48 = vsel %vm250_vm0, %v10841_v42, 0.0  ;;  %v805_v49 = vsel %vm250_vm0, %v10846_v43, 0.0  ;;  %v10873_v52 = vld [vmem:[%s15747_s27 + $0x90] sm:$0xff] }
  0x23   :  { %v808_v50 = vsel %vm250_vm0, %v10851_v44, 0.0  ;;  %v811_v51 = vsel %vm250_vm0, %v10856_v45, 0.0  ;;  %v10878_v53 = vld [vmem:[%s15747_s27 + $0x98] sm:$0xff]  ;;  %v814_v54 = vsel %vm250_vm0, %v10873_v52, 0.0  ;;  %v10887_v56 = vld [vmem:[%s15747_s27 + $0xa0] sm:$0xff]  ;;  %v10892_v57 = vld [vmem:[%s15747_s27 + $0xa8] sm:$0xff] }
  0x24   :  { %336 = vadd.xlane.f32.xlu0 %v335_v10  ;;  %339 = vadd.xlane.f32.xlu1 %v338_v11  ;;  %v817_v55 = vsel %vm250_vm0, %v10878_v53, 0.0  ;;  %v820_v58 = vsel %vm250_vm0, %v10887_v56, 0.0  ;;  %v823_v59 = vsel %vm250_vm0, %v10892_v57, 0.0  ;;  %v10901_v60 = vld [vmem:[%s15747_s27 + $0xb0] sm:$0xff]  ;;  %v10906_v61 = vld [vmem:[%s15747_s27 + $0xb8] sm:$0xff]  ;;  %v10915_v3 = vld [vmem:[%s15746_s26] sm:$0xff] }
  0x25   :  { %v826_v62 = vsel %vm250_vm0, %v10901_v60, 0.0  ;;  %v829_v63 = vsel %vm250_vm0, %v10906_v61, 0.0  ;;  %v10920_v4 = vld [vmem:[%s15746_s26 + $0x8] sm:$0xff]  ;;  %v251_v6 = vsel %vm250_vm0, %v10915_v3, 0.0  ;;  %v10929_v10 = vld [vmem:[%s15747_s27 + $0xc0] sm:$0xff] }
  0x26   :  { %v254_v7 = vsel %vm250_vm0, %v10920_v4, 0.0  ;;  %v10934_v11 = vld [vmem:[%s15747_s27 + $0xc8] sm:$0xff] }
  0x28   :  { %342 = vadd.xlane.f32.xlu0 %v341_v14  ;;  %345 = vadd.xlane.f32.xlu1 %v344_v15  ;;  %v832_v14 = vsel %vm250_vm0, %v10929_v10, 0.0  ;;  %v835_v15 = vsel %vm250_vm0, %v10934_v11, 0.0 }
  0x2c   :  { %761 = vadd.xlane.f32.xlu0 %v760_v18  ;;  %764 = vadd.xlane.f32.xlu1 %v763_v19  ;;  %v10943_v18 = vld [vmem:[%s15746_s26 + $0x10] sm:$0xff]  ;;  %v10948_v19 = vld [vmem:[%s15746_s26 + $0x18] sm:$0xff] }
  0x30   :  { %767 = vadd.xlane.f32.xlu0 %v766_v25  ;;  %770 = vadd.xlane.f32.xlu1 %v769_v26  ;;  %v257_v25 = vsel %vm250_vm0, %v10943_v18, 0.0  ;;  %v260_v26 = vsel %vm250_vm0, %v10948_v19, 0.0 }
  0x34   :  { %773 = vadd.xlane.f32.xlu0 %v772_v32  ;;  %776 = vadd.xlane.f32.xlu1 %v775_v33  ;;  %v10957_v32 = vld [vmem:[%s15747_s27 + $0xd0] sm:$0xff]  ;;  %v10962_v33 = vld [vmem:[%s15747_s27 + $0xd8] sm:$0xff] }
  0x38   :  { %779 = vadd.xlane.f32.xlu0 %v778_v34  ;;  %782 = vadd.xlane.f32.xlu1 %v781_v35  ;;  %v838_v34 = vsel %vm250_vm0, %v10957_v32, 0.0  ;;  %v841_v35 = vsel %vm250_vm0, %v10962_v33, 0.0 }
  0x3c   :  { %785 = vadd.xlane.f32.xlu0 %v784_v36  ;;  %788 = vadd.xlane.f32.xlu1 %v787_v37  ;;  %v10971_v36 = vld [vmem:[%s15746_s26 + $0x20] sm:$0xff]  ;;  %v10976_v37 = vld [vmem:[%s15746_s26 + $0x28] sm:$0xff] }
  0x40   :  { %791 = vadd.xlane.f32.xlu0 %v790_v38  ;;  %794 = vadd.xlane.f32.xlu1 %v793_v39  ;;  %v263_v38 = vsel %vm250_vm0, %v10971_v36, 0.0  ;;  %v266_v39 = vsel %vm250_vm0, %v10976_v37, 0.0 }
  0x44   :  { %797 = vadd.xlane.f32.xlu0 %v796_v46  ;;  %800 = vadd.xlane.f32.xlu1 %v799_v47  ;;  %v10985_v46 = vld [vmem:[%s15746_s26 + $0x30] sm:$0xff]  ;;  %v10990_v47 = vld [vmem:[%s15746_s26 + $0x38] sm:$0xff] }
  0x48   :  { %803 = vadd.xlane.f32.xlu0 %v802_v48  ;;  %806 = vadd.xlane.f32.xlu1 %v805_v49  ;;  %v269_v48 = vsel %vm250_vm0, %v10985_v46, 0.0  ;;  %v272_v49 = vsel %vm250_vm0, %v10990_v47, 0.0 }
  0x4c   :  { %809 = vadd.xlane.f32.xlu0 %v808_v50  ;;  %812 = vadd.xlane.f32.xlu1 %v811_v51  ;;  %v10999_v50 = vld [vmem:[%s15746_s26 + $0x40] sm:$0xff]  ;;  %v11004_v51 = vld [vmem:[%s15746_s26 + $0x48] sm:$0xff] }
  0x50   :  { %815 = vadd.xlane.f32.xlu0 %v814_v54  ;;  %818 = vadd.xlane.f32.xlu1 %v817_v55  ;;  %v275_v54 = vsel %vm250_vm0, %v10999_v50, 0.0  ;;  %v278_v55 = vsel %vm250_vm0, %v11004_v51, 0.0 }
  0x54   :  { %821 = vadd.xlane.f32.xlu0 %v820_v58  ;;  %824 = vadd.xlane.f32.xlu1 %v823_v59  ;;  %v11013_v58 = vld [vmem:[%s15747_s27 + $0xe0] sm:$0xff]  ;;  %v11018_v59 = vld [vmem:[%s15747_s27 + $0xe8] sm:$0xff] }
  0x58   :  { %827 = vadd.xlane.f32.xlu0 %v826_v62  ;;  %830 = vadd.xlane.f32.xlu1 %v829_v63  ;;  %v844_v62 = vsel %vm250_vm0, %v11013_v58, 0.0  ;;  %v847_v63 = vsel %vm250_vm0, %v11018_v59, 0.0 }
  0x5c   :  { %252 = vadd.xlane.f32.xlu0 %v251_v6  ;;  %255 = vadd.xlane.f32.xlu1 %v254_v7  ;;  %v11027_v6 = vld [vmem:[%s15746_s26 + $0x50] sm:$0xff]  ;;  %v11032_v7 = vld [vmem:[%s15746_s26 + $0x58] sm:$0xff] }
  0x60   :  { %833 = vadd.xlane.f32.xlu0 %v832_v14  ;;  %836 = vadd.xlane.f32.xlu1 %v835_v15  ;;  %v281_v14 = vsel %vm250_vm0, %v11027_v6, 0.0  ;;  %v284_v15 = vsel %vm250_vm0, %v11032_v7, 0.0 }
  0x64   :  { %258 = vadd.xlane.f32.xlu0 %v257_v25  ;;  %261 = vadd.xlane.f32.xlu1 %v260_v26  ;;  %v11041_v25 = vld [vmem:[%s15747_s27 + $0xf0] sm:$0xff]  ;;  %v11046_v26 = vld [vmem:[%s15747_s27 + $0xf8] sm:$0xff] }
  0x65   :  { %15748 = vst [vmem:[#allocation5_spill] sm:$0xff] %v11041_v25  ;;  %15749 = vst [vmem:[#allocation6_spill] sm:$0xff] %v11046_v26 }
  0x68   :  { %839 = vadd.xlane.f32.xlu0 %v838_v34  ;;  %842 = vadd.xlane.f32.xlu1 %v841_v35  ;;  %v850_v34 = vsel %vm250_vm0, %v11041_v25, 0.0  ;;  %v853_v35 = vsel %vm250_vm0, %v11046_v26, 0.0 }
  0x6c   :  { %264 = vadd.xlane.f32.xlu0 %v263_v38  ;;  %267 = vadd.xlane.f32.xlu1 %v266_v39  ;;  %v11055_v38 = vld [vmem:[%s15746_s26 + $0x60] sm:$0xff]  ;;  %v11060_v39 = vld [vmem:[%s15746_s26 + $0x68] sm:$0xff] }
  0x6d   :  { %15750 = vst [vmem:[#allocation7_spill] sm:$0xff] %v11055_v38  ;;  %15751 = vst [vmem:[#allocation8_spill] sm:$0xff] %v11060_v39 }
  0x70   :  { %270 = vadd.xlane.f32.xlu0 %v269_v48  ;;  %273 = vadd.xlane.f32.xlu1 %v272_v49  ;;  %v287_v48 = vsel %vm250_vm0, %v11055_v38, 0.0  ;;  %v290_v49 = vsel %vm250_vm0, %v11060_v39, 0.0 }
  0x74   :  { %276 = vadd.xlane.f32.xlu0 %v275_v54  ;;  %279 = vadd.xlane.f32.xlu1 %v278_v55  ;;  %v11069_v54 = vld [vmem:[%s15746_s26 + $0x70] sm:$0xff]  ;;  %v11074_v55 = vld [vmem:[%s15746_s26 + $0x78] sm:$0xff] }
  0x75   :  { %15752 = vst [vmem:[#allocation9_spill] sm:$0xff] %v11069_v54  ;;  %15753 = vst [vmem:[#allocation10_spill] sm:$0xff] %v11074_v55 }
  0x78   :  { %845 = vadd.xlane.f32.xlu0 %v844_v62  ;;  %848 = vadd.xlane.f32.xlu1 %v847_v63  ;;  %v293_v62 = vsel %vm250_vm0, %v11069_v54, 0.0  ;;  %v296_v63 = vsel %vm250_vm0, %v11074_v55, 0.0 }
  0x7c   :  { %282 = vadd.xlane.f32.xlu0 %v281_v14  ;;  %285 = vadd.xlane.f32.xlu1 %v284_v15  ;;  %v11083_v14 = vld [vmem:[%s15746_s26 + $0x80] sm:$0xff]  ;;  %v11088_v15 = vld [vmem:[%s15746_s26 + $0x88] sm:$0xff] }
  0x7d   :  { %15754 = vst [vmem:[#allocation11_spill] sm:$0xff] %v11083_v14 }
  0x80   :  { %851 = vadd.xlane.f32.xlu0 %v850_v34  ;;  %854 = vadd.xlane.f32.xlu1 %v853_v35  ;;  %v299_v34 = vsel %vm250_vm0, %v11083_v14, 0.0  ;;  %v302_v35 = vsel %vm250_vm0, %v11088_v15, 0.0 }
  0x84   :  { %288 = vadd.xlane.f32.xlu0 %v287_v48  ;;  %291 = vadd.xlane.f32.xlu1 %v290_v49 }
  0x88   :  { %294 = vadd.xlane.f32.xlu0 %v293_v62  ;;  %297 = vadd.xlane.f32.xlu1 %v296_v63 }
  0x8c   :  { %300 = vadd.xlane.f32.xlu0 %v299_v34  ;;  %303 = vadd.xlane.f32.xlu1 %v302_v35 }
  0xa9   :  { %v325_v48 = vpop.xlane.xlu0 %324  ;;  %v331_v49 = vpop.xlane.xlu1 %330 }
  0xaa   :  { %v372_v55 = vmul.f32 0.015625, %v325_v48  ;;  %v374_v54 = vmul.f32 0.015625, %v331_v49 }
  0xac   :  { %v11095_v39 = vsub.f32 %v10691_v0, %v372_v55  ;;  %v11098_v38 = vsub.f32 %v10696_v1, %v374_v54 }
  0xad   :  { %v328_v62 = vpop.xlane.xlu0 %327  ;;  %v334_v63 = vpop.xlane.xlu1 %333 }
  0xae   :  { %15755 = vst [vmem:[#allocation12_spill] sm:$0xff] %v11098_v38  ;;  %v373_v26 = vmul.f32 0.015625, %v328_v62  ;;  %v375_v25 = vmul.f32 0.015625, %v334_v63  ;;  %v436_v14 = vmul.f32 %v11095_v39, %v11095_v39  ;;  %v438_v34 = vmul.f32 %v11098_v38, %v11098_v38 }
  0xb0   :  { %v11105_v35 = vsub.f32 %v10701_v2, %v373_v26  ;;  %v11108_v48 = vsub.f32 %v10710_v5, %v375_v25  ;;  %v516_v0 = vsel %vm250_vm0, %v436_v14, 0.0  ;;  %v522_v55 = vsel %vm250_vm0, %v438_v34, 0.0 }
  0xb1   :  { %v337_v1 = vpop.xlane.xlu0 %336  ;;  %517 = vadd.xlane.f32.xlu0 %v516_v0  ;;  %v340_v54 = vpop.xlane.xlu1 %339 }
  0xb2   :  { %v376_v49 = vmul.f32 0.015625, %v337_v1  ;;  %v377_v62 = vmul.f32 0.015625, %v340_v54  ;;  %v437_v63 = vmul.f32 %v11105_v35, %v11105_v35  ;;  %v439_v38 = vmul.f32 %v11108_v48, %v11108_v48 }
  0xb4   :  { %v11117_v2 = vsub.f32 %v10719_v8, %v376_v49  ;;  %v11120_v5 = vsub.f32 %v10724_v9, %v377_v62  ;;  %v519_v25 = vsel %vm250_vm0, %v437_v63, 0.0  ;;  %v525_v34 = vsel %vm250_vm0, %v439_v38, 0.0 }
  0xb5   :  { %v343_v26 = vpop.xlane.xlu0 %342  ;;  %520 = vadd.xlane.f32.xlu1 %v519_v25  ;;  %523 = vadd.xlane.f32.xlu0 %v522_v55  ;;  %v346_v14 = vpop.xlane.xlu1 %345 }
  0xb6   :  { %v378_v0 = vmul.f32 0.015625, %v343_v26  ;;  %v379_v1 = vmul.f32 0.015625, %v346_v14  ;;  %v440_v54 = vmul.f32 %v11117_v2, %v11117_v2  ;;  %v441_v8 = vmul.f32 %v11120_v5, %v11120_v5 }
  0xb8   :  { %v11129_v49 = vsub.f32 %v10733_v12, %v378_v0  ;;  %v11132_v9 = vsub.f32 %v10738_v13, %v379_v1  ;;  %v528_v62 = vsel %vm250_vm0, %v440_v54, 0.0  ;;  %v531_v63 = vsel %vm250_vm0, %v441_v8, 0.0 }
  0xb9   :  { %v762_v55 = vpop.xlane.xlu0 %761  ;;  %526 = vadd.xlane.f32.xlu1 %v525_v34  ;;  %529 = vadd.xlane.f32.xlu0 %v528_v62  ;;  %v765_v38 = vpop.xlane.xlu1 %764 }
  0xba   :  { %v856_v25 = vmul.f32 0.015625, %v762_v55  ;;  %v857_v26 = vmul.f32 0.015625, %v765_v38  ;;  %v442_v14 = vmul.f32 %v11129_v49, %v11129_v49  ;;  %v443_v12 = vmul.f32 %v11132_v9, %v11132_v9 }
  0xbc   :  { %v11141_v0 = vsub.f32 %v10747_v16, %v856_v25  ;;  %v11144_v13 = vsub.f32 %v10752_v17, %v857_v26  ;;  %v534_v34 = vsel %vm250_vm0, %v442_v14, 0.0  ;;  %v537_v8 = vsel %vm250_vm0, %v443_v12, 0.0 }
  0xbd   :  { %v768_v1 = vpop.xlane.xlu0 %767  ;;  %532 = vadd.xlane.f32.xlu1 %v531_v63  ;;  %535 = vadd.xlane.f32.xlu0 %v534_v34  ;;  %v771_v54 = vpop.xlane.xlu1 %770 }
  0xbe   :  { %v858_v62 = vmul.f32 0.015625, %v768_v1  ;;  %v859_v55 = vmul.f32 0.015625, %v771_v54  ;;  %v920_v38 = vmul.f32 %v11141_v0, %v11141_v0  ;;  %v921_v16 = vmul.f32 %v11144_v13, %v11144_v13 }
  0xc0   :  { %v11153_v25 = vsub.f32 %v10761_v20, %v858_v62  ;;  %v11156_v17 = vsub.f32 %v10766_v21, %v859_v55  ;;  %v952_v63 = vsel %vm250_vm0, %v920_v38, 0.0  ;;  %v955_v12 = vsel %vm250_vm0, %v921_v16, 0.0 }
  0xc1   :  { %v774_v26 = vpop.xlane.xlu0 %773  ;;  %538 = vadd.xlane.f32.xlu1 %v537_v8  ;;  %953 = vadd.xlane.f32.xlu0 %v952_v63  ;;  %v777_v14 = vpop.xlane.xlu1 %776 }
  0xc2   :  { %v860_v34 = vmul.f32 0.015625, %v774_v26  ;;  %v861_v1 = vmul.f32 0.015625, %v777_v14  ;;  %v922_v54 = vmul.f32 %v11153_v25, %v11153_v25  ;;  %v923_v20 = vmul.f32 %v11156_v17, %v11156_v17 }
  0xc4   :  { %v11165_v62 = vsub.f32 %v10771_v22, %v860_v34  ;;  %v11168_v21 = vsub.f32 %v10776_v23, %v861_v1  ;;  %v958_v8 = vsel %vm250_vm0, %v922_v54, 0.0  ;;  %v961_v16 = vsel %vm250_vm0, %v923_v20, 0.0 }
  0xc5   :  { %v780_v55 = vpop.xlane.xlu0 %779  ;;  %956 = vadd.xlane.f32.xlu1 %v955_v12  ;;  %959 = vadd.xlane.f32.xlu0 %v958_v8  ;;  %v783_v38 = vpop.xlane.xlu1 %782 }
  0xc6   :  { %v862_v63 = vmul.f32 0.015625, %v780_v55  ;;  %v863_v26 = vmul.f32 0.015625, %v783_v38  ;;  %v924_v14 = vmul.f32 %v11165_v62, %v11165_v62  ;;  %v925_v22 = vmul.f32 %v11168_v21, %v11168_v21 }
  0xc8   :  { %v11177_v34 = vsub.f32 %v10781_v24, %v862_v63  ;;  %v11180_v23 = vsub.f32 %v10790_v27, %v863_v26  ;;  %v964_v12 = vsel %vm250_vm0, %v924_v14, 0.0  ;;  %v967_v20 = vsel %vm250_vm0, %v925_v22, 0.0 }
  0xc9   :  { %v786_v1 = vpop.xlane.xlu0 %785  ;;  %962 = vadd.xlane.f32.xlu1 %v961_v16  ;;  %965 = vadd.xlane.f32.xlu0 %v964_v12  ;;  %v789_v54 = vpop.xlane.xlu1 %788  ;;  %v9643_v12 = vld [vmem:[%s15510_s6] sm:$0xff]  }
  0xca   :  { %v864_v8 = vmul.f32 0.015625, %v786_v1  ;;  %v865_v55 = vmul.f32 0.015625, %v789_v54  ;;  %v926_v38 = vmul.f32 %v11177_v34, %v11177_v34  ;;  %v927_v24 = vmul.f32 %v11180_v23, %v11180_v23  ;;  %9470 = vmatprep.subr.bf16.mxu1 %v9643_v12  ;;  %8718 = vmatprep.subr.bf16.mxu0 %v9643_v12 }
  0xcb   :  { %9474 = vmatpush3.bf16.msra.mxu1 %v9643_v12  ;;  %8719 = vmatpush3.bf16.msra.mxu0 %v9643_v12 }
  0xcc   :  { %v11189_v63 = vsub.f32 %v10795_v28, %v864_v8  ;;  %v11192_v27 = vsub.f32 %v10800_v29, %v865_v55  ;;  %v970_v16 = vsel %vm250_vm0, %v926_v38, 0.0  ;;  %v973_v22 = vsel %vm250_vm0, %v927_v24, 0.0 }
  0xcd   :  { %v792_v26 = vpop.xlane.xlu0 %791  ;;  %968 = vadd.xlane.f32.xlu1 %v967_v20  ;;  %971 = vadd.xlane.f32.xlu0 %v970_v16  ;;  %v795_v14 = vpop.xlane.xlu1 %794 }
  0xce   :  { %v866_v1 = vmul.f32 0.015625, %v792_v26  ;;  %v867_v54 = vmul.f32 0.015625, %v795_v14  ;;  %v928_v28 = vmul.f32 %v11189_v63, %v11189_v63  ;;  %v929_v29 = vmul.f32 %v11192_v27, %v11192_v27  ;;  %v9644_v26 = vld [vmem:[%s15510_s6 + $0x8] sm:$0xff]  }
  0xcf   :  { %9471 = vmatprep.subr.bf16.mxu1 %v9644_v26  ;;  %8720 = vmatprep.subr.bf16.mxu0 %v9644_v26 }
  0xd0   :  { %v11204_v20 = vsub.f32 %v10805_v30, %v866_v1  ;;  %v11207_v8 = vsub.f32 %v10810_v31, %v867_v54  ;;  %v976_v55 = vsel %vm250_vm0, %v928_v28, 0.0  ;;  %v979_v24 = vsel %vm250_vm0, %v929_v29, 0.0  ;;  %9475 = vmatpush3.bf16.msra.mxu1 %v9644_v26  ;;  %8721 = vmatpush3.bf16.msra.mxu0 %v9644_v26 }
  0xd1   :  { %974 = vadd.xlane.f32.xlu1 %v973_v22  ;;  %977 = vadd.xlane.f32.xlu0 %v976_v55  ;;  %v798_v38 = vpop.xlane.xlu0 %797  ;;  %v801_v16 = vpop.xlane.xlu1 %800  ;;  %v11221_v22 = vld [vmem:[%s15746_s26 + $0x90] sm:$0xff] }
  0xd2   :  { %v868_v14 = vmul.f32 0.015625, %v798_v38  ;;  %v930_v30 = vmul.f32 %v11204_v20, %v11204_v20  ;;  %v869_v31 = vmul.f32 0.015625, %v801_v16  ;;  %v931_v1 = vmul.f32 %v11207_v8, %v11207_v8  ;;  %v9645_v16 = vld [vmem:[%s15510_s6 + $0x10] sm:$0xff]  }
  0xd3   :  { %v305_v55 = vsel %vm250_vm0, %v11221_v22, 0.0  ;;  %9472 = vmatprep.subr.bf16.mxu1 %v9645_v16  ;;  %8722 = vmatprep.subr.bf16.mxu0 %v9645_v16 }
  0xd4   :  { %v11224_v12 = vsub.f32 %v10831_v40, %v868_v14  ;;  %v982_v54 = vsel %vm250_vm0, %v930_v30, 0.0  ;;  %v11228_v28 = vsub.f32 %v10836_v41, %v869_v31  ;;  %v985_v14 = vsel %vm250_vm0, %v931_v1, 0.0  ;;  %9476 = vmatpush3.bf16.msra.mxu1 %v9645_v16  ;;  %8723 = vmatpush3.bf16.msra.mxu0 %v9645_v16 }
  0xd5   :  { %980 = vadd.xlane.f32.xlu1 %v979_v24  ;;  %983 = vadd.xlane.f32.xlu0 %v982_v54  ;;  %v804_v29 = vpop.xlane.xlu0 %803  ;;  %v807_v38 = vpop.xlane.xlu1 %806  ;;  %v11239_v24 = vld [vmem:[%s15746_s26 + $0x98] sm:$0xff] }
  0xd6   :  { %15756 = vst [vmem:[#allocation13_spill] sm:$0xff] %v11228_v28  ;;  %v870_v40 = vmul.f32 0.015625, %v804_v29  ;;  %v871_v30 = vmul.f32 0.015625, %v807_v38  ;;  %v932_v41 = vmul.f32 %v11224_v12, %v11224_v12  ;;  %v308_v54 = vsel %vm250_vm0, %v11239_v24, 0.0 }
  0xd7   :  { %v933_v38 = vmul.f32 %v11228_v28, %v11228_v28 }
  0xd8   :  { %v11244_v26 = vsub.f32 %v10841_v42, %v870_v40  ;;  %v11247_v31 = vsub.f32 %v10846_v43, %v871_v30  ;;  %v9646_v42 = vld [vmem:[%s15510_s6 + $0x18] sm:$0xff]   ;;  %v988_v16 = vsel %vm250_vm0, %v932_v41, 0.0 }
  0xd9   :  { %986 = vadd.xlane.f32.xlu1 %v985_v14  ;;  %306 = vadd.xlane.f32.xlu0 %v305_v55  ;;  %v810_v1 = vpop.xlane.xlu0 %809  ;;  %v813_v29 = vpop.xlane.xlu1 %812 }
  0xda   :  { %15757 = vst [vmem:[#allocation14_spill] sm:$0xff] %v11244_v26  ;;  %15758 = vst [vmem:[#allocation15_spill] sm:$0xff] %v11247_v31  ;;  %v872_v40 = vmul.f32 0.015625, %v810_v1  ;;  %v873_v14 = vmul.f32 0.015625, %v813_v29  ;;  %v934_v43 = vmul.f32 %v11244_v26, %v11244_v26  ;;  %9473 = vmatprep.subr.bf16.mxu1 %v9646_v42  ;;  %8724 = vmatprep.subr.bf16.mxu0 %v9646_v42  ;;  %v991_v1 = vsel %vm250_vm0, %v933_v38, 0.0  ;;  %v11271_v26 = vld [vmem:[%s15512_s8] sm:$0xff]  }
  0xdb   :  { %9477 = vmatpush3.bf16.msra.mxu1 %v9646_v42  ;;  %8725 = vmatpush3.bf16.msra.mxu0 %v9646_v42  ;;  %v935_v29 = vmul.f32 %v11247_v31, %v11247_v31 }
  0xdc   :  { %v11260_v55 = vsub.f32 %v10851_v44, %v872_v40  ;;  %v11263_v30 = vsub.f32 %v10856_v45, %v873_v14  ;;  %v994_v42 = vsel %vm250_vm0, %v934_v43, 0.0  ;;  %8758 = vmatprep.subr.bf16.mxu1 %v11271_v26 }
  0xdd   :  { %309 = vadd.xlane.f32.xlu1 %v308_v54  ;;  %989 = vadd.xlane.f32.xlu0 %v988_v16  ;;  %v816_v28 = vpop.xlane.xlu0 %815  ;;  %v819_v41 = vpop.xlane.xlu1 %818  ;;  %v997_v40 = vsel %vm250_vm0, %v935_v29, 0.0 }
  0xde   :  { %15759 = vst [vmem:[#allocation16_spill] sm:$0xff] %v11260_v55  ;;  %15760 = vst [vmem:[#allocation17_spill] sm:$0xff] %v11263_v30  ;;  %v874_v44 = vmul.f32 0.015625, %v816_v28  ;;  %v875_v54 = vmul.f32 0.015625, %v819_v41  ;;  %v936_v45 = vmul.f32 %v11260_v55, %v11260_v55  ;;  %v937_v43 = vmul.f32 %v11263_v30, %v11263_v30 }
  0xe0   :  { %v11278_v38 = vsub.f32 %v10873_v52, %v874_v44  ;;  %v11282_v31 = vsub.f32 %v10878_v53, %v875_v54  ;;  %v1000_v28 = vsel %vm250_vm0, %v936_v45, 0.0  ;;  %v1003_v44 = vsel %vm250_vm0, %v937_v43, 0.0  ;;  %v11296_v54 = vld [vmem:[%s15746_s26 + $0xa0] sm:$0xff] }
  0xe1   :  { %992 = vadd.xlane.f32.xlu1 %v991_v1  ;;  %995 = vadd.xlane.f32.xlu0 %v994_v42  ;;  %v822_v16 = vpop.xlane.xlu0 %821  ;;  %v825_v14 = vpop.xlane.xlu1 %824  ;;  %15763 = vst [vmem:[#allocation20_spill] sm:$0xff] %v11296_v54 }
  0xe2   :  { %15761 = vst [vmem:[#allocation18_spill] sm:$0xff] %v11278_v38  ;;  %15762 = vst [vmem:[#allocation19_spill] sm:$0xff] %v11282_v31  ;;  %v938_v41 = vmul.f32 %v11278_v38, %v11278_v38  ;;  %v876_v42 = vmul.f32 0.015625, %v822_v16  ;;  %v939_v53 = vmul.f32 %v11282_v31, %v11282_v31  ;;  %v877_v45 = vmul.f32 0.015625, %v825_v14  ;;  %v11307_v31 = vld [vmem:[%s15746_s26 + $0xa8] sm:$0xff]  ;;  %v11312_v14 = vld [vmem:[%s15746_s26 + $0xb0] sm:$0xff] }
  0xe3   :  { %v311_v16 = vsel %vm250_vm0, %v11296_v54, 0.0  ;;  %15764 = vst [vmem:[#allocation21_spill] sm:$0xff] %v11307_v31  ;;  %15765 = vst [vmem:[#allocation22_spill] sm:$0xff] %v11312_v14  ;;  %v317_v30 = vsel %vm250_vm0, %v11312_v14, 0.0 }
  0xe4   :  { %v1006_v29 = vsel %vm250_vm0, %v938_v41, 0.0  ;;  %v11299_v38 = vsub.f32 %v10887_v56, %v876_v42  ;;  %v1009_v43 = vsel %vm250_vm0, %v939_v53, 0.0  ;;  %v11315_v56 = vsub.f32 %v10892_v57, %v877_v45 }
  0xe5   :  { %998 = vadd.xlane.f32.xlu1 %v997_v40  ;;  %1001 = vadd.xlane.f32.xlu0 %v1000_v28  ;;  %v828_v52 = vpop.xlane.xlu0 %827  ;;  %v831_v1 = vpop.xlane.xlu1 %830 }
  0xe6   :  { %v878_v41 = vmul.f32 0.015625, %v828_v52  ;;  %15766 = vst [vmem:[#allocation23_spill] sm:$0xff] %v11315_v56  ;;  %v940_v57 = vmul.f32 %v11299_v38, %v11299_v38 }
  0xe8   :  { %v11320_v53 = vsub.f32 %v10901_v60, %v878_v41 }
  0xe9   :  { %1004 = vadd.xlane.f32.xlu1 %v1003_v44  ;;  %1007 = vadd.xlane.f32.xlu0 %v1006_v29  ;;  %v253_v40 = vpop.xlane.xlu0 %252  ;;  %v256_v28 = vpop.xlane.xlu1 %255  ;;  %v314_v44 = vsel %vm250_vm0, %v11307_v31, 0.0  ;;  %v879_v29 = vmul.f32 0.015625, %v831_v1  ;;  %v1012_v31 = vsel %vm250_vm0, %v940_v57, 0.0 }
  0xea   :  { %v348_v45 = vmul.f32 0.015625, %v253_v40  ;;  %v349_v41 = vmul.f32 0.015625, %v256_v28 }
  0xeb   :  { %v11332_v1 = vsub.f32 %v10906_v61, %v879_v29 }
  0xec   :  { %v11340_v54 = vsub.f32 %v10915_v3, %v348_v45 }
  0xed   :  { %1010 = vadd.xlane.f32.xlu1 %v1009_v43  ;;  %312 = vadd.xlane.f32.xlu0 %v311_v16  ;;  %v834_v52 = vpop.xlane.xlu0 %833  ;;  %v837_v42 = vpop.xlane.xlu1 %836  ;;  %v11327_v43 = vld [vmem:[%s15746_s26 + $0xb8] sm:$0xff]  ;;  %v941_v16 = vmul.f32 %v11315_v56, %v11315_v56  ;;  %v943_v28 = vmul.f32 %v11332_v1, %v11332_v1 }
  0xee   :  { %v320_v60 = vsel %vm250_vm0, %v11327_v43, 0.0  ;;  %v880_v40 = vmul.f32 0.015625, %v834_v52  ;;  %v881_v29 = vmul.f32 0.015625, %v837_v42  ;;  %v412_v52 = vmul.f32 %v11340_v54, %v11340_v54 }
  0xef   :  { %v1015_v61 = vsel %vm250_vm0, %v941_v16, 0.0 }
  0xf0   :  { %v11352_v45 = vsub.f32 %v10929_v10, %v880_v40  ;;  %v444_v10 = vsel %vm250_vm0, %v412_v52, 0.0 }
  0xf1   :  { %315 = vadd.xlane.f32.xlu1 %v314_v44  ;;  %318 = vadd.xlane.f32.xlu0 %v317_v30  ;;  %v259_v55 = vpop.xlane.xlu0 %258  ;;  %v262_v14 = vpop.xlane.xlu1 %261  ;;  %v942_v30 = vmul.f32 %v11320_v53, %v11320_v53  ;;  %v11346_v44 = vsub.f32 %v10920_v4, %v349_v41  ;;  %v1021_v4 = vsel %vm250_vm0, %v943_v28, 0.0 }
  0xf2   :  { %v351_v16 = vmul.f32 0.015625, %v262_v14 }
  0xf3   :  { %v1018_v3 = vsel %vm250_vm0, %v942_v30, 0.0  ;;  %v413_v42 = vmul.f32 %v11346_v44, %v11346_v44 }
  0xf4   :  { %v11370_v28 = vsub.f32 %v10948_v19, %v351_v16 }
  0xf5   :  { %321 = vadd.xlane.f32.xlu1 %v320_v60  ;;  %1013 = vadd.xlane.f32.xlu0 %v1012_v31  ;;  %v840_v56 = vpop.xlane.xlu0 %839  ;;  %v843_v57 = vpop.xlane.xlu1 %842  ;;  %v350_v31 = vmul.f32 0.015625, %v259_v55  ;;  %v11358_v60 = vsub.f32 %v10934_v11, %v881_v29  ;;  %v944_v55 = vmul.f32 %v11352_v45, %v11352_v45  ;;  %v447_v11 = vsel %vm250_vm0, %v413_v42, 0.0 }
  0xf6   :  { %v883_v29 = vmul.f32 0.015625, %v843_v57  ;;  %v415_v57 = vmul.f32 %v11370_v28, %v11370_v28 }
  0xf7   :  { %v11364_v40 = vsub.f32 %v10943_v18, %v350_v31  ;;  %v945_v14 = vmul.f32 %v11358_v60, %v11358_v60  ;;  %v1024_v18 = vsel %vm250_vm0, %v944_v55, 0.0 }
  0xf8   :  { %v11382_v42 = vsub.f32 %v10962_v33, %v883_v29  ;;  %v453_v33 = vsel %vm250_vm0, %v415_v57, 0.0 }
  0xf9   :  { %1016 = vadd.xlane.f32.xlu1 %v1015_v61  ;;  %1019 = vadd.xlane.f32.xlu0 %v1018_v3  ;;  %v265_v41 = vpop.xlane.xlu0 %264  ;;  %v268_v30 = vpop.xlane.xlu1 %267  ;;  %v882_v61 = vmul.f32 0.015625, %v840_v56  ;;  %v414_v56 = vmul.f32 %v11364_v40, %v11364_v40  ;;  %v1027_v19 = vsel %vm250_vm0, %v945_v14, 0.0 }
  0xfa   :  { %v353_v16 = vmul.f32 0.015625, %v268_v30  ;;  %v947_v30 = vmul.f32 %v11382_v42, %v11382_v42 }
  0xfb   :  { %v11376_v31 = vsub.f32 %v10957_v32, %v882_v61  ;;  %v450_v32 = vsel %vm250_vm0, %v414_v56, 0.0 }
  0xfc   :  { %v11394_v14 = vsub.f32 %v10976_v37, %v353_v16  ;;  %v1033_v37 = vsel %vm250_vm0, %v947_v30, 0.0 }
  0xfd   :  { %1022 = vadd.xlane.f32.xlu1 %v1021_v4  ;;  %445 = vadd.xlane.f32.xlu0 %v444_v10  ;;  %v271_v3 = vpop.xlane.xlu0 %270  ;;  %v274_v52 = vpop.xlane.xlu1 %273  ;;  %v352_v4 = vmul.f32 0.015625, %v265_v41  ;;  %v946_v41 = vmul.f32 %v11376_v31, %v11376_v31 }
  0xfe   :  { %v355_v29 = vmul.f32 0.015625, %v274_v52  ;;  %v417_v52 = vmul.f32 %v11394_v14, %v11394_v14 }
  0xff   :  { %v11388_v61 = vsub.f32 %v10971_v36, %v352_v4  ;;  %v1030_v36 = vsel %vm250_vm0, %v946_v41, 0.0 }
 0x100   :  { %v11406_v57 = vsub.f32 %v10990_v47, %v355_v29  ;;  %v459_v47 = vsel %vm250_vm0, %v417_v52, 0.0 }
 0x101   :  { %448 = vadd.xlane.f32.xlu1 %v447_v11  ;;  %1025 = vadd.xlane.f32.xlu0 %v1024_v18  ;;  %v277_v10 = vpop.xlane.xlu0 %276  ;;  %v280_v55 = vpop.xlane.xlu1 %279  ;;  %v354_v11 = vmul.f32 0.015625, %v271_v3  ;;  %v416_v3 = vmul.f32 %v11388_v61, %v11388_v61 }
 0x102   :  { %v357_v16 = vmul.f32 0.015625, %v280_v55  ;;  %v419_v55 = vmul.f32 %v11406_v57, %v11406_v57 }
 0x103   :  { %v11400_v4 = vsub.f32 %v10985_v46, %v354_v11  ;;  %v456_v46 = vsel %vm250_vm0, %v416_v3, 0.0 }
 0x104   :  { %v11418_v30 = vsub.f32 %v11004_v51, %v357_v16  ;;  %v465_v51 = vsel %vm250_vm0, %v419_v55, 0.0 }
 0x105   :  { %1028 = vadd.xlane.f32.xlu1 %v1027_v19  ;;  %451 = vadd.xlane.f32.xlu0 %v450_v32  ;;  %v846_v18 = vpop.xlane.xlu0 %845  ;;  %v849_v56 = vpop.xlane.xlu1 %848  ;;  %v356_v19 = vmul.f32 0.015625, %v277_v10  ;;  %v418_v10 = vmul.f32 %v11400_v4, %v11400_v4 }
 0x106   :  { %v885_v29 = vmul.f32 0.015625, %v849_v56  ;;  %v421_v56 = vmul.f32 %v11418_v30, %v11418_v30 }
 0x107   :  { %v11412_v11 = vsub.f32 %v10999_v50, %v356_v19  ;;  %v462_v50 = vsel %vm250_vm0, %v418_v10, 0.0 }
 0x108   :  { %v11430_v52 = vsub.f32 %v11018_v59, %v885_v29  ;;  %v471_v59 = vsel %vm250_vm0, %v421_v56, 0.0 }
 0x109   :  { %454 = vadd.xlane.f32.xlu1 %v453_v33  ;;  %1031 = vadd.xlane.f32.xlu0 %v1030_v36  ;;  %v283_v32 = vpop.xlane.xlu0 %282  ;;  %v286_v41 = vpop.xlane.xlu1 %285  ;;  %v884_v33 = vmul.f32 0.015625, %v846_v18  ;;  %v420_v18 = vmul.f32 %v11412_v11, %v11412_v11 }
 0x10a   :  { %15767 = vst [vmem:[#allocation24_spill] sm:$0xff] %v11430_v52  ;;  %v359_v16 = vmul.f32 0.015625, %v286_v41  ;;  %v949_v41 = vmul.f32 %v11430_v52, %v11430_v52 }
 0x10b   :  { %v11424_v19 = vsub.f32 %v11013_v58, %v884_v33  ;;  %v468_v10 = vsel %vm250_vm0, %v420_v18, 0.0  ;;  %v15770_v18 = vld [vmem:[#allocation5_spill] sm:$0xff] }
 0x10c   :  { %v11442_v55 = vsub.f32 %v11032_v7, %v359_v16  ;;  %v1039_v56 = vsel %vm250_vm0, %v949_v41, 0.0  ;;  %v15772_v7 = vld [vmem:[#allocation6_spill] sm:$0xff] }
 0x10d   :  { %1034 = vadd.xlane.f32.xlu1 %v1033_v37  ;;  %457 = vadd.xlane.f32.xlu0 %v456_v46  ;;  %v852_v36 = vpop.xlane.xlu0 %851  ;;  %v855_v3 = vpop.xlane.xlu1 %854  ;;  %v358_v37 = vmul.f32 0.015625, %v283_v32  ;;  %v948_v32 = vmul.f32 %v11424_v19, %v11424_v19 }
 0x10e   :  { %v886_v33 = vmul.f32 0.015625, %v852_v36  ;;  %15769 = vst [vmem:[#allocation26_spill] sm:$0xff] %v11442_v55  ;;  %v887_v29 = vmul.f32 0.015625, %v855_v3  ;;  %v423_v3 = vmul.f32 %v11442_v55, %v11442_v55 }
 0x10f   :  { %v11436_v58 = vsub.f32 %v11027_v6, %v358_v37  ;;  %v1036_v6 = vsel %vm250_vm0, %v948_v32, 0.0 }
 0x110   :  { %v11448_v37 = vsub.f32 %v15770_v18, %v886_v33  ;;  %v11454_v16 = vsub.f32 %v15772_v7, %v887_v29  ;;  %v15774_v33 = vld [vmem:[#allocation7_spill] sm:$0xff]  ;;  %v477_v41 = vsel %vm250_vm0, %v423_v3, 0.0  ;;  %v15776_v29 = vld [vmem:[#allocation8_spill] sm:$0xff] }
 0x111   :  { %460 = vadd.xlane.f32.xlu1 %v459_v47  ;;  %463 = vadd.xlane.f32.xlu0 %v462_v50  ;;  %v289_v46 = vpop.xlane.xlu0 %288  ;;  %15768 = vst [vmem:[#allocation25_spill] sm:$0xff] %v11436_v58  ;;  %v292_v47 = vpop.xlane.xlu1 %291  ;;  %v422_v36 = vmul.f32 %v11436_v58, %v11436_v58 }
 0x112   :  { %15771 = vst [vmem:[#allocation5_spill] sm:$0xff] %v11448_v37  ;;  %15773 = vst [vmem:[#allocation6_spill] sm:$0xff] %v11454_v16 }
 0x113   :  { %v474_v32 = vsel %vm250_vm0, %v422_v36, 0.0 }
 0x115   :  { %466 = vadd.xlane.f32.xlu1 %v465_v51  ;;  %469 = vadd.xlane.f32.xlu0 %v468_v10  ;;  %v295_v50 = vpop.xlane.xlu0 %294  ;;  %v360_v51 = vmul.f32 0.015625, %v289_v46  ;;  %v361_v10 = vmul.f32 0.015625, %v292_v47  ;;  %v298_v52 = vpop.xlane.xlu1 %297  ;;  %v950_v46 = vmul.f32 %v11448_v37, %v11448_v37  ;;  %v951_v47 = vmul.f32 %v11454_v16, %v11454_v16 }
 0x116   :  { %v363_v55 = vmul.f32 0.015625, %v298_v52 }
 0x117   :  { %v11460_v18 = vsub.f32 %v15774_v33, %v360_v51  ;;  %v11466_v7 = vsub.f32 %v15776_v29, %v361_v10  ;;  %v1042_v36 = vsel %vm250_vm0, %v950_v46, 0.0  ;;  %v15778_v51 = vld [vmem:[#allocation9_spill] sm:$0xff]  ;;  %v1045_v3 = vsel %vm250_vm0, %v951_v47, 0.0  ;;  %v15780_v10 = vld [vmem:[#allocation10_spill] sm:$0xff]  ;;  %v15782_v29 = vld [vmem:[#allocation11_spill] sm:$0xff] }
 0x119   :  { %472 = vadd.xlane.f32.xlu1 %v471_v59  ;;  %1037 = vadd.xlane.f32.xlu0 %v1036_v6  ;;  %15775 = vst [vmem:[#allocation7_spill] sm:$0xff] %v11460_v18  ;;  %v362_v59 = vmul.f32 0.015625, %v295_v50  ;;  %v301_v6 = vpop.xlane.xlu0 %300  ;;  %15777 = vst [vmem:[#allocation8_spill] sm:$0xff] %v11466_v7  ;;  %v424_v50 = vmul.f32 %v11460_v18, %v11460_v18  ;;  %v425_v52 = vmul.f32 %v11466_v7, %v11466_v7 }
 0x11a   :  { %v364_v37 = vmul.f32 0.015625, %v301_v6 }
 0x11b   :  { %v11472_v33 = vsub.f32 %v15778_v51, %v362_v59  ;;  %v480_v46 = vsel %vm250_vm0, %v424_v50, 0.0 }
 0x11c   :  { %v11484_v59 = vsub.f32 %v15782_v29, %v364_v37 }
 0x11d   :  { %1040 = vadd.xlane.f32.xlu1 %v1039_v56  ;;  %475 = vadd.xlane.f32.xlu0 %v474_v32  ;;  %15779 = vst [vmem:[#allocation9_spill] sm:$0xff] %v11472_v33  ;;  %v304_v56 = vpop.xlane.xlu1 %303  ;;  %v11478_v32 = vsub.f32 %v15780_v10, %v363_v55  ;;  %v426_v6 = vmul.f32 %v11472_v33, %v11472_v33 }
 0x11e   :  { %15783 = vst [vmem:[#allocation11_spill] sm:$0xff] %v11484_v59  ;;  %v365_v51 = vmul.f32 0.015625, %v304_v56  ;;  %v428_v37 = vmul.f32 %v11484_v59, %v11484_v59 }
 0x11f   :  { %15781 = vst [vmem:[#allocation10_spill] sm:$0xff] %v11478_v32  ;;  %v486_v55 = vsel %vm250_vm0, %v426_v6, 0.0 }
 0x120   :  { %v11490_v47 = vsub.f32 %v11088_v15, %v365_v51  ;;  %v492_v56 = vsel %vm250_vm0, %v428_v37, 0.0 }
 0x121   :  { %478 = vadd.xlane.f32.xlu1 %v477_v41  ;;  %1043 = vadd.xlane.f32.xlu0 %v1042_v36  ;;  %v483_v41 = vsel %vm250_vm0, %v425_v52, 0.0  ;;  %v427_v36 = vmul.f32 %v11478_v32, %v11478_v32 }
 0x122   :  { %15784 = vst [vmem:[#allocation27_spill] sm:$0xff] %v11490_v47 }
 0x123   :  { %v489_v50 = vsel %vm250_vm0, %v427_v36, 0.0 }
 0x125   :  { %1046 = vadd.xlane.f32.xlu1 %v1045_v3  ;;  %481 = vadd.xlane.f32.xlu0 %v480_v46  ;;  %v429_v3 = vmul.f32 %v11490_v47, %v11490_v47 }
 0x127   :  { %v495_v15 = vsel %vm250_vm0, %v429_v3, 0.0 }
 0x129   :  { %484 = vadd.xlane.f32.xlu1 %v483_v41  ;;  %487 = vadd.xlane.f32.xlu0 %v486_v55 }
 0x12d   :  { %490 = vadd.xlane.f32.xlu1 %v489_v50  ;;  %493 = vadd.xlane.f32.xlu0 %v492_v56 }
 0x131   :  { %496 = vadd.xlane.f32.xlu1 %v495_v15 }
 0x13e   :  { %v518_v10 = vpop.xlane.xlu0 %517 }
 0x13f   :  { %v564_v52 = vmul.f32 0.015625, %v518_v10 }
 0x141   :  { %v596_v46 = vadd.f32 1e-05, %v564_v52 }
 0x142   :  { %v521_v29 = vpop.xlane.xlu1 %520  ;;  %v524_v51 = vpop.xlane.xlu0 %523 }
 0x143   :  { %9695 = vrsqrt.f32 %v596_v46  ;;  %v565_v6 = vmul.f32 0.015625, %v521_v29  ;;  %v566_v41 = vmul.f32 0.015625, %v524_v51 }
 0x145   :  { %v597_v55 = vadd.f32 1e-05, %v565_v6  ;;  %v598_v36 = vadd.f32 1e-05, %v566_v41 }
 0x146   :  { %v527_v59 = vpop.xlane.xlu1 %526  ;;  %v530_v37 = vpop.xlane.xlu0 %529 }
 0x147   :  { %9697 = vrsqrt.f32 %v597_v55  ;;  %v567_v32 = vmul.f32 0.015625, %v527_v59  ;;  %v568_v47 = vmul.f32 0.015625, %v530_v37 }
 0x148   :  { %9699 = vrsqrt.f32 %v598_v36 }
 0x149   :  { %v599_v50 = vadd.f32 1e-05, %v567_v32  ;;  %v600_v56 = vadd.f32 1e-05, %v568_v47  ;;  %v11506_v32 = vld [vmem:[%s15785_s23] ss:$0 sm:$0xff] }
 0x14a   :  { %v533_v3 = vpop.xlane.xlu1 %532  ;;  %v536_v15 = vpop.xlane.xlu0 %535 }
 0x14b   :  { %9701 = vrsqrt.f32 %v599_v50  ;;  %v569_v10 = vmul.f32 0.015625, %v533_v3  ;;  %v570_v52 = vmul.f32 0.015625, %v536_v15 }
 0x14c   :  { %9703 = vrsqrt.f32 %v600_v56 }
 0x14d   :  { %v9696_v33 = vpop.eup %9695  ;;  %v601_v46 = vadd.f32 1e-05, %v569_v10  ;;  %v602_v29 = vadd.f32 1e-05, %v570_v52  ;;  %v11513_v52 = vld [vmem:[%s15786_s25] ss:$0 sm:$0xff] }
 0x14e   :  { %v539_v51 = vpop.xlane.xlu1 %538  ;;  %v954_v6 = vpop.xlane.xlu0 %953  ;;  %v660_v41 = vmul.f32 %v9696_v33, %v11095_v39 }
 0x14f   :  { %9705 = vrsqrt.f32 %v601_v46  ;;  %v571_v55 = vmul.f32 0.015625, %v539_v51  ;;  %v1048_v59 = vmul.f32 0.015625, %v954_v6  ;;  %v15787_v46 = vld [vmem:[#allocation12_spill] sm:$0xff] }
 0x150   :  { %9707 = vrsqrt.f32 %v602_v29  ;;  %v698_v10 = vmul.f32 %v11506_v32, %v660_v41 }
 0x151   :  { %v9698_v47 = vpop.eup %9697  ;;  %v603_v36 = vadd.f32 1e-05, %v571_v55  ;;  %v1080_v37 = vadd.f32 1e-05, %v1048_v59 }
 0x152   :  { %v9700_v50 = vpop.eup %9699  ;;  %v957_v56 = vpop.xlane.xlu1 %956  ;;  %v661_v15 = vmul.f32 %v9698_v47, %v11105_v35  ;;  %v736_v41 = vadd.f32 %v11513_v52, %v698_v10 }
 0x153   :  { %v960_v3 = vpop.xlane.xlu0 %959  ;;  %9709 = vrsqrt.f32 %v603_v36  ;;  %v1049_v39 = vmul.f32 0.015625, %v957_v56  ;;  %v662_v29 = vmul.f32 %v9700_v50, %v15787_v46 }
 0x154   :  { %v1050_v33 = vmul.f32 0.015625, %v960_v3  ;;  %9711 = vrsqrt.f32 %v1080_v37  ;;  %v699_v51 = vmul.f32 %v11506_v32, %v661_v15 }
 0x155   :  { %v9702_v6 = vpop.eup %9701  ;;  %v1081_v55 = vadd.f32 1e-05, %v1049_v39  ;;  %v700_v3 = vmul.f32 %v11506_v32, %v662_v29 }
 0x156   :  { %v1082_v59 = vadd.f32 1e-05, %v1050_v33  ;;  %v9704_v7 = vpop.eup %9703  ;;  %v963_v35 = vpop.xlane.xlu1 %962  ;;  %v737_v36 = vadd.f32 %v11513_v52, %v699_v51  ;;  %v663_v56 = vmul.f32 %v9702_v6, %v11108_v48 }
 0x157   :  { %v966_v47 = vpop.xlane.xlu0 %965  ;;  %9713 = vrsqrt.f32 %v1081_v55  ;;  %v1051_v18 = vmul.f32 0.015625, %v963_v35  ;;  %v664_v39 = vmul.f32 %v9704_v7, %v11117_v2  ;;  %v738_v48 = vadd.f32 %v11513_v52, %v700_v3 }
 0x158   :  { %v1052_v50 = vmul.f32 0.015625, %v966_v47  ;;  %9715 = vrsqrt.f32 %v1082_v59  ;;  %v756_v37 = vpack.c.bf16 %v737_v36, %v736_v41  ;;  %v701_v15 = vmul.f32 %v11506_v32, %v663_v56  ;;  %v9648_v47 = vld [vmem:[%s15512_s8 + $0x8] sm:$0xff]  }
 0x159   :  { %v9706_v33 = vpop.eup %9705  ;;  %v1083_v46 = vadd.f32 1e-05, %v1051_v18  ;;  %v702_v55 = vmul.f32 %v11506_v32, %v664_v39 }
 0x15a   :  { %v1084_v16 = vadd.f32 1e-05, %v1052_v50  ;;  %v9708_v58 = vpop.eup %9707  ;;  %v969_v10 = vpop.xlane.xlu1 %968  ;;  %8750 = vmatprep.mubr.msk.bf16.mxu1 %vm250_vm0, %v756_v37  ;;  %v739_v29 = vadd.f32 %v11513_v52, %v701_v15  ;;  %v665_v6 = vmul.f32 %v9706_v33, %v11120_v5  ;;  %v11541_v15 = vld [vmem:[%s15788_s4] ss:$0 sm:$0xff] }
 0x15b   :  { %v972_v51 = vpop.xlane.xlu0 %971  ;;  %9717 = vrsqrt.f32 %v1083_v46  ;;  %v1053_v59 = vmul.f32 0.015625, %v969_v10  ;;  %v666_v2 = vmul.f32 %v9708_v58, %v11129_v49  ;;  %v740_v37 = vadd.f32 %v11513_v52, %v702_v55 }
 0x15c   :  { %v1054_v35 = vmul.f32 0.015625, %v972_v51  ;;  %9719 = vrsqrt.f32 %v1084_v16  ;;  %v757_v18 = vpack.c.bf16 %v739_v29, %v738_v48  ;;  %v703_v7 = vmul.f32 %v11506_v32, %v665_v6 }
 0x15d   :  { %v9710_v41 = vpop.eup %9709  ;;  %v1085_v36 = vadd.f32 1e-05, %v1053_v59  ;;  %v704_v16 = vmul.f32 %v11506_v32, %v666_v2 }
 0x15e   :  { %v1086_v56 = vadd.f32 1e-05, %v1054_v35  ;;  %v9712_v3 = vpop.eup %9711  ;;  %v975_v5 = vpop.xlane.xlu1 %974  ;;  %8751 = vmatmul.mubr.msk.bf16.vlgmr.msra.gmra.mrb[0].mxu1 %vm250_vm0, %v757_v18  ;;  %v741_v49 = vadd.f32 %v11513_v52, %v703_v7  ;;  %v667_v58 = vmul.f32 %v9710_v41, %v11132_v9  ;;  %v9649_v9 = vld [vmem:[%s15512_s8 + $0x10] sm:$0xff]   ;;  %v11557_v7 = vld [vmem:[%s15509_s5] ss:$0 sm:$0xff] }
 0x15f   :  { %v978_v50 = vpop.xlane.xlu0 %977  ;;  %v1144_v39 = vmul.f32 %v9712_v3, %v11141_v0  ;;  %9721 = vrsqrt.f32 %v1085_v36  ;;  %v1055_v33 = vmul.f32 0.015625, %v975_v5  ;;  %8759 = vmatpush3.bf16.msra.mxu1 %v11271_v26  ;;  %v742_v2 = vadd.f32 %v11513_v52, %v704_v16  ;;  %v9650_v5 = vld [vmem:[%s15512_s8 + $0x18] sm:$0xff]  }
 0x160   :  { %v1056_v46 = vmul.f32 0.015625, %v978_v50  ;;  %9723 = vrsqrt.f32 %v1086_v56  ;;  %v758_v10 = vpack.c.bf16 %v741_v49, %v740_v37  ;;  %8760 = vmatprep.subr.bf16.mxu1 %v9648_v47  ;;  %v705_v51 = vmul.f32 %v11506_v32, %v667_v58 }
 0x161   :  { %v9714_v48 = vpop.eup %9713  ;;  %v1087_v29 = vadd.f32 1e-05, %v1055_v33  ;;  %v1182_v0 = vmul.f32 %v11541_v15, %v1144_v39 }
 0x162   :  { %v1088_v6 = vadd.f32 1e-05, %v1056_v46  ;;  %v9716_v55 = vpop.eup %9715  ;;  %v1145_v59 = vmul.f32 %v9714_v48, %v11144_v13  ;;  %v981_v35 = vpop.xlane.xlu1 %980  ;;  %8754 = vmatprep.mubr.msk.bf16.mxu1 %vm250_vm0, %v758_v10  ;;  %v743_v18 = vadd.f32 %v11513_v52, %v705_v51 }
 0x163   :  { %v984_v26 = vpop.xlane.xlu0 %983  ;;  %v1146_v41 = vmul.f32 %v9716_v55, %v11153_v25  ;;  %9725 = vrsqrt.f32 %v1087_v29  ;;  %v1057_v36 = vmul.f32 0.015625, %v981_v35  ;;  %8761 = vmatpush3.bf16.msra.mxu1 %v9648_v47  ;;  %v1220_v33 = vadd.f32 %v11557_v7, %v1182_v0 }
 0x164   :  { %v1058_v56 = vmul.f32 0.015625, %v984_v26  ;;  %v1183_v13 = vmul.f32 %v11541_v15, %v1145_v59  ;;  %9727 = vrsqrt.f32 %v1088_v6  ;;  %v759_v3 = vpack.c.bf16 %v743_v18, %v742_v2  ;;  %8762 = vmatprep.subr.bf16.mxu1 %v9649_v9 }
 0x165   :  { %v9718_v50 = vpop.eup %9717  ;;  %v1184_v37 = vmul.f32 %v11541_v15, %v1146_v41  ;;  %v1089_v49 = vadd.f32 1e-05, %v1057_v36 }
 0x166   :  { %v1090_v58 = vadd.f32 1e-05, %v1058_v56  ;;  %v9720_v16 = vpop.eup %9719  ;;  %v1147_v25 = vmul.f32 %v9718_v50, %v11156_v17  ;;  %v987_v39 = vpop.xlane.xlu1 %986  ;;  %8755 = vmatmul.mubr.msk.bf16.gmra.mrb[4].mxu1 %vm250_vm0, %v759_v3  ;;  %v1221_v46 = vadd.f32 %v11557_v7, %v1183_v13 }
 0x167   :  { %v307_v47 = vpop.xlane.xlu0 %306  ;;  %v1148_v10 = vmul.f32 %v9720_v16, %v11165_v62  ;;  %9729 = vrsqrt.f32 %v1089_v49  ;;  %v1059_v51 = vmul.f32 0.015625, %v987_v39  ;;  %8763 = vmatpush3.bf16.msra.mxu1 %v9649_v9  ;;  %v1222_v55 = vadd.f32 %v11557_v7, %v1184_v37 }
 0x168   :  { %v1185_v48 = vmul.f32 %v11541_v15, %v1147_v25  ;;  %9731 = vrsqrt.f32 %v1090_v58  ;;  %v366_v29 = vmul.f32 0.015625, %v307_v47  ;;  %8764 = vmatprep.subr.bf16.mxu1 %v9650_v5  ;;  %v11571_v6 = vpack.c.bf16 %v1221_v46, %v1220_v33 }
 0x169   :  { %v9722_v17 = vpop.eup %9721  ;;  %v1091_v59 = vadd.f32 1e-05, %v1059_v51  ;;  %v1186_v26 = vmul.f32 %v11541_v15, %v1148_v10 }
 0x16a   :  { %15789 = vst [vmem:[#allocation12_spill] sm:$0xff] %v11571_v6  ;;  %v9724_v35 = vpop.eup %9723  ;;  %v1223_v0 = vadd.f32 %v11557_v7, %v1185_v48  ;;  %v1149_v62 = vmul.f32 %v9722_v17, %v11168_v21  ;;  %v11578_v9 = vsub.f32 %v11221_v22, %v366_v29  ;;  %v310_v2 = vpop.xlane.xlu1 %309  ;;  %8766 = vmatprep.mubr.msk.bf16.mxu1 %vm250_vm0, %v11571_v6 }
 0x16b   :  { %v990_v18 = vpop.xlane.xlu0 %989  ;;  %v1150_v41 = vmul.f32 %v9724_v35, %v11177_v34  ;;  %9733 = vrsqrt.f32 %v1091_v59  ;;  %v367_v36 = vmul.f32 0.015625, %v310_v2  ;;  %8765 = vmatpush3.bf16.msra.mxu1 %v9650_v5  ;;  %v1224_v39 = vadd.f32 %v11557_v7, %v1186_v26 }
 0x16c   :  { %v1060_v56 = vmul.f32 0.015625, %v990_v18  ;;  %v1187_v13 = vmul.f32 %v11541_v15, %v1149_v62  ;;  %v11584_v3 = vpack.c.bf16 %v1223_v0, %v1222_v55  ;;  %v430_v21 = vmul.f32 %v11578_v9, %v11578_v9 }
 0x16d   :  { %v9726_v22 = vpop.eup %9725  ;;  %v1188_v50 = vmul.f32 %v11541_v15, %v1150_v41  ;;  %v11590_v37 = vsub.f32 %v11239_v24, %v367_v36 }
 0x16e   :  { %15790 = vst [vmem:[#allocation28_spill] sm:$0xff] %v11584_v3  ;;  %v1092_v49 = vadd.f32 1e-05, %v1060_v56  ;;  %v9728_v58 = vpop.eup %9727  ;;  %v1151_v34 = vmul.f32 %v9726_v22, %v11180_v23  ;;  %v993_v16 = vpop.xlane.xlu1 %992  ;;  %8767 = vmatmul.mubr.msk.bf16.vlgmr.msra.gmra.mrb[8].mxu1 %vm250_vm0, %v11584_v3  ;;  %v498_v5 = vsel %vm250_vm0, %v430_v21, 0.0  ;;  %v1225_v47 = vadd.f32 %v11557_v7, %v1187_v13 }
 0x16f   :  { %v996_v25 = vpop.xlane.xlu0 %995  ;;  %v1152_v33 = vmul.f32 %v9728_v58, %v11189_v63  ;;  %v1061_v24 = vmul.f32 0.015625, %v993_v16  ;;  %499 = vadd.xlane.f32.xlu0 %v498_v5  ;;  %v431_v23 = vmul.f32 %v11590_v37, %v11590_v37  ;;  %v1226_v55 = vadd.f32 %v11557_v7, %v1188_v50 }
 0x170   :  { %9735 = vrsqrt.f32 %v1092_v49  ;;  %v1062_v46 = vmul.f32 0.015625, %v996_v25  ;;  %v1189_v10 = vmul.f32 %v11541_v15, %v1151_v34  ;;  %v11602_v51 = vpack.c.bf16 %v1225_v47, %v1224_v39 }
 0x171   :  { %v9730_v48 = vpop.eup %9729  ;;  %v1093_v29 = vadd.f32 1e-05, %v1061_v24  ;;  %v1190_v35 = vmul.f32 %v11541_v15, %v1152_v33  ;;  %v501_v0 = vsel %vm250_vm0, %v431_v23, 0.0 }
 0x172   :  { %15791 = vst [vmem:[#allocation29_spill] sm:$0xff] %v11602_v51  ;;  %v1094_v17 = vadd.f32 1e-05, %v1062_v46  ;;  %v9732_v59 = vpop.eup %9731  ;;  %v1153_v63 = vmul.f32 %v9730_v48, %v11192_v27  ;;  %v999_v26 = vpop.xlane.xlu1 %998  ;;  %8770 = vmatprep.mubr.msk.bf16.mxu1 %vm250_vm0, %v11602_v51  ;;  %v1227_v2 = vadd.f32 %v11557_v7, %v1189_v10  ;;  %502 = vadd.xlane.f32.xlu1 %v501_v0 }
 0x173   :  { %v1002_v62 = vpop.xlane.xlu0 %1001  ;;  %v1154_v18 = vmul.f32 %v9732_v59, %v11204_v20  ;;  %9737 = vrsqrt.f32 %v1093_v29  ;;  %v1063_v41 = vmul.f32 0.015625, %v999_v26  ;;  %v1228_v34 = vadd.f32 %v11557_v7, %v1190_v35 }
 0x174   :  { %v1064_v36 = vmul.f32 0.015625, %v1002_v62  ;;  %v1191_v56 = vmul.f32 %v11541_v15, %v1153_v63  ;;  %9739 = vrsqrt.f32 %v1094_v17  ;;  %v11613_v13 = vpack.c.bf16 %v1227_v2, %v1226_v55  ;;  %v15796_v2 = vld [vmem:[#allocation13_spill] sm:$0xff] }
 0x175   :  { %v9734_v27 = vpop.eup %9733  ;;  %v1095_v21 = vadd.f32 1e-05, %v1063_v41  ;;  %v1192_v50 = vmul.f32 %v11541_v15, %v1154_v18 }
 0x176   :  { %15792 = vst [vmem:[#allocation30_spill] sm:$0xff] %v11613_v13  ;;  %v1096_v22 = vadd.f32 1e-05, %v1064_v36  ;;  %v1155_v49 = vmul.f32 %v9734_v27, %v11207_v8  ;;  %v1005_v58 = vpop.xlane.xlu1 %1004  ;;  %8771 = vmatmul.mubr.msk.bf16.gmra.mrb[12].mxu1 %vm250_vm0, %v11613_v13  ;;  %v1229_v16 = vadd.f32 %v11557_v7, %v1191_v56  ;;  %v15797_v56 = vld [vmem:[#allocation14_spill] sm:$0xff] }
 0x177   :  { %v1008_v20 = vpop.xlane.xlu0 %1007  ;;  %9741 = vrsqrt.f32 %v1095_v21  ;;  %v1065_v5 = vmul.f32 0.015625, %v1005_v58  ;;  %v1230_v48 = vadd.f32 %v11557_v7, %v1192_v50 }
 0x178   :  { %v1066_v25 = vmul.f32 0.015625, %v1008_v20  ;;  %v1193_v39 = vmul.f32 %v11541_v15, %v1155_v49  ;;  %9743 = vrsqrt.f32 %v1096_v22  ;;  %v11622_v47 = vpack.c.bf16 %v1229_v16, %v1228_v34  ;;  %v15798_v20 = vld [vmem:[#allocation21_spill] sm:$0xff]  ;;  %v15799_v16 = vld [vmem:[#allocation22_spill] sm:$0xff] }
 0x179   :  { %v1097_v24 = vadd.f32 1e-05, %v1065_v5 }
 0x17a   :  { %15793 = vst [vmem:[#allocation31_spill] sm:$0xff] %v11622_v47  ;;  %v9736_v33 = vpop.eup %9735  ;;  %v1098_v8 = vadd.f32 1e-05, %v1066_v25  ;;  %v1011_v10 = vpop.xlane.xlu1 %1010  ;;  %8774 = vmatprep.mubr.msk.bf16.mxu1 %vm250_vm0, %v11622_v47  ;;  %v1231_v29 = vadd.f32 %v11557_v7, %v1193_v39 }
 0x17b   :  { %v1156_v46 = vmul.f32 %v9736_v33, %v11224_v12  ;;  %v313_v23 = vpop.xlane.xlu0 %312  ;;  %9745 = vrsqrt.f32 %v1097_v24  ;;  %v1067_v17 = vmul.f32 0.015625, %v1011_v10  ;;  %v15795_v12 = vld [vmem:[#allocation20_spill] sm:$0xff]  ;;  %v15800_v24 = vld [vmem:[#allocation15_spill] sm:$0xff] }
 0x17c   :  { %v368_v55 = vmul.f32 0.015625, %v313_v23  ;;  %9747 = vrsqrt.f32 %v1098_v8  ;;  %v11629_v59 = vpack.c.bf16 %v1231_v29, %v1230_v48  ;;  %v15801_v29 = vld [vmem:[#allocation16_spill] sm:$0xff] }
 0x17d   :  { %v9738_v35 = vpop.eup %9737  ;;  %v1194_v63 = vmul.f32 %v11541_v15, %v1156_v46  ;;  %v1099_v0 = vadd.f32 1e-05, %v1067_v17 }
 0x17e   :  { %15794 = vst [vmem:[#allocation32_spill] sm:$0xff] %v11629_v59  ;;  %v11633_v26 = vsub.f32 %v15795_v12, %v368_v55  ;;  %v9740_v62 = vpop.eup %9739  ;;  %v1157_v18 = vmul.f32 %v9738_v35, %v15796_v2  ;;  %v316_v41 = vpop.xlane.xlu1 %315  ;;  %8775 = vmatmul.mubr.msk.bf16.gmra.mrb[16].mxu1 %vm250_vm0, %v11629_v59 }
 0x17f   :  { %v319_v36 = vpop.xlane.xlu0 %318  ;;  %v1158_v27 = vmul.f32 %v9740_v62, %v15797_v56  ;;  %9749 = vrsqrt.f32 %v1099_v0  ;;  %v369_v21 = vmul.f32 0.015625, %v316_v41  ;;  %v1232_v25 = vadd.f32 %v11557_v7, %v1194_v63 }
 0x180   :  { %v370_v22 = vmul.f32 0.015625, %v319_v36  ;;  %v1195_v50 = vmul.f32 %v11541_v15, %v1157_v18  ;;  %v432_v49 = vmul.f32 %v11633_v26, %v11633_v26 }
 0x181   :  { %v9742_v58 = vpop.eup %9741  ;;  %v11643_v34 = vsub.f32 %v15798_v20, %v369_v21  ;;  %v1196_v33 = vmul.f32 %v11541_v15, %v1158_v27  ;;  %v15803_v21 = vld [vmem:[#allocation17_spill] sm:$0xff] }
 0x182   :  { %v11646_v5 = vsub.f32 %v15799_v16, %v370_v22  ;;  %v9744_v39 = vpop.eup %9743  ;;  %v1159_v8 = vmul.f32 %v9742_v58, %v15800_v24  ;;  %v322_v46 = vpop.xlane.xlu1 %321  ;;  %v504_v10 = vsel %vm250_vm0, %v432_v49, 0.0  ;;  %v1233_v48 = vadd.f32 %v11557_v7, %v1195_v50 }
 0x183   :  { %v1014_v23 = vpop.xlane.xlu0 %1013  ;;  %v1160_v17 = vmul.f32 %v9744_v39, %v15801_v29  ;;  %v371_v55 = vmul.f32 0.015625, %v322_v46  ;;  %505 = vadd.xlane.f32.xlu0 %v504_v10  ;;  %v433_v0 = vmul.f32 %v11643_v34, %v11643_v34  ;;  %v1234_v20 = vadd.f32 %v11557_v7, %v1196_v33 }
 0x184   :  { %v1068_v35 = vmul.f32 0.015625, %v1014_v23  ;;  %v1197_v63 = vmul.f32 %v11541_v15, %v1159_v8  ;;  %v11657_v12 = vpack.c.bf16 %v1233_v48, %v1232_v25  ;;  %v434_v62 = vmul.f32 %v11646_v5, %v11646_v5 }
 0x185   :  { %v9746_v2 = vpop.eup %9745  ;;  %v1198_v18 = vmul.f32 %v11541_v15, %v1160_v17  ;;  %v11663_v41 = vsub.f32 %v11327_v43, %v371_v55  ;;  %v507_v56 = vsel %vm250_vm0, %v433_v0, 0.0  ;;  %v15804_v43 = vld [vmem:[#allocation18_spill] sm:$0xff]  ;;  %v15806_v55 = vld [vmem:[#allocation19_spill] sm:$0xff] }
 0x186   :  { %15802 = vst [vmem:[#allocation20_spill] sm:$0xff] %v11657_v12  ;;  %v1100_v36 = vadd.f32 1e-05, %v1068_v35  ;;  %v9748_v27 = vpop.eup %9747  ;;  %v1161_v22 = vmul.f32 %v9746_v2, %v15803_v21  ;;  %508 = vadd.xlane.f32.xlu1 %v507_v56  ;;  %v1017_v50 = vpop.xlane.xlu1 %1016  ;;  %8778 = vmatprep.mubr.msk.bf16.mxu1 %vm250_vm0, %v11657_v12  ;;  %v510_v49 = vsel %vm250_vm0, %v434_v62, 0.0  ;;  %v1235_v16 = vadd.f32 %v11557_v7, %v1197_v63 }
 0x187   :  { %v1020_v58 = vpop.xlane.xlu0 %1019  ;;  %v1162_v25 = vmul.f32 %v9748_v27, %v15804_v43  ;;  %v1069_v39 = vmul.f32 0.015625, %v1017_v50  ;;  %511 = vadd.xlane.f32.xlu0 %v510_v49  ;;  %v435_v46 = vmul.f32 %v11663_v41, %v11663_v41  ;;  %v1236_v33 = vadd.f32 %v11557_v7, %v1198_v18 }
 0x188   :  { %9751 = vrsqrt.f32 %v1100_v36  ;;  %v1070_v24 = vmul.f32 0.015625, %v1020_v58  ;;  %v1199_v8 = vmul.f32 %v11541_v15, %v1161_v22  ;;  %v11676_v10 = vpack.c.bf16 %v1235_v16, %v1234_v20 }
 0x189   :  { %v9750_v23 = vpop.eup %9749  ;;  %v1101_v48 = vadd.f32 1e-05, %v1069_v39  ;;  %v1200_v17 = vmul.f32 %v11541_v15, %v1162_v25  ;;  %v513_v0 = vsel %vm250_vm0, %v435_v46, 0.0 }
 0x18a   :  { %15805 = vst [vmem:[#allocation13_spill] sm:$0xff] %v11676_v10  ;;  %v1102_v29 = vadd.f32 1e-05, %v1070_v24  ;;  %v1163_v35 = vmul.f32 %v9750_v23, %v15806_v55  ;;  %v1023_v63 = vpop.xlane.xlu1 %1022  ;;  %8779 = vmatmul.mubr.msk.bf16.gmra.mrb[20].mxu1 %vm250_vm0, %v11676_v10  ;;  %v1237_v2 = vadd.f32 %v11557_v7, %v1199_v8  ;;  %514 = vadd.xlane.f32.xlu1 %v513_v0 }
 0x18b   :  { %v446_v62 = vpop.xlane.xlu0 %445  ;;  %9753 = vrsqrt.f32 %v1101_v48  ;;  %v1071_v36 = vmul.f32 0.015625, %v1023_v63  ;;  %v1238_v58 = vadd.f32 %v11557_v7, %v1200_v17 }
 0x18c   :  { %v540_v56 = vmul.f32 0.015625, %v446_v62  ;;  %v1201_v27 = vmul.f32 %v11541_v15, %v1163_v35  ;;  %9755 = vrsqrt.f32 %v1102_v29  ;;  %v11686_v18 = vpack.c.bf16 %v1237_v2, %v1236_v33  ;;  %v15809_v62 = vld [vmem:[#allocation23_spill] sm:$0xff] }
 0x18d   :  { %v1103_v21 = vadd.f32 1e-05, %v1071_v36 }
 0x18e   :  { %15807 = vst [vmem:[#allocation14_spill] sm:$0xff] %v11686_v18  ;;  %v572_v22 = vadd.f32 1e-05, %v540_v56  ;;  %v449_v50 = vpop.xlane.xlu1 %448  ;;  %8782 = vmatprep.mubr.msk.bf16.mxu1 %vm250_vm0, %v11686_v18  ;;  %v1239_v20 = vadd.f32 %v11557_v7, %v1201_v27 }
 0x18f   :  { %v1026_v49 = vpop.xlane.xlu0 %1025  ;;  %9757 = vrsqrt.f32 %v1103_v21  ;;  %v541_v16 = vmul.f32 0.015625, %v449_v50 }
 0x190   :  { %v1072_v43 = vmul.f32 0.015625, %v1026_v49  ;;  %9759 = vrsqrt.f32 %v572_v22  ;;  %v11692_v25 = vpack.c.bf16 %v1239_v20, %v1238_v58 }
 0x191   :  { %v573_v24 = vadd.f32 1e-05, %v541_v16 }
 0x192   :  { %15808 = vst [vmem:[#allocation21_spill] sm:$0xff] %v11692_v25  ;;  %v9752_v39 = vpop.eup %9751  ;;  %v1104_v8 = vadd.f32 1e-05, %v1072_v43  ;;  %v1029_v23 = vpop.xlane.xlu1 %1028  ;;  %8783 = vmatmul.mubr.msk.bf16.gmra.mrb[24].mxu1 %vm250_vm0, %v11692_v25 }
 0x193   :  { %v1164_v46 = vmul.f32 %v9752_v39, %v11299_v38  ;;  %v452_v48 = vpop.xlane.xlu0 %451  ;;  %9761 = vrsqrt.f32 %v573_v24  ;;  %v1073_v29 = vmul.f32 0.015625, %v1029_v23 }
 0x194   :  { %v542_v33 = vmul.f32 0.015625, %v452_v48  ;;  %9763 = vrsqrt.f32 %v1104_v8 }
 0x195   :  { %v9754_v17 = vpop.eup %9753  ;;  %v1105_v55 = vadd.f32 1e-05, %v1073_v29  ;;  %v1202_v63 = vmul.f32 %v11541_v15, %v1164_v46 }
 0x196   :  { %v574_v35 = vadd.f32 1e-05, %v542_v33  ;;  %v9756_v0 = vpop.eup %9755  ;;  %v1165_v2 = vmul.f32 %v9754_v17, %v15809_v62  ;;  %v455_v36 = vpop.xlane.xlu1 %454 }
 0x197   :  { %v1032_v56 = vpop.xlane.xlu0 %1031  ;;  %v1166_v38 = vmul.f32 %v9756_v0, %v11320_v53  ;;  %9765 = vrsqrt.f32 %v1105_v55  ;;  %v543_v27 = vmul.f32 0.015625, %v455_v36  ;;  %v1240_v8 = vadd.f32 %v11557_v7, %v1202_v63 }
 0x198   :  { %v1074_v21 = vmul.f32 0.015625, %v1032_v56  ;;  %v1203_v22 = vmul.f32 %v11541_v15, %v1165_v2  ;;  %9767 = vrsqrt.f32 %v574_v35 }
 0x199   :  { %v9758_v50 = vpop.eup %9757  ;;  %v575_v49 = vadd.f32 1e-05, %v543_v27  ;;  %v1204_v16 = vmul.f32 %v11541_v15, %v1166_v38 }
 0x19a   :  { %v1106_v58 = vadd.f32 1e-05, %v1074_v21  ;;  %v9760_v20 = vpop.eup %9759  ;;  %v1167_v43 = vmul.f32 %v9758_v50, %v11332_v1  ;;  %v1035_v39 = vpop.xlane.xlu1 %1034  ;;  %v1241_v53 = vadd.f32 %v11557_v7, %v1203_v22  ;;  %v11712_v1 = vld [vmem:[%s15514_s10] sm:$0xff]  }
 0x19b   :  { %v458_v24 = vpop.xlane.xlu0 %457  ;;  %9769 = vrsqrt.f32 %v575_v49  ;;  %v1075_v46 = vmul.f32 0.015625, %v1035_v39  ;;  %v636_v33 = vmul.f32 %v9760_v20, %v11340_v54  ;;  %v1242_v2 = vadd.f32 %v11557_v7, %v1204_v16  ;;  %8798 = vmatprep.subr.bf16.mxu0 %v11712_v1 }
 0x19c   :  { %v544_v23 = vmul.f32 0.015625, %v458_v24  ;;  %v1205_v48 = vmul.f32 %v11541_v15, %v1167_v43  ;;  %9771 = vrsqrt.f32 %v1106_v58  ;;  %v11706_v29 = vpack.c.bf16 %v1241_v53, %v1240_v8 }
 0x19d   :  { %v9762_v17 = vpop.eup %9761  ;;  %v1107_v55 = vadd.f32 1e-05, %v1075_v46  ;;  %v674_v56 = vmul.f32 %v11506_v32, %v636_v33 }
 0x19e   :  { %15810 = vst [vmem:[#allocation22_spill] sm:$0xff] %v11706_v29  ;;  %v576_v35 = vadd.f32 1e-05, %v544_v23  ;;  %v9764_v0 = vpop.eup %9763  ;;  %v461_v63 = vpop.xlane.xlu1 %460  ;;  %8786 = vmatprep.mubr.msk.bf16.mxu1 %vm250_vm0, %v11706_v29  ;;  %v1243_v36 = vadd.f32 %v11557_v7, %v1205_v48  ;;  %v637_v54 = vmul.f32 %v9762_v17, %v11346_v44 }
 0x19f   :  { %v464_v62 = vpop.xlane.xlu0 %463  ;;  %v1168_v38 = vmul.f32 %v9764_v0, %v11352_v45  ;;  %9773 = vrsqrt.f32 %v1107_v55  ;;  %v545_v27 = vmul.f32 0.015625, %v461_v63  ;;  %v712_v24 = vadd.f32 %v11513_v52, %v674_v56 }
 0x1a0   :  { %v546_v21 = vmul.f32 0.015625, %v464_v62  ;;  %9775 = vrsqrt.f32 %v576_v35  ;;  %v11722_v22 = vpack.c.bf16 %v1243_v36, %v1242_v2  ;;  %v675_v50 = vmul.f32 %v11506_v32, %v637_v54 }
 0x1a1   :  { %v9766_v49 = vpop.eup %9765  ;;  %v577_v58 = vadd.f32 1e-05, %v545_v27  ;;  %v1206_v44 = vmul.f32 %v11541_v15, %v1168_v38 }
 0x1a2   :  { %15811 = vst [vmem:[#allocation15_spill] sm:$0xff] %v11722_v22  ;;  %v578_v20 = vadd.f32 1e-05, %v546_v21  ;;  %v9768_v16 = vpop.eup %9767  ;;  %v1169_v43 = vmul.f32 %v9766_v49, %v11358_v60  ;;  %v467_v39 = vpop.xlane.xlu1 %466  ;;  %8787 = vmatmul.mubr.msk.bf16.gmra.mrb[28].mxu1 %vm250_vm0, %v11722_v22  ;;  %v713_v8 = vadd.f32 %v11513_v52, %v675_v50 }
 0x1a3   :  { %v470_v45 = vpop.xlane.xlu0 %469  ;;  %9777 = vrsqrt.f32 %v577_v58  ;;  %v547_v53 = vmul.f32 0.015625, %v467_v39  ;;  %v638_v33 = vmul.f32 %v9768_v16, %v11364_v40  ;;  %v1244_v62 = vadd.f32 %v11557_v7, %v1206_v44 }
 0x1a4   :  { %v548_v46 = vmul.f32 0.015625, %v470_v45  ;;  %v1207_v23 = vmul.f32 %v11541_v15, %v1169_v43  ;;  %9779 = vrsqrt.f32 %v578_v20  ;;  %v744_v48 = vpack.c.bf16 %v713_v8, %v712_v24 }
 0x1a5   :  { %v9770_v17 = vpop.eup %9769  ;;  %v579_v60 = vadd.f32 1e-05, %v547_v53  ;;  %v676_v54 = vmul.f32 %v11506_v32, %v638_v33 }
 0x1a6   :  { %v580_v55 = vadd.f32 1e-05, %v548_v46  ;;  %v9772_v35 = vpop.eup %9771  ;;  %v473_v0 = vpop.xlane.xlu1 %472  ;;  %8726 = vmatprep.mubr.msk.bf16.mxu0 %vm250_vm0, %v744_v48  ;;  %v1245_v2 = vadd.f32 %v11557_v7, %v1207_v23  ;;  %v639_v36 = vmul.f32 %v9770_v17, %v11370_v28 }
 0x1a7   :  { %v1038_v63 = vpop.xlane.xlu0 %1037  ;;  %v1170_v56 = vmul.f32 %v9772_v35, %v11376_v31  ;;  %9781 = vrsqrt.f32 %v579_v60  ;;  %v549_v40 = vmul.f32 0.015625, %v473_v0  ;;  %v714_v43 = vadd.f32 %v11513_v52, %v676_v54 }
 0x1a8   :  { %v1076_v38 = vmul.f32 0.015625, %v1038_v63  ;;  %9783 = vrsqrt.f32 %v580_v55  ;;  %v11739_v27 = vpack.c.bf16 %v1245_v2, %v1244_v62  ;;  %v677_v21 = vmul.f32 %v11506_v32, %v639_v36 }
 0x1a9   :  { %v9774_v50 = vpop.eup %9773  ;;  %v581_v49 = vadd.f32 1e-05, %v549_v40  ;;  %v1208_v16 = vmul.f32 %v11541_v15, %v1170_v56  ;;  %v9653_v40 = vld [vmem:[%s15514_s10 + $0x10] sm:$0xff]  }
 0x1aa   :  { %15812 = vst [vmem:[#allocation16_spill] sm:$0xff] %v11739_v27  ;;  %v1108_v58 = vadd.f32 1e-05, %v1076_v38  ;;  %v9776_v20 = vpop.eup %9775  ;;  %v1171_v28 = vmul.f32 %v9774_v50, %v11382_v42  ;;  %v1041_v44 = vpop.xlane.xlu1 %1040  ;;  %8790 = vmatprep.mubr.msk.bf16.mxu1 %vm250_vm0, %v11739_v27  ;;  %v715_v39 = vadd.f32 %v11513_v52, %v677_v21  ;;  %v9652_v42 = vld [vmem:[%s15514_s10 + $0x8] sm:$0xff]  }
 0x1ab   :  { %v476_v31 = vpop.xlane.xlu0 %475  ;;  %9785 = vrsqrt.f32 %v581_v49  ;;  %v1077_v45 = vmul.f32 0.015625, %v1041_v44  ;;  %v640_v46 = vmul.f32 %v9776_v20, %v11388_v61  ;;  %v1246_v35 = vadd.f32 %v11557_v7, %v1208_v16 }
 0x1ac   :  { %v550_v24 = vmul.f32 0.015625, %v476_v31  ;;  %v1209_v8 = vmul.f32 %v11541_v15, %v1171_v28  ;;  %9787 = vrsqrt.f32 %v1108_v58  ;;  %v745_v53 = vpack.c.bf16 %v715_v39, %v714_v43 }
 0x1ad   :  { %v9778_v23 = vpop.eup %9777  ;;  %v1109_v48 = vadd.f32 1e-05, %v1077_v45  ;;  %v678_v61 = vmul.f32 %v11506_v32, %v640_v46  ;;  %v9654_v45 = vld [vmem:[%s15514_s10 + $0x18] sm:$0xff]  }
 0x1ae   :  { %v582_v33 = vadd.f32 1e-05, %v550_v24  ;;  %v9780_v17 = vpop.eup %9779  ;;  %v479_v60 = vpop.xlane.xlu1 %478  ;;  %8727 = vmatmul.mubr.msk.bf16.vlgmr.msra.gmra.mrb[0].mxu0 %vm250_vm0, %v745_v53  ;;  %v1247_v0 = vadd.f32 %v11557_v7, %v1209_v8  ;;  %v641_v63 = vmul.f32 %v9778_v23, %v11394_v14 }
 0x1af   :  { %v1044_v55 = vpop.xlane.xlu0 %1043  ;;  %9789 = vrsqrt.f32 %v1109_v48  ;;  %v551_v62 = vmul.f32 0.015625, %v479_v60  ;;  %v642_v36 = vmul.f32 %v9780_v17, %v11400_v4  ;;  %8799 = vmatpush3.bf16.msra.mxu0 %v11712_v1  ;;  %v716_v1 = vadd.f32 %v11513_v52, %v678_v61 }
 0x1b0   :  { %v1078_v2 = vmul.f32 0.015625, %v1044_v55  ;;  %9791 = vrsqrt.f32 %v582_v33  ;;  %v11760_v54 = vpack.c.bf16 %v1247_v0, %v1246_v35  ;;  %v679_v56 = vmul.f32 %v11506_v32, %v641_v63  ;;  %8800 = vmatprep.subr.bf16.mxu0 %v9652_v42 }
 0x1b1   :  { %v9782_v14 = vpop.eup %9781  ;;  %v583_v38 = vadd.f32 1e-05, %v551_v62  ;;  %v680_v16 = vmul.f32 %v11506_v32, %v642_v36 }
 0x1b2   :  { %15813 = vst [vmem:[#allocation17_spill] sm:$0xff] %v11760_v54  ;;  %v1110_v21 = vadd.f32 1e-05, %v1078_v2  ;;  %v9784_v50 = vpop.eup %9783  ;;  %v1047_v49 = vpop.xlane.xlu1 %1046  ;;  %8791 = vmatmul.mubr.msk.bf16.gmra.mrb[32].mxu1 %vm250_vm0, %v11760_v54  ;;  %v717_v58 = vadd.f32 %v11513_v52, %v679_v56  ;;  %v643_v20 = vmul.f32 %v9782_v14, %v11406_v57 }
 0x1b3   :  { %v482_v4 = vpop.xlane.xlu0 %481  ;;  %9793 = vrsqrt.f32 %v583_v38  ;;  %v1079_v28 = vmul.f32 0.015625, %v1047_v49  ;;  %8801 = vmatpush3.bf16.msra.mxu0 %v9652_v42  ;;  %v644_v39 = vmul.f32 %v9784_v50, %v11412_v11  ;;  %v718_v42 = vadd.f32 %v11513_v52, %v680_v16 }
 0x1b4   :  { %v552_v44 = vmul.f32 0.015625, %v482_v4  ;;  %9795 = vrsqrt.f32 %v1110_v21  ;;  %v746_v31 = vpack.c.bf16 %v717_v58, %v716_v1  ;;  %v681_v43 = vmul.f32 %v11506_v32, %v643_v20  ;;  %8802 = vmatprep.subr.bf16.mxu0 %v9653_v40  ;;  %v15815_v1 = vld [vmem:[#allocation25_spill] sm:$0xff] }
 0x1b5   :  { %v9786_v24 = vpop.eup %9785  ;;  %v1111_v8 = vadd.f32 1e-05, %v1079_v28  ;;  %v682_v11 = vmul.f32 %v11506_v32, %v644_v39 }
 0x1b6   :  { %v584_v57 = vadd.f32 1e-05, %v552_v44  ;;  %v9788_v53 = vpop.eup %9787  ;;  %v485_v46 = vpop.xlane.xlu1 %484  ;;  %8730 = vmatprep.mubr.msk.bf16.mxu0 %vm250_vm0, %v746_v31  ;;  %v719_v48 = vadd.f32 %v11513_v52, %v681_v43  ;;  %v645_v33 = vmul.f32 %v9786_v24, %v11418_v30  ;;  %v15814_v30 = vld [vmem:[#allocation24_spill] sm:$0xff]  ;;  %v15816_v24 = vld [vmem:[#allocation26_spill] sm:$0xff] }
 0x1b7   :  { %v488_v23 = vpop.xlane.xlu0 %487  ;;  %v1172_v17 = vmul.f32 %v9788_v53, %v11424_v19  ;;  %9797 = vrsqrt.f32 %v1111_v8  ;;  %v553_v60 = vmul.f32 0.015625, %v485_v46  ;;  %8803 = vmatpush3.bf16.msra.mxu0 %v9653_v40  ;;  %v720_v38 = vadd.f32 %v11513_v52, %v682_v11 }
 0x1b8   :  { %v554_v55 = vmul.f32 0.015625, %v488_v23  ;;  %9799 = vrsqrt.f32 %v584_v57  ;;  %v747_v35 = vpack.c.bf16 %v719_v48, %v718_v42  ;;  %v683_v0 = vmul.f32 %v11506_v32, %v645_v33  ;;  %8804 = vmatprep.subr.bf16.mxu0 %v9654_v45  ;;  %v15817_v57 = vld [vmem:[#allocation5_spill] sm:$0xff] }
 0x1b9   :  { %v9790_v63 = vpop.eup %9789  ;;  %v585_v61 = vadd.f32 1e-05, %v553_v60  ;;  %v1210_v36 = vmul.f32 %v11541_v15, %v1172_v17  ;;  %v15819_v60 = vld [vmem:[#allocation6_spill] sm:$0xff] }
 0x1ba   :  { %v586_v62 = vadd.f32 1e-05, %v554_v55  ;;  %v9792_v2 = vpop.eup %9791  ;;  %v1173_v56 = vmul.f32 %v9790_v63, %v15814_v30  ;;  %v491_v14 = vpop.xlane.xlu1 %490  ;;  %8731 = vmatmul.mubr.msk.bf16.gmra.mrb[4].mxu0 %vm250_vm0, %v747_v35  ;;  %v721_v40 = vadd.f32 %v11513_v52, %v683_v0  ;;  %v15820_v63 = vld [vmem:[#allocation7_spill] sm:$0xff] }
 0x1bb   :  { %v494_v19 = vpop.xlane.xlu0 %493  ;;  %9801 = vrsqrt.f32 %v585_v61  ;;  %v555_v21 = vmul.f32 0.015625, %v491_v14  ;;  %8805 = vmatpush3.bf16.msra.mxu0 %v9654_v45  ;;  %v646_v58 = vmul.f32 %v9792_v2, %v15815_v1  ;;  %v1248_v43 = vadd.f32 %v11557_v7, %v1210_v36  ;;  %v15821_v14 = vld [vmem:[#allocation8_spill] sm:$0xff] }
 0x1bc   :  { %v556_v50 = vmul.f32 0.015625, %v494_v19  ;;  %v1211_v49 = vmul.f32 %v11541_v15, %v1173_v56  ;;  %9803 = vrsqrt.f32 %v586_v62  ;;  %v748_v4 = vpack.c.bf16 %v721_v40, %v720_v38  ;;  %v15822_v40 = vld [vmem:[#allocation9_spill] sm:$0xff] }
 0x1bd   :  { %v9794_v20 = vpop.eup %9793  ;;  %v587_v16 = vadd.f32 1e-05, %v555_v21  ;;  %v684_v45 = vmul.f32 %v11506_v32, %v646_v58 }
 0x1be   :  { %v588_v28 = vadd.f32 1e-05, %v556_v50  ;;  %v9796_v44 = vpop.eup %9795  ;;  %v497_v31 = vpop.xlane.xlu1 %496  ;;  %8734 = vmatprep.mubr.msk.bf16.mxu0 %vm250_vm0, %v748_v4  ;;  %v1249_v39 = vadd.f32 %v11557_v7, %v1211_v49  ;;  %v647_v8 = vmul.f32 %v9794_v20, %v15816_v24  ;;  %v15824_v20 = vld [vmem:[#allocation10_spill] sm:$0xff] }
 0x1bf   :  { %v1174_v53 = vmul.f32 %v9796_v44, %v15817_v57  ;;  %9805 = vrsqrt.f32 %v587_v16  ;;  %v557_v46 = vmul.f32 0.015625, %v497_v31  ;;  %v722_v35 = vadd.f32 %v11513_v52, %v684_v45  ;;  %v15825_v44 = vld [vmem:[#allocation11_spill] sm:$0xff] }
 0x1c0   :  { %9807 = vrsqrt.f32 %v588_v28  ;;  %v11797_v23 = vpack.c.bf16 %v1249_v39, %v1248_v43  ;;  %v685_v42 = vmul.f32 %v11506_v32, %v647_v8  ;;  %v15826_v57 = vld [vmem:[#allocation27_spill] sm:$0xff] }
 0x1c1   :  { %v9798_v48 = vpop.eup %9797  ;;  %v589_v33 = vadd.f32 1e-05, %v557_v46  ;;  %v1212_v17 = vmul.f32 %v11541_v15, %v1174_v53 }
 0x1c2   :  { %15818 = vst [vmem:[#allocation18_spill] sm:$0xff] %v11797_v23  ;;  %v9800_v11 = vpop.eup %9799  ;;  %v1175_v55 = vmul.f32 %v9798_v48, %v15819_v60  ;;  %8794 = vmatprep.mubr.msk.bf16.mxu1 %vm250_vm0, %v11797_v23  ;;  %v723_v0 = vadd.f32 %v11513_v52, %v685_v42  ;;  %v11815_v52 = vld [vmem:[%s15785_s23] ss:$0 sm:$0xff] }
 0x1c3   :  { %9809 = vrsqrt.f32 %v589_v33  ;;  %v648_v61 = vmul.f32 %v9800_v11, %v15820_v63  ;;  %v1250_v30 = vadd.f32 %v11557_v7, %v1212_v17 }
 0x1c4   :  { %v1213_v62 = vmul.f32 %v11541_v15, %v1175_v55  ;;  %v749_v32 = vpack.c.bf16 %v723_v0, %v722_v35 }
 0x1c5   :  { %v9802_v2 = vpop.eup %9801  ;;  %v686_v38 = vmul.f32 %v11815_v52, %v648_v61 }
 0x1c6   :  { %v9804_v36 = vpop.eup %9803  ;;  %8735 = vmatmul.mubr.msk.bf16.gmra.mrb[8].mxu0 %vm250_vm0, %v749_v32  ;;  %v1251_v56 = vadd.f32 %v11557_v7, %v1213_v62  ;;  %v649_v19 = vmul.f32 %v9802_v2, %v15821_v14  ;;  %v11827_v7 = vld [vmem:[%s15786_s25] ss:$0 sm:$0xff] }
 0x1c7   :  { %v650_v15 = vmul.f32 %v9804_v36, %v15822_v40  ;;  %v724_v1 = vadd.f32 %v11827_v7, %v686_v38 }
 0x1c8   :  { %v11819_v21 = vpack.c.bf16 %v1251_v56, %v1250_v30  ;;  %v687_v50 = vmul.f32 %v11815_v52, %v649_v19 }
 0x1c9   :  { %v9806_v49 = vpop.eup %9805  ;;  %v688_v28 = vmul.f32 %v11815_v52, %v650_v15 }
 0x1ca   :  { %15823 = vst [vmem:[#allocation19_spill] sm:$0xff] %v11819_v21  ;;  %v9808_v4 = vpop.eup %9807  ;;  %8795 = vmatmul.mubr.msk.bf16.gmra.mrb[36].mxu1 %vm250_vm0, %v11819_v21  ;;  %v725_v58 = vadd.f32 %v11827_v7, %v687_v50  ;;  %v651_v16 = vmul.f32 %v9806_v49, %v15824_v20 }
 0x1cb   :  { %v652_v31 = vmul.f32 %v9808_v4, %v15825_v44  ;;  %v726_v8 = vadd.f32 %v11827_v7, %v688_v28 }
 0x1cc   :  { %v750_v43 = vpack.c.bf16 %v725_v58, %v724_v1  ;;  %v689_v39 = vmul.f32 %v11815_v52, %v651_v16 }
 0x1cd   :  { %v9810_v24 = vpop.eup %9809  ;;  %v690_v46 = vmul.f32 %v11815_v52, %v652_v31 }
 0x1ce   :  { %8738 = vmatprep.mubr.msk.bf16.mxu0 %vm250_vm0, %v750_v43  ;;  %v727_v45 = vadd.f32 %v11827_v7, %v689_v39  ;;  %v653_v53 = vmul.f32 %v9810_v24, %v15826_v57 }
 0x1cf   :  { %v728_v33 = vadd.f32 %v11827_v7, %v690_v46 }
 0x1d0   :  { %v751_v42 = vpack.c.bf16 %v727_v45, %v726_v8  ;;  %v691_v48 = vmul.f32 %v11815_v52, %v653_v53 }
 0x1d2   :  { %8739 = vmatmul.mubr.msk.bf16.gmra.mrb[12].mxu0 %vm250_vm0, %v751_v42  ;;  %v729_v11 = vadd.f32 %v11827_v7, %v691_v48 }
 0x1d4   :  { %v752_v17 = vpack.c.bf16 %v729_v11, %v728_v33 }
 0x1d6   :  { %8742 = vmatprep.mubr.msk.bf16.mxu0 %vm250_vm0, %v752_v17 }
 0x1fc   :  { %v500_v60 = vpop.xlane.xlu0 %499 }
 0x1fd   :  { %v558_v55 = vmul.f32 0.015625, %v500_v60 }
 0x1ff   :  { %v590_v35 = vadd.f32 1e-05, %v558_v55  ;;  %v503_v0 = vpop.xlane.xlu1 %502 }
 0x200   :  { %v559_v63 = vmul.f32 0.015625, %v503_v0 }
 0x201   :  { %9811 = vrsqrt.f32 %v590_v35 }
 0x202   :  { %v591_v61 = vadd.f32 1e-05, %v559_v63 }
 0x204   :  { %9813 = vrsqrt.f32 %v591_v61 }
 0x20b   :  { %v9812_v62 = vpop.eup %9811 }
 0x20c   :  { %v654_v32 = vmul.f32 %v9812_v62, %v11578_v9 }
 0x20e   :  { %v9814_v2 = vpop.eup %9813  ;;  %v692_v56 = vmul.f32 %v11815_v52, %v654_v32 }
 0x20f   :  { %v655_v30 = vmul.f32 %v9814_v2, %v11590_v37 }
 0x210   :  { %v506_v36 = vpop.xlane.xlu0 %505  ;;  %v730_v49 = vadd.f32 %v11827_v7, %v692_v56 }
 0x211   :  { %v560_v14 = vmul.f32 0.015625, %v506_v36  ;;  %v693_v19 = vmul.f32 %v11815_v52, %v655_v30 }
 0x213   :  { %v592_v38 = vadd.f32 1e-05, %v560_v14  ;;  %v509_v40 = vpop.xlane.xlu1 %508  ;;  %v731_v4 = vadd.f32 %v11827_v7, %v693_v19 }
 0x214   :  { %v561_v15 = vmul.f32 0.015625, %v509_v40  ;;  %v512_v50 = vpop.xlane.xlu0 %511 }
 0x215   :  { %9815 = vrsqrt.f32 %v592_v38  ;;  %v562_v1 = vmul.f32 0.015625, %v512_v50  ;;  %v753_v58 = vpack.c.bf16 %v731_v4, %v730_v49  ;;  %v11900_v4 = vld [vmem:[%s15513_s9] ss:$0 sm:$0xff]  ;;  %s10576_s9 = smov 112  }
 0x216   :  { %v593_v9 = vadd.f32 1e-05, %v561_v15 }
 0x217   :  { %v594_v20 = vadd.f32 1e-05, %v562_v1  ;;  %v515_v37 = vpop.xlane.xlu1 %514  ;;  %8743 = vmatmul.mubr.msk.bf16.gmra.mrb[16].mxu0 %vm250_vm0, %v753_v58 }
 0x218   :  { %9817 = vrsqrt.f32 %v593_v9  ;;  %v563_v16 = vmul.f32 0.015625, %v515_v37 }
 0x219   :  { %9819 = vrsqrt.f32 %v594_v20 }
 0x21a   :  { %v595_v28 = vadd.f32 1e-05, %v563_v16 }
 0x21c   :  { %9821 = vrsqrt.f32 %v595_v28 }
 0x21f   :  { %v9816_v44 = vpop.eup %9815 }
 0x220   :  { %v656_v31 = vmul.f32 %v9816_v44, %v11633_v26 }
 0x222   :  { %v9818_v43 = vpop.eup %9817  ;;  %v694_v8 = vmul.f32 %v11815_v52, %v656_v31 }
 0x223   :  { %v9820_v39 = vpop.eup %9819  ;;  %v657_v24 = vmul.f32 %v9818_v43, %v11643_v34 }
 0x224   :  { %v658_v45 = vmul.f32 %v9820_v39, %v11646_v5  ;;  %v732_v46 = vadd.f32 %v11827_v7, %v694_v8 }
 0x225   :  { %v695_v57 = vmul.f32 %v11815_v52, %v657_v24 }
 0x226   :  { %v9822_v53 = vpop.eup %9821  ;;  %v696_v33 = vmul.f32 %v11815_v52, %v658_v45 }
 0x227   :  { %v733_v42 = vadd.f32 %v11827_v7, %v695_v57  ;;  %v659_v48 = vmul.f32 %v9822_v53, %v11663_v41  ;;  %v11871_v41 = vld [vmem:[%s15511_s7] ss:$0 sm:$0xff] }
 0x228   :  { %v734_v34 = vadd.f32 %v11827_v7, %v696_v33 }
 0x229   :  { %v754_v26 = vpack.c.bf16 %v733_v42, %v732_v46  ;;  %v697_v11 = vmul.f32 %v11815_v52, %v659_v48 }
 0x22b   :  { %8746 = vmatprep.mubr.msk.bf16.mxu0 %vm250_vm0, %v754_v26  ;;  %v735_v5 = vadd.f32 %v11827_v7, %v697_v11 }
 0x22d   :  { %v755_v17 = vpack.c.bf16 %v735_v5, %v734_v34 }
 0x22f   :  { %8747 = vmatmul.mubr.msk.bf16.gmra.mrb[20].mxu0 %vm250_vm0, %v755_v17 }
 0x230   :  { %8806 = vmatprep.mubr.msk.bf16.mxu0 %vm250_vm0, %v11571_v6 }
 0x231   :  { %v8752_v60 = vpop.f32.mrb[0].mxu1 }
 0x232   :  { %v1476_v55 = vpop.f32.mrb[1].mxu1  ;;  %v1485_v35 = vadd.f32 %v8752_v60, %v11871_v41 }
 0x233   :  { %v8753_v52 = vpop.f32.mrb[2].mxu1  ;;  %v1477_v7 = vadd.f32 %v11871_v41, %v1476_v55 }
 0x234   :  { %v1488_v0 = vadd.f32 %v8753_v52, %v11871_v41  ;;  %v1479_v63 = vpop.f32.mrb[3].mxu1 }
 0x235   :  { %v1480_v61 = vadd.f32 %v11871_v41, %v1479_v63 }
 0x236   :  { %v11877_v62 = vpack.c.bf16 %v1488_v0, %v1485_v35 }
 0x237   :  { %v11879_v32 = vpack.c.bf16 %v1480_v61, %v1477_v7  ;;  %8807 = vmatmul.mubr.msk.bf16.vlgmr.msra.gmra.mrb[24].mxu0 %vm250_vm0, %v11584_v3 }
 0x238   :  { %15827 = vst [vmem:[#allocation23_spill] sm:$0xff] %v11877_v62  ;;  %8810 = vmatprep.mubr.msk.bf16.mxu0 %vm250_vm0, %v11602_v51 }
 0x239   :  { %15828 = vst [vmem:[#allocation24_spill] sm:$0xff] %v11879_v32  ;;  %v8756_v2 = vpop.f32.mrb[4].mxu1 }
 0x23a   :  { %v1492_v36 = vpop.f32.mrb[5].mxu1  ;;  %v1501_v56 = vadd.f32 %v8756_v2, %v11871_v41 }
 0x23b   :  { %v8757_v30 = vpop.f32.mrb[6].mxu1  ;;  %v1493_v38 = vadd.f32 %v11871_v41, %v1492_v36 }
 0x23c   :  { %v1504_v14 = vadd.f32 %v8757_v30, %v11871_v41  ;;  %v1495_v19 = vpop.f32.mrb[7].mxu1 }
 0x23d   :  { %v1496_v40 = vadd.f32 %v11871_v41, %v1495_v19 }
 0x23e   :  { %v11889_v15 = vpack.c.bf16 %v1504_v14, %v1501_v56 }
 0x23f   :  { %v11891_v50 = vpack.c.bf16 %v1496_v40, %v1493_v38  ;;  %8811 = vmatmul.mubr.msk.bf16.gmra.mrb[28].mxu0 %vm250_vm0, %v11613_v13 }
 0x240   :  { %15829 = vst [vmem:[#allocation25_spill] sm:$0xff] %v11889_v15  ;;  %8814 = vmatprep.mubr.msk.bf16.mxu0 %vm250_vm0, %v11622_v47 }
 0x241   :  { %15830 = vst [vmem:[#allocation26_spill] sm:$0xff] %v11891_v50  ;;  %v8768_v49 = vpop.f32.mrb[8].mxu1 }
 0x242   :  { %v1635_v1 = vpop.f32.mrb[9].mxu1  ;;  %v1644_v58 = vadd.f32 %v8768_v49, %v11900_v4 }
 0x243   :  { %v8769_v9 = vpop.f32.mrb[10].mxu1  ;;  %v1636_v16 = vadd.f32 %v11900_v4, %v1635_v1 }
 0x244   :  { %v1647_v20 = vadd.f32 %v8769_v9, %v11900_v4  ;;  %v1638_v37 = vpop.f32.mrb[11].mxu1 }
 0x245   :  { %v1639_v28 = vadd.f32 %v11900_v4, %v1638_v37 }
 0x246   :  { %v11906_v44 = vpack.c.bf16 %v1647_v20, %v1644_v58 }
 0x247   :  { %v11908_v31 = vpack.c.bf16 %v1639_v28, %v1636_v16  ;;  %8815 = vmatmul.mubr.msk.bf16.gmra.mrb[32].mxu0 %vm250_vm0, %v11629_v59 }
 0x248   :  { %15831 = vst [vmem:[#allocation5_spill] sm:$0xff] %v11906_v44  ;;  %8818 = vmatprep.mubr.msk.bf16.mxu0 %vm250_vm0, %v11657_v12  ;;  %v2014_v34 = vsel %vm1985_vm1, %v11906_v44, 0 }
 0x249   :  { %15832 = vst [vmem:[#allocation6_spill] sm:$0xff] %v11908_v31  ;;  %2819 = vrot.lane.b32.xlu1 %v11908_v31, %s10576_s9  ;;  %v8772_v43 = vpop.f32.mrb[12].mxu1  ;;  %v2011_v39 = vsel %vm1985_vm1, %v11908_v31, 0  ;;  %9574 = vmatprep.subr.msk.bf16.mxu1 %vm1985_vm1, %v11908_v31 }
 0x24a   :  { %v1651_v24 = vpop.f32.mrb[13].mxu1  ;;  %8839 = vmatpush3.bf16.xpose.msra.mxu1 %v2011_v39  ;;  %v1660_v45 = vadd.f32 %v8772_v43, %v11900_v4 }
 0x24b   :  { %v8773_v8 = vpop.f32.mrb[14].mxu1  ;;  %9575 = vmatprep.subr.msk.bf16.mxu1 %vm1985_vm1, %v11906_v44  ;;  %v1652_v46 = vadd.f32 %v11900_v4, %v1651_v24 }
 0x24c   :  { %v1663_v57 = vadd.f32 %v8773_v8, %v11900_v4  ;;  %v1654_v53 = vpop.f32.mrb[15].mxu1 }
 0x24d   :  { %v1655_v42 = vadd.f32 %v11900_v4, %v1654_v53 }
 0x24e   :  { %v11926_v48 = vpack.c.bf16 %v1663_v57, %v1660_v45 }
 0x24f   :  { %v11928_v33 = vpack.c.bf16 %v1655_v42, %v1652_v46  ;;  %8819 = vmatmul.mubr.msk.bf16.gmra.mrb[36].mxu0 %vm250_vm0, %v11676_v10 }
 0x250   :  { %15833 = vst [vmem:[#allocation7_spill] sm:$0xff] %v11926_v48  ;;  %8822 = vmatprep.mubr.msk.bf16.mxu0 %vm250_vm0, %v11686_v18  ;;  %v2020_v49 = vsel %vm1985_vm1, %v11926_v48, 0 }
 0x251   :  { %15834 = vst [vmem:[#allocation8_spill] sm:$0xff] %v11928_v33  ;;  %v8776_v26 = vpop.f32.mrb[16].mxu1  ;;  %v2017_v7 = vsel %vm1985_vm1, %v11928_v33, 0 }
 0x252   :  { %v1667_v11 = vpop.f32.mrb[17].mxu1  ;;  %8841 = vmatpush3.bf16.xpose.msra.mxu1 %v2014_v34  ;;  %v1676_v17 = vadd.f32 %v8776_v26, %v11900_v4 }
 0x253   :  { %v8777_v5 = vpop.f32.mrb[18].mxu1  ;;  %9576 = vmatprep.subr.msk.bf16.mxu1 %vm1985_vm1, %v11928_v33  ;;  %v1668_v52 = vadd.f32 %v11900_v4, %v1667_v11 }
 0x254   :  { %v1679_v60 = vadd.f32 %v8777_v5, %v11900_v4  ;;  %v1670_v55 = vpop.f32.mrb[19].mxu1 }
 0x255   :  { %v1671_v35 = vadd.f32 %v11900_v4, %v1670_v55 }
 0x256   :  { %v11942_v0 = vpack.c.bf16 %v1679_v60, %v1676_v17 }
 0x257   :  { %v11944_v63 = vpack.c.bf16 %v1671_v35, %v1668_v52  ;;  %8823 = vmatmul.mubr.msk.bf16.gmra.mrb[40].mxu0 %vm250_vm0, %v11692_v25 }
 0x258   :  { %15835 = vst [vmem:[#allocation9_spill] sm:$0xff] %v11942_v0  ;;  %8826 = vmatprep.mubr.msk.bf16.mxu0 %vm250_vm0, %v11706_v29  ;;  %v2026_v53 = vsel %vm1985_vm1, %v11942_v0, 0 }
 0x259   :  { %15836 = vst [vmem:[#allocation10_spill] sm:$0xff] %v11944_v63  ;;  %v2023_v8 = vsel %vm1985_vm1, %v11944_v63, 0 }
 0x25a   :  { %8843 = vmatpush3.bf16.xpose.msra.mxu1 %v2017_v7 }
 0x25b   :  { %9577 = vmatprep.subr.msk.bf16.mxu1 %vm1985_vm1, %v11926_v48 }
 0x25d   :  { %v8780_v61 = vpop.f32.mrb[20].mxu1 }
 0x25e   :  { %v1683_v2 = vpop.f32.mrb[21].mxu1  ;;  %v1692_v30 = vadd.f32 %v8780_v61, %v11900_v4 }
 0x25f   :  { %v8781_v36 = vpop.f32.mrb[22].mxu1  ;;  %8827 = vmatmul.mubr.msk.bf16.gmra.mrb[44].mxu0 %vm250_vm0, %v11722_v22  ;;  %v1684_v19 = vadd.f32 %v11900_v4, %v1683_v2  ;;  %v9655_v2 = vld [vmem:[%s15514_s10 + $0x20] sm:$0xff]  }
 0x260   :  { %v1695_v56 = vadd.f32 %v8781_v36, %v11900_v4  ;;  %v1686_v14 = vpop.f32.mrb[23].mxu1  ;;  %8830 = vmatprep.mubr.msk.bf16.mxu0 %vm250_vm0, %v11739_v27 }
 0x261   :  { %v1687_v38 = vadd.f32 %v11900_v4, %v1686_v14 }
 0x262   :  { %v11962_v40 = vpack.c.bf16 %v1695_v56, %v1692_v30  ;;  %8845 = vmatpush3.bf16.xpose.msra.mxu1 %v2020_v49 }
 0x263   :  { %v11966_v1 = vpack.c.bf16 %v1687_v38, %v1684_v19  ;;  %9578 = vmatprep.subr.msk.bf16.mxu1 %vm1985_vm1, %v11944_v63 }
 0x264   :  { %15837 = vst [vmem:[#allocation11_spill] sm:$0xff] %v11962_v40  ;;  %v2032_v56 = vsel %vm1985_vm1, %v11962_v40, 0 }
 0x265   :  { %15838 = vst [vmem:[#allocation27_spill] sm:$0xff] %v11966_v1  ;;  %v8784_v9 = vpop.f32.mrb[24].mxu1  ;;  %v2029_v35 = vsel %vm1985_vm1, %v11966_v1, 0 }
 0x266   :  { %v1699_v58 = vpop.f32.mrb[25].mxu1  ;;  %v1708_v37 = vadd.f32 %v8784_v9, %v11900_v4 }
 0x267   :  { %v8785_v20 = vpop.f32.mrb[26].mxu1  ;;  %8831 = vmatmul.mubr.msk.bf16.gmra.mrb[48].mxu0 %vm250_vm0, %v11760_v54  ;;  %v1700_v43 = vadd.f32 %v11900_v4, %v1699_v58 }
 0x268   :  { %v1711_v16 = vadd.f32 %v8785_v20, %v11900_v4  ;;  %v1702_v28 = vpop.f32.mrb[27].mxu1  ;;  %8834 = vmatprep.mubr.msk.bf16.mxu0 %vm250_vm0, %v11797_v23 }
 0x269   :  { %v1703_v39 = vadd.f32 %v11900_v4, %v1702_v28 }
 0x26a   :  { %v11978_v24 = vpack.c.bf16 %v1711_v16, %v1708_v37  ;;  %8847 = vmatpush3.bf16.xpose.msra.mxu1 %v2023_v8 }
 0x26b   :  { %v11982_v45 = vpack.c.bf16 %v1703_v39, %v1700_v43  ;;  %9579 = vmatprep.subr.msk.bf16.mxu1 %vm1985_vm1, %v11942_v0 }
 0x26c   :  { %15839 = vst [vmem:[#allocation33_spill] sm:$0xff] %v11978_v24  ;;  %3014 = vrot.lane.b32.xlu1 %v11978_v24, %s10576_s9  ;;  %v2159_v42 = vsel %vm1985_vm1, %v11978_v24, 0 }
 0x26d   :  { %15840 = vst [vmem:[#allocation34_spill] sm:$0xff] %v11982_v45  ;;  %3012 = vrot.lane.b32.xlu0 %v11982_v45, %s10576_s9  ;;  %9582 = vmatprep.subr.msk.bf16.mxu0 %vm1985_vm1, %v11982_v45  ;;  %v2156_v57 = vsel %vm1985_vm1, %v11982_v45, 0 }
 0x26e   :  { %8871 = vmatpush3.bf16.xpose.msra.mxu0 %v2156_v57 }
 0x26f   :  { %9583 = vmatprep.subr.msk.bf16.mxu0 %vm1985_vm1, %v11978_v24  ;;  %8835 = vmatmul.mubr.msk.bf16.gmra.mrb[52].mxu0 %vm250_vm0, %v11819_v21 }
 0x270   :  { %2821 = vrot.lane.b32.xlu1 %v11906_v44, %s10576_s9 }
 0x272   :  { %8849 = vmatpush3.bf16.xpose.msra.mxu1 %v2026_v53 }
 0x273   :  { %9580 = vmatprep.subr.msk.bf16.mxu1 %vm1985_vm1, %v11966_v1 }
 0x274   :  { %2823 = vrot.lane.b32.xlu1 %v11928_v33, %s10576_s9 }
 0x275   :  { %v8788_v46 = vpop.f32.mrb[28].mxu1 }
 0x276   :  { %v1715_v26 = vpop.f32.mrb[29].mxu1  ;;  %8873 = vmatpush3.bf16.xpose.msra.mxu0 %v2159_v42  ;;  %v1724_v34 = vadd.f32 %v8788_v46, %v11900_v4  ;;  %v9656_v46 = vld [vmem:[%s15514_s10 + $0x28] sm:$0xff]  }
 0x277   :  { %v8789_v11 = vpop.f32.mrb[30].mxu1  ;;  %v1716_v60 = vadd.f32 %v11900_v4, %v1715_v26 }
 0x278   :  { %v1727_v5 = vadd.f32 %v8789_v11, %v11900_v4  ;;  %2825 = vrot.lane.b32.xlu1 %v11926_v48, %s10576_s9  ;;  %v1718_v17 = vpop.f32.mrb[31].mxu1 }
 0x279   :  { %v1719_v55 = vadd.f32 %v11900_v4, %v1718_v17 }
 0x27a   :  { %v12014_v52 = vpack.c.bf16 %v1727_v5, %v1724_v34  ;;  %8851 = vmatpush3.bf16.xpose.msra.mxu1 %v2029_v35  ;;  %v9657_v5 = vld [vmem:[%s15514_s10 + $0x30] sm:$0xff]  }
 0x27b   :  { %v12018_v7 = vpack.c.bf16 %v1719_v55, %v1716_v60  ;;  %9581 = vmatprep.subr.msk.bf16.mxu1 %vm1985_vm1, %v11962_v40 }
 0x27c   :  { %15841 = vst [vmem:[#allocation35_spill] sm:$0xff] %v12014_v52  ;;  %2827 = vrot.lane.b32.xlu1 %v11944_v63, %s10576_s9  ;;  %v2165_v37 = vsel %vm1985_vm1, %v12014_v52, 0 }
 0x27d   :  { %15842 = vst [vmem:[#allocation36_spill] sm:$0xff] %v12018_v7  ;;  %3016 = vrot.lane.b32.xlu0 %v12018_v7, %s10576_s9  ;;  %9584 = vmatprep.subr.msk.bf16.mxu0 %vm1985_vm1, %v12018_v7  ;;  %v2162_v61 = vsel %vm1985_vm1, %v12018_v7, 0 }
 0x27e   :  { %8875 = vmatpush3.bf16.xpose.msra.mxu0 %v2162_v61 }
 0x27f   :  { %9585 = vmatprep.subr.msk.bf16.mxu0 %vm1985_vm1, %v12014_v52 }
 0x280   :  { %2829 = vrot.lane.b32.xlu1 %v11942_v0, %s10576_s9 }
 0x281   :  { %3018 = vrot.lane.b32.xlu0 %v12014_v52, %s10576_s9  ;;  %v8728_v36 = vpop.f32.mrb[0].mxu0 }
 0x282   :  { %v1380_v30 = vpop.f32.mrb[1].mxu0  ;;  %8853 = vmatpush3.bf16.xpose.msra.mxu1 %v2032_v56  ;;  %v1389_v19 = vadd.f32 %v8728_v36, %v11871_v41 }
 0x283   :  { %v8729_v14 = vpop.f32.mrb[2].mxu0  ;;  %8902 = vmatprep.subr.bf16.mxu1 %v9655_v2  ;;  %v1381_v9 = vadd.f32 %v11871_v41, %v1380_v30  ;;  %v9658_v30 = vld [vmem:[%s15514_s10 + $0x38] sm:$0xff]  }
 0x284   :  { %v1392_v38 = vadd.f32 %v8729_v14, %v11871_v41  ;;  %2831 = vrot.lane.b32.xlu1 %v11966_v1, %s10576_s9  ;;  %v1383_v49 = vpop.f32.mrb[3].mxu0 }
 0x285   :  { %v1384_v58 = vadd.f32 %v11871_v41, %v1383_v49  ;;  %v8792_v20 = vpop.f32.mrb[32].mxu1 }
 0x286   :  { %v12049_v16 = vpack.c.bf16 %v1392_v38, %v1389_v19  ;;  %v1731_v28 = vpop.f32.mrb[33].mxu1  ;;  %8877 = vmatpush3.bf16.xpose.msra.mxu0 %v2165_v37  ;;  %v1740_v8 = vadd.f32 %v8792_v20, %v11900_v4 }
 0x287   :  { %v12051_v43 = vpack.c.bf16 %v1384_v58, %v1381_v9  ;;  %v8793_v39 = vpop.f32.mrb[34].mxu1  ;;  %v1732_v42 = vadd.f32 %v11900_v4, %v1731_v28 }
 0x288   :  { %15843 = vst [vmem:[#allocation37_spill] sm:$0xff] %v12049_v16  ;;  %v1743_v57 = vadd.f32 %v8793_v39, %v11900_v4  ;;  %2833 = vrot.lane.b32.xlu1 %v11962_v40, %s10576_s9  ;;  %v1734_v53 = vpop.f32.mrb[35].mxu1 }
 0x289   :  { %15844 = vst [vmem:[#allocation38_spill] sm:$0xff] %v12051_v43  ;;  %v1735_v26 = vadd.f32 %v11900_v4, %v1734_v53  ;;  %8854 = vmatprep.mubr.msk.bf16.mxu1 %vm1985_vm1, %v12051_v43 }
 0x28a   :  { %v12064_v11 = vpack.c.bf16 %v1743_v57, %v1740_v8  ;;  %8855 = vmatmul.mubr.msk.bf16.vlgmr.msra.gmra.mrb[40].mxu1 %vm1985_vm1, %v12049_v16 }
 0x28b   :  { %v12068_v34 = vpack.c.bf16 %v1735_v26, %v1732_v42  ;;  %8903 = vmatpush3.bf16.msra.mxu1 %v9655_v2 }
 0x28c   :  { %15845 = vst [vmem:[#allocation39_spill] sm:$0xff] %v12064_v11  ;;  %8904 = vmatprep.subr.bf16.mxu1 %v9656_v46  ;;  %v2171_v49 = vsel %vm1985_vm1, %v12064_v11, 0 }
 0x28d   :  { %15846 = vst [vmem:[#allocation40_spill] sm:$0xff] %v12068_v34  ;;  %3020 = vrot.lane.b32.xlu0 %v12068_v34, %s10576_s9  ;;  %v8732_v17 = vpop.f32.mrb[4].mxu0  ;;  %9586 = vmatprep.subr.msk.bf16.mxu0 %vm1985_vm1, %v12068_v34  ;;  %v2168_v60 = vsel %vm1985_vm1, %v12068_v34, 0 }
 0x28e   :  { %v1396_v55 = vpop.f32.mrb[5].mxu0  ;;  %8879 = vmatpush3.bf16.xpose.msra.mxu0 %v2168_v60  ;;  %v1405_v61 = vadd.f32 %v8732_v17, %v11871_v41 }
 0x28f   :  { %v8733_v35 = vpop.f32.mrb[6].mxu0  ;;  %9587 = vmatprep.subr.msk.bf16.mxu0 %vm1985_vm1, %v12064_v11  ;;  %8905 = vmatpush3.bf16.msra.mxu1 %v9656_v46  ;;  %v1397_v56 = vadd.f32 %v11871_v41, %v1396_v55 }
 0x290   :  { %v1408_v2 = vadd.f32 %v8733_v35, %v11871_v41  ;;  %v1399_v36 = vpop.f32.mrb[7].mxu0  ;;  %8906 = vmatprep.subr.bf16.mxu1 %v9657_v5 }
 0x291   :  { %v1400_v14 = vadd.f32 %v11871_v41, %v1399_v36  ;;  %3022 = vrot.lane.b32.xlu0 %v12064_v11, %s10576_s9 }
 0x292   :  { %v12090_v19 = vpack.c.bf16 %v1408_v2, %v1405_v61 }
 0x293   :  { %v12092_v38 = vpack.c.bf16 %v1400_v14, %v1397_v56  ;;  %8907 = vmatpush3.bf16.msra.mxu1 %v9657_v5 }
 0x294   :  { %15847 = vst [vmem:[#allocation41_spill] sm:$0xff] %v12090_v19  ;;  %8908 = vmatprep.subr.bf16.mxu1 %v9658_v30 }
 0x295   :  { %15848 = vst [vmem:[#allocation42_spill] sm:$0xff] %v12092_v38  ;;  %8858 = vmatprep.mubr.msk.bf16.mxu1 %vm1985_vm1, %v12092_v38 }
 0x296   :  { %8859 = vmatmul.mubr.msk.bf16.gmra.mrb[44].mxu1 %vm1985_vm1, %v12090_v19  ;;  %8881 = vmatpush3.bf16.xpose.msra.mxu0 %v2171_v49 }
 0x297   :  { %8909 = vmatpush3.bf16.msra.mxu1 %v9658_v30 }
 0x299   :  { %v8736_v9 = vpop.f32.mrb[8].mxu0 }
 0x29a   :  { %v1412_v58 = vpop.f32.mrb[9].mxu0  ;;  %v1421_v37 = vadd.f32 %v8736_v9, %v11871_v41 }
 0x29b   :  { %v8737_v20 = vpop.f32.mrb[10].mxu0  ;;  %v1413_v8 = vadd.f32 %v11871_v41, %v1412_v58 }
 0x29c   :  { %v1424_v28 = vadd.f32 %v8737_v20, %v11871_v41  ;;  %v1415_v39 = vpop.f32.mrb[11].mxu0 }
 0x29d   :  { %v1416_v57 = vadd.f32 %v11871_v41, %v1415_v39  ;;  %v8796_v53 = vpop.f32.mrb[36].mxu1 }
 0x29e   :  { %v12104_v46 = vpack.c.bf16 %v1424_v28, %v1421_v37  ;;  %v1747_v42 = vpop.f32.mrb[37].mxu1  ;;  %v1756_v17 = vadd.f32 %v8796_v53, %v11900_v4 }
 0x29f   :  { %v12106_v26 = vpack.c.bf16 %v1416_v57, %v1413_v8  ;;  %v8797_v5 = vpop.f32.mrb[38].mxu1  ;;  %v1748_v35 = vadd.f32 %v11900_v4, %v1747_v42 }
 0x2a0   :  { %15849 = vst [vmem:[#allocation43_spill] sm:$0xff] %v12104_v46  ;;  %v1759_v60 = vadd.f32 %v8797_v5, %v11900_v4  ;;  %v1750_v55 = vpop.f32.mrb[39].mxu1 }
 0x2a1   :  { %15850 = vst [vmem:[#allocation44_spill] sm:$0xff] %v12106_v26  ;;  %v1751_v61 = vadd.f32 %v11900_v4, %v1750_v55  ;;  %8862 = vmatprep.mubr.msk.bf16.mxu1 %vm1985_vm1, %v12106_v26 }
 0x2a2   :  { %v12114_v2 = vpack.c.bf16 %v1759_v60, %v1756_v17  ;;  %8863 = vmatmul.mubr.msk.bf16.gmra.mrb[48].mxu1 %vm1985_vm1, %v12104_v46 }
 0x2a3   :  { %v12118_v36 = vpack.c.bf16 %v1751_v61, %v1748_v35 }
 0x2a4   :  { %15851 = vst [vmem:[#allocation45_spill] sm:$0xff] %v12114_v2  ;;  %v2177_v8 = vsel %vm1985_vm1, %v12114_v2, 0 }
 0x2a5   :  { %15852 = vst [vmem:[#allocation46_spill] sm:$0xff] %v12118_v36  ;;  %3024 = vrot.lane.b32.xlu0 %v12118_v36, %s10576_s9  ;;  %v8740_v30 = vpop.f32.mrb[12].mxu0  ;;  %9588 = vmatprep.subr.msk.bf16.mxu0 %vm1985_vm1, %v12118_v36  ;;  %v2174_v4 = vsel %vm1985_vm1, %v12118_v36, 0 }
 0x2a6   :  { %v1428_v56 = vpop.f32.mrb[13].mxu0  ;;  %8883 = vmatpush3.bf16.xpose.msra.mxu0 %v2174_v4  ;;  %v1437_v49 = vadd.f32 %v8740_v30, %v11871_v41 }
 0x2a7   :  { %v8741_v14 = vpop.f32.mrb[14].mxu0  ;;  %9589 = vmatprep.subr.msk.bf16.mxu0 %vm1985_vm1, %v12114_v2  ;;  %v1429_v20 = vadd.f32 %v11871_v41, %v1428_v56 }
 0x2a8   :  { %v1440_v9 = vadd.f32 %v8741_v14, %v11871_v41  ;;  %v1431_v58 = vpop.f32.mrb[15].mxu0 }
 0x2a9   :  { %v1432_v37 = vadd.f32 %v11871_v41, %v1431_v58  ;;  %3026 = vrot.lane.b32.xlu0 %v12114_v2, %s10576_s9 }
 0x2aa   :  { %v12134_v28 = vpack.c.bf16 %v1440_v9, %v1437_v49 }
 0x2ab   :  { %v12136_v39 = vpack.c.bf16 %v1432_v37, %v1429_v20 }
 0x2ac   :  { %15853 = vst [vmem:[#allocation47_spill] sm:$0xff] %v12134_v28 }
 0x2ad   :  { %15854 = vst [vmem:[#allocation48_spill] sm:$0xff] %v12136_v39  ;;  %8866 = vmatprep.mubr.msk.bf16.mxu1 %vm1985_vm1, %v12136_v39 }
 0x2ae   :  { %8867 = vmatmul.mubr.msk.bf16.gmra.mrb[52].mxu1 %vm1985_vm1, %v12134_v28  ;;  %8885 = vmatpush3.bf16.xpose.msra.mxu0 %v2177_v8 }
 0x2af   :  { %8910 = vmatprep.mubr.msk.bf16.mxu1 %vm250_vm0, %v11571_v6 }
 0x2b6   :  { %8911 = vmatmul.mubr.msk.bf16.vlgmr.msra.gmra.mrb[56].mxu1 %vm250_vm0, %v11584_v3 }
 0x2b7   :  { %8914 = vmatprep.mubr.msk.bf16.mxu1 %vm250_vm0, %v11602_v51 }
 0x2bb   :  { %v2820_v57 = vpop.permute.xlu1 %2819 }
 0x2bc   :  { %9590 = vmatprep.subr.msk.bf16.mxu1 %vm1985_vm1, %v2820_v57  ;;  %v2860_v53 = vsel %vm1985_vm1, %v2820_v57, 0 }
 0x2bd   :  { %8943 = vmatpush3.bf16.xpose.msra.mxu1 %v2860_v53 }
 0x2be   :  { %8915 = vmatmul.mubr.msk.bf16.gmra.mrb[60].mxu1 %vm250_vm0, %v11613_v13 }
 0x2bf   :  { %8918 = vmatprep.mubr.msk.bf16.mxu1 %vm250_vm0, %v11622_v47 }
 0x2c6   :  { %8919 = vmatmul.mubr.msk.bf16.gmra.mrb[64].mxu1 %vm250_vm0, %v11629_v59 }
 0x2c7   :  { %8922 = vmatprep.mubr.msk.bf16.mxu1 %vm250_vm0, %v11657_v12 }
 0x2ce   :  { %8923 = vmatmul.mubr.msk.bf16.gmra.mrb[68].mxu1 %vm250_vm0, %v11676_v10 }
 0x2cf   :  { %8926 = vmatprep.mubr.msk.bf16.mxu1 %vm250_vm0, %v11686_v18 }
 0x2d6   :  { %8927 = vmatmul.mubr.msk.bf16.gmra.mrb[72].mxu1 %vm250_vm0, %v11692_v25 }
 0x2d7   :  { %8930 = vmatprep.mubr.msk.bf16.mxu1 %vm250_vm0, %v11706_v29 }
 0x2de   :  { %v3015_v42 = vpop.permute.xlu1 %3014  ;;  %8931 = vmatmul.mubr.msk.bf16.gmra.mrb[76].mxu1 %vm250_vm0, %v11722_v22 }
 0x2df   :  { %8934 = vmatprep.mubr.msk.bf16.mxu1 %vm250_vm0, %v11739_v27  ;;  %v3013_v5 = vpop.permute.xlu0 %3012 }
 0x2e0   :  { %9598 = vmatprep.subr.msk.bf16.mxu0 %vm1985_vm1, %v3013_v5 }
 0x2e2   :  { %v2822_v17 = vpop.permute.xlu1 %2821 }
 0x2e3   :  { %9591 = vmatprep.subr.msk.bf16.mxu1 %vm1985_vm1, %v2822_v17  ;;  %v2863_v60 = vsel %vm1985_vm1, %v2822_v17, 0  ;;  %v3053_v17 = vsel %vm1985_vm1, %v3013_v5, 0 }
 0x2e4   :  { %8945 = vmatpush3.bf16.xpose.msra.mxu1 %v2863_v60 }
 0x2e6   :  { %v2824_v55 = vpop.permute.xlu1 %2823  ;;  %8935 = vmatmul.mubr.msk.bf16.gmra.mrb[80].mxu1 %vm250_vm0, %v11760_v54 }
 0x2e7   :  { %8938 = vmatprep.mubr.msk.bf16.mxu1 %vm250_vm0, %v11797_v23  ;;  %9592 = vmatprep.subr.msk.bf16.mxu1 %vm1985_vm1, %v2824_v55  ;;  %v2866_v61 = vsel %vm1985_vm1, %v2824_v55, 0  ;;  %v3056_v55 = vsel %vm1985_vm1, %v3015_v42, 0 }
 0x2ea   :  { %v8744_v35 = vpop.f32.mrb[16].mxu0  ;;  %v2826_v30 = vpop.permute.xlu1 %2825 }
 0x2eb   :  { %v1444_v4 = vpop.f32.mrb[17].mxu0  ;;  %v1453_v14 = vadd.f32 %v8744_v35, %v11871_v41  ;;  %v2869_v57 = vsel %vm1985_vm1, %v2826_v30, 0 }
 0x2ec   :  { %8947 = vmatpush3.bf16.xpose.msra.mxu1 %v2866_v61  ;;  %v8745_v56 = vpop.f32.mrb[18].mxu0  ;;  %v1445_v58 = vadd.f32 %v11871_v41, %v1444_v4 }
 0x2ed   :  { %9593 = vmatprep.subr.msk.bf16.mxu1 %vm1985_vm1, %v2826_v30  ;;  %v1456_v49 = vadd.f32 %v8745_v56, %v11871_v41  ;;  %v1447_v9 = vpop.f32.mrb[19].mxu0 }
 0x2ee   :  { %8939 = vmatmul.mubr.msk.bf16.gmra.mrb[84].mxu1 %vm250_vm0, %v11819_v21  ;;  %v1448_v20 = vadd.f32 %v11871_v41, %v1447_v9  ;;  %v2828_v53 = vpop.permute.xlu1 %2827 }
 0x2ef   :  { %v12188_v37 = vpack.c.bf16 %v1456_v49, %v1453_v14  ;;  %v2872_v5 = vsel %vm1985_vm1, %v2828_v53, 0  ;;  %v3017_v35 = vpop.permute.xlu0 %3016 }
 0x2f0   :  { %v12190_v8 = vpack.c.bf16 %v1448_v20, %v1445_v58  ;;  %v3059_v14 = vsel %vm1985_vm1, %v3017_v35, 0 }
 0x2f1   :  { %15855 = vst [vmem:[#allocation49_spill] sm:$0xff] %v12188_v37  ;;  %2990 = vrot.lane.b32.xlu1 %v12188_v37, %s10576_s9 }
 0x2f2   :  { %15856 = vst [vmem:[#allocation50_spill] sm:$0xff] %v12190_v8  ;;  %2988 = vrot.lane.b32.xlu0 %v12190_v8, %s10576_s9  ;;  %8886 = vmatprep.mubr.msk.bf16.mxu0 %vm1985_vm1, %v12190_v8  ;;  %v2830_v60 = vpop.permute.xlu1 %2829 }
 0x2f3   :  { %8887 = vmatmul.mubr.msk.bf16.vlgmr.msra.gmra.mrb[56].mxu0 %vm1985_vm1, %v12188_v37  ;;  %v2875_v30 = vsel %vm1985_vm1, %v2830_v60, 0  ;;  %v3019_v49 = vpop.permute.xlu0 %3018 }
 0x2f4   :  { %8949 = vmatpush3.bf16.xpose.msra.mxu1 %v2869_v57  ;;  %8975 = vmatpush3.bf16.xpose.msra.mxu0 %v3053_v17 }
 0x2f5   :  { %9594 = vmatprep.subr.msk.bf16.mxu1 %vm1985_vm1, %v2828_v53  ;;  %9599 = vmatprep.subr.msk.bf16.mxu0 %vm1985_vm1, %v3015_v42 }
 0x2f6   :  { %2797 = vrot.lane.b32.xlu1 %v12049_v16, %s10576_s9  ;;  %2795 = vrot.lane.b32.xlu0 %v12051_v43, %s10576_s9  ;;  %v2832_v4 = vpop.permute.xlu1 %2831 }
 0x2fa   :  { %2801 = vrot.lane.b32.xlu1 %v12090_v19, %s10576_s9  ;;  %2799 = vrot.lane.b32.xlu0 %v12092_v38, %s10576_s9 }
 0x2fc   :  { %8951 = vmatpush3.bf16.xpose.msra.mxu1 %v2872_v5  ;;  %8977 = vmatpush3.bf16.xpose.msra.mxu0 %v3056_v55 }
 0x2fd   :  { %9595 = vmatprep.subr.msk.bf16.mxu1 %vm1985_vm1, %v2830_v60  ;;  %9600 = vmatprep.subr.msk.bf16.mxu0 %vm1985_vm1, %v3017_v35  ;;  %v12231_v60 = vld [vmem:[%s15515_s11] ss:$0 sm:$0xff]  ;;  %v2834_v35 = vpop.permute.xlu1 %2833 }
 0x302   :  { %v8748_v61 = vpop.f32.mrb[20].mxu0 }
 0x303   :  { %v1460_v56 = vpop.f32.mrb[21].mxu0  ;;  %v1469_v42 = vadd.f32 %v8748_v61, %v11871_v41 }
 0x304   :  { %8953 = vmatpush3.bf16.xpose.msra.mxu1 %v2875_v30  ;;  %8979 = vmatpush3.bf16.xpose.msra.mxu0 %v3059_v14  ;;  %v8749_v9 = vpop.f32.mrb[22].mxu0  ;;  %v1461_v57 = vadd.f32 %v11871_v41, %v1460_v56  ;;  %v3062_v56 = vsel %vm1985_vm1, %v3019_v49, 0  ;;  %v3021_v14 = vpop.permute.xlu0 %3020 }
 0x305   :  { %9596 = vmatprep.subr.msk.bf16.mxu1 %vm1985_vm1, %v2832_v4  ;;  %v1472_v58 = vadd.f32 %v8749_v9, %v11871_v41  ;;  %9601 = vmatprep.subr.msk.bf16.mxu0 %vm1985_vm1, %v3019_v49  ;;  %v1463_v20 = vpop.f32.mrb[23].mxu0 }
 0x306   :  { %v1464_v53 = vadd.f32 %v11871_v41, %v1463_v20  ;;  %v2878_v41 = vsel %vm1985_vm1, %v2832_v4, 0 }
 0x307   :  { %v12224_v17 = vpack.c.bf16 %v1472_v58, %v1469_v42 }
 0x308   :  { %v12226_v5 = vpack.c.bf16 %v1464_v53, %v1461_v57 }
 0x309   :  { %15857 = vst [vmem:[#allocation51_spill] sm:$0xff] %v12224_v17  ;;  %2994 = vrot.lane.b32.xlu1 %v12224_v17, %s10576_s9 }
 0x30a   :  { %15858 = vst [vmem:[#allocation52_spill] sm:$0xff] %v12226_v5  ;;  %v8808_v55 = vpop.f32.mrb[24].mxu0  ;;  %2992 = vrot.lane.b32.xlu0 %v12226_v5, %s10576_s9  ;;  %8890 = vmatprep.mubr.msk.bf16.mxu0 %vm1985_vm1, %v12226_v5 }
 0x30b   :  { %v1851_v61 = vadd.f32 %v8808_v55, %v12231_v60  ;;  %v1842_v30 = vpop.f32.mrb[25].mxu0  ;;  %8891 = vmatmul.mubr.msk.bf16.gmra.mrb[60].mxu0 %vm1985_vm1, %v12224_v17  ;;  %v2881_v55 = vsel %vm1985_vm1, %v2834_v35, 0 }
 0x30c   :  { %8955 = vmatpush3.bf16.xpose.msra.mxu1 %v2878_v41  ;;  %8981 = vmatpush3.bf16.xpose.msra.mxu0 %v3062_v56  ;;  %v8809_v9 = vpop.f32.mrb[26].mxu0  ;;  %v1843_v58 = vadd.f32 %v12231_v60, %v1842_v30  ;;  %v3023_v56 = vpop.permute.xlu0 %3022 }
 0x30d   :  { %8894 = vmatprep.mubr.msk.bf16.mxu0 %vm1985_vm1, %v11879_v32  ;;  %v1854_v42 = vadd.f32 %v8809_v9, %v12231_v60  ;;  %9602 = vmatprep.subr.msk.bf16.mxu0 %vm1985_vm1, %v3021_v14  ;;  %v1845_v4 = vpop.f32.mrb[27].mxu0 }
 0x30e   :  { %9597 = vmatprep.subr.msk.bf16.mxu1 %vm1985_vm1, %v2834_v35  ;;  %2805 = vrot.lane.b32.xlu1 %v12104_v46, %s10576_s9  ;;  %v1846_v49 = vadd.f32 %v12231_v60, %v1845_v4 }
 0x30f   :  { %2803 = vrot.lane.b32.xlu0 %v12106_v26, %s10576_s9  ;;  %v12255_v20 = vpack.c.bf16 %v1854_v42, %v1851_v61  ;;  %v3065_v61 = vsel %vm1985_vm1, %v3021_v14, 0 }
 0x310   :  { %v12257_v57 = vpack.c.bf16 %v1846_v49, %v1843_v58 }
 0x311   :  { %15859 = vst [vmem:[#allocation53_spill] sm:$0xff] %v12255_v20 }
 0x312   :  { %15860 = vst [vmem:[#allocation54_spill] sm:$0xff] %v12257_v57  ;;  %2998 = vrot.lane.b32.xlu1 %v11877_v62, %s10576_s9  ;;  %v8812_v53 = vpop.f32.mrb[28].mxu0 }
 0x313   :  { %2996 = vrot.lane.b32.xlu0 %v11879_v32, %s10576_s9  ;;  %v1867_v41 = vadd.f32 %v8812_v53, %v12231_v60  ;;  %v1858_v30 = vpop.f32.mrb[29].mxu0  ;;  %8895 = vmatmul.mubr.msk.bf16.gmra.mrb[64].mxu0 %vm1985_vm1, %v11877_v62 }
 0x314   :  { %8957 = vmatpush3.bf16.xpose.msra.mxu1 %v2881_v55  ;;  %v1859_v9 = vadd.f32 %v12231_v60, %v1858_v30  ;;  %8983 = vmatpush3.bf16.xpose.msra.mxu0 %v3065_v61  ;;  %v8813_v42 = vpop.f32.mrb[30].mxu0  ;;  %v3068_v61 = vsel %vm1985_vm1, %v3023_v56, 0 }
 0x315   :  { %8898 = vmatprep.mubr.msk.bf16.mxu0 %vm1985_vm1, %v11891_v50  ;;  %v1870_v4 = vadd.f32 %v8813_v42, %v12231_v60  ;;  %9603 = vmatprep.subr.msk.bf16.mxu0 %vm1985_vm1, %v3023_v56  ;;  %v1861_v35 = vpop.f32.mrb[31].mxu0 }
 0x316   :  { %2809 = vrot.lane.b32.xlu1 %v12134_v28, %s10576_s9  ;;  %v1862_v58 = vadd.f32 %v12231_v60, %v1861_v35 }
 0x317   :  { %2807 = vrot.lane.b32.xlu0 %v12136_v39, %s10576_s9  ;;  %v12278_v14 = vpack.c.bf16 %v1870_v4, %v1867_v41  ;;  %v3025_v42 = vpop.permute.xlu0 %3024 }
 0x318   :  { %v12280_v49 = vpack.c.bf16 %v1862_v58, %v1859_v9  ;;  %v3071_v21 = vsel %vm1985_vm1, %v3025_v42, 0 }
 0x319   :  { %15861 = vst [vmem:[#allocation55_spill] sm:$0xff] %v12278_v14 }
 0x31a   :  { %15862 = vst [vmem:[#allocation56_spill] sm:$0xff] %v12280_v49  ;;  %3002 = vrot.lane.b32.xlu1 %v11889_v15, %s10576_s9  ;;  %v8816_v53 = vpop.f32.mrb[32].mxu0 }
 0x31b   :  { %3000 = vrot.lane.b32.xlu0 %v11891_v50, %s10576_s9  ;;  %v1883_v55 = vadd.f32 %v8816_v53, %v12231_v60  ;;  %v1874_v30 = vpop.f32.mrb[33].mxu0  ;;  %8899 = vmatmul.mubr.msk.bf16.gmra.mrb[68].mxu0 %vm1985_vm1, %v11889_v15  ;;  %v3027_v23 = vpop.permute.xlu0 %3026 }
 0x31c   :  { %v1875_v41 = vadd.f32 %v12231_v60, %v1874_v30  ;;  %8985 = vmatpush3.bf16.xpose.msra.mxu0 %v3068_v61  ;;  %v8817_v9 = vpop.f32.mrb[34].mxu0  ;;  %v3074_v29 = vsel %vm1985_vm1, %v3027_v23, 0 }
 0x31d   :  { %v1886_v4 = vadd.f32 %v8817_v9, %v12231_v60  ;;  %9604 = vmatprep.subr.msk.bf16.mxu0 %vm1985_vm1, %v3025_v42  ;;  %v1877_v35 = vpop.f32.mrb[35].mxu0 }
 0x31e   :  { %4090 = vrot.lane.b32.xlu1 %v11906_v44, %s10577_s19  ;;  %v1878_v58 = vadd.f32 %v12231_v60, %v1877_v35 }
 0x31f   :  { %4088 = vrot.lane.b32.xlu0 %v11908_v31, %s10577_s19  ;;  %v12298_v56 = vpack.c.bf16 %v1886_v4, %v1883_v55 }
 0x320   :  { %v12300_v53 = vpack.c.bf16 %v1878_v58, %v1875_v41 }
 0x321   :  { %15863 = vst [vmem:[#allocation57_spill] sm:$0xff] %v12298_v56 }
 0x322   :  { %15864 = vst [vmem:[#allocation58_spill] sm:$0xff] %v12300_v53  ;;  %v8820_v30 = vpop.f32.mrb[36].mxu0 }
 0x323   :  { %v1899_v61 = vadd.f32 %v8820_v30, %v12231_v60  ;;  %v1890_v9 = vpop.f32.mrb[37].mxu0 }
 0x324   :  { %v1891_v54 = vadd.f32 %v12231_v60, %v1890_v9  ;;  %8987 = vmatpush3.bf16.xpose.msra.mxu0 %v3071_v21  ;;  %v8821_v27 = vpop.f32.mrb[38].mxu0 }
 0x325   :  { %v1902_v35 = vadd.f32 %v8821_v27, %v12231_v60  ;;  %9605 = vmatprep.subr.msk.bf16.mxu0 %vm1985_vm1, %v3027_v23  ;;  %v1893_v22 = vpop.f32.mrb[39].mxu0 }
 0x326   :  { %v1894_v55 = vadd.f32 %v12231_v60, %v1893_v22 }
 0x327   :  { %v12308_v41 = vpack.c.bf16 %v1902_v35, %v1899_v61 }
 0x328   :  { %v12310_v4 = vpack.c.bf16 %v1894_v55, %v1891_v54 }
 0x329   :  { %15865 = vst [vmem:[#allocation59_spill] sm:$0xff] %v12308_v41 }
 0x32a   :  { %15866 = vst [vmem:[#allocation60_spill] sm:$0xff] %v12310_v4  ;;  %v8824_v58 = vpop.f32.mrb[40].mxu0 }
 0x32b   :  { %v1915_v30 = vadd.f32 %v8824_v58, %v12231_v60  ;;  %v1906_v42 = vpop.f32.mrb[41].mxu0 }
 0x32c   :  { %8989 = vmatpush3.bf16.xpose.msra.mxu0 %v3074_v29  ;;  %v8825_v21 = vpop.f32.mrb[42].mxu0  ;;  %v1907_v25 = vadd.f32 %v12231_v60, %v1906_v42 }
 0x32d   :  { %v1918_v9 = vadd.f32 %v8825_v21, %v12231_v60  ;;  %v1909_v27 = vpop.f32.mrb[43].mxu0 }
 0x32e   :  { %v1910_v18 = vadd.f32 %v12231_v60, %v1909_v27 }
 0x32f   :  { %v12317_v22 = vpack.c.bf16 %v1918_v9, %v1915_v30 }
 0x330   :  { %v12319_v61 = vpack.c.bf16 %v1910_v18, %v1907_v25 }
 0x331   :  { %15867 = vst [vmem:[#allocation61_spill] sm:$0xff] %v12317_v22 }
 0x332   :  { %15868 = vst [vmem:[#allocation62_spill] sm:$0xff] %v12319_v61  ;;  %v8828_v54 = vpop.f32.mrb[44].mxu0 }
 0x333   :  { %v1931_v35 = vadd.f32 %v8828_v54, %v12231_v60  ;;  %v1922_v55 = vpop.f32.mrb[45].mxu0 }
 0x334   :  { %v1923_v58 = vadd.f32 %v12231_v60, %v1922_v55  ;;  %v8829_v23 = vpop.f32.mrb[46].mxu0 }
 0x335   :  { %v1934_v29 = vadd.f32 %v8829_v23, %v12231_v60  ;;  %v1925_v10 = vpop.f32.mrb[47].mxu0 }
 0x336   :  { %v1926_v21 = vadd.f32 %v12231_v60, %v1925_v10 }
 0x337   :  { %v12325_v12 = vpack.c.bf16 %v1934_v29, %v1931_v35 }
 0x338   :  { %v12327_v42 = vpack.c.bf16 %v1926_v21, %v1923_v58 }
 0x339   :  { %15869 = vst [vmem:[#allocation63_spill] sm:$0xff] %v12325_v12 }
 0x33a   :  { %15870 = vst [vmem:[#allocation64_spill] sm:$0xff] %v12327_v42  ;;  %v8832_v30 = vpop.f32.mrb[48].mxu0 }
 0x33b   :  { %v1947_v18 = vadd.f32 %v8832_v30, %v12231_v60  ;;  %v1938_v25 = vpop.f32.mrb[49].mxu0 }
 0x33c   :  { %v1939_v9 = vadd.f32 %v12231_v60, %v1938_v25  ;;  %v8833_v27 = vpop.f32.mrb[50].mxu0 }
 0x33d   :  { %v1950_v54 = vadd.f32 %v8833_v27, %v12231_v60  ;;  %v1941_v55 = vpop.f32.mrb[51].mxu0 }
 0x33e   :  { %v1942_v59 = vadd.f32 %v12231_v60, %v1941_v55 }
 0x33f   :  { %v12333_v23 = vpack.c.bf16 %v1950_v54, %v1947_v18 }
 0x340   :  { %v12335_v47 = vpack.c.bf16 %v1942_v59, %v1939_v9 }
 0x341   :  { %15871 = vst [vmem:[#allocation65_spill] sm:$0xff] %v12333_v23 }
 0x342   :  { %15872 = vst [vmem:[#allocation66_spill] sm:$0xff] %v12335_v47  ;;  %v8836_v10 = vpop.f32.mrb[52].mxu0 }
 0x343   :  { %v1963_v35 = vadd.f32 %v8836_v10, %v12231_v60  ;;  %v1954_v58 = vpop.f32.mrb[53].mxu0 }
 0x344   :  { %v1955_v29 = vadd.f32 %v12231_v60, %v1954_v58  ;;  %v8837_v21 = vpop.f32.mrb[54].mxu0 }
 0x345   :  { %v1966_v30 = vadd.f32 %v8837_v21, %v12231_v60  ;;  %v1957_v25 = vpop.f32.mrb[55].mxu0 }
 0x346   :  { %v1958_v13 = vadd.f32 %v12231_v60, %v1957_v25 }
 0x347   :  { %v12341_v27 = vpack.c.bf16 %v1966_v30, %v1963_v35 }
 0x348   :  { %v12343_v51 = vpack.c.bf16 %v1958_v13, %v1955_v29 }
 0x349   :  { %15873 = vst [vmem:[#allocation67_spill] sm:$0xff] %v12341_v27 }
 0x34a   :  { %15874 = vst [vmem:[#allocation68_spill] sm:$0xff] %v12343_v51 }
 0x35d   :  { %v12345_v18 = vpop.f32.mrb[40].mxu1 }
 0x35e   :  { %v12347_v59 = vpop.f32.mrb[41].mxu1  ;;  %2280 = vmax.xlane.f32.xlu0 %v12345_v18 }
 0x35f   :  { %v12350_v9 = vpop.f32.mrb[42].mxu1 }
 0x360   :  { %v12352_v54 = vpop.f32.mrb[43].mxu1  ;;  %2282 = vmax.xlane.f32.xlu1 %v12350_v9 }
 0x362   :  { %2276 = vmax.xlane.f32.xlu0 %v12347_v59 }
 0x363   :  { %v2991_v55 = vpop.permute.xlu1 %2990 }
 0x364   :  { %2278 = vmax.xlane.f32.xlu1 %v12352_v54  ;;  %v2989_v60 = vpop.permute.xlu0 %2988 }
 0x365   :  { %8990 = vmatprep.mubr.msk.bf16.mxu0 %vm1985_vm1, %v2989_v60 }
 0x366   :  { %8991 = vmatmul.mubr.msk.bf16.vlgmr.msra.gmra.mrb[72].mxu0 %vm1985_vm1, %v2991_v55 }
 0x368   :  { %v2796_v13 = vpop.permute.xlu0 %2795  ;;  %v2798_v35 = vpop.permute.xlu1 %2797 }
 0x369   :  { %v12359_v10 = vpop.f32.mrb[44].mxu1  ;;  %8958 = vmatprep.mubr.msk.bf16.mxu1 %vm1985_vm1, %v2796_v13 }
 0x36a   :  { %v12362_v58 = vpop.f32.mrb[45].mxu1  ;;  %2288 = vmax.xlane.f32.xlu0 %v12359_v10  ;;  %8959 = vmatmul.mubr.msk.bf16.vlgmr.msra.gmra.mrb[88].mxu1 %vm1985_vm1, %v2798_v35 }
 0x36b   :  { %v12366_v29 = vpop.f32.mrb[46].mxu1 }
 0x36c   :  { %v12368_v21 = vpop.f32.mrb[47].mxu1  ;;  %2290 = vmax.xlane.f32.xlu1 %v12366_v29  ;;  %v2800_v30 = vpop.permute.xlu0 %2799 }
 0x36d   :  { %8962 = vmatprep.mubr.msk.bf16.mxu1 %vm1985_vm1, %v2800_v30  ;;  %v2802_v25 = vpop.permute.xlu1 %2801 }
 0x36e   :  { %2284 = vmax.xlane.f32.xlu0 %v12362_v58 }
 0x370   :  { %2286 = vmax.xlane.f32.xlu1 %v12368_v21 }
 0x372   :  { %8963 = vmatmul.mubr.msk.bf16.gmra.mrb[92].mxu1 %vm1985_vm1, %v2802_v25 }
 0x375   :  { %v12375_v55 = vpop.f32.mrb[48].mxu1 }
 0x376   :  { %v12377_v60 = vpop.f32.mrb[49].mxu1  ;;  %2296 = vmax.xlane.f32.xlu0 %v12375_v55 }
 0x377   :  { %v12380_v13 = vpop.f32.mrb[50].mxu1 }
 0x378   :  { %v12382_v35 = vpop.f32.mrb[51].mxu1  ;;  %2298 = vmax.xlane.f32.xlu1 %v12380_v13 }
 0x37a   :  { %2292 = vmax.xlane.f32.xlu0 %v12377_v60 }
 0x37b   :  { %v2995_v30 = vpop.permute.xlu1 %2994 }
 0x37c   :  { %2294 = vmax.xlane.f32.xlu1 %v12382_v35  ;;  %v2993_v27 = vpop.permute.xlu0 %2992 }
 0x37d   :  { %8994 = vmatprep.mubr.msk.bf16.mxu0 %vm1985_vm1, %v2993_v27 }
 0x37e   :  { %8995 = vmatmul.mubr.msk.bf16.gmra.mrb[76].mxu0 %vm1985_vm1, %v2995_v30 }
 0x380   :  { %v2806_v25 = vpop.permute.xlu1 %2805 }
 0x381   :  { %v2804_v3 = vpop.permute.xlu0 %2803  ;;  %v12389_v51 = vpop.f32.mrb[52].mxu1 }
 0x382   :  { %8966 = vmatprep.mubr.msk.bf16.mxu1 %vm1985_vm1, %v2804_v3  ;;  %v12392_v6 = vpop.f32.mrb[53].mxu1  ;;  %2304 = vmax.xlane.f32.xlu0 %v12389_v51 }
 0x383   :  { %8967 = vmatmul.mubr.msk.bf16.gmra.mrb[96].mxu1 %vm1985_vm1, %v2806_v25  ;;  %v12396_v23 = vpop.f32.mrb[54].mxu1  ;;  %v12408_v25 = vld [vmem:[%s15515_s11 + $0x1] ss:$0 sm:$0xff] }
 0x384   :  { %v2999_v31 = vpop.permute.xlu1 %2998  ;;  %v12398_v47 = vpop.f32.mrb[55].mxu1  ;;  %2306 = vmax.xlane.f32.xlu1 %v12396_v23 }
 0x385   :  { %v2997_v27 = vpop.permute.xlu0 %2996 }
 0x386   :  { %8998 = vmatprep.mubr.msk.bf16.mxu0 %vm1985_vm1, %v2997_v27  ;;  %2300 = vmax.xlane.f32.xlu0 %v12392_v6 }
 0x387   :  { %8999 = vmatmul.mubr.msk.bf16.gmra.mrb[80].mxu0 %vm1985_vm1, %v2999_v31 }
 0x388   :  { %v2810_v3 = vpop.permute.xlu1 %2809  ;;  %2302 = vmax.xlane.f32.xlu1 %v12398_v47 }
 0x389   :  { %v8912_v30 = vpop.f32.mrb[56].mxu1  ;;  %v2808_v28 = vpop.permute.xlu0 %2807 }
 0x38a   :  { %v2644_v12 = vpop.f32.mrb[57].mxu1  ;;  %8970 = vmatprep.mubr.msk.bf16.mxu1 %vm1985_vm1, %v2808_v28  ;;  %v2653_v27 = vadd.f32 %v8912_v30, %v12408_v25 }
 0x38b   :  { %v8913_v39 = vpop.f32.mrb[58].mxu1  ;;  %8971 = vmatmul.mubr.msk.bf16.gmra.mrb[100].mxu1 %vm1985_vm1, %v2810_v3  ;;  %v2645_v42 = vadd.f32 %v12408_v25, %v2644_v12 }
 0x38c   :  { %v2656_v31 = vadd.f32 %v8913_v39, %v12408_v25  ;;  %v2647_v44 = vpop.f32.mrb[59].mxu1  ;;  %v3003_v26 = vpop.permute.xlu1 %3002 }
 0x38d   :  { %v2648_v46 = vadd.f32 %v12408_v25, %v2647_v44  ;;  %v3001_v22 = vpop.permute.xlu0 %3000 }
 0x38e   :  { %v2772_v15 = vpack.c.bf16 %v2656_v31, %v2653_v27  ;;  %9002 = vmatprep.mubr.msk.bf16.mxu0 %vm1985_vm1, %v3001_v22 }
 0x38f   :  { %v2771_v50 = vpack.c.bf16 %v2648_v46, %v2645_v42  ;;  %9003 = vmatmul.mubr.msk.bf16.gmra.mrb[84].mxu0 %vm1985_vm1, %v3003_v26 }
 0x390   :  { %v12546_v24 = vpop.permute.xlu1 %4090 }
 0x391   :  { %v8916_v28 = vpop.f32.mrb[60].mxu1  ;;  %9006 = vmatprep.subr.bf16.mxu1 %v2771_v50  ;;  %15883 = vst [vmem:[#allocation77_spill] sm:$0xff] %v12546_v24  ;;  %v12551_v14 = vpop.permute.xlu0 %4088 }
 0x392   :  { %v2660_v30 = vpop.f32.mrb[61].mxu1  ;;  %9007 = vmatpush3.bf16.msra.mxu1 %v2771_v50  ;;  %v2669_v39 = vadd.f32 %v8916_v28, %v12408_v25  ;;  %15884 = vst [vmem:[#allocation78_spill] sm:$0xff] %v12551_v14 }
 0x393   :  { %v8917_v3 = vpop.f32.mrb[62].mxu1  ;;  %9008 = vmatprep.subr.bf16.mxu1 %v2772_v15  ;;  %v2661_v44 = vadd.f32 %v12408_v25, %v2660_v30 }
 0x394   :  { %v2672_v12 = vadd.f32 %v8917_v3, %v12408_v25  ;;  %v2663_v19 = vpop.f32.mrb[63].mxu1 }
 0x395   :  { %v2664_v27 = vadd.f32 %v12408_v25, %v2663_v19 }
 0x396   :  { %v2774_v46 = vpack.c.bf16 %v2672_v12, %v2669_v39  ;;  %9009 = vmatpush3.bf16.msra.mxu1 %v2772_v15 }
 0x397   :  { %v2773_v22 = vpack.c.bf16 %v2664_v27, %v2661_v44 }
 0x399   :  { %v8920_v42 = vpop.f32.mrb[64].mxu1  ;;  %9010 = vmatprep.subr.bf16.mxu1 %v2773_v22 }
 0x39a   :  { %v2676_v26 = vpop.f32.mrb[65].mxu1  ;;  %9011 = vmatpush3.bf16.msra.mxu1 %v2773_v22  ;;  %v2685_v50 = vadd.f32 %v8920_v42, %v12408_v25 }
 0x39b   :  { %v8921_v31 = vpop.f32.mrb[66].mxu1  ;;  %9012 = vmatprep.subr.bf16.mxu1 %v2774_v46  ;;  %v2677_v3 = vadd.f32 %v12408_v25, %v2676_v26 }
 0x39c   :  { %v2688_v28 = vadd.f32 %v8921_v31, %v12408_v25  ;;  %v2679_v62 = vpop.f32.mrb[67].mxu1 }
 0x39d   :  { %v2680_v30 = vadd.f32 %v12408_v25, %v2679_v62 }
 0x39e   :  { %v2776_v38 = vpack.c.bf16 %v2688_v28, %v2685_v50  ;;  %9013 = vmatpush3.bf16.msra.mxu1 %v2774_v46 }
 0x39f   :  { %v2775_v19 = vpack.c.bf16 %v2680_v30, %v2677_v3 }
 0x3a1   :  { %v8924_v15 = vpop.f32.mrb[68].mxu1  ;;  %9014 = vmatprep.subr.bf16.mxu1 %v2775_v19 }
 0x3a2   :  { %v2692_v39 = vpop.f32.mrb[69].mxu1  ;;  %9015 = vmatpush3.bf16.msra.mxu1 %v2775_v19  ;;  %v2701_v44 = vadd.f32 %v8924_v15, %v12408_v25 }
 0x3a3   :  { %v8925_v12 = vpop.f32.mrb[70].mxu1  ;;  %9016 = vmatprep.subr.bf16.mxu1 %v2776_v38  ;;  %v2693_v42 = vadd.f32 %v12408_v25, %v2692_v39 }
 0x3a4   :  { %v2704_v27 = vadd.f32 %v8925_v12, %v12408_v25  ;;  %v2695_v22 = vpop.f32.mrb[71].mxu1 }
 0x3a5   :  { %v2696_v26 = vadd.f32 %v12408_v25, %v2695_v22 }
 0x3a6   :  { %v2778_v31 = vpack.c.bf16 %v2704_v27, %v2701_v44  ;;  %9017 = vmatpush3.bf16.msra.mxu1 %v2776_v38 }
 0x3a7   :  { %v2777_v62 = vpack.c.bf16 %v2696_v26, %v2693_v42 }
 0x3a9   :  { %v8928_v46 = vpop.f32.mrb[72].mxu1  ;;  %9018 = vmatprep.subr.bf16.mxu1 %v2777_v62 }
 0x3aa   :  { %v2708_v50 = vpop.f32.mrb[73].mxu1  ;;  %9019 = vmatpush3.bf16.msra.mxu1 %v2777_v62  ;;  %v2717_v3 = vadd.f32 %v8928_v46, %v12408_v25 }
 0x3ab   :  { %v8929_v28 = vpop.f32.mrb[74].mxu1  ;;  %9020 = vmatprep.subr.bf16.mxu1 %v2778_v31  ;;  %v2709_v15 = vadd.f32 %v12408_v25, %v2708_v50 }
 0x3ac   :  { %v2720_v30 = vadd.f32 %v8929_v28, %v12408_v25  ;;  %v2711_v19 = vpop.f32.mrb[75].mxu1 }
 0x3ad   :  { %v2712_v39 = vadd.f32 %v12408_v25, %v2711_v19 }
 0x3ae   :  { %v2780_v12 = vpack.c.bf16 %v2720_v30, %v2717_v3  ;;  %9021 = vmatpush3.bf16.msra.mxu1 %v2778_v31 }
 0x3af   :  { %v2779_v44 = vpack.c.bf16 %v2712_v39, %v2709_v15  ;;  %9070 = vmatprep.subr.bf16.mxu1 %v12257_v57 }
 0x3b1   :  { %v8932_v38 = vpop.f32.mrb[76].mxu1  ;;  %9038 = vmatprep.subr.bf16.mxu0 %v2779_v44 }
 0x3b2   :  { %v2724_v27 = vpop.f32.mrb[77].mxu1  ;;  %9039 = vmatpush3.bf16.msra.mxu0 %v2779_v44  ;;  %v2733_v42 = vadd.f32 %v8932_v38, %v12408_v25 }
 0x3b3   :  { %v8933_v22 = vpop.f32.mrb[78].mxu1  ;;  %9040 = vmatprep.subr.bf16.mxu0 %v2780_v12  ;;  %v2725_v46 = vadd.f32 %v12408_v25, %v2724_v27 }
 0x3b4   :  { %v2736_v26 = vadd.f32 %v8933_v22, %v12408_v25  ;;  %v2727_v62 = vpop.f32.mrb[79].mxu1 }
 0x3b5   :  { %v2728_v50 = vadd.f32 %v12408_v25, %v2727_v62 }
 0x3b6   :  { %v2782_v28 = vpack.c.bf16 %v2736_v26, %v2733_v42  ;;  %9041 = vmatpush3.bf16.msra.mxu0 %v2780_v12 }
 0x3b7   :  { %v2781_v31 = vpack.c.bf16 %v2728_v50, %v2725_v46 }
 0x3b9   :  { %v8936_v3 = vpop.f32.mrb[80].mxu1  ;;  %9042 = vmatprep.subr.bf16.mxu0 %v2781_v31 }
 0x3ba   :  { %v2740_v30 = vpop.f32.mrb[81].mxu1  ;;  %9043 = vmatpush3.bf16.msra.mxu0 %v2781_v31  ;;  %v2749_v15 = vadd.f32 %v8936_v3, %v12408_v25 }
 0x3bb   :  { %v8937_v19 = vpop.f32.mrb[82].mxu1  ;;  %9044 = vmatprep.subr.bf16.mxu0 %v2782_v28  ;;  %v2741_v38 = vadd.f32 %v12408_v25, %v2740_v30 }
 0x3bc   :  { %v2752_v39 = vadd.f32 %v8937_v19, %v12408_v25  ;;  %v2743_v44 = vpop.f32.mrb[83].mxu1 }
 0x3bd   :  { %v2744_v27 = vadd.f32 %v12408_v25, %v2743_v44 }
 0x3be   :  { %v2784_v22 = vpack.c.bf16 %v2752_v39, %v2749_v15  ;;  %9045 = vmatpush3.bf16.msra.mxu0 %v2782_v28 }
 0x3bf   :  { %v2783_v42 = vpack.c.bf16 %v2744_v27, %v2741_v38 }
 0x3c1   :  { %v8940_v12 = vpop.f32.mrb[84].mxu1  ;;  %9046 = vmatprep.subr.bf16.mxu0 %v2783_v42 }
 0x3c2   :  { %v2756_v26 = vpop.f32.mrb[85].mxu1  ;;  %9047 = vmatpush3.bf16.msra.mxu0 %v2783_v42  ;;  %v2765_v46 = vadd.f32 %v8940_v12, %v12408_v25 }
 0x3c3   :  { %v8941_v62 = vpop.f32.mrb[86].mxu1  ;;  %9048 = vmatprep.subr.bf16.mxu0 %v2784_v22  ;;  %v2757_v3 = vadd.f32 %v12408_v25, %v2756_v26 }
 0x3c4   :  { %v2768_v50 = vadd.f32 %v8941_v62, %v12408_v25  ;;  %v2759_v31 = vpop.f32.mrb[87].mxu1 }
 0x3c5   :  { %v2760_v30 = vadd.f32 %v12408_v25, %v2759_v31 }
 0x3c6   :  { %v2786_v19 = vpack.c.bf16 %v2768_v50, %v2765_v46  ;;  %9049 = vmatpush3.bf16.msra.mxu0 %v2784_v22  ;;  %v12447_v28 = vpop.f32.mrb[56].mxu0 }
 0x3c7   :  { %v2785_v15 = vpack.c.bf16 %v2760_v30, %v2757_v3  ;;  %v12449_v39 = vpop.f32.mrb[57].mxu0  ;;  %2312 = vmax.xlane.f32.xlu0 %v12447_v28 }
 0x3c8   :  { %v12452_v44 = vpop.f32.mrb[58].mxu0 }
 0x3c9   :  { %9050 = vmatprep.subr.bf16.mxu0 %v2785_v15  ;;  %2314 = vmax.xlane.f32.xlu1 %v12452_v44  ;;  %v12455_v38 = vpop.f32.mrb[59].mxu0 }
 0x3ca   :  { %9051 = vmatpush3.bf16.msra.mxu0 %v2785_v15 }
 0x3cb   :  { %9052 = vmatprep.subr.bf16.mxu0 %v2786_v19  ;;  %2308 = vmax.xlane.f32.xlu0 %v12449_v39 }
 0x3cd   :  { %2310 = vmax.xlane.f32.xlu1 %v12455_v38 }
 0x3ce   :  { %9053 = vmatpush3.bf16.msra.mxu0 %v2786_v19 }
 0x3cf   :  { %9102 = vmatprep.subr.bf16.mxu0 %v12319_v61 }
 0x3de   :  { %v12460_v25 = vpop.f32.mrb[60].mxu0 }
 0x3df   :  { %2320 = vmax.xlane.f32.xlu0 %v12460_v25  ;;  %v12463_v27 = vpop.f32.mrb[61].mxu0 }
 0x3e0   :  { %v12465_v22 = vpop.f32.mrb[62].mxu0 }
 0x3e1   :  { %2322 = vmax.xlane.f32.xlu1 %v12465_v22  ;;  %v12468_v42 = vpop.f32.mrb[63].mxu0 }
 0x3e3   :  { %2316 = vmax.xlane.f32.xlu0 %v12463_v27 }
 0x3e5   :  { %2318 = vmax.xlane.f32.xlu1 %v12468_v42 }
 0x3e6   :  { %v12472_v12 = vpop.f32.mrb[64].mxu0 }
 0x3e7   :  { %15875 = vst [vmem:[#allocation69_spill] sm:$0xff] %v12472_v12  ;;  %2328 = vmax.xlane.f32.xlu0 %v12472_v12  ;;  %v12475_v26 = vpop.f32.mrb[65].mxu0 }
 0x3e8   :  { %15876 = vst [vmem:[#allocation70_spill] sm:$0xff] %v12475_v26  ;;  %v12477_v62 = vpop.f32.mrb[66].mxu0 }
 0x3e9   :  { %15877 = vst [vmem:[#allocation71_spill] sm:$0xff] %v12477_v62  ;;  %2330 = vmax.xlane.f32.xlu1 %v12477_v62  ;;  %v12480_v46 = vpop.f32.mrb[67].mxu0 }
 0x3ea   :  { %15878 = vst [vmem:[#allocation72_spill] sm:$0xff] %v12480_v46 }
 0x3eb   :  { %2324 = vmax.xlane.f32.xlu0 %v12475_v26  ;;  %v2281_v57 = vpop.xlane.xlu0 %2280 }
 0x3ed   :  { %2326 = vmax.xlane.f32.xlu1 %v12480_v46  ;;  %v2283_v49 = vpop.xlane.xlu1 %2282 }
 0x3ee   :  { %v12484_v50 = vpop.f32.mrb[68].mxu0 }
 0x3ef   :  { %15879 = vst [vmem:[#allocation73_spill] sm:$0xff] %v12484_v50  ;;  %2336 = vmax.xlane.f32.xlu0 %v12484_v50  ;;  %v12487_v31 = vpop.f32.mrb[69].mxu0  ;;  %v2277_v48 = vpop.xlane.xlu0 %2276 }
 0x3f0   :  { %15880 = vst [vmem:[#allocation74_spill] sm:$0xff] %v12487_v31  ;;  %v12489_v3 = vpop.f32.mrb[70].mxu0 }
 0x3f1   :  { %15881 = vst [vmem:[#allocation75_spill] sm:$0xff] %v12489_v3  ;;  %2338 = vmax.xlane.f32.xlu1 %v12489_v3  ;;  %v12492_v30 = vpop.f32.mrb[71].mxu0  ;;  %v2343_v3 = vsub.f32 %v12350_v9, %v2283_v49  ;;  %v2279_v50 = vpop.xlane.xlu1 %2278  ;;  %v2342_v49 = vsub.f32 %v12345_v18, %v2281_v57 }
 0x3f2   :  { %15882 = vst [vmem:[#allocation76_spill] sm:$0xff] %v12492_v30  ;;  %v2341_v46 = vsub.f32 %v12352_v54, %v2279_v50 }
 0x3f3   :  { %2332 = vmax.xlane.f32.xlu0 %v12487_v31  ;;  %v2378_v12 = vmul.f32 1.442695, %v2343_v3 }
 0x3f4   :  { %v2374_v26 = vmul.f32 1.442695, %v2341_v46 }
 0x3f5   :  { %2334 = vmax.xlane.f32.xlu1 %v12492_v30  ;;  %9823 = vpow2.f32 %v2378_v12 }
 0x3f6   :  { %9825 = vpow2.f32 %v2374_v26 }
 0x3f7   :  { %v2289_v9 = vpop.xlane.xlu0 %2288 }
 0x3fb   :  { %v2285_v3 = vpop.xlane.xlu0 %2284 }
 0x3ff   :  { %v12592_v46 = vpop.eup %9823 }
 0x400   :  { %15888 = vst [vmem:[#allocation82_spill] sm:$0xff] %v12592_v46 }
 0x403   :  { %v2297_v12 = vpop.xlane.xlu0 %2296 }
 0x439   :  { %v12496_v19 = vpop.f32.mrb[72].mxu0 }
 0x43a   :  { %v12498_v15 = vpop.f32.mrb[73].mxu0 }
 0x43b   :  { %v12500_v61 = vpop.f32.mrb[74].mxu0 }
 0x43c   :  { %v12502_v32 = vpop.f32.mrb[75].mxu0 }
 0x43d   :  { %v12504_v8 = vpop.f32.mrb[88].mxu1 }
 0x43e   :  { %3177 = vmax.xlane.f32.xlu0 %v12504_v8  ;;  %v12507_v17 = vpop.f32.mrb[89].mxu1 }
 0x43f   :  { %v12509_v36 = vpop.f32.mrb[90].mxu1 }
 0x440   :  { %3179 = vmax.xlane.f32.xlu1 %v12509_v36  ;;  %v12512_v5 = vpop.f32.mrb[91].mxu1 }
 0x442   :  { %3173 = vmax.xlane.f32.xlu0 %v12507_v17 }
 0x444   :  { %3175 = vmax.xlane.f32.xlu1 %v12512_v5 }
 0x445   :  { %v12516_v16 = vpop.f32.mrb[92].mxu1 }
 0x446   :  { %3185 = vmax.xlane.f32.xlu0 %v12516_v16  ;;  %v12519_v37 = vpop.f32.mrb[93].mxu1 }
 0x447   :  { %v12521_v41 = vpop.f32.mrb[94].mxu1 }
 0x448   :  { %3187 = vmax.xlane.f32.xlu1 %v12521_v41  ;;  %v12524_v43 = vpop.f32.mrb[95].mxu1 }
 0x44a   :  { %3181 = vmax.xlane.f32.xlu0 %v12519_v37 }
 0x44c   :  { %3183 = vmax.xlane.f32.xlu1 %v12524_v43 }
 0x451   :  { %v12528_v2 = vpop.f32.mrb[76].mxu0 }
 0x452   :  { %v12530_v4 = vpop.f32.mrb[77].mxu0 }
 0x453   :  { %v12532_v52 = vpop.f32.mrb[78].mxu0 }
 0x454   :  { %v12534_v11 = vpop.f32.mrb[79].mxu0 }
 0x456   :  { %v12536_v56 = vpop.f32.mrb[96].mxu1 }
 0x457   :  { %3193 = vmax.xlane.f32.xlu0 %v12536_v56  ;;  %v12539_v7 = vpop.f32.mrb[97].mxu1 }
 0x458   :  { %v12541_v34 = vpop.f32.mrb[98].mxu1 }
 0x459   :  { %3195 = vmax.xlane.f32.xlu1 %v12541_v34  ;;  %v12544_v53 = vpop.f32.mrb[99].mxu1 }
 0x45a   :  { %v12548_v40 = vpop.f32.mrb[80].mxu0 }
 0x45b   :  { %3189 = vmax.xlane.f32.xlu0 %v12539_v7  ;;  %v12553_v45 = vpop.f32.mrb[81].mxu0 }
 0x45c   :  { %v12555_v1 = vpop.f32.mrb[82].mxu0 }
 0x45d   :  { %3191 = vmax.xlane.f32.xlu1 %v12544_v53  ;;  %v12558_v0 = vpop.f32.mrb[83].mxu0 }
 0x45e   :  { %v12560_v20 = vpop.f32.mrb[100].mxu1 }
 0x45f   :  { %3201 = vmax.xlane.f32.xlu0 %v12560_v20  ;;  %v12563_v24 = vpop.f32.mrb[101].mxu1 }
 0x460   :  { %15885 = vst [vmem:[#allocation79_spill] sm:$0xff] %v12563_v24  ;;  %v12565_v63 = vpop.f32.mrb[102].mxu1 }
 0x461   :  { %15886 = vst [vmem:[#allocation80_spill] sm:$0xff] %v12565_v63  ;;  %3203 = vmax.xlane.f32.xlu1 %v12565_v63  ;;  %v12568_v14 = vpop.f32.mrb[103].mxu1  ;;  %v2340_v63 = vsub.f32 %v12347_v59, %v2277_v48 }
 0x462   :  { %15887 = vst [vmem:[#allocation81_spill] sm:$0xff] %v12568_v14  ;;  %v12571_v30 = vpop.f32.mrb[84].mxu0 }
 0x463   :  { %3197 = vmax.xlane.f32.xlu0 %v12563_v24  ;;  %v12574_v31 = vpop.f32.mrb[85].mxu0  ;;  %v2376_v24 = vmul.f32 1.442695, %v2342_v49  ;;  %v2372_v54 = vmul.f32 1.442695, %v2340_v63  ;;  %v2346_v63 = vsub.f32 %v12359_v10, %v2289_v9 }
 0x464   :  { %v12576_v33 = vpop.f32.mrb[86].mxu0 }
 0x465   :  { %3199 = vmax.xlane.f32.xlu1 %v12568_v14  ;;  %v12579_v62 = vpop.f32.mrb[87].mxu0  ;;  %v2291_v14 = vpop.xlane.xlu1 %2290  ;;  %9827 = vpow2.f32 %v2376_v24  ;;  %v2384_v49 = vmul.f32 1.442695, %v2346_v63 }
 0x466   :  { %v2347_v57 = vsub.f32 %v12366_v29, %v2291_v14  ;;  %9829 = vpow2.f32 %v2372_v54  ;;  %v12597_v24 = vpop.eup %9825  ;;  %v2293_v14 = vpop.xlane.xlu0 %2292  ;;  %v2344_v54 = vsub.f32 %v12362_v58, %v2285_v3 }
 0x467   :  { %3209 = vmax.xlane.f32.xlu0 %v12496_v19 }
 0x468   :  { %v2386_v48 = vmul.f32 1.442695, %v2347_v57  ;;  %v2380_v9 = vmul.f32 1.442695, %v2344_v54  ;;  %v2350_v54 = vsub.f32 %v12375_v55, %v2297_v12 }
 0x469   :  { %3207 = vmax.xlane.f32.xlu1 %v12502_v32  ;;  %v2287_v18 = vpop.xlane.xlu1 %2286 }
 0x46a   :  { %v2345_v59 = vsub.f32 %v12368_v21, %v2287_v18  ;;  %9831 = vpow2.f32 %v2386_v48  ;;  %v2305_v21 = vpop.xlane.xlu0 %2304 }
 0x46b   :  { %3205 = vmax.xlane.f32.xlu0 %v12498_v15 }
 0x46c   :  { %v2382_v50 = vmul.f32 1.442695, %v2345_v59 }
 0x46d   :  { %3219 = vmax.xlane.f32.xlu1 %v12532_v52  ;;  %v2299_v26 = vpop.xlane.xlu1 %2298 }
 0x46e   :  { %9833 = vpow2.f32 %v2382_v50  ;;  %v2351_v18 = vsub.f32 %v12380_v13, %v2299_v26  ;;  %v2301_v59 = vpop.xlane.xlu0 %2300 }
 0x46f   :  { %3211 = vmax.xlane.f32.xlu0 %v12500_v61  ;;  %v12601_v29 = vpop.eup %9827  ;;  %9835 = vpow2.f32 %v2384_v49 }
 0x470   :  { %15889 = vst [vmem:[#allocation83_spill] sm:$0xff] %v12601_v29  ;;  %v12606_v57 = vpop.eup %9829  ;;  %9837 = vpow2.f32 %v2380_v9  ;;  %v2394_v3 = vmul.f32 1.442695, %v2351_v18  ;;  %v2392_v18 = vmul.f32 1.442695, %v2350_v54  ;;  %v2352_v54 = vsub.f32 %v12392_v6, %v2301_v59 }
 0x471   :  { %3215 = vmax.xlane.f32.xlu1 %v12534_v11  ;;  %v2295_v10 = vpop.xlane.xlu1 %2294 }
 0x472   :  { %v2349_v63 = vsub.f32 %v12382_v35, %v2295_v10  ;;  %v2313_v50 = vpop.xlane.xlu0 %2312  ;;  %9839 = vpow2.f32 %v2394_v3  ;;  %v2348_v35 = vsub.f32 %v12377_v60, %v2293_v14 }
 0x473   :  { %3217 = vmax.xlane.f32.xlu0 %v12528_v2 }
 0x474   :  { %v12612_v58 = vpop.eup %9831  ;;  %v2388_v3 = vmul.f32 1.442695, %v2348_v35 }
 0x475   :  { %2442 = vadd.xlane.f32.xlu1 %v12592_v46  ;;  %v2307_v48 = vpop.xlane.xlu1 %2306  ;;  %15890 = vst [vmem:[#allocation84_spill] sm:$0xff] %v12612_v58  ;;  %v2390_v46 = vmul.f32 1.442695, %v2349_v63 }
 0x476   :  { %v2355_v9 = vsub.f32 %v12396_v23, %v2307_v48  ;;  %v2354_v23 = vsub.f32 %v12389_v51, %v2305_v21 }
 0x477   :  { %3213 = vmax.xlane.f32.xlu0 %v12530_v4  ;;  %9841 = vpow2.f32 %v2390_v46 }
 0x478   :  { %v12617_v49 = vpop.eup %9833  ;;  %v2402_v55 = vmul.f32 1.442695, %v2355_v9  ;;  %9843 = vpow2.f32 %v2392_v18  ;;  %v2358_v18 = vsub.f32 %v12447_v28, %v2313_v50 }
 0x479   :  { %2438 = vadd.xlane.f32.xlu1 %v12597_v24  ;;  %v2303_v13 = vpop.xlane.xlu1 %2302  ;;  %v12621_v26 = vpop.eup %9835 }
 0x47a   :  { %v2353_v12 = vsub.f32 %v12398_v47, %v2303_v13  ;;  %9845 = vpow2.f32 %v2402_v55  ;;  %v2400_v47 = vmul.f32 1.442695, %v2354_v23  ;;  %v2408_v55 = vmul.f32 1.442695, %v2358_v18 }
 0x47b   :  { %2440 = vadd.xlane.f32.xlu0 %v12601_v29  ;;  %v12627_v29 = vpop.eup %9837  ;;  %9847 = vpow2.f32 %v2388_v3 }
 0x47c   :  { %v2398_v60 = vmul.f32 1.442695, %v2353_v12  ;;  %v12635_v46 = vpop.eup %9839 }
 0x47d   :  { %3227 = vmax.xlane.f32.xlu1 %v12555_v1  ;;  %v2315_v10 = vpop.xlane.xlu1 %2314  ;;  %15891 = vst [vmem:[#allocation85_spill] sm:$0xff] %v12635_v46 }
 0x47e   :  { %v2359_v14 = vsub.f32 %v12452_v44, %v2315_v10  ;;  %9849 = vpow2.f32 %v2398_v60  ;;  %v2396_v44 = vmul.f32 1.442695, %v2352_v54 }
 0x47f   :  { %2436 = vadd.xlane.f32.xlu0 %v12606_v57  ;;  %9851 = vpow2.f32 %v2400_v47 }
 0x480   :  { %v2410_v51 = vmul.f32 1.442695, %v2359_v14 }
 0x481   :  { %3223 = vmax.xlane.f32.xlu1 %v12558_v0  ;;  %v2311_v63 = vpop.xlane.xlu1 %2310  ;;  %v12641_v9 = vpop.eup %9841 }
 0x482   :  { %v2357_v21 = vsub.f32 %v12455_v38, %v2311_v63  ;;  %v12645_v35 = vpop.eup %9843  ;;  %9853 = vpow2.f32 %v2410_v51 }
 0x483   :  { %3225 = vmax.xlane.f32.xlu0 %v12548_v40  ;;  %15892 = vst [vmem:[#allocation86_spill] sm:$0xff] %v12645_v35  ;;  %9855 = vpow2.f32 %v2396_v44 }
 0x484   :  { %v2406_v6 = vmul.f32 1.442695, %v2357_v21  ;;  %v12649_v38 = vpop.eup %9845 }
 0x485   :  { %2450 = vadd.xlane.f32.xlu1 %v12612_v58  ;;  %v2309_v58 = vpop.xlane.xlu0 %2308  ;;  %v2323_v10 = vpop.xlane.xlu1 %2322  ;;  %15893 = vst [vmem:[#allocation87_spill] sm:$0xff] %v12649_v38 }
 0x486   :  { %v2356_v12 = vsub.f32 %v12449_v39, %v2309_v58  ;;  %v12653_v28 = vpop.eup %9847  ;;  %9857 = vpow2.f32 %v2406_v6  ;;  %v2363_v50 = vsub.f32 %v12465_v22, %v2323_v10 }
 0x487   :  { %3221 = vmax.xlane.f32.xlu0 %v12553_v45  ;;  %9859 = vpow2.f32 %v2408_v55 }
 0x488   :  { %v2404_v23 = vmul.f32 1.442695, %v2356_v12  ;;  %v2418_v58 = vmul.f32 1.442695, %v2363_v50 }
 0x489   :  { %2446 = vadd.xlane.f32.xlu1 %v12617_v49  ;;  %v2321_v48 = vpop.xlane.xlu0 %2320  ;;  %v2319_v14 = vpop.xlane.xlu1 %2318 }
 0x48a   :  { %v2362_v60 = vsub.f32 %v12460_v25, %v2321_v48  ;;  %v2361_v47 = vsub.f32 %v12468_v42, %v2319_v14 }
 0x48b   :  { %2448 = vadd.xlane.f32.xlu0 %v12621_v26 }
 0x48c   :  { %v2416_v22 = vmul.f32 1.442695, %v2362_v60  ;;  %v2414_v48 = vmul.f32 1.442695, %v2361_v47 }
 0x48d   :  { %3235 = vmax.xlane.f32.xlu1 %v12576_v33  ;;  %v2317_v13 = vpop.xlane.xlu0 %2316 }
 0x48e   :  { %v2360_v59 = vsub.f32 %v12463_v27, %v2317_v13  ;;  %v12657_v27 = vpop.eup %9849 }
 0x48f   :  { %2444 = vadd.xlane.f32.xlu0 %v12627_v29  ;;  %15894 = vst [vmem:[#allocation88_spill] sm:$0xff] %v12657_v27  ;;  %v12661_v39 = vpop.eup %9851 }
 0x490   :  { %v2412_v3 = vmul.f32 1.442695, %v2360_v59  ;;  %15895 = vst [vmem:[#allocation89_spill] sm:$0xff] %v12661_v39  ;;  %v12664_v63 = vpop.eup %9853  ;;  %v12693_v59 = vpop.xlane.xlu1 %2330 }
 0x491   :  { %3231 = vmax.xlane.f32.xlu1 %v12579_v62  ;;  %15896 = vst [vmem:[#allocation90_spill] sm:$0xff] %v12664_v63  ;;  %v12668_v54 = vpop.eup %9855  ;;  %v12689_v18 = vpop.xlane.xlu0 %2328 }
 0x492   :  { %9861 = vpow2.f32 %v2412_v3  ;;  %15897 = vst [vmem:[#allocation91_spill] sm:$0xff] %v12668_v54  ;;  %v12671_v25 = vpop.eup %9857 }
 0x493   :  { %3233 = vmax.xlane.f32.xlu0 %v12571_v30  ;;  %9863 = vpow2.f32 %v2404_v23  ;;  %15898 = vst [vmem:[#allocation92_spill] sm:$0xff] %v12671_v25  ;;  %v12674_v51 = vpop.eup %9859 }
 0x494   :  { %9865 = vpow2.f32 %v2418_v58  ;;  %15899 = vst [vmem:[#allocation93_spill] sm:$0xff] %v12674_v51  ;;  %v12698_v55 = vpop.xlane.xlu1 %2326 }
 0x495   :  { %2458 = vadd.xlane.f32.xlu1 %v12635_v46  ;;  %9867 = vpow2.f32 %v2416_v22  ;;  %v12696_v10 = vpop.xlane.xlu0 %2324 }
 0x496   :  { %9869 = vpow2.f32 %v2414_v48 }
 0x497   :  { %3229 = vmax.xlane.f32.xlu0 %v12574_v31 }
 0x498   :  { %v12702_v50 = vpop.xlane.xlu1 %2338 }
 0x499   :  { %2454 = vadd.xlane.f32.xlu1 %v12641_v9  ;;  %v12700_v12 = vpop.xlane.xlu0 %2336 }
 0x49b   :  { %2456 = vadd.xlane.f32.xlu0 %v12645_v35  ;;  %v15932_v35 = vld [vmem:[#allocation75_spill] sm:$0xff] }
 0x49c   :  { %v12677_v21 = vpop.eup %9861  ;;  %v12706_v23 = vpop.xlane.xlu1 %2334 }
 0x49d   :  { %2466 = vadd.xlane.f32.xlu1 %v12649_v38  ;;  %15900 = vst [vmem:[#allocation94_spill] sm:$0xff] %v12677_v21  ;;  %v12680_v42 = vpop.eup %9863  ;;  %v12704_v3 = vpop.xlane.xlu0 %2332 }
 0x49e   :  { %15901 = vst [vmem:[#allocation95_spill] sm:$0xff] %v12680_v42  ;;  %v12683_v13 = vpop.eup %9865 }
 0x49f   :  { %2452 = vadd.xlane.f32.xlu0 %v12653_v28  ;;  %15902 = vst [vmem:[#allocation96_spill] sm:$0xff] %v12683_v13  ;;  %v12686_v44 = vpop.eup %9867 }
 0x4a0   :  { %15903 = vst [vmem:[#allocation97_spill] sm:$0xff] %v12686_v44  ;;  %v12691_v6 = vpop.eup %9869 }
 0x4a1   :  { %2462 = vadd.xlane.f32.xlu1 %v12657_v27  ;;  %15904 = vst [vmem:[#allocation98_spill] sm:$0xff] %v12691_v6 }
 0x4a3   :  { %2464 = vadd.xlane.f32.xlu0 %v12661_v39 }
 0x4a5   :  { %2474 = vadd.xlane.f32.xlu1 %v12664_v63 }
 0x4a7   :  { %2460 = vadd.xlane.f32.xlu0 %v12668_v54 }
 0x4a9   :  { %2470 = vadd.xlane.f32.xlu1 %v12671_v25 }
 0x4ab   :  { %2472 = vadd.xlane.f32.xlu0 %v12674_v51 }
 0x4ad   :  { %2476 = vadd.xlane.f32.xlu1 %v12677_v21 }
 0x4af   :  { %2468 = vadd.xlane.f32.xlu0 %v12680_v42 }
 0x4b1   :  { %2482 = vadd.xlane.f32.xlu1 %v12683_v13 }
 0x4b3   :  { %2480 = vadd.xlane.f32.xlu0 %v12686_v44 }
 0x4b7   :  { %2478 = vadd.xlane.f32.xlu0 %v12691_v6 }
 0x4cb   :  { %v3178_v60 = vpop.xlane.xlu0 %3177 }
 0x4cc   :  { %v3239_v14 = vsub.f32 %v12504_v8, %v3178_v60 }
 0x4cd   :  { %v3180_v58 = vpop.xlane.xlu1 %3179 }
 0x4ce   :  { %v3273_v22 = vmul.f32 1.442695, %v3239_v14  ;;  %v3240_v47 = vsub.f32 %v12509_v36, %v3180_v58 }
 0x4cf   :  { %v3174_v48 = vpop.xlane.xlu0 %3173 }
 0x4d0   :  { %9871 = vpow2.f32 %v3273_v22  ;;  %v3275_v13 = vmul.f32 1.442695, %v3240_v47  ;;  %v3237_v44 = vsub.f32 %v12507_v17, %v3174_v48 }
 0x4d1   :  { %v3176_v21 = vpop.xlane.xlu1 %3175 }
 0x4d2   :  { %9873 = vpow2.f32 %v3275_v13  ;;  %v3269_v63 = vmul.f32 1.442695, %v3237_v44  ;;  %v3238_v6 = vsub.f32 %v12512_v5, %v3176_v21 }
 0x4d3   :  { %v3186_v51 = vpop.xlane.xlu0 %3185 }
 0x4d4   :  { %9875 = vpow2.f32 %v3269_v63  ;;  %v3271_v25 = vmul.f32 1.442695, %v3238_v6  ;;  %v3243_v42 = vsub.f32 %v12516_v16, %v3186_v51 }
 0x4d5   :  { %v3188_v8 = vpop.xlane.xlu1 %3187 }
 0x4d6   :  { %9877 = vpow2.f32 %v3271_v25  ;;  %v3281_v60 = vmul.f32 1.442695, %v3243_v42  ;;  %v3244_v36 = vsub.f32 %v12521_v41, %v3188_v8 }
 0x4d7   :  { %v3182_v14 = vpop.xlane.xlu0 %3181 }
 0x4d8   :  { %9879 = vpow2.f32 %v3281_v60  ;;  %v3283_v58 = vmul.f32 1.442695, %v3244_v36  ;;  %v3241_v17 = vsub.f32 %v12519_v37, %v3182_v14 }
 0x4d9   :  { %v3184_v22 = vpop.xlane.xlu1 %3183 }
 0x4da   :  { %v12715_v13 = vpop.eup %9871  ;;  %9881 = vpow2.f32 %v3283_v58  ;;  %v3277_v5 = vmul.f32 1.442695, %v3241_v17  ;;  %v3242_v63 = vsub.f32 %v12524_v43, %v3184_v22 }
 0x4db   :  { %3337 = vadd.xlane.f32.xlu0 %v12715_v13 }
 0x4dc   :  { %v12719_v16 = vpop.eup %9873  ;;  %9883 = vpow2.f32 %v3277_v5  ;;  %v3279_v25 = vmul.f32 1.442695, %v3242_v63 }
 0x4dd   :  { %3339 = vadd.xlane.f32.xlu1 %v12719_v16 }
 0x4de   :  { %v12722_v41 = vpop.eup %9875  ;;  %9885 = vpow2.f32 %v3279_v25 }
 0x4df   :  { %3333 = vadd.xlane.f32.xlu0 %v12722_v41 }
 0x4e0   :  { %v12725_v37 = vpop.eup %9877 }
 0x4e1   :  { %3335 = vadd.xlane.f32.xlu1 %v12725_v37 }
 0x4e2   :  { %v12728_v51 = vpop.eup %9879 }
 0x4e3   :  { %3345 = vadd.xlane.f32.xlu0 %v12728_v51 }
 0x4e4   :  { %v3194_v43 = vpop.xlane.xlu0 %3193  ;;  %v12731_v21 = vpop.eup %9881 }
 0x4e5   :  { %v3247_v42 = vsub.f32 %v12536_v56, %v3194_v43  ;;  %3347 = vadd.xlane.f32.xlu1 %v12731_v21  ;;  %v15905_v43 = vld [vmem:[#allocation80_spill] sm:$0xff] }
 0x4e6   :  { %v3196_v44 = vpop.xlane.xlu1 %3195  ;;  %v12735_v6 = vpop.eup %9883 }
 0x4e7   :  { %v3289_v47 = vmul.f32 1.442695, %v3247_v42  ;;  %v3248_v48 = vsub.f32 %v12541_v34, %v3196_v44  ;;  %3341 = vadd.xlane.f32.xlu0 %v12735_v6 }
 0x4e8   :  { %v3190_v8 = vpop.xlane.xlu0 %3189  ;;  %v12739_v60 = vpop.eup %9885 }
 0x4e9   :  { %9887 = vpow2.f32 %v3289_v47  ;;  %v3291_v36 = vmul.f32 1.442695, %v3248_v48  ;;  %v3245_v14 = vsub.f32 %v12539_v7, %v3190_v8  ;;  %3343 = vadd.xlane.f32.xlu1 %v12739_v60  ;;  %v15906_v47 = vld [vmem:[#allocation79_spill] sm:$0xff] }
 0x4ea   :  { %v3192_v58 = vpop.xlane.xlu1 %3191 }
 0x4eb   :  { %9889 = vpow2.f32 %v3291_v36  ;;  %v3285_v56 = vmul.f32 1.442695, %v3245_v14  ;;  %v3246_v17 = vsub.f32 %v12544_v53, %v3192_v58  ;;  %v15907_v14 = vld [vmem:[#allocation81_spill] sm:$0xff] }
 0x4ec   :  { %v3202_v5 = vpop.xlane.xlu0 %3201 }
 0x4ed   :  { %9891 = vpow2.f32 %v3285_v56  ;;  %v3287_v22 = vmul.f32 1.442695, %v3246_v17  ;;  %v3251_v34 = vsub.f32 %v12560_v20, %v3202_v5 }
 0x4ee   :  { %v3204_v63 = vpop.xlane.xlu1 %3203 }
 0x4ef   :  { %9893 = vpow2.f32 %v3287_v22  ;;  %v3297_v25 = vmul.f32 1.442695, %v3251_v34  ;;  %v3252_v42 = vsub.f32 %v15905_v43, %v3204_v63 }
 0x4f0   :  { %v3198_v44 = vpop.xlane.xlu0 %3197 }
 0x4f1   :  { %9895 = vpow2.f32 %v3297_v25  ;;  %v3299_v7 = vmul.f32 1.442695, %v3252_v42  ;;  %v3249_v48 = vsub.f32 %v15906_v47, %v3198_v44 }
 0x4f2   :  { %v3200_v36 = vpop.xlane.xlu1 %3199 }
 0x4f3   :  { %v12747_v8 = vpop.eup %9887  ;;  %9897 = vpow2.f32 %v3299_v7  ;;  %v3293_v53 = vmul.f32 1.442695, %v3249_v48  ;;  %v3250_v58 = vsub.f32 %v15907_v14, %v3200_v36 }
 0x4f4   :  { %3353 = vadd.xlane.f32.xlu0 %v12747_v8  ;;  %v3210_v56 = vpop.xlane.xlu0 %3209 }
 0x4f5   :  { %v12751_v20 = vpop.eup %9889  ;;  %9899 = vpow2.f32 %v3293_v53  ;;  %v3295_v17 = vmul.f32 1.442695, %v3250_v58  ;;  %v3255_v22 = vsub.f32 %v12496_v19, %v3210_v56 }
 0x4f6   :  { %3355 = vadd.xlane.f32.xlu1 %v12751_v20  ;;  %v3208_v34 = vpop.xlane.xlu1 %3207 }
 0x4f7   :  { %v12755_v5 = vpop.eup %9891  ;;  %9901 = vpow2.f32 %v3295_v17  ;;  %v3305_v63 = vmul.f32 1.442695, %v3255_v22  ;;  %v3254_v47 = vsub.f32 %v12502_v32, %v3208_v34 }
 0x4f8   :  { %3349 = vadd.xlane.f32.xlu0 %v12755_v5  ;;  %v3206_v43 = vpop.xlane.xlu0 %3205 }
 0x4f9   :  { %v12758_v25 = vpop.eup %9893  ;;  %9903 = vpow2.f32 %v3305_v63  ;;  %v3253_v42 = vsub.f32 %v12498_v15, %v3206_v43  ;;  %v3303_v56 = vmul.f32 1.442695, %v3254_v47 }
 0x4fa   :  { %3351 = vadd.xlane.f32.xlu1 %v12758_v25  ;;  %v3220_v44 = vpop.xlane.xlu1 %3219 }
 0x4fb   :  { %v12762_v7 = vpop.eup %9895  ;;  %v3301_v19 = vmul.f32 1.442695, %v3253_v42  ;;  %v3260_v17 = vsub.f32 %v12532_v52, %v3220_v44 }
 0x4fc   :  { %3361 = vadd.xlane.f32.xlu0 %v12762_v7  ;;  %v3212_v48 = vpop.xlane.xlu0 %3211 }
 0x4fd   :  { %v12766_v36 = vpop.eup %9897  ;;  %9905 = vpow2.f32 %v3301_v19  ;;  %v3256_v53 = vsub.f32 %v12500_v61, %v3212_v48  ;;  %v3315_v42 = vmul.f32 1.442695, %v3260_v17 }
 0x4fe   :  { %v3216_v14 = vpop.xlane.xlu1 %3215  ;;  %3363 = vadd.xlane.f32.xlu1 %v12766_v36 }
 0x4ff   :  { %v12770_v15 = vpop.eup %9899  ;;  %v3307_v58 = vmul.f32 1.442695, %v3256_v53  ;;  %v3258_v44 = vsub.f32 %v12534_v11, %v3216_v14 }
 0x500   :  { %3357 = vadd.xlane.f32.xlu0 %v12770_v15  ;;  %v3218_v32 = vpop.xlane.xlu0 %3217 }
 0x501   :  { %v12774_v22 = vpop.eup %9901  ;;  %9907 = vpow2.f32 %v3307_v58  ;;  %v3259_v34 = vsub.f32 %v12528_v2, %v3218_v32  ;;  %v3311_v58 = vmul.f32 1.442695, %v3258_v44 }
 0x502   :  { %v12777_v63 = vpop.xlane.xlu1 %2442  ;;  %3359 = vadd.xlane.f32.xlu1 %v12774_v22  ;;  %9909 = vpow2.f32 %v3303_v56 }
 0x503   :  { %v12780_v61 = vpop.eup %9903  ;;  %v3313_v43 = vmul.f32 1.442695, %v3259_v34 }
 0x504   :  { %3369 = vadd.xlane.f32.xlu0 %v12780_v61  ;;  %v3214_v52 = vpop.xlane.xlu0 %3213 }
 0x505   :  { %9911 = vpow2.f32 %v3313_v43  ;;  %v3257_v19 = vsub.f32 %v12530_v4, %v3214_v52  ;;  %v15909_v52 = vld [vmem:[#allocation70_spill] sm:$0xff] }
 0x506   :  { %v12785_v47 = vpop.xlane.xlu1 %2438  ;;  %9913 = vpow2.f32 %v3315_v42  ;;  %v2364_v44 = vsub.f32 %v15909_v52, %v12696_v10 }
 0x507   :  { %v12787_v2 = vpop.eup %9905  ;;  %v3309_v48 = vmul.f32 1.442695, %v3257_v19 }
 0x508   :  { %3365 = vadd.xlane.f32.xlu0 %v12787_v2  ;;  %v12790_v53 = vpop.xlane.xlu0 %2440 }
 0x509   :  { %9915 = vpow2.f32 %v3309_v48 }
 0x50a   :  { %v3228_v56 = vpop.xlane.xlu1 %3227  ;;  %9917 = vpow2.f32 %v3311_v58 }
 0x50b   :  { %v12792_v17 = vpop.eup %9907  ;;  %v3264_v11 = vsub.f32 %v12555_v1, %v3228_v56 }
 0x50c   :  { %3371 = vadd.xlane.f32.xlu1 %v12792_v17  ;;  %v12796_v4 = vpop.xlane.xlu0 %2436  ;;  %v12798_v32 = vpop.eup %9909 }
 0x50d   :  { %v3323_v14 = vmul.f32 1.442695, %v3264_v11 }
 0x50e   :  { %v3224_v34 = vpop.xlane.xlu1 %3223 }
 0x50f   :  { %v12800_v43 = vpop.eup %9911  ;;  %v3262_v42 = vsub.f32 %v12558_v0, %v3224_v34  ;;  %9919 = vpow2.f32 %v3323_v14  ;;  %v2420_v0 = vmul.f32 1.442695, %v2364_v44  ;;  %v15910_v34 = vld [vmem:[#allocation72_spill] sm:$0xff] }
 0x510   :  { %15908 = vst [vmem:[#allocation80_spill] sm:$0xff] %v12800_v43  ;;  %3367 = vadd.xlane.f32.xlu1 %v12798_v32  ;;  %3377 = vadd.xlane.f32.xlu0 %v12800_v43  ;;  %v3226_v1 = vpop.xlane.xlu0 %3225  ;;  %v12808_v58 = vpop.eup %9913  ;;  %v2365_v14 = vsub.f32 %v15910_v34, %v12698_v55 }
 0x511   :  { %v3319_v19 = vmul.f32 1.442695, %v3262_v42  ;;  %v3263_v48 = vsub.f32 %v12548_v40, %v3226_v1 }
 0x512   :  { %v12810_v56 = vpop.xlane.xlu1 %2450  ;;  %v2422_v39 = vmul.f32 1.442695, %v2365_v14 }
 0x513   :  { %v12812_v11 = vpop.eup %9915  ;;  %v3321_v38 = vmul.f32 1.442695, %v3263_v48  ;;  %9921 = vpow2.f32 %v3319_v19  ;;  %v15911_v19 = vld [vmem:[#allocation69_spill] sm:$0xff] }
 0x514   :  { %3379 = vadd.xlane.f32.xlu1 %v12808_v58  ;;  %3373 = vadd.xlane.f32.xlu0 %v12812_v11  ;;  %v3222_v10 = vpop.xlane.xlu0 %3221  ;;  %v12821_v52 = vpop.eup %9917  ;;  %v2366_v48 = vsub.f32 %v15911_v19, %v12689_v18 }
 0x515   :  { %9923 = vpow2.f32 %v3321_v38  ;;  %v3261_v40 = vsub.f32 %v12553_v45, %v3222_v10  ;;  %v15913_v38 = vld [vmem:[#allocation71_spill] sm:$0xff] }
 0x516   :  { %v12819_v42 = vpop.xlane.xlu1 %2446  ;;  %9925 = vpow2.f32 %v2420_v0  ;;  %v2367_v45 = vsub.f32 %v15913_v38, %v12693_v59  ;;  %v2424_v0 = vmul.f32 1.442695, %v2366_v48 }
 0x517   :  { %v3317_v1 = vmul.f32 1.442695, %v3261_v40 }
 0x518   :  { %3375 = vadd.xlane.f32.xlu1 %v12821_v52  ;;  %v12824_v44 = vpop.xlane.xlu0 %2448  ;;  %v2426_v46 = vmul.f32 1.442695, %v2367_v45 }
 0x519   :  { %9927 = vpow2.f32 %v3317_v1  ;;  %v12828_v27 = vpop.eup %9919 }
 0x51a   :  { %15912 = vst [vmem:[#allocation79_spill] sm:$0xff] %v12828_v27  ;;  %v3236_v55 = vpop.xlane.xlu1 %3235  ;;  %9929 = vpow2.f32 %v2422_v39 }
 0x51b   :  { %v3268_v18 = vsub.f32 %v12576_v33, %v3236_v55  ;;  %9931 = vpow2.f32 %v2424_v0 }
 0x51c   :  { %3387 = vadd.xlane.f32.xlu1 %v12828_v27  ;;  %v12833_v10 = vpop.xlane.xlu0 %2444  ;;  %9933 = vpow2.f32 %v2426_v46  ;;  %v15930_v27 = vld [vmem:[#allocation73_spill] sm:$0xff] }
 0x51d   :  { %v12835_v34 = vpop.eup %9921  ;;  %v3331_v38 = vmul.f32 1.442695, %v3268_v18 }
 0x51e   :  { %15914 = vst [vmem:[#allocation81_spill] sm:$0xff] %v12835_v34  ;;  %v3232_v19 = vpop.xlane.xlu1 %3231 }
 0x51f   :  { %v12837_v40 = vpop.eup %9923  ;;  %v3266_v45 = vsub.f32 %v12579_v62, %v3232_v19 }
 0x520   :  { %15915 = vst [vmem:[#allocation70_spill] sm:$0xff] %v12837_v40  ;;  %3383 = vadd.xlane.f32.xlu1 %v12835_v34  ;;  %3385 = vadd.xlane.f32.xlu0 %v12837_v40  ;;  %v3234_v14 = vpop.xlane.xlu0 %3233  ;;  %v12843_v1 = vpop.eup %9925  ;;  %v2370_v34 = vsub.f32 %v15930_v27, %v12700_v12 }
 0x521   :  { %v3267_v59 = vsub.f32 %v12571_v30, %v3234_v14  ;;  %15916 = vst [vmem:[#allocation72_spill] sm:$0xff] %v12843_v1  ;;  %v3327_v14 = vmul.f32 1.442695, %v3266_v45 }
 0x522   :  { %v2432_v54 = vmul.f32 1.442695, %v2370_v34 }
 0x523   :  { %v12845_v48 = vpop.eup %9927  ;;  %v3329_v39 = vmul.f32 1.442695, %v3267_v59 }
 0x524   :  { %15917 = vst [vmem:[#allocation69_spill] sm:$0xff] %v12845_v48  ;;  %2484 = vadd.xlane.f32.xlu1 %v12843_v1  ;;  %3381 = vadd.xlane.f32.xlu0 %v12845_v48  ;;  %v3230_v33 = vpop.xlane.xlu0 %3229  ;;  %v12851_v0 = vpop.eup %9929  ;;  %v15931_v48 = vld [vmem:[#allocation76_spill] sm:$0xff] }
 0x525   :  { %9935 = vpow2.f32 %v3329_v39  ;;  %v3265_v55 = vsub.f32 %v12574_v31, %v3230_v33  ;;  %15918 = vst [vmem:[#allocation71_spill] sm:$0xff] %v12851_v0  ;;  %v12854_v46 = vpop.eup %9931 }
 0x526   :  { %9937 = vpow2.f32 %v3331_v38  ;;  %15919 = vst [vmem:[#allocation99_spill] sm:$0xff] %v12854_v46  ;;  %v12857_v18 = vpop.eup %9933  ;;  %v12874_v38 = vpop.xlane.xlu1 %2458 }
 0x527   :  { %v3325_v30 = vmul.f32 1.442695, %v3265_v55  ;;  %15920 = vst [vmem:[#allocation100_spill] sm:$0xff] %v12857_v18 }
 0x528   :  { %2486 = vadd.xlane.f32.xlu1 %v12851_v0  ;;  %v12872_v39 = vpop.xlane.xlu0 %2456 }
 0x529   :  { %9939 = vpow2.f32 %v3325_v30 }
 0x52a   :  { %9941 = vpow2.f32 %v3327_v14  ;;  %v12878_v45 = vpop.xlane.xlu1 %2454  ;;  %v15925_v14 = vld [vmem:[#allocation7_spill] sm:$0xff] }
 0x52c   :  { %2488 = vadd.xlane.f32.xlu1 %v12854_v46  ;;  %v12876_v33 = vpop.xlane.xlu0 %2452  ;;  %v15926_v46 = vld [vmem:[#allocation8_spill] sm:$0xff] }
 0x52e   :  { %v12882_v30 = vpop.xlane.xlu1 %2466 }
 0x52f   :  { %v12859_v59 = vpop.eup %9935 }
 0x530   :  { %15921 = vst [vmem:[#allocation101_spill] sm:$0xff] %v12859_v59  ;;  %2490 = vadd.xlane.f32.xlu1 %v12857_v18  ;;  %3393 = vadd.xlane.f32.xlu0 %v12859_v59  ;;  %v12863_v62 = vpop.eup %9937  ;;  %v12880_v55 = vpop.xlane.xlu0 %2464 }
 0x531   :  { %15922 = vst [vmem:[#allocation102_spill] sm:$0xff] %v12863_v62 }
 0x532   :  { %v12890_v1 = vpop.xlane.xlu1 %2462 }
 0x533   :  { %v12865_v31 = vpop.eup %9939 }
 0x534   :  { %15923 = vst [vmem:[#allocation103_spill] sm:$0xff] %v12865_v31  ;;  %3395 = vadd.xlane.f32.xlu1 %v12863_v62  ;;  %3389 = vadd.xlane.f32.xlu0 %v12865_v31  ;;  %v12869_v19 = vpop.eup %9941  ;;  %v12888_v18 = vpop.xlane.xlu0 %2460 }
 0x535   :  { %15924 = vst [vmem:[#allocation104_spill] sm:$0xff] %v12869_v19 }
 0x536   :  { %v12894_v59 = vpop.xlane.xlu1 %2474 }
 0x537   :  { %15928 = vst [vmem:[#allocation106_spill] sm:$0xff] %v12894_v59 }
 0x538   :  { %3391 = vadd.xlane.f32.xlu1 %v12869_v19  ;;  %v12892_v0 = vpop.xlane.xlu0 %2472  ;;  %v15929_v19 = vld [vmem:[#allocation74_spill] sm:$0xff] }
 0x539   :  { %15927 = vst [vmem:[#allocation105_spill] sm:$0xff] %v12892_v0  ;;  %v2368_v31 = vsub.f32 %v15929_v19, %v12704_v3  ;;  %v2371_v0 = vsub.f32 %v15932_v35, %v12702_v50 }
 0x53a   :  { %v12904_v40 = vpop.xlane.xlu1 %2470 }
 0x53b   :  { %v2434_v19 = vmul.f32 1.442695, %v2371_v0 }
 0x53c   :  { %v12898_v62 = vpop.xlane.xlu0 %2468 }
 0x53e   :  { %v12910_v3 = vpop.xlane.xlu1 %2476 }
 0x53f   :  { %15934 = vst [vmem:[#allocation73_spill] sm:$0xff] %v12910_v3  ;;  %v15942_v3 = vld [vmem:[#allocation54_spill] sm:$0xff] }
 0x540   :  { %v12908_v43 = vpop.xlane.xlu0 %2480 }
 0x541   :  { %15933 = vst [vmem:[#allocation74_spill] sm:$0xff] %v12908_v43 }
 0x542   :  { %v12914_v12 = vpop.xlane.xlu1 %2482 }
 0x543   :  { %15936 = vst [vmem:[#allocation75_spill] sm:$0xff] %v12914_v12 }
 0x544   :  { %v12912_v27 = vpop.xlane.xlu0 %2478 }
 0x545   :  { %15935 = vst [vmem:[#allocation76_spill] sm:$0xff] %v12912_v27 }
 0x549   :  { %4094 = vrot.lane.b32.xlu1 %v15925_v14, %s10577_s19  ;;  %v2428_v14 = vmul.f32 1.442695, %v2368_v31 }
 0x54a   :  { %4092 = vrot.lane.b32.xlu0 %v15926_v46, %s10577_s19  ;;  %v2369_v46 = vsub.f32 %v15931_v48, %v12706_v23 }
 0x54b   :  { %9943 = vpow2.f32 %v2428_v14 }
 0x54c   :  { %v2430_v59 = vmul.f32 1.442695, %v2369_v46  ;;  %9945 = vpow2.f32 %v2432_v54 }
 0x54e   :  { %9947 = vpow2.f32 %v2430_v59 }
 0x54f   :  { %9949 = vpow2.f32 %v2434_v19 }
 0x555   :  { %v12916_v23 = vpop.eup %9943 }
 0x556   :  { %15937 = vst [vmem:[#allocation107_spill] sm:$0xff] %v12916_v23  ;;  %v12919_v50 = vpop.eup %9945 }
 0x557   :  { %15938 = vst [vmem:[#allocation108_spill] sm:$0xff] %v12919_v50 }
 0x558   :  { %v12921_v48 = vpop.eup %9947 }
 0x559   :  { %15939 = vst [vmem:[#allocation109_spill] sm:$0xff] %v12921_v48  ;;  %v12925_v0 = vpop.eup %9949 }
 0x55a   :  { %15940 = vst [vmem:[#allocation110_spill] sm:$0xff] %v12925_v0 }
 0x568   :  { %v3338_v34 = vpop.xlane.xlu0 %3337 }
 0x569   :  { %2492 = vadd.xlane.f32.xlu0 %v12916_v23 }
 0x56a   :  { %v3340_v35 = vpop.xlane.xlu1 %3339 }
 0x56b   :  { %9951 = vrcp.f32 %v3340_v35 }
 0x56c   :  { %v3334_v46 = vpop.xlane.xlu0 %3333 }
 0x56d   :  { %2494 = vadd.xlane.f32.xlu1 %v12921_v48  ;;  %2496 = vadd.xlane.f32.xlu0 %v12919_v50  ;;  %9953 = vrcp.f32 %v3334_v46 }
 0x56e   :  { %9955 = vrcp.f32 %v3338_v34  ;;  %v3336_v54 = vpop.xlane.xlu1 %3335 }
 0x56f   :  { %9957 = vrcp.f32 %v3336_v54 }
 0x570   :  { %v3346_v59 = vpop.xlane.xlu0 %3345 }
 0x571   :  { %2498 = vadd.xlane.f32.xlu0 %v12925_v0 }
 0x572   :  { %v3348_v31 = vpop.xlane.xlu1 %3347 }
 0x573   :  { %9959 = vrcp.f32 %v3348_v31 }
 0x574   :  { %v3342_v14 = vpop.xlane.xlu0 %3341 }
 0x575   :  { %9961 = vrcp.f32 %v3342_v14  ;;  %v9952_v19 = vpop.eup %9951  ;;  %v15941_v14 = vld [vmem:[#allocation10_spill] sm:$0xff] }
 0x576   :  { %9963 = vrcp.f32 %v3346_v59  ;;  %v3344_v35 = vpop.xlane.xlu1 %3343  ;;  %v3432_v34 = vmul.f32 %v9952_v19, %v12719_v16  ;;  %v15943_v19 = vld [vmem:[#allocation53_spill] sm:$0xff] }
 0x577   :  { %v9954_v23 = vpop.eup %9953  ;;  %9965 = vrcp.f32 %v3344_v35 }
 0x578   :  { %v9956_v48 = vpop.eup %9955  ;;  %v3429_v46 = vmul.f32 %v9954_v23, %v12722_v41 }
 0x579   :  { %v9958_v50 = vpop.eup %9957  ;;  %v3431_v12 = vmul.f32 %v9956_v48, %v12715_v13  ;;  %v15944_v13 = vld [vmem:[#allocation9_spill] sm:$0xff]  ;;  %v15945_v48 = vld [vmem:[#allocation56_spill] sm:$0xff] }
 0x57a   :  { %v3430_v54 = vmul.f32 %v9958_v50, %v12725_v37 }
 0x57b   :  { %v3462_v43 = vpack.c.bf16 %v3432_v34, %v3431_v12 }
 0x57c   :  { %v3461_v0 = vpack.c.bf16 %v3430_v54, %v3429_v46  ;;  %v15949_v46 = vld [vmem:[#allocation11_spill] sm:$0xff]  ;;  %v15950_v54 = vld [vmem:[#allocation33_spill] sm:$0xff] }
 0x57d   :  { %v9960_v31 = vpop.eup %9959 }
 0x57e   :  { %4096 = vrot.lane.b32.xlu1 %v15941_v14, %s10577_s19  ;;  %9022 = vmatprep.mubr.bf16.mxu1 %v3461_v0  ;;  %v3436_v41 = vmul.f32 %v9960_v31, %v12731_v21  ;;  %v15946_v21 = vld [vmem:[#allocation27_spill] sm:$0xff]  ;;  %v15951_v31 = vld [vmem:[#allocation58_spill] sm:$0xff] }
 0x57f   :  { %v9962_v59 = vpop.eup %9961  ;;  %9023 = vmatmul.mubr.bf16.vlgmr.msra.gmra.mrb[104].mxu1 %v3462_v43 }
 0x580   :  { %v9964_v35 = vpop.eup %9963  ;;  %9071 = vmatpush3.bf16.msra.mxu1 %v15942_v3  ;;  %v3433_v12 = vmul.f32 %v9962_v59, %v12735_v6  ;;  %v15947_v6 = vld [vmem:[#allocation34_spill] sm:$0xff] }
 0x581   :  { %v3354_v27 = vpop.xlane.xlu0 %3353  ;;  %v9966_v16 = vpop.eup %9965  ;;  %9072 = vmatprep.subr.bf16.mxu1 %v15943_v19  ;;  %v3435_v50 = vmul.f32 %v9964_v35, %v12728_v51  ;;  %v15948_v51 = vld [vmem:[#allocation55_spill] sm:$0xff] }
 0x582   :  { %4098 = vrot.lane.b32.xlu1 %v15944_v13, %s10577_s19  ;;  %v3434_v23 = vmul.f32 %v9966_v16, %v12739_v60  ;;  %v15952_v16 = vld [vmem:[#allocation40_spill] sm:$0xff] }
 0x583   :  { %v3356_v37 = vpop.xlane.xlu1 %3355  ;;  %v3464_v0 = vpack.c.bf16 %v3436_v41, %v3435_v50  ;;  %v15953_v41 = vld [vmem:[#allocation36_spill] sm:$0xff]  ;;  %v15955_v50 = vld [vmem:[#allocation39_spill] sm:$0xff] }
 0x584   :  { %9967 = vrcp.f32 %v3356_v37  ;;  %9073 = vmatpush3.bf16.msra.mxu1 %v15943_v19  ;;  %v3463_v3 = vpack.c.bf16 %v3434_v23, %v3433_v12  ;;  %v15954_v12 = vld [vmem:[#allocation57_spill] sm:$0xff] }
 0x585   :  { %v3350_v43 = vpop.xlane.xlu0 %3349  ;;  %9074 = vmatprep.subr.bf16.mxu1 %v15945_v48 }
 0x586   :  { %9969 = vrcp.f32 %v3350_v43  ;;  %4100 = vrot.lane.b32.xlu1 %v15946_v21, %s10577_s19  ;;  %9026 = vmatprep.mubr.bf16.mxu1 %v3463_v3 }
 0x587   :  { %9971 = vrcp.f32 %v3354_v27  ;;  %v3352_v34 = vpop.xlane.xlu1 %3351  ;;  %4265 = vrot.lane.b32.xlu0 %v15947_v6, %s10577_s19  ;;  %9027 = vmatmul.mubr.bf16.gmra.mrb[108].mxu1 %v3464_v0  ;;  %v15956_v0 = vld [vmem:[#allocation35_spill] sm:$0xff] }
 0x588   :  { %9973 = vrcp.f32 %v3352_v34  ;;  %9075 = vmatpush3.bf16.msra.mxu1 %v15945_v48 }
 0x589   :  { %9076 = vmatprep.subr.bf16.mxu1 %v15948_v51  ;;  %v3362_v60 = vpop.xlane.xlu0 %3361  ;;  %9975 = vrcp.f32 %v12785_v47 }
 0x58a   :  { %4102 = vrot.lane.b32.xlu1 %v15949_v46, %s10577_s19  ;;  %9977 = vrcp.f32 %v12796_v4 }
 0x58b   :  { %v3364_v27 = vpop.xlane.xlu1 %3363  ;;  %4267 = vrot.lane.b32.xlu0 %v15950_v54, %s10577_s19 }
 0x58c   :  { %9077 = vmatpush3.bf16.msra.mxu1 %v15948_v51  ;;  %9979 = vrcp.f32 %v3364_v27 }
 0x58d   :  { %9078 = vmatprep.subr.bf16.mxu1 %v15951_v31  ;;  %v3358_v59 = vpop.xlane.xlu0 %3357 }
 0x58e   :  { %v9968_v35 = vpop.eup %9967  ;;  %9981 = vrcp.f32 %v3358_v59  ;;  %4273 = vrot.lane.b32.xlu1 %v15952_v16, %s10577_s19 }
 0x58f   :  { %9983 = vrcp.f32 %v3362_v60  ;;  %v3360_v47 = vpop.xlane.xlu1 %3359  ;;  %4269 = vrot.lane.b32.xlu0 %v15953_v41, %s10577_s19  ;;  %v3440_v23 = vmul.f32 %v9968_v35, %v12751_v20  ;;  %v15957_v20 = vld [vmem:[#allocation60_spill] sm:$0xff] }
 0x590   :  { %v9970_v19 = vpop.eup %9969  ;;  %9985 = vrcp.f32 %v3360_v47  ;;  %9079 = vmatpush3.bf16.msra.mxu1 %v15951_v31 }
 0x591   :  { %v9972_v37 = vpop.eup %9971  ;;  %9080 = vmatprep.subr.bf16.mxu1 %v15954_v12  ;;  %v3437_v43 = vmul.f32 %v9970_v19, %v12755_v5  ;;  %v3370_v48 = vpop.xlane.xlu0 %3369  ;;  %9987 = vrcp.f32 %v12790_v53  ;;  %v15958_v5 = vld [vmem:[#allocation45_spill] sm:$0xff]  ;;  %v15960_v19 = vld [vmem:[#allocation59_spill] sm:$0xff] }
 0x592   :  { %v9974_v4 = vpop.eup %9973  ;;  %4275 = vrot.lane.b32.xlu1 %v15955_v50, %s10577_s19  ;;  %v3439_v34 = vmul.f32 %v9972_v37, %v12747_v8  ;;  %9989 = vrcp.f32 %v12833_v10  ;;  %v15959_v8 = vld [vmem:[#allocation38_spill] sm:$0xff]  ;;  %v15961_v37 = vld [vmem:[#allocation49_spill] sm:$0xff] }
 0x593   :  { %v3438_v3 = vmul.f32 %v9974_v4, %v12758_v25  ;;  %4271 = vrot.lane.b32.xlu0 %v15956_v0, %s10577_s19  ;;  %v9976_v60 = vpop.eup %9975  ;;  %9991 = vrcp.f32 %v12777_v63  ;;  %v12988_v63 = vld [vmem:[%s15514_s10 + $0x40] sm:$0xff]  }
 0x594   :  { %9081 = vmatpush3.bf16.msra.mxu1 %v15954_v12  ;;  %v3466_v27 = vpack.c.bf16 %v3440_v23, %v3439_v34  ;;  %v9978_v31 = vpop.eup %9977  ;;  %9993 = vrcp.f32 %v12819_v42 }
 0x595   :  { %v3465_v51 = vpack.c.bf16 %v3438_v3, %v3437_v43  ;;  %9082 = vmatprep.subr.bf16.mxu1 %v15957_v20  ;;  %9995 = vrcp.f32 %v12824_v44  ;;  %v3366_v10 = vpop.xlane.xlu0 %3365  ;;  %v15962_v44 = vld [vmem:[#allocation37_spill] sm:$0xff]  ;;  %v2532_v23 = vmul.f32 %v9978_v31, %v12606_v57  ;;  %v15964_v57 = vld [vmem:[#allocation46_spill] sm:$0xff]  ;;  %v15965_v31 = vld [vmem:[#allocation83_spill] sm:$0xff] }
 0x596   :  { %4279 = vrot.lane.b32.xlu1 %v15958_v5, %s10577_s19  ;;  %v9980_v25 = vpop.eup %9979  ;;  %9997 = vrcp.f32 %v12876_v33 }
 0x597   :  { %9030 = vmatprep.mubr.bf16.mxu1 %v3465_v51  ;;  %4072 = vrot.lane.b32.xlu0 %v15959_v8, %s10577_s19  ;;  %v3444_v42 = vmul.f32 %v9980_v25, %v12766_v36  ;;  %v2533_v36 = vmul.f32 %v9976_v60, %v12597_v24 }
 0x598   :  { %9031 = vmatmul.mubr.bf16.gmra.mrb[112].mxu1 %v3466_v27  ;;  %v9982_v59 = vpop.eup %9981 }
 0x599   :  { %9083 = vmatpush3.bf16.msra.mxu1 %v15957_v20  ;;  %v9984_v53 = vpop.eup %9983  ;;  %v3372_v35 = vpop.xlane.xlu1 %3371  ;;  %v3441_v4 = vmul.f32 %v9982_v59, %v12770_v15  ;;  %v15963_v15 = vld [vmem:[#allocation52_spill] sm:$0xff] }
 0x59a   :  { %9084 = vmatprep.subr.bf16.mxu1 %v15960_v19  ;;  %v9986_v47 = vpop.eup %9985  ;;  %4251 = vrot.lane.b32.xlu1 %v15961_v37, %s10577_s19  ;;  %9999 = vrcp.f32 %v3372_v35  ;;  %v3443_v33 = vmul.f32 %v9984_v53, %v12762_v7  ;;  %v2564_v7 = vpack.c.bf16 %v2533_v36, %v2532_v23  ;;  %v15967_v53 = vld [vmem:[#allocation50_spill] sm:$0xff] }
 0x59b   :  { %4074 = vrot.lane.b32.xlu0 %v15962_v44, %s10577_s19  ;;  %v3442_v12 = vmul.f32 %v9986_v47, %v12774_v22  ;;  %10001 = vrcp.f32 %v3366_v10  ;;  %v9988_v51 = vpop.eup %9987  ;;  %v9660_v23 = vld [vmem:[%s15514_s10 + $0x48] sm:$0xff]  }
 0x59c   :  { %10003 = vrcp.f32 %v3370_v48  ;;  %v3468_v22 = vpack.c.bf16 %v3444_v42, %v3443_v33  ;;  %v9990_v48 = vpop.eup %9989  ;;  %v2534_v25 = vmul.f32 %v9988_v51, %v15965_v31  ;;  %v15970_v33 = vld [vmem:[#allocation42_spill] sm:$0xff] }
 0x59d   :  { %9085 = vmatpush3.bf16.msra.mxu1 %v15960_v19  ;;  %v3368_v43 = vpop.xlane.xlu1 %3367  ;;  %v3378_v3 = vpop.xlane.xlu0 %3377  ;;  %v3467_v34 = vpack.c.bf16 %v3442_v12, %v3441_v4  ;;  %v15969_v4 = vld [vmem:[#allocation24_spill] sm:$0xff] }
 0x59e   :  { %9134 = vmatprep.subr.bf16.mxu1 %v12988_v63  ;;  %10005 = vrcp.f32 %v3368_v43  ;;  %4253 = vrot.lane.b32.xlu1 %v15963_v15, %s10577_s19  ;;  %v9992_v24 = vpop.eup %9991 }
 0x59f   :  { %10007 = vrcp.f32 %v12810_v56  ;;  %4277 = vrot.lane.b32.xlu0 %v15964_v57, %s10577_s19  ;;  %9034 = vmatprep.mubr.bf16.mxu1 %v3467_v34  ;;  %v9994_v27 = vpop.eup %9993  ;;  %v15966_v56 = vld [vmem:[#allocation51_spill] sm:$0xff] }
 0x5a0   :  { %10009 = vrcp.f32 %v12878_v45  ;;  %9035 = vmatmul.mubr.bf16.gmra.mrb[116].mxu1 %v3468_v22  ;;  %v9996_v59 = vpop.eup %9995  ;;  %v2536_v45 = vmul.f32 %v9990_v48, %v12627_v29  ;;  %v2537_v42 = vmul.f32 %v9994_v27, %v12617_v49  ;;  %v15971_v48 = vld [vmem:[#allocation23_spill] sm:$0xff]  ;;  %v15973_v27 = vld [vmem:[#allocation84_spill] sm:$0xff] }
 0x5a1   :  { %10011 = vrcp.f32 %v12872_v39  ;;  %v3380_v60 = vpop.xlane.xlu1 %3379  ;;  %9086 = vmatprep.mubr.bf16.mxu1 %v2564_v7  ;;  %v3374_v20 = vpop.xlane.xlu0 %3373  ;;  %v15968_v39 = vld [vmem:[#allocation82_spill] sm:$0xff] }
 0x5a2   :  { %10013 = vrcp.f32 %v12888_v18  ;;  %4255 = vrot.lane.b32.xlu1 %v15966_v56, %s10577_s19  ;;  %v9998_v10 = vpop.eup %9997  ;;  %v2535_v35 = vmul.f32 %v9992_v24, %v15968_v39  ;;  %v2566_v43 = vpack.c.bf16 %v2537_v42, %v2536_v45  ;;  %v15972_v24 = vld [vmem:[#allocation41_spill] sm:$0xff] }
 0x5a3   :  { %10015 = vrcp.f32 %v3380_v60  ;;  %4249 = vrot.lane.b32.xlu0 %v15967_v53, %s10577_s19 }
 0x5a4   :  { %10017 = vrcp.f32 %v3374_v20  ;;  %v10000_v19 = vpop.eup %9999  ;;  %v2565_v12 = vpack.c.bf16 %v2535_v35, %v2534_v25  ;;  %v15976_v35 = vld [vmem:[#allocation44_spill] sm:$0xff] }
 0x5a5   :  { %10019 = vrcp.f32 %v3378_v3  ;;  %v3376_v47 = vpop.xlane.xlu1 %3375  ;;  %v10002_v18 = vpop.eup %10001  ;;  %v3448_v49 = vmul.f32 %v10000_v19, %v12792_v17 }
 0x5a6   :  { %10021 = vrcp.f32 %v3376_v47  ;;  %4257 = vrot.lane.b32.xlu1 %v15969_v4, %s10577_s19  ;;  %v10004_v29 = vpop.eup %10003  ;;  %v3445_v22 = vmul.f32 %v10002_v18, %v12787_v2  ;;  %v2540_v2 = vmul.f32 %v9998_v10, %v12653_v28  ;;  %v15974_v28 = vld [vmem:[#allocation26_spill] sm:$0xff]  ;;  %v15977_v47 = vld [vmem:[#allocation61_spill] sm:$0xff]  ;;  %v9662_v18 = vld [vmem:[%s15514_s10 + $0x58] sm:$0xff]  }
 0x5a7   :  { %10023 = vrcp.f32 %v12874_v38  ;;  %4076 = vrot.lane.b32.xlu0 %v15970_v33, %s10577_s19  ;;  %v3447_v7 = vmul.f32 %v10004_v29, %v12780_v61 }
 0x5a8   :  { %v10006_v3 = vpop.eup %10005  ;;  %10025 = vrcp.f32 %v12890_v1  ;;  %9087 = vmatmul.mubr.bf16.vlgmr.msra.gmra.mrb[104].mxu1 %v2565_v12  ;;  %v2538_v1 = vmul.f32 %v9996_v59, %v12621_v26  ;;  %v9661_v59 = vld [vmem:[%s15514_s10 + $0x50] sm:$0xff]  }
 0x5a9   :  { %v10008_v34 = vpop.eup %10007  ;;  %v3388_v36 = vpop.xlane.xlu1 %3387  ;;  %9090 = vmatprep.mubr.bf16.mxu1 %v2566_v43  ;;  %v3446_v51 = vmul.f32 %v10006_v3, %v12798_v32  ;;  %9135 = vmatpush3.bf16.msra.mxu1 %v12988_v63  ;;  %v3470_v32 = vpack.c.bf16 %v3448_v49, %v3447_v7  ;;  %10027 = vrcp.f32 %v12880_v55  ;;  %v15975_v55 = vld [vmem:[#allocation62_spill] sm:$0xff]  ;;  %v15978_v49 = vld [vmem:[#allocation25_spill] sm:$0xff]  ;;  %v15982_v7 = vld [vmem:[#allocation91_spill] sm:$0xff] }
 0x5aa   :  { %v10010_v38 = vpop.eup %10009  ;;  %4259 = vrot.lane.b32.xlu1 %v15971_v48, %s10577_s19  ;;  %9136 = vmatprep.subr.bf16.mxu1 %v9660_v23  ;;  %v2539_v63 = vmul.f32 %v10008_v34, %v15973_v27  ;;  %10029 = vrcp.f32 %v12882_v30 }
 0x5ab   :  { %v10012_v17 = vpop.eup %10011  ;;  %4078 = vrot.lane.b32.xlu0 %v15972_v24, %s10577_s19  ;;  %v3469_v60 = vpack.c.bf16 %v3446_v51, %v3445_v22  ;;  %v2541_v26 = vmul.f32 %v10010_v38, %v12641_v9  ;;  %v15980_v22 = vld [vmem:[#allocation86_spill] sm:$0xff]  ;;  %v15981_v38 = vld [vmem:[#allocation43_spill] sm:$0xff] }
 0x5ac   :  { %v10014_v20 = vpop.eup %10013  ;;  %v2567_v10 = vpack.c.bf16 %v2539_v63, %v2538_v1  ;;  %v2542_v51 = vmul.f32 %v10012_v17, %v15980_v22  ;;  %v15983_v1 = vld [vmem:[#allocation64_spill] sm:$0xff]  ;;  %v15986_v63 = vld [vmem:[#allocation5_spill] sm:$0xff] }
 0x5ad   :  { %v10016_v31 = vpop.eup %10015  ;;  %v3384_v61 = vpop.xlane.xlu1 %3383  ;;  %9054 = vmatprep.mubr.bf16.mxu0 %v3469_v60  ;;  %9137 = vmatpush3.bf16.msra.mxu1 %v9660_v23  ;;  %v2568_v9 = vpack.c.bf16 %v2541_v26, %v2540_v2  ;;  %v15984_v60 = vld [vmem:[#allocation85_spill] sm:$0xff]  ;;  %v15985_v17 = vld [vmem:[#allocation88_spill] sm:$0xff]  ;;  %v15988_v26 = vld [vmem:[#allocation63_spill] sm:$0xff] }
 0x5ae   :  { %v3386_v25 = vpop.xlane.xlu0 %3385  ;;  %v10018_v45 = vpop.eup %10017  ;;  %4261 = vrot.lane.b32.xlu1 %v15974_v28, %s10577_s19  ;;  %9055 = vmatmul.mubr.bf16.vlgmr.msra.gmra.mrb[88].mxu0 %v3470_v32  ;;  %v3452_v42 = vmul.f32 %v10016_v31, %v12808_v58  ;;  %v15979_v58 = vld [vmem:[#allocation80_spill] sm:$0xff]  ;;  %v15994_v22 = vld [vmem:[#allocation69_spill] sm:$0xff] }
 0x5af   :  { %v10020_v39 = vpop.eup %10019  ;;  %9103 = vmatpush3.bf16.msra.mxu0 %v15975_v55  ;;  %4080 = vrot.lane.b32.xlu0 %v15976_v35, %s10577_s19  ;;  %10031 = vrcp.f32 %v3386_v25  ;;  %v3449_v29 = vmul.f32 %v10018_v45, %v12812_v11 }
 0x5b0   :  { %v10022_v19 = vpop.eup %10021  ;;  %9104 = vmatprep.subr.bf16.mxu0 %v15977_v47  ;;  %9091 = vmatmul.mubr.bf16.gmra.mrb[108].mxu1 %v2567_v10  ;;  %10033 = vrcp.f32 %v3384_v61  ;;  %v3451_v34 = vmul.f32 %v10020_v39, %v15979_v58  ;;  %v15989_v39 = vld [vmem:[#allocation89_spill] sm:$0xff]  ;;  %v15993_v58 = vld [vmem:[#allocation70_spill] sm:$0xff] }
 0x5b1   :  { %v10024_v12 = vpop.eup %10023  ;;  %v13056_v30 = vpop.xlane.xlu1 %2484  ;;  %9094 = vmatprep.mubr.bf16.mxu1 %v2568_v9  ;;  %v3450_v43 = vmul.f32 %v10022_v19, %v12821_v52  ;;  %9138 = vmatprep.subr.bf16.mxu1 %v9661_v59  ;;  %10035 = vrcp.f32 %v3388_v36  ;;  %v2544_v52 = vmul.f32 %v10014_v20, %v15982_v7  ;;  %v15987_v20 = vld [vmem:[#allocation48_spill] sm:$0xff]  ;;  %v15990_v19 = vld [vmem:[#allocation47_spill] sm:$0xff] }
 0x5b2   :  { %v3382_v23 = vpop.xlane.xlu0 %3381  ;;  %v10026_v3 = vpop.eup %10025  ;;  %4263 = vrot.lane.b32.xlu1 %v15978_v49, %s10577_s19  ;;  %9139 = vmatpush3.bf16.msra.mxu1 %v9661_v59  ;;  %v3472_v36 = vpack.c.bf16 %v3452_v42, %v3451_v34  ;;  %v2543_v2 = vmul.f32 %v10024_v12, %v15984_v60  ;;  %v15991_v42 = vld [vmem:[#allocation66_spill] sm:$0xff]  ;;  %v15992_v12 = vld [vmem:[#allocation87_spill] sm:$0xff]  ;;  %v15998_v60 = vld [vmem:[#allocation65_spill] sm:$0xff] }
 0x5b3   :  { %10037 = vrcp.f32 %v3382_v23  ;;  %9105 = vmatpush3.bf16.msra.mxu0 %v15977_v47  ;;  %4082 = vrot.lane.b32.xlu0 %v15981_v38, %s10577_s19  ;;  %v3471_v11 = vpack.c.bf16 %v3450_v43, %v3449_v29  ;;  %v2545_v27 = vmul.f32 %v10026_v3, %v15985_v17  ;;  %v10028_v61 = vpop.eup %10027 }
 0x5b4   :  { %9106 = vmatprep.subr.bf16.mxu0 %v15983_v1  ;;  %9140 = vmatprep.subr.bf16.mxu1 %v9662_v18  ;;  %v2569_v31 = vpack.c.bf16 %v2543_v2, %v2542_v51  ;;  %v10030_v59 = vpop.eup %10029  ;;  %v2546_v55 = vmul.f32 %v10028_v61, %v15989_v39  ;;  %10039 = vrcp.f32 %v12904_v40  ;;  %v16000_v61 = vld [vmem:[#allocation68_spill] sm:$0xff] }
 0x5b5   :  { %v13070_v32 = vpop.xlane.xlu1 %2486  ;;  %9058 = vmatprep.mubr.bf16.mxu0 %v3471_v11  ;;  %v2570_v25 = vpack.c.bf16 %v2545_v27, %v2544_v52  ;;  %v2547_v23 = vmul.f32 %v10030_v59, %v15992_v12  ;;  %v15995_v11 = vld [vmem:[#allocation81_spill] sm:$0xff]  ;;  %v15996_v52 = vld [vmem:[#allocation6_spill] sm:$0xff]  ;;  %v15999_v27 = vld [vmem:[#allocation12_spill] sm:$0xff]  ;;  %10041 = vrcp.f32 %v12898_v62 }
 0x5b6   :  { %5181 = vrot.lane.b32.xlu1 %v15986_v63, %s10578_s1  ;;  %9059 = vmatmul.mubr.bf16.gmra.mrb[92].mxu0 %v3472_v36  ;;  %v16001_v40 = vld [vmem:[#allocation28_spill] sm:$0xff]  ;;  %v16003_v59 = vld [vmem:[#allocation29_spill] sm:$0xff] }
 0x5b7   :  { %9107 = vmatpush3.bf16.msra.mxu0 %v15983_v1  ;;  %4084 = vrot.lane.b32.xlu0 %v15987_v20, %s10577_s19  ;;  %v2571_v34 = vpack.c.bf16 %v2547_v23, %v2546_v55  ;;  %v15997_v1 = vld [vmem:[#allocation79_spill] sm:$0xff]  ;;  %v16005_v55 = vld [vmem:[#allocation76_spill] sm:$0xff]  ;;  %v16008_v23 = vld [vmem:[#allocation73_spill] sm:$0xff] }
 0x5b8   :  { %9108 = vmatprep.subr.bf16.mxu0 %v15988_v26  ;;  %9095 = vmatmul.mubr.bf16.gmra.mrb[112].mxu1 %v2569_v31 }
 0x5b9   :  { %v13079_v45 = vpop.xlane.xlu1 %2488  ;;  %9098 = vmatprep.mubr.bf16.mxu1 %v2570_v25  ;;  %9141 = vmatpush3.bf16.msra.mxu1 %v9662_v18  ;;  %v10032_v10 = vpop.eup %10031 }
 0x5ba   :  { %v10034_v9 = vpop.eup %10033  ;;  %v3455_v18 = vmul.f32 %v10032_v10, %v15993_v58  ;;  %v16004_v10 = vld [vmem:[#allocation105_spill] sm:$0xff]  ;;  %v16009_v58 = vld [vmem:[#allocation30_spill] sm:$0xff] }
 0x5bb   :  { %9109 = vmatpush3.bf16.msra.mxu0 %v15988_v26  ;;  %4086 = vrot.lane.b32.xlu0 %v15990_v19, %s10577_s19  ;;  %v10036_v47 = vpop.eup %10035  ;;  %v3454_v7 = vmul.f32 %v10034_v9, %v15995_v11  ;;  %v16002_v26 = vld [vmem:[#allocation67_spill] sm:$0xff] }
 0x5bc   :  { %9110 = vmatprep.subr.bf16.mxu0 %v15991_v42  ;;  %v3456_v36 = vmul.f32 %v10036_v47, %v15997_v1  ;;  %v16006_v47 = vld [vmem:[#allocation106_spill] sm:$0xff]  ;;  %v16014_v1 = vld [vmem:[#allocation95_spill] sm:$0xff] }
 0x5bd   :  { %v10038_v29 = vpop.eup %10037  ;;  %v13087_v43 = vpop.xlane.xlu1 %2490 }
 0x5be   :  { %v3394_v3 = vpop.xlane.xlu0 %3393  ;;  %v3453_v51 = vmul.f32 %v10038_v29, %v15994_v22  ;;  %v3474_v31 = vpack.c.bf16 %v3456_v36, %v3455_v18  ;;  %v10040_v62 = vpop.eup %10039  ;;  %v16010_v18 = vld [vmem:[#allocation102_spill] sm:$0xff]  ;;  %v16011_v22 = vld [vmem:[#allocation31_spill] sm:$0xff] }
 0x5bf   :  { %9111 = vmatpush3.bf16.msra.mxu0 %v15991_v42  ;;  %5179 = vrot.lane.b32.xlu0 %v15996_v52, %s10578_s1  ;;  %v10042_v39 = vpop.eup %10041  ;;  %v16007_v42 = vld [vmem:[#allocation78_spill] sm:$0xff] }
 0x5c0   :  { %9112 = vmatprep.subr.bf16.mxu0 %v15998_v60  ;;  %9099 = vmatmul.mubr.bf16.gmra.mrb[116].mxu1 %v2571_v34  ;;  %v3473_v2 = vpack.c.bf16 %v3454_v7, %v3453_v51  ;;  %v16012_v51 = vld [vmem:[#allocation103_spill] sm:$0xff]  ;;  %v16013_v7 = vld [vmem:[#allocation104_spill] sm:$0xff]  ;;  %v2548_v36 = vmul.f32 %v10042_v39, %v16014_v1 }
 0x5c1   :  { %v3396_v17 = vpop.xlane.xlu1 %3395  ;;  %9142 = vmatprep.mubr.msk.bf16.mxu1 %vm250_vm0, %v15999_v27 }
 0x5c2   :  { %v3390_v63 = vpop.xlane.xlu0 %3389  ;;  %9062 = vmatprep.mubr.bf16.mxu0 %v3473_v2  ;;  %10043 = vrcp.f32 %v3396_v17  ;;  %v16016_v17 = vld [vmem:[#allocation74_spill] sm:$0xff] }
 0x5c3   :  { %9063 = vmatmul.mubr.bf16.gmra.mrb[96].mxu0 %v3474_v31  ;;  %10045 = vrcp.f32 %v3390_v63  ;;  %v16017_v31 = vld [vmem:[#allocation92_spill] sm:$0xff] }
 0x5c4   :  { %9113 = vmatpush3.bf16.msra.mxu0 %v15998_v60  ;;  %10047 = vrcp.f32 %v3394_v3  ;;  %v16015_v60 = vld [vmem:[#allocation101_spill] sm:$0xff] }
 0x5c5   :  { %9114 = vmatprep.subr.bf16.mxu0 %v16000_v61  ;;  %v3392_v25 = vpop.xlane.xlu1 %3391 }
 0x5c6   :  { %10049 = vrcp.f32 %v3392_v25 }
 0x5c7   :  { %10051 = vrcp.f32 %v16004_v10  ;;  %v16018_v10 = vld [vmem:[#allocation75_spill] sm:$0xff] }
 0x5c8   :  { %9115 = vmatpush3.bf16.msra.mxu0 %v16000_v61  ;;  %9143 = vmatmul.mubr.msk.bf16.vlgmr.msra.gmra.mrb[120].mxu1 %vm250_vm0, %v16001_v40  ;;  %10053 = vrcp.f32 %v16005_v55  ;;  %v2549_v61 = vmul.f32 %v10040_v62, %v16017_v31  ;;  %v16021_v62 = vld [vmem:[#allocation20_spill] sm:$0xff]  ;;  %v16047_v40 = vld [vmem:[#allocation7_spill] sm:$0xff] }
 0x5c9   :  { %9116 = vmatprep.subr.bf16.mxu0 %v16002_v26  ;;  %9146 = vmatprep.mubr.msk.bf16.mxu1 %vm250_vm0, %v16003_v59  ;;  %10055 = vrcp.f32 %v16006_v47  ;;  %v16046_v59 = vld [vmem:[#allocation8_spill] sm:$0xff] }
 0x5ca   :  { %10057 = vrcp.f32 %v16008_v23  ;;  %v2572_v55 = vpack.c.bf16 %v2549_v61, %v2548_v36  ;;  %v4129_v36 = vsel %vm1985_vm1, %v16007_v42, 0  ;;  %v16028_v61 = vld [vmem:[#allocation14_spill] sm:$0xff] }
 0x5cb   :  { %10059 = vrcp.f32 %v16016_v17  ;;  %v16025_v17 = vld [vmem:[#allocation77_spill] sm:$0xff] }
 0x5cc   :  { %9117 = vmatpush3.bf16.msra.mxu0 %v16002_v26  ;;  %v10044_v9 = vpop.eup %10043  ;;  %10061 = vrcp.f32 %v13070_v32  ;;  %v16022_v32 = vld [vmem:[#allocation98_spill] sm:$0xff] }
 0x5cd   :  { %9606 = vmatprep.subr.msk.bf16.mxu0 %vm1985_vm1, %v16007_v42  ;;  %v10046_v12 = vpop.eup %10045  ;;  %v3460_v34 = vmul.f32 %v10044_v9, %v16010_v18  ;;  %10063 = vrcp.f32 %v16018_v10  ;;  %v16023_v18 = vld [vmem:[#allocation90_spill] sm:$0xff]  ;;  %v16031_v42 = vld [vmem:[#allocation72_spill] sm:$0xff] }
 0x5ce   :  { %v10048_v29 = vpop.eup %10047  ;;  %v3457_v11 = vmul.f32 %v10046_v12, %v16012_v51  ;;  %10065 = vrcp.f32 %v13056_v30  ;;  %v16019_v12 = vld [vmem:[#allocation93_spill] sm:$0xff]  ;;  %v16024_v51 = vld [vmem:[#allocation94_spill] sm:$0xff] }
 0x5cf   :  { %v3459_v2 = vmul.f32 %v10048_v29, %v16015_v60  ;;  %v16020_v29 = vld [vmem:[#allocation32_spill] sm:$0xff]  ;;  %10067 = vrcp.f32 %v13087_v43  ;;  %v16026_v43 = vld [vmem:[#allocation13_spill] sm:$0xff] }
 0x5d0   :  { %v10050_v3 = vpop.eup %10049  ;;  %9147 = vmatmul.mubr.msk.bf16.gmra.mrb[124].mxu1 %vm250_vm0, %v16009_v58  ;;  %10069 = vrcp.f32 %v13079_v45  ;;  %v16029_v45 = vld [vmem:[#allocation71_spill] sm:$0xff] }
 0x5d1   :  { %9150 = vmatprep.mubr.msk.bf16.mxu1 %vm250_vm0, %v16011_v22  ;;  %v3458_v52 = vmul.f32 %v10050_v3, %v16013_v7  ;;  %v3476_v25 = vpack.c.bf16 %v3460_v34, %v3459_v2  ;;  %v10052_v26 = vpop.eup %10051 }
 0x5d2   :  { %v10054_v9 = vpop.eup %10053  ;;  %v2550_v23 = vmul.f32 %v10052_v26, %v16019_v12  ;;  %v16030_v26 = vld [vmem:[#allocation96_spill] sm:$0xff]  ;;  %v4132_v12 = vsel %vm1985_vm1, %v16025_v17, 0 }
 0x5d3   :  { %v3475_v63 = vpack.c.bf16 %v3458_v52, %v3457_v11  ;;  %v10056_v39 = vpop.eup %10055  ;;  %v2553_v3 = vmul.f32 %v10054_v9, %v16022_v32  ;;  %v4093_v32 = vpop.permute.xlu0 %4092 }
 0x5d4   :  { %v10058_v47 = vpop.eup %10057  ;;  %v2551_v34 = vmul.f32 %v10056_v39, %v16023_v18  ;;  %v16033_v18 = vld [vmem:[#allocation100_spill] sm:$0xff] }
 0x5d5   :  { %9066 = vmatprep.mubr.bf16.mxu0 %v3475_v63  ;;  %v2552_v30 = vmul.f32 %v10058_v47, %v16024_v51  ;;  %v10060_v7 = vpop.eup %10059  ;;  %v16027_v63 = vld [vmem:[#allocation97_spill] sm:$0xff]  ;;  %v16034_v51 = vld [vmem:[#allocation22_spill] sm:$0xff] }
 0x5d6   :  { %9067 = vmatmul.mubr.bf16.gmra.mrb[100].mxu0 %v3476_v25  ;;  %v2573_v11 = vpack.c.bf16 %v2551_v34, %v2550_v23  ;;  %v10062_v1 = vpop.eup %10061  ;;  %v2554_v31 = vmul.f32 %v10060_v7, %v16027_v63  ;;  %v16038_v63 = vld [vmem:[#allocation17_spill] sm:$0xff] }
 0x5d7   :  { %9118 = vmatprep.mubr.bf16.mxu0 %v2572_v55  ;;  %v2574_v52 = vpack.c.bf16 %v2553_v3, %v2552_v30  ;;  %v10064_v60 = vpop.eup %10063  ;;  %v2557_v25 = vmul.f32 %v10062_v1, %v16029_v45  ;;  %v16032_v3 = vld [vmem:[#allocation21_spill] sm:$0xff]  ;;  %v16035_v30 = vld [vmem:[#allocation99_spill] sm:$0xff]  ;;  %v4095_v1 = vpop.permute.xlu1 %4094 }
 0x5d8   :  { %9151 = vmatmul.mubr.msk.bf16.gmra.mrb[128].mxu1 %vm250_vm0, %v16020_v29  ;;  %v10066_v2 = vpop.eup %10065  ;;  %v2555_v10 = vmul.f32 %v10064_v60, %v16030_v26  ;;  %v16037_v60 = vld [vmem:[#allocation16_spill] sm:$0xff] }
 0x5d9   :  { %9154 = vmatprep.mubr.msk.bf16.mxu1 %vm250_vm0, %v16021_v62  ;;  %v2556_v55 = vmul.f32 %v10066_v2, %v16031_v42  ;;  %v10068_v39 = vpop.eup %10067  ;;  %v4138_v2 = vsel %vm1985_vm1, %v4095_v1, 0 }
 0x5da   :  { %v2575_v9 = vpack.c.bf16 %v2555_v10, %v2554_v31  ;;  %v10070_v23 = vpop.eup %10069  ;;  %v2559_v34 = vmul.f32 %v10068_v39, %v16033_v18  ;;  %v16039_v31 = vld [vmem:[#allocation18_spill] sm:$0xff]  ;;  %v16041_v18 = vld [vmem:[#allocation107_spill] sm:$0xff] }
 0x5db   :  { %v2576_v47 = vpack.c.bf16 %v2557_v25, %v2556_v55  ;;  %v16040_v55 = vld [vmem:[#allocation19_spill] sm:$0xff] }
 0x5de   :  { %9119 = vmatmul.mubr.bf16.vlgmr.msra.gmra.mrb[88].mxu0 %v2573_v11  ;;  %v2558_v11 = vmul.f32 %v10070_v23, %v16035_v30  ;;  %v16042_v30 = vld [vmem:[#allocation109_spill] sm:$0xff] }
 0x5df   :  { %9175 = vmatpush3.bf16.xpose.msra.mxu0 %v4129_v36  ;;  %9122 = vmatprep.mubr.bf16.mxu0 %v2574_v52  ;;  %v4135_v52 = vsel %vm1985_vm1, %v4093_v32, 0  ;;  %v16036_v36 = vld [vmem:[#allocation15_spill] sm:$0xff] }
 0x5e0   :  { %9607 = vmatprep.subr.msk.bf16.mxu0 %vm1985_vm1, %v16025_v17  ;;  %9155 = vmatmul.mubr.msk.bf16.gmra.mrb[132].mxu1 %vm250_vm0, %v16026_v43  ;;  %v2577_v7 = vpack.c.bf16 %v2559_v34, %v2558_v11 }
 0x5e1   :  { %9158 = vmatprep.mubr.msk.bf16.mxu1 %vm250_vm0, %v16028_v61 }
 0x5e6   :  { %9123 = vmatmul.mubr.bf16.gmra.mrb[92].mxu0 %v2575_v9 }
 0x5e7   :  { %9177 = vmatpush3.bf16.xpose.msra.mxu0 %v4132_v12  ;;  %9126 = vmatprep.mubr.bf16.mxu0 %v2576_v47 }
 0x5e8   :  { %9608 = vmatprep.subr.msk.bf16.mxu0 %vm1985_vm1, %v4093_v32  ;;  %9159 = vmatmul.mubr.msk.bf16.gmra.mrb[136].mxu1 %vm250_vm0, %v16032_v3 }
 0x5e9   :  { %9162 = vmatprep.mubr.msk.bf16.mxu1 %vm250_vm0, %v16034_v51 }
 0x5ee   :  { %9127 = vmatmul.mubr.bf16.gmra.mrb[96].mxu0 %v2577_v7 }
 0x5ef   :  { %9179 = vmatpush3.bf16.xpose.msra.mxu0 %v4135_v52 }
 0x5f0   :  { %9609 = vmatprep.subr.msk.bf16.mxu0 %vm1985_vm1, %v4095_v1  ;;  %9163 = vmatmul.mubr.msk.bf16.gmra.mrb[140].mxu1 %vm250_vm0, %v16036_v36 }
 0x5f1   :  { %9166 = vmatprep.mubr.msk.bf16.mxu1 %vm250_vm0, %v16037_v60 }
 0x5f6   :  { %v2493_v17 = vpop.xlane.xlu0 %2492 }
 0x5f7   :  { %9181 = vmatpush3.bf16.xpose.msra.mxu0 %v4138_v2  ;;  %10071 = vrcp.f32 %v2493_v17 }
 0x5f8   :  { %9167 = vmatmul.mubr.msk.bf16.gmra.mrb[144].mxu1 %vm250_vm0, %v16038_v63 }
 0x5f9   :  { %9170 = vmatprep.mubr.msk.bf16.mxu1 %vm250_vm0, %v16039_v31 }
 0x5fa   :  { %v2495_v45 = vpop.xlane.xlu1 %2494  ;;  %v2497_v25 = vpop.xlane.xlu0 %2496 }
 0x5fb   :  { %10073 = vrcp.f32 %v2495_v45 }
 0x5fc   :  { %10075 = vrcp.f32 %v2497_v25  ;;  %v16043_v25 = vld [vmem:[#allocation108_spill] sm:$0xff] }
 0x5fe   :  { %v4097_v26 = vpop.permute.xlu1 %4096  ;;  %v2499_v10 = vpop.xlane.xlu0 %2498 }
 0x5ff   :  { %10077 = vrcp.f32 %v2499_v10  ;;  %9610 = vmatprep.subr.msk.bf16.mxu0 %vm1985_vm1, %v4097_v26  ;;  %v4141_v42 = vsel %vm1985_vm1, %v4097_v26, 0  ;;  %v16044_v10 = vld [vmem:[#allocation110_spill] sm:$0xff] }
 0x600   :  { %9171 = vmatmul.mubr.msk.bf16.gmra.mrb[148].mxu1 %vm250_vm0, %v16040_v55  ;;  %9183 = vmatpush3.bf16.xpose.msra.mxu0 %v4141_v42 }
 0x601   :  { %v10072_v47 = vpop.eup %10071 }
 0x602   :  { %v4099_v9 = vpop.permute.xlu1 %4098  ;;  %v4266_v39 = vpop.permute.xlu0 %4265  ;;  %v2560_v34 = vmul.f32 %v10072_v47, %v16041_v18 }
 0x603   :  { %9611 = vmatprep.subr.msk.bf16.mxu0 %vm1985_vm1, %v4099_v9  ;;  %9614 = vmatprep.subr.msk.bf16.mxu1 %vm1985_vm1, %v4266_v39  ;;  %v4306_v12 = vsel %vm1985_vm1, %v4266_v39, 0  ;;  %v4144_v52 = vsel %vm1985_vm1, %v4099_v9, 0 }
 0x604   :  { %9207 = vmatpush3.bf16.xpose.msra.mxu1 %v4306_v12 }
 0x605   :  { %v10074_v23 = vpop.eup %10073 }
 0x606   :  { %v4268_v32 = vpop.permute.xlu0 %4267  ;;  %v2561_v11 = vmul.f32 %v10074_v23, %v16042_v30  ;;  %v10076_v7 = vpop.eup %10075 }
 0x607   :  { %9615 = vmatprep.subr.msk.bf16.mxu1 %vm1985_vm1, %v4268_v32  ;;  %v4101_v1 = vpop.permute.xlu1 %4100  ;;  %v2562_v26 = vmul.f32 %v10076_v7, %v16043_v25  ;;  %v4309_v39 = vsel %vm1985_vm1, %v4268_v32, 0 }
 0x608   :  { %9185 = vmatpush3.bf16.xpose.msra.mxu0 %v4144_v52  ;;  %v2578_v2 = vpack.c.bf16 %v2561_v11, %v2560_v34  ;;  %v4147_v12 = vsel %vm1985_vm1, %v4101_v1, 0 }
 0x609   :  { %v10078_v17 = vpop.eup %10077  ;;  %9612 = vmatprep.subr.msk.bf16.mxu0 %vm1985_vm1, %v4101_v1 }
 0x60a   :  { %9130 = vmatprep.mubr.bf16.mxu0 %v2578_v2  ;;  %v4270_v45 = vpop.permute.xlu0 %4269  ;;  %v2563_v42 = vmul.f32 %v10078_v17, %v16044_v10 }
 0x60b   :  { %v4103_v23 = vpop.permute.xlu1 %4102  ;;  %v4312_v34 = vsel %vm1985_vm1, %v4270_v45, 0 }
 0x60c   :  { %9209 = vmatpush3.bf16.xpose.msra.mxu1 %v4309_v39  ;;  %v2579_v47 = vpack.c.bf16 %v2563_v42, %v2562_v26  ;;  %v4150_v30 = vsel %vm1985_vm1, %v4103_v23, 0 }
 0x60d   :  { %9616 = vmatprep.subr.msk.bf16.mxu1 %vm1985_vm1, %v4270_v45 }
 0x60e   :  { %9131 = vmatmul.mubr.bf16.gmra.mrb[100].mxu0 %v2579_v47  ;;  %v4272_v9 = vpop.permute.xlu0 %4271 }
 0x60f   :  { %v4315_v7 = vsel %vm1985_vm1, %v4272_v9, 0  ;;  %v4274_v52 = vpop.permute.xlu1 %4273 }
 0x610   :  { %9187 = vmatpush3.bf16.xpose.msra.mxu0 %v4147_v12  ;;  %v4318_v17 = vsel %vm1985_vm1, %v4274_v52, 0 }
 0x611   :  { %9613 = vmatprep.subr.msk.bf16.mxu0 %vm1985_vm1, %v4103_v23 }
 0x612   :  { %v4073_v18 = vpop.permute.xlu0 %4072 }
 0x613   :  { %9190 = vmatprep.mubr.msk.bf16.mxu0 %vm1985_vm1, %v4073_v18  ;;  %v4276_v45 = vpop.permute.xlu1 %4275 }
 0x614   :  { %9211 = vmatpush3.bf16.xpose.msra.mxu1 %v4312_v34  ;;  %v4321_v10 = vsel %vm1985_vm1, %v4276_v45, 0 }
 0x615   :  { %9617 = vmatprep.subr.msk.bf16.mxu1 %vm1985_vm1, %v4272_v9 }
 0x616   :  { %v4075_v32 = vpop.permute.xlu0 %4074 }
 0x617   :  { %v4280_v39 = vpop.permute.xlu1 %4279 }
 0x618   :  { %9189 = vmatpush3.bf16.xpose.msra.mxu0 %v4150_v30  ;;  %v4327_v34 = vsel %vm1985_vm1, %v4280_v39, 0 }
 0x61a   :  { %v4278_v11 = vpop.permute.xlu0 %4277 }
 0x61b   :  { %v4324_v9 = vsel %vm1985_vm1, %v4278_v11, 0  ;;  %v4252_v12 = vpop.permute.xlu1 %4251 }
 0x61c   :  { %9213 = vmatpush3.bf16.xpose.msra.mxu1 %v4315_v7 }
 0x61d   :  { %9618 = vmatprep.subr.msk.bf16.mxu1 %vm1985_vm1, %v4274_v52 }
 0x61e   :  { %v4250_v1 = vpop.permute.xlu0 %4249 }
 0x61f   :  { %9191 = vmatmul.mubr.msk.bf16.vlgmr.msra.gmra.mrb[104].mxu0 %vm1985_vm1, %v4075_v32  ;;  %9222 = vmatprep.mubr.msk.bf16.mxu1 %vm1985_vm1, %v4250_v1  ;;  %v4254_v18 = vpop.permute.xlu1 %4253 }
 0x622   :  { %v4077_v2 = vpop.permute.xlu0 %4076 }
 0x623   :  { %9194 = vmatprep.mubr.msk.bf16.mxu0 %vm1985_vm1, %v4077_v2  ;;  %v4256_v32 = vpop.permute.xlu1 %4255  ;;  %v13221_v2 = vld [vmem:[%s15515_s11 + $0x2] ss:$0 sm:$0xff] }
 0x624   :  { %9215 = vmatpush3.bf16.xpose.msra.mxu1 %v4318_v17 }
 0x625   :  { %9619 = vmatprep.subr.msk.bf16.mxu1 %vm1985_vm1, %v4276_v45 }
 0x626   :  { %v4079_v25 = vpop.permute.xlu0 %4078 }
 0x627   :  { %9195 = vmatmul.mubr.msk.bf16.gmra.mrb[108].mxu0 %vm1985_vm1, %v4079_v25  ;;  %v4258_v30 = vpop.permute.xlu1 %4257 }
 0x62a   :  { %v4081_v26 = vpop.permute.xlu0 %4080 }
 0x62b   :  { %9198 = vmatprep.mubr.msk.bf16.mxu0 %vm1985_vm1, %v4081_v26 }
 0x62c   :  { %9217 = vmatpush3.bf16.xpose.msra.mxu1 %v4321_v10 }
 0x62d   :  { %9620 = vmatprep.subr.msk.bf16.mxu1 %vm1985_vm1, %v4278_v11  ;;  %v4260_v11 = vpop.permute.xlu1 %4259 }
 0x62e   :  { %v4083_v42 = vpop.permute.xlu0 %4082 }
 0x62f   :  { %9199 = vmatmul.mubr.msk.bf16.gmra.mrb[112].mxu0 %vm1985_vm1, %v4083_v42 }
 0x631   :  { %v4262_v7 = vpop.permute.xlu1 %4261 }
 0x632   :  { %v4085_v47 = vpop.permute.xlu0 %4084 }
 0x633   :  { %9202 = vmatprep.mubr.msk.bf16.mxu0 %vm1985_vm1, %v4085_v47 }
 0x634   :  { %9219 = vmatpush3.bf16.xpose.msra.mxu1 %v4324_v9 }
 0x635   :  { %9621 = vmatprep.subr.msk.bf16.mxu1 %vm1985_vm1, %v4280_v39  ;;  %v4264_v52 = vpop.permute.xlu1 %4263 }
 0x636   :  { %v4087_v23 = vpop.permute.xlu0 %4086 }
 0x637   :  { %9203 = vmatmul.mubr.msk.bf16.gmra.mrb[116].mxu0 %vm1985_vm1, %v4087_v23 }
 0x63c   :  { %9221 = vmatpush3.bf16.xpose.msra.mxu1 %v4327_v34 }
 0x643   :  { %9223 = vmatmul.mubr.msk.bf16.vlgmr.msra.gmra.mrb[152].mxu1 %vm1985_vm1, %v4252_v12 }
 0x644   :  { %9226 = vmatprep.mubr.msk.bf16.mxu1 %vm1985_vm1, %v4254_v18 }
 0x64b   :  { %9227 = vmatmul.mubr.msk.bf16.gmra.mrb[156].mxu1 %vm1985_vm1, %v4256_v32 }
 0x64c   :  { %9230 = vmatprep.mubr.msk.bf16.mxu1 %vm1985_vm1, %v4258_v30 }
 0x653   :  { %9231 = vmatmul.mubr.msk.bf16.gmra.mrb[160].mxu1 %vm1985_vm1, %v4260_v11 }
 0x654   :  { %9234 = vmatprep.mubr.msk.bf16.mxu1 %vm1985_vm1, %v4262_v7 }
 0x65b   :  { %9235 = vmatmul.mubr.msk.bf16.gmra.mrb[164].mxu1 %vm1985_vm1, %v4264_v52 }
 0x69b   :  { %v9144_v1 = vpop.f32.mrb[120].mxu1 }
 0x69c   :  { %v3929_v17 = vpop.f32.mrb[121].mxu1  ;;  %v3938_v25 = vadd.f32 %v9144_v1, %v13221_v2 }
 0x69d   :  { %v9145_v45 = vpop.f32.mrb[122].mxu1  ;;  %v3930_v42 = vadd.f32 %v13221_v2, %v3929_v17 }
 0x69e   :  { %v3941_v26 = vadd.f32 %v9145_v45, %v13221_v2  ;;  %v3932_v10 = vpop.f32.mrb[123].mxu1 }
 0x69f   :  { %v3933_v39 = vadd.f32 %v13221_v2, %v3932_v10 }
 0x6a0   :  { %v4057_v47 = vpack.c.bf16 %v3941_v26, %v3938_v25 }
 0x6a1   :  { %v4056_v9 = vpack.c.bf16 %v3933_v39, %v3930_v42 }
 0x6a3   :  { %v9148_v12 = vpop.f32.mrb[124].mxu1  ;;  %9238 = vmatprep.subr.bf16.mxu1 %v4056_v9 }
 0x6a4   :  { %v3945_v23 = vpop.f32.mrb[125].mxu1  ;;  %9239 = vmatpush3.bf16.msra.mxu1 %v4056_v9  ;;  %v3954_v34 = vadd.f32 %v9148_v12, %v13221_v2 }
 0x6a5   :  { %v9149_v18 = vpop.f32.mrb[126].mxu1  ;;  %9240 = vmatprep.subr.bf16.mxu1 %v4057_v47  ;;  %v3946_v11 = vadd.f32 %v13221_v2, %v3945_v23 }
 0x6a6   :  { %v3957_v32 = vadd.f32 %v9149_v18, %v13221_v2  ;;  %v3948_v30 = vpop.f32.mrb[127].mxu1 }
 0x6a7   :  { %v3949_v7 = vadd.f32 %v13221_v2, %v3948_v30 }
 0x6a8   :  { %v4059_v52 = vpack.c.bf16 %v3957_v32, %v3954_v34  ;;  %9241 = vmatpush3.bf16.msra.mxu1 %v4057_v47 }
 0x6a9   :  { %v4058_v1 = vpack.c.bf16 %v3949_v7, %v3946_v11 }
 0x6ab   :  { %v9152_v17 = vpop.f32.mrb[128].mxu1  ;;  %9242 = vmatprep.subr.bf16.mxu1 %v4058_v1 }
 0x6ac   :  { %v3961_v45 = vpop.f32.mrb[129].mxu1  ;;  %9243 = vmatpush3.bf16.msra.mxu1 %v4058_v1  ;;  %v3970_v26 = vadd.f32 %v9152_v17, %v13221_v2 }
 0x6ad   :  { %v9153_v25 = vpop.f32.mrb[130].mxu1  ;;  %9244 = vmatprep.subr.bf16.mxu1 %v4059_v52  ;;  %v3962_v39 = vadd.f32 %v13221_v2, %v3961_v45 }
 0x6ae   :  { %v3973_v10 = vadd.f32 %v9153_v25, %v13221_v2  ;;  %v3964_v42 = vpop.f32.mrb[131].mxu1 }
 0x6af   :  { %v3965_v9 = vadd.f32 %v13221_v2, %v3964_v42 }
 0x6b0   :  { %v4061_v12 = vpack.c.bf16 %v3973_v10, %v3970_v26  ;;  %9245 = vmatpush3.bf16.msra.mxu1 %v4059_v52 }
 0x6b1   :  { %v4060_v23 = vpack.c.bf16 %v3965_v9, %v3962_v39 }
 0x6b3   :  { %v9156_v47 = vpop.f32.mrb[132].mxu1  ;;  %9246 = vmatprep.subr.bf16.mxu1 %v4060_v23 }
 0x6b4   :  { %v3977_v18 = vpop.f32.mrb[133].mxu1  ;;  %9247 = vmatpush3.bf16.msra.mxu1 %v4060_v23  ;;  %v3986_v32 = vadd.f32 %v9156_v47, %v13221_v2  ;;  %v13243_v47 = vpop.permute.xlu0 %5179 }
 0x6b5   :  { %v9157_v34 = vpop.f32.mrb[134].mxu1  ;;  %9248 = vmatprep.subr.bf16.mxu1 %v4061_v12  ;;  %v3978_v7 = vadd.f32 %v13221_v2, %v3977_v18  ;;  %16045 = vst [vmem:[#allocation10_spill] sm:$0xff] %v13243_v47 }
 0x6b6   :  { %v3989_v30 = vadd.f32 %v9157_v34, %v13221_v2  ;;  %v3980_v11 = vpop.f32.mrb[135].mxu1 }
 0x6b7   :  { %v3981_v1 = vadd.f32 %v13221_v2, %v3980_v11 }
 0x6b8   :  { %v4063_v17 = vpack.c.bf16 %v3989_v30, %v3986_v32  ;;  %9249 = vmatpush3.bf16.msra.mxu1 %v4061_v12 }
 0x6b9   :  { %v4062_v45 = vpack.c.bf16 %v3981_v1, %v3978_v7 }
 0x6bb   :  { %v9160_v52 = vpop.f32.mrb[136].mxu1  ;;  %9250 = vmatprep.subr.bf16.mxu1 %v4062_v45 }
 0x6bc   :  { %v3993_v25 = vpop.f32.mrb[137].mxu1  ;;  %9251 = vmatpush3.bf16.msra.mxu1 %v4062_v45  ;;  %v4002_v10 = vadd.f32 %v9160_v52, %v13221_v2 }
 0x6bd   :  { %v9161_v26 = vpop.f32.mrb[138].mxu1  ;;  %9252 = vmatprep.subr.bf16.mxu1 %v4063_v17  ;;  %v3994_v9 = vadd.f32 %v13221_v2, %v3993_v25 }
 0x6be   :  { %v4005_v42 = vadd.f32 %v9161_v26, %v13221_v2  ;;  %v3996_v39 = vpop.f32.mrb[139].mxu1 }
 0x6bf   :  { %v3997_v23 = vadd.f32 %v13221_v2, %v3996_v39 }
 0x6c0   :  { %v4065_v18 = vpack.c.bf16 %v4005_v42, %v4002_v10  ;;  %9253 = vmatpush3.bf16.msra.mxu1 %v4063_v17 }
 0x6c1   :  { %v4064_v12 = vpack.c.bf16 %v3997_v23, %v3994_v9  ;;  %9622 = vmatprep.subr.msk.bf16.mxu1 %vm1985_vm1, %v13243_v47 }
 0x6c3   :  { %v9164_v34 = vpop.f32.mrb[140].mxu1  ;;  %9270 = vmatprep.subr.bf16.mxu0 %v4064_v12 }
 0x6c4   :  { %v4009_v32 = vpop.f32.mrb[141].mxu1  ;;  %9271 = vmatpush3.bf16.msra.mxu0 %v4064_v12  ;;  %v4018_v11 = vadd.f32 %v9164_v34, %v13221_v2 }
 0x6c5   :  { %v9165_v30 = vpop.f32.mrb[142].mxu1  ;;  %9272 = vmatprep.subr.bf16.mxu0 %v4065_v18  ;;  %v4010_v45 = vadd.f32 %v13221_v2, %v4009_v32 }
 0x6c6   :  { %v4021_v7 = vadd.f32 %v9165_v30, %v13221_v2  ;;  %v4012_v1 = vpop.f32.mrb[143].mxu1 }
 0x6c7   :  { %v4013_v52 = vadd.f32 %v13221_v2, %v4012_v1 }
 0x6c8   :  { %v4067_v17 = vpack.c.bf16 %v4021_v7, %v4018_v11  ;;  %9273 = vmatpush3.bf16.msra.mxu0 %v4065_v18 }
 0x6c9   :  { %v4066_v25 = vpack.c.bf16 %v4013_v52, %v4010_v45 }
 0x6cb   :  { %v9168_v26 = vpop.f32.mrb[144].mxu1  ;;  %9274 = vmatprep.subr.bf16.mxu0 %v4066_v25 }
 0x6cc   :  { %v4025_v10 = vpop.f32.mrb[145].mxu1  ;;  %9275 = vmatpush3.bf16.msra.mxu0 %v4066_v25  ;;  %v4034_v39 = vadd.f32 %v9168_v26, %v13221_v2 }
 0x6cd   :  { %v9169_v42 = vpop.f32.mrb[146].mxu1  ;;  %9276 = vmatprep.subr.bf16.mxu0 %v4067_v17  ;;  %v4026_v12 = vadd.f32 %v13221_v2, %v4025_v10 }
 0x6ce   :  { %v4037_v9 = vadd.f32 %v9169_v42, %v13221_v2  ;;  %v4028_v23 = vpop.f32.mrb[147].mxu1 }
 0x6cf   :  { %v4029_v34 = vadd.f32 %v13221_v2, %v4028_v23 }
 0x6d0   :  { %v4069_v32 = vpack.c.bf16 %v4037_v9, %v4034_v39  ;;  %9277 = vmatpush3.bf16.msra.mxu0 %v4067_v17 }
 0x6d1   :  { %v4068_v30 = vpack.c.bf16 %v4029_v34, %v4026_v12 }
 0x6d3   :  { %v9172_v18 = vpop.f32.mrb[148].mxu1  ;;  %9278 = vmatprep.subr.bf16.mxu0 %v4068_v30 }
 0x6d4   :  { %v4041_v11 = vpop.f32.mrb[149].mxu1  ;;  %9279 = vmatpush3.bf16.msra.mxu0 %v4068_v30  ;;  %v4050_v1 = vadd.f32 %v9172_v18, %v13221_v2 }
 0x6d5   :  { %v9173_v7 = vpop.f32.mrb[150].mxu1  ;;  %9280 = vmatprep.subr.bf16.mxu0 %v4069_v32  ;;  %v4042_v25 = vadd.f32 %v13221_v2, %v4041_v11 }
 0x6d6   :  { %v4053_v45 = vadd.f32 %v9173_v7, %v13221_v2  ;;  %v4044_v52 = vpop.f32.mrb[151].mxu1 }
 0x6d7   :  { %v4045_v26 = vadd.f32 %v13221_v2, %v4044_v52 }
 0x6d8   :  { %v4071_v10 = vpack.c.bf16 %v4053_v45, %v4050_v1  ;;  %9281 = vmatpush3.bf16.msra.mxu0 %v4069_v32 }
 0x6d9   :  { %v4070_v42 = vpack.c.bf16 %v4045_v26, %v4042_v25 }
 0x6db   :  { %9282 = vmatprep.subr.bf16.mxu0 %v4070_v42 }
 0x6dc   :  { %9283 = vmatpush3.bf16.msra.mxu0 %v4070_v42 }
 0x6dd   :  { %9284 = vmatprep.subr.bf16.mxu0 %v4071_v10 }
 0x6e0   :  { %9285 = vmatpush3.bf16.msra.mxu0 %v4071_v10 }
 0x6f2   :  { %v13259_v17 = vpop.f32.mrb[104].mxu0 }
 0x6f3   :  { %v13261_v39 = vpop.f32.mrb[105].mxu0 }
 0x6f4   :  { %v13263_v9 = vpop.f32.mrb[106].mxu0 }
 0x6f5   :  { %v13265_v23 = vpop.f32.mrb[107].mxu0 }
 0x6fa   :  { %v13267_v12 = vpop.f32.mrb[108].mxu0 }
 0x6fb   :  { %v13269_v34 = vpop.f32.mrb[109].mxu0 }
 0x6fc   :  { %v13271_v2 = vpop.f32.mrb[110].mxu0 }
 0x6fd   :  { %v13273_v32 = vpop.f32.mrb[111].mxu0 }
 0x702   :  { %v13275_v30 = vpop.f32.mrb[112].mxu0 }
 0x703   :  { %v13277_v18 = vpop.f32.mrb[113].mxu0 }
 0x704   :  { %v13279_v11 = vpop.f32.mrb[114].mxu0 }
 0x705   :  { %v13281_v7 = vpop.f32.mrb[115].mxu0 }
 0x70a   :  { %v13283_v1 = vpop.f32.mrb[116].mxu0 }
 0x70b   :  { %v13285_v45 = vpop.f32.mrb[117].mxu0 }
 0x70c   :  { %v13287_v52 = vpop.f32.mrb[118].mxu0 }
 0x70d   :  { %v13289_v25 = vpop.f32.mrb[119].mxu0 }
 0x716   :  { %v9224_v26 = vpop.f32.mrb[152].mxu1 }
 0x717   :  { %4462 = vmax.xlane.f32.xlu0 %v9224_v26  ;;  %v4363_v10 = vpop.f32.mrb[153].mxu1 }
 0x718   :  { %v9225_v42 = vpop.f32.mrb[154].mxu1 }
 0x719   :  { %4464 = vmax.xlane.f32.xlu1 %v9225_v42  ;;  %v13291_v55 = vpop.f32.mrb[155].mxu1 }
 0x71b   :  { %4458 = vmax.xlane.f32.xlu0 %v4363_v10 }
 0x71d   :  { %4460 = vmax.xlane.f32.xlu1 %v13291_v55 }
 0x71e   :  { %v13294_v31 = vpop.f32.mrb[156].mxu1 }
 0x71f   :  { %4430 = vmax.xlane.f32.xlu0 %v13259_v17  ;;  %v13297_v63 = vpop.f32.mrb[157].mxu1 }
 0x720   :  { %v13299_v60 = vpop.f32.mrb[158].mxu1 }
 0x721   :  { %4428 = vmax.xlane.f32.xlu1 %v13265_v23  ;;  %v13302_v36 = vpop.f32.mrb[159].mxu1 }
 0x723   :  { %4426 = vmax.xlane.f32.xlu0 %v13261_v39 }
 0x725   :  { %4472 = vmax.xlane.f32.xlu1 %v13299_v60 }
 0x726   :  { %v13306_v51 = vpop.f32.mrb[160].mxu1 }
 0x727   :  { %4432 = vmax.xlane.f32.xlu0 %v13263_v9  ;;  %v13309_v3 = vpop.f32.mrb[161].mxu1 }
 0x728   :  { %v13311_v61 = vpop.f32.mrb[162].mxu1 }
 0x729   :  { %4468 = vmax.xlane.f32.xlu1 %v13302_v36  ;;  %v13314_v43 = vpop.f32.mrb[163].mxu1 }
 0x72d   :  { %4440 = vmax.xlane.f32.xlu1 %v13271_v2 }
 0x72e   :  { %v13317_v62 = vpop.f32.mrb[164].mxu1 }
 0x72f   :  { %v13319_v29 = vpop.f32.mrb[165].mxu1 }
 0x730   :  { %v13321_v22 = vpop.f32.mrb[166].mxu1 }
 0x731   :  { %v13323_v58 = vpop.f32.mrb[167].mxu1  ;;  %4436 = vmax.xlane.f32.xlu1 %v13273_v32 }
 0x735   :  { %4480 = vmax.xlane.f32.xlu1 %v13311_v61 }
 0x739   :  { %4476 = vmax.xlane.f32.xlu1 %v13314_v43 }
 0x73d   :  { %5183 = vrot.lane.b32.xlu0 %v16046_v59, %s10578_s1  ;;  %4448 = vmax.xlane.f32.xlu1 %v13279_v11 }
 0x741   :  { %4444 = vmax.xlane.f32.xlu1 %v13281_v7 }
 0x745   :  { %4488 = vmax.xlane.f32.xlu1 %v13321_v22 }
 0x749   :  { %4484 = vmax.xlane.f32.xlu1 %v13323_v58 }
 0x74d   :  { %4456 = vmax.xlane.f32.xlu1 %v13287_v52 }
 0x751   :  { %4452 = vmax.xlane.f32.xlu1 %v13289_v25 }
 0x75c   :  { %4470 = vmax.xlane.f32.xlu0 %v13294_v31 }
 0x760   :  { %4466 = vmax.xlane.f32.xlu0 %v13297_v63 }
 0x762   :  { %5185 = vrot.lane.b32.xlu1 %v16047_v40, %s10578_s1  ;;  %v13350_v40 = vpop.permute.xlu1 %5181 }
 0x763   :  { %16048 = vst [vmem:[#allocation54_spill] sm:$0xff] %v13350_v40 }
 0x764   :  { %4438 = vmax.xlane.f32.xlu0 %v13267_v12 }
 0x768   :  { %4434 = vmax.xlane.f32.xlu0 %v13269_v34 }
 0x76c   :  { %4478 = vmax.xlane.f32.xlu0 %v13306_v51 }
 0x770   :  { %4474 = vmax.xlane.f32.xlu0 %v13309_v3 }
 0x774   :  { %4446 = vmax.xlane.f32.xlu0 %v13275_v30 }
 0x778   :  { %4442 = vmax.xlane.f32.xlu0 %v13277_v18 }
 0x77c   :  { %4486 = vmax.xlane.f32.xlu0 %v13317_v62 }
 0x780   :  { %4482 = vmax.xlane.f32.xlu0 %v13319_v29 }
 0x784   :  { %4454 = vmax.xlane.f32.xlu0 %v13283_v1 }
 0x788   :  { %4450 = vmax.xlane.f32.xlu0 %v13285_v45 }
 0x7a4   :  { %v4463_v59 = vpop.xlane.xlu0 %4462 }
 0x7a5   :  { %v4508_v27 = vsub.f32 %v9224_v26, %v4463_v59 }
 0x7a6   :  { %v4465_v28 = vpop.xlane.xlu1 %4464 }
 0x7a7   :  { %v4558_v4 = vmul.f32 1.442695, %v4508_v27  ;;  %v4509_v49 = vsub.f32 %v9225_v42, %v4465_v28 }
 0x7a8   :  { %v4459_v15 = vpop.xlane.xlu0 %4458 }
 0x7a9   :  { %10079 = vpow2.f32 %v4558_v4  ;;  %v4506_v48 = vsub.f32 %v4363_v10, %v4459_v15  ;;  %v4560_v57 = vmul.f32 1.442695, %v4509_v49 }
 0x7aa   :  { %v4461_v53 = vpop.xlane.xlu1 %4460 }
 0x7ab   :  { %v4554_v56 = vmul.f32 1.442695, %v4506_v48  ;;  %v4507_v47 = vsub.f32 %v13291_v55, %v4461_v53 }
 0x7ac   :  { %v4431_v37 = vpop.xlane.xlu0 %4430 }
 0x7ad   :  { %10081 = vpow2.f32 %v4554_v56  ;;  %v4492_v20 = vsub.f32 %v13259_v17, %v4431_v37  ;;  %v4556_v40 = vmul.f32 1.442695, %v4507_v47 }
 0x7ae   :  { %v4429_v5 = vpop.xlane.xlu1 %4428  ;;  %10083 = vpow2.f32 %v4560_v57 }
 0x7af   :  { %v4526_v16 = vmul.f32 1.442695, %v4492_v20  ;;  %v4491_v56 = vsub.f32 %v13265_v23, %v4429_v5 }
 0x7b0   :  { %v4427_v26 = vpop.xlane.xlu0 %4426 }
 0x7b1   :  { %10085 = vpow2.f32 %v4526_v16  ;;  %v4490_v28 = vsub.f32 %v13261_v39, %v4427_v26  ;;  %v4524_v16 = vmul.f32 1.442695, %v4491_v56 }
 0x7b2   :  { %v4473_v27 = vpop.xlane.xlu1 %4472  ;;  %10087 = vpow2.f32 %v4556_v40 }
 0x7b3   :  { %v13355_v4 = vpop.eup %10079  ;;  %v4522_v15 = vmul.f32 1.442695, %v4490_v28  ;;  %v4513_v20 = vsub.f32 %v13299_v60, %v4473_v27 }
 0x7b4   :  { %4622 = vadd.xlane.f32.xlu1 %v13355_v4  ;;  %v4433_v53 = vpop.xlane.xlu0 %4432 }
 0x7b5   :  { %10089 = vpow2.f32 %v4522_v15  ;;  %v4493_v37 = vsub.f32 %v13263_v9, %v4433_v53  ;;  %v4568_v5 = vmul.f32 1.442695, %v4513_v20 }
 0x7b6   :  { %v4469_v48 = vpop.xlane.xlu1 %4468 }
 0x7b7   :  { %v13360_v57 = vpop.eup %10081  ;;  %v4528_v49 = vmul.f32 1.442695, %v4493_v37  ;;  %v4511_v56 = vsub.f32 %v13302_v36, %v4469_v48 }
 0x7b8   :  { %4618 = vadd.xlane.f32.xlu1 %v13360_v57  ;;  %v13364_v55 = vpop.eup %10083  ;;  %v13389_v26 = vpop.permute.xlu0 %5183 }
 0x7b9   :  { %10091 = vpow2.f32 %v4528_v49 }
 0x7ba   :  { %v4441_v47 = vpop.xlane.xlu1 %4440  ;;  %10093 = vpow2.f32 %v4524_v16 }
 0x7bb   :  { %v13366_v17 = vpop.eup %10085  ;;  %10095 = vpow2.f32 %v4568_v5  ;;  %v4564_v5 = vmul.f32 1.442695, %v4511_v56  ;;  %v4497_v36 = vsub.f32 %v13271_v2, %v4441_v47 }
 0x7bc   :  { %4624 = vadd.xlane.f32.xlu1 %v13364_v55  ;;  %4590 = vadd.xlane.f32.xlu0 %v13366_v17  ;;  %v13370_v39 = vpop.eup %10087 }
 0x7be   :  { %v4437_v9 = vpop.xlane.xlu1 %4436 }
 0x7bf   :  { %v13372_v23 = vpop.eup %10089  ;;  %v4495_v10 = vsub.f32 %v13273_v32, %v4437_v9 }
 0x7c0   :  { %4620 = vadd.xlane.f32.xlu1 %v13370_v39  ;;  %4586 = vadd.xlane.f32.xlu0 %v13372_v23 }
 0x7c1   :  { %v4532_v60 = vmul.f32 1.442695, %v4495_v10 }
 0x7c2   :  { %v4481_v16 = vpop.xlane.xlu1 %4480 }
 0x7c3   :  { %v13377_v42 = vpop.eup %10091  ;;  %10097 = vpow2.f32 %v4532_v60 }
 0x7c4   :  { %4592 = vadd.xlane.f32.xlu1 %v13377_v42  ;;  %v13380_v40 = vpop.eup %10093 }
 0x7c5   :  { %v13383_v59 = vpop.eup %10095 }
 0x7c8   :  { %4588 = vadd.xlane.f32.xlu1 %v13380_v40 }
 0x7cc   :  { %4632 = vadd.xlane.f32.xlu1 %v13383_v59 }
 0x7cd   :  { %v13386_v32 = vpop.eup %10097 }
 0x7ce   :  { %16049 = vst [vmem:[#allocation53_spill] sm:$0xff] %v13386_v32 }
 0x7d0   :  { %4596 = vadd.xlane.f32.xlu1 %v13386_v32 }
 0x7e9   :  { %v4471_v28 = vpop.xlane.xlu0 %4470 }
 0x7ea   :  { %v4512_v27 = vsub.f32 %v13294_v31, %v4471_v28  ;;  %v4477_v31 = vpop.xlane.xlu1 %4476 }
 0x7ec   :  { %v4566_v15 = vmul.f32 1.442695, %v4512_v27 }
 0x7ed   :  { %v4467_v53 = vpop.xlane.xlu0 %4466 }
 0x7ee   :  { %10099 = vpow2.f32 %v4566_v15  ;;  %v4510_v37 = vsub.f32 %v13297_v63, %v4467_v53  ;;  %v4536_v15 = vmul.f32 1.442695, %v4497_v36  ;;  %v4449_v53 = vpop.xlane.xlu1 %4448 }
 0x7f0   :  { %v4562_v49 = vmul.f32 1.442695, %v4510_v37 }
 0x7f1   :  { %v4439_v20 = vpop.xlane.xlu0 %4438 }
 0x7f2   :  { %10101 = vpow2.f32 %v4562_v49  ;;  %v4496_v9 = vsub.f32 %v13267_v12, %v4439_v20  ;;  %v4517_v12 = vsub.f32 %v13311_v61, %v4481_v16  ;;  %v4515_v20 = vsub.f32 %v13314_v43, %v4477_v31  ;;  %v4445_v16 = vpop.xlane.xlu1 %4444 }
 0x7f3   :  { %10103 = vpow2.f32 %v4564_v5 }
 0x7f4   :  { %v4534_v60 = vmul.f32 1.442695, %v4496_v9  ;;  %v4576_v49 = vmul.f32 1.442695, %v4517_v12  ;;  %v4572_v9 = vmul.f32 1.442695, %v4515_v20  ;;  %v4501_v12 = vsub.f32 %v13279_v11, %v4449_v53 }
 0x7f5   :  { %v4435_v10 = vpop.xlane.xlu0 %4434  ;;  %v4499_v11 = vsub.f32 %v13281_v7, %v4445_v16 }
 0x7f6   :  { %v4494_v32 = vsub.f32 %v13269_v34, %v4435_v10  ;;  %10105 = vpow2.f32 %v4534_v60  ;;  %v4489_v60 = vpop.xlane.xlu1 %4488  ;;  %v4544_v20 = vmul.f32 1.442695, %v4501_v12 }
 0x7f8   :  { %v13396_v28 = vpop.eup %10099  ;;  %v4530_v48 = vmul.f32 1.442695, %v4494_v32 }
 0x7f9   :  { %4630 = vadd.xlane.f32.xlu0 %v13396_v28  ;;  %v4479_v63 = vpop.xlane.xlu0 %4478 }
 0x7fa   :  { %10107 = vpow2.f32 %v4530_v48  ;;  %v4516_v34 = vsub.f32 %v13306_v51, %v4479_v63 }
 0x7fb   :  { %10109 = vpow2.f32 %v4536_v15 }
 0x7fc   :  { %v13400_v27 = vpop.eup %10101  ;;  %v4574_v61 = vmul.f32 1.442695, %v4516_v34  ;;  %v4521_v34 = vsub.f32 %v13321_v22, %v4489_v60 }
 0x7fd   :  { %4626 = vadd.xlane.f32.xlu0 %v13400_v27  ;;  %v4475_v56 = vpop.xlane.xlu0 %4474  ;;  %v13406_v2 = vpop.eup %10103 }
 0x7fe   :  { %v4514_v37 = vsub.f32 %v13309_v3, %v4475_v56 }
 0x800   :  { %v4570_v47 = vmul.f32 1.442695, %v4514_v37  ;;  %v13410_v5 = vpop.eup %10105 }
 0x801   :  { %4628 = vadd.xlane.f32.xlu0 %v13406_v2  ;;  %v4447_v32 = vpop.xlane.xlu0 %4446 }
 0x802   :  { %10111 = vpow2.f32 %v4570_v47  ;;  %v4500_v51 = vsub.f32 %v13275_v30, %v4447_v32  ;;  %v4485_v47 = vpop.xlane.xlu1 %4484 }
 0x803   :  { %10113 = vpow2.f32 %v4576_v49  ;;  %v4519_v22 = vsub.f32 %v13323_v58, %v4485_v47 }
 0x804   :  { %10115 = vpow2.f32 %v4574_v61  ;;  %v13414_v10 = vpop.eup %10107  ;;  %v4542_v36 = vmul.f32 1.442695, %v4500_v51  ;;  %v4584_v61 = vmul.f32 1.442695, %v4521_v34  ;;  %v4540_v51 = vmul.f32 1.442695, %v4499_v11 }
 0x805   :  { %4598 = vadd.xlane.f32.xlu0 %v13410_v5  ;;  %v4443_v3 = vpop.xlane.xlu0 %4442  ;;  %10117 = vpow2.f32 %v4572_v9  ;;  %v13419_v48 = vpop.eup %10109  ;;  %v4580_v16 = vmul.f32 1.442695, %v4519_v22 }
 0x806   :  { %v4498_v63 = vsub.f32 %v13277_v18, %v4443_v3  ;;  %10119 = vpow2.f32 %v4542_v36  ;;  %v4457_v3 = vpop.xlane.xlu1 %4456 }
 0x808   :  { %v4538_v56 = vmul.f32 1.442695, %v4498_v63 }
 0x809   :  { %4594 = vadd.xlane.f32.xlu0 %v13414_v10  ;;  %v4487_v43 = vpop.xlane.xlu0 %4486 }
 0x80a   :  { %v4520_v31 = vsub.f32 %v13317_v62, %v4487_v43 }
 0x80c   :  { %v13421_v30 = vpop.eup %10111  ;;  %v4582_v15 = vmul.f32 1.442695, %v4520_v31 }
 0x80d   :  { %4600 = vadd.xlane.f32.xlu0 %v13419_v48  ;;  %4634 = vadd.xlane.f32.xlu1 %v13421_v30  ;;  %v4483_v18 = vpop.xlane.xlu0 %4482  ;;  %v13428_v62 = vpop.eup %10113 }
 0x80e   :  { %10121 = vpow2.f32 %v4582_v15  ;;  %v4518_v37 = vsub.f32 %v13319_v29, %v4483_v18  ;;  %v13430_v49 = vpop.eup %10115  ;;  %v4453_v15 = vpop.xlane.xlu1 %4452 }
 0x80f   :  { %10123 = vpow2.f32 %v4538_v56  ;;  %v13436_v29 = vpop.eup %10117  ;;  %v4503_v56 = vsub.f32 %v13289_v25, %v4453_v15  ;;  %v16052_v15 = vld [vmem:[#allocation48_spill] sm:$0xff] }
 0x810   :  { %v4578_v32 = vmul.f32 1.442695, %v4518_v37  ;;  %v13441_v36 = vpop.eup %10119 }
 0x811   :  { %4638 = vadd.xlane.f32.xlu0 %v13430_v49  ;;  %4640 = vadd.xlane.f32.xlu1 %v13428_v62  ;;  %v4455_v53 = vpop.xlane.xlu0 %4454 }
 0x812   :  { %10125 = vpow2.f32 %v4578_v32  ;;  %v4504_v9 = vsub.f32 %v13283_v1, %v4455_v53  ;;  %v4505_v1 = vsub.f32 %v13287_v52, %v4457_v3  ;;  %v4548_v52 = vmul.f32 1.442695, %v4503_v56  ;;  %v9663_v53 = vld [vmem:[%s15514_s10 + $0x60] sm:$0xff]   ;;  %v9666_v56 = vld [vmem:[%s15514_s10 + $0x78] sm:$0xff]  }
 0x813   :  { %10127 = vpow2.f32 %v4544_v20  ;;  %9302 = vmatprep.subr.bf16.mxu0 %v9663_v53 }
 0x814   :  { %10129 = vpow2.f32 %v4584_v61  ;;  %v4550_v58 = vmul.f32 1.442695, %v4504_v9  ;;  %v13484_v61 = vpop.permute.xlu1 %5185 }
 0x815   :  { %4636 = vadd.xlane.f32.xlu1 %v13436_v29  ;;  %v4451_v7 = vpop.xlane.xlu0 %4450  ;;  %10131 = vpow2.f32 %v4540_v51 }
 0x816   :  { %v4502_v60 = vsub.f32 %v13285_v45, %v4451_v7  ;;  %10133 = vpow2.f32 %v4580_v16  ;;  %v4552_v45 = vmul.f32 1.442695, %v4505_v1 }
 0x817   :  { %10135 = vpow2.f32 %v4550_v58 }
 0x818   :  { %v13443_v63 = vpop.eup %10121  ;;  %v4546_v43 = vmul.f32 1.442695, %v4502_v60 }
 0x819   :  { %4606 = vadd.xlane.f32.xlu1 %v13441_v36  ;;  %4646 = vadd.xlane.f32.xlu0 %v13443_v63  ;;  %v13448_v31 = vpop.eup %10123 }
 0x81a   :  { %10137 = vpow2.f32 %v4546_v43 }
 0x81b   :  { %10139 = vpow2.f32 %v4552_v45 }
 0x81c   :  { %v13450_v12 = vpop.eup %10125  ;;  %10141 = vpow2.f32 %v4548_v52  ;;  %v16055_v52 = vld [vmem:[#allocation46_spill] sm:$0xff] }
 0x81d   :  { %4602 = vadd.xlane.f32.xlu1 %v13448_v31  ;;  %4642 = vadd.xlane.f32.xlu0 %v13450_v12  ;;  %v13455_v18 = vpop.eup %10127 }
 0x81e   :  { %v13457_v34 = vpop.eup %10129 }
 0x81f   :  { %v13461_v37 = vpop.eup %10131 }
 0x820   :  { %v13463_v47 = vpop.eup %10133 }
 0x821   :  { %4608 = vadd.xlane.f32.xlu1 %v13455_v18  ;;  %4648 = vadd.xlane.f32.xlu0 %v13457_v34  ;;  %v13467_v25 = vpop.eup %10135 }
 0x824   :  { %v13469_v32 = vpop.eup %10137 }
 0x825   :  { %4604 = vadd.xlane.f32.xlu1 %v13461_v37  ;;  %4644 = vadd.xlane.f32.xlu0 %v13463_v47  ;;  %v13473_v20 = vpop.eup %10139 }
 0x826   :  { %v13476_v11 = vpop.eup %10141 }
 0x829   :  { %4614 = vadd.xlane.f32.xlu0 %v13467_v25  ;;  %4610 = vadd.xlane.f32.xlu1 %v13469_v32 }
 0x82d   :  { %4616 = vadd.xlane.f32.xlu0 %v13473_v20 }
 0x831   :  { %4612 = vadd.xlane.f32.xlu0 %v13476_v11 }
 0x83a   :  { %5189 = vrot.lane.b32.xlu1 %v15944_v13, %s10578_s1 }
 0x83e   :  { %5191 = vrot.lane.b32.xlu1 %v15946_v21, %s10578_s1 }
 0x841   :  { %v4623_v22 = vpop.xlane.xlu1 %4622 }
 0x842   :  { %5193 = vrot.lane.b32.xlu1 %v15949_v46, %s10578_s1 }
 0x845   :  { %v4619_v51 = vpop.xlane.xlu1 %4618 }
 0x846   :  { %5165 = vrot.lane.b32.xlu1 %v15962_v44, %s10578_s1 }
 0x847   :  { %5187 = vrot.lane.b32.xlu0 %v15941_v14, %s10578_s1 }
 0x849   :  { %v4625_v3 = vpop.xlane.xlu1 %4624  ;;  %v4591_v13 = vpop.xlane.xlu0 %4590 }
 0x84a   :  { %5358 = vrot.lane.b32.xlu1 %v15950_v54, %s10578_s1  ;;  %10143 = vrcp.f32 %v4625_v3  ;;  %v16059_v3 = vld [vmem:[#allocation23_spill] sm:$0xff] }
 0x84b   :  { %5163 = vrot.lane.b32.xlu0 %v15959_v8, %s10578_s1  ;;  %10145 = vrcp.f32 %v4619_v51  ;;  %v16058_v51 = vld [vmem:[#allocation50_spill] sm:$0xff] }
 0x84c   :  { %10147 = vrcp.f32 %v4623_v22  ;;  %v16057_v22 = vld [vmem:[#allocation51_spill] sm:$0xff] }
 0x84d   :  { %v4621_v21 = vpop.xlane.xlu1 %4620  ;;  %v4587_v14 = vpop.xlane.xlu0 %4586 }
 0x84e   :  { %10149 = vrcp.f32 %v4621_v21  ;;  %5169 = vrot.lane.b32.xlu1 %v15972_v24, %s10578_s1  ;;  %v16060_v21 = vld [vmem:[#allocation52_spill] sm:$0xff] }
 0x84f   :  { %5356 = vrot.lane.b32.xlu0 %v15947_v6, %s10578_s1 }
 0x851   :  { %v4593_v46 = vpop.xlane.xlu1 %4592 }
 0x852   :  { %5362 = vrot.lane.b32.xlu1 %v15956_v0, %s10578_s1  ;;  %10151 = vrcp.f32 %v4593_v46  ;;  %v16062_v46 = vld [vmem:[#allocation24_spill] sm:$0xff] }
 0x853   :  { %5167 = vrot.lane.b32.xlu0 %v15970_v33, %s10578_s1  ;;  %10153 = vrcp.f32 %v4587_v14  ;;  %v16061_v14 = vld [vmem:[#allocation25_spill] sm:$0xff] }
 0x854   :  { %v10144_v54 = vpop.eup %10143  ;;  %10155 = vrcp.f32 %v4591_v13 }
 0x855   :  { %v4589_v8 = vpop.xlane.xlu1 %4588  ;;  %v10146_v44 = vpop.eup %10145  ;;  %v4701_v0 = vmul.f32 %v10144_v54, %v13364_v55  ;;  %v5226_v54 = vsel %vm1985_vm1, %v13389_v26, 0 }
 0x856   :  { %10157 = vrcp.f32 %v4589_v8  ;;  %5173 = vrot.lane.b32.xlu1 %v15981_v38, %s10578_s1  ;;  %v10148_v24 = vpop.eup %10147  ;;  %v4698_v9 = vmul.f32 %v10146_v44, %v13360_v57  ;;  %v16050_v57 = vld [vmem:[#allocation40_spill] sm:$0xff]  ;;  %v16063_v8 = vld [vmem:[#allocation26_spill] sm:$0xff]  ;;  %v5229_v44 = vsel %vm1985_vm1, %v13484_v61, 0 }
 0x857   :  { %5360 = vrot.lane.b32.xlu0 %v15953_v41, %s10578_s1  ;;  %v4700_v7 = vmul.f32 %v10148_v24, %v13355_v4  ;;  %v9664_v41 = vld [vmem:[%s15514_s10 + $0x68] sm:$0xff]  }
 0x858   :  { %v10150_v6 = vpop.eup %10149 }
 0x859   :  { %v4699_v33 = vmul.f32 %v10150_v6, %v13370_v39  ;;  %v4723_v16 = vpack.c.bf16 %v4701_v0, %v4700_v7  ;;  %v9665_v39 = vld [vmem:[%s15514_s10 + $0x70] sm:$0xff]   ;;  %v4633_v0 = vpop.xlane.xlu1 %4632  ;;  %s7991_s10 = sld [smem:[#allocation2 + $0x3]] }
 0x85a   :  { %5366 = vrot.lane.b32.xlu1 %v15955_v50, %s10578_s1 }
 0x85b   :  { %5171 = vrot.lane.b32.xlu0 %v15976_v35, %s10578_s1  ;;  %v4722_v38 = vpack.c.bf16 %v4699_v33, %v4698_v9 }
 0x85c   :  { %v10152_v60 = vpop.eup %10151 }
 0x85d   :  { %9286 = vmatprep.mubr.bf16.mxu0 %v4722_v38  ;;  %v10154_v55 = vpop.eup %10153  ;;  %v4685_v35 = vmul.f32 %v10152_v60, %v13377_v42 }
 0x85e   :  { %9287 = vmatmul.mubr.bf16.vlgmr.msra.gmra.mrb[88].mxu0 %v4723_v16  ;;  %5177 = vrot.lane.b32.xlu1 %v15990_v19, %s10578_s1  ;;  %v10156_v4 = vpop.eup %10155  ;;  %v4682_v58 = vmul.f32 %v10154_v55, %v13372_v23  ;;  %v16051_v19 = vld [vmem:[#allocation45_spill] sm:$0xff] }
 0x85f   :  { %5364 = vrot.lane.b32.xlu0 %v16050_v57, %s10578_s1  ;;  %9303 = vmatpush3.bf16.msra.mxu0 %v9663_v53  ;;  %v4684_v43 = vmul.f32 %v10156_v4, %v13366_v17  ;;  %v16053_v23 = vld [vmem:[#allocation49_spill] sm:$0xff]  ;;  %v16054_v17 = vld [vmem:[#allocation10_spill] sm:$0xff] }
 0x860   :  { %v10158_v50 = vpop.eup %10157  ;;  %9304 = vmatprep.subr.bf16.mxu0 %v9664_v41  ;;  %v16056_v53 = vld [vmem:[#allocation54_spill] sm:$0xff] }
 0x861   :  { %v4683_v1 = vmul.f32 %v10158_v50, %v13380_v40  ;;  %v4715_v42 = vpack.c.bf16 %v4685_v35, %v4684_v43  ;;  %v5220_v40 = vsel %vm1985_vm1, %v16054_v17, 0  ;;  %v5223_v13 = vsel %vm1985_vm1, %v16056_v53, 0 }
 0x862   :  { %5370 = vrot.lane.b32.xlu1 %v16051_v19, %s10578_s1 }
 0x863   :  { %5175 = vrot.lane.b32.xlu0 %v16052_v15, %s10578_s1  ;;  %v4714_v45 = vpack.c.bf16 %v4683_v1, %v4682_v58  ;;  %9305 = vmatpush3.bf16.msra.mxu0 %v9664_v41 }
 0x864   :  { %9306 = vmatprep.subr.bf16.mxu0 %v9665_v39 }
 0x865   :  { %9254 = vmatprep.mubr.bf16.mxu1 %v4714_v45 }
 0x866   :  { %5342 = vrot.lane.b32.xlu1 %v16053_v23, %s10578_s1  ;;  %9255 = vmatmul.mubr.bf16.vlgmr.msra.gmra.mrb[104].mxu1 %v4715_v42 }
 0x867   :  { %9343 = vmatpush3.bf16.xpose.msra.mxu1 %v5220_v40  ;;  %5368 = vrot.lane.b32.xlu0 %v16055_v52, %s10578_s1 }
 0x868   :  { %9623 = vmatprep.subr.msk.bf16.mxu1 %vm1985_vm1, %v16056_v53  ;;  %9307 = vmatpush3.bf16.msra.mxu0 %v9665_v39 }
 0x869   :  { %9308 = vmatprep.subr.bf16.mxu0 %v9666_v56 }
 0x86a   :  { %5346 = vrot.lane.b32.xlu1 %v16057_v22, %s10578_s1 }
 0x86b   :  { %5340 = vrot.lane.b32.xlu0 %v16058_v51, %s10578_s1 }
 0x86c   :  { %9309 = vmatpush3.bf16.msra.mxu0 %v9666_v56 }
 0x86e   :  { %5350 = vrot.lane.b32.xlu1 %v16059_v3, %s10578_s1 }
 0x86f   :  { %9345 = vmatpush3.bf16.xpose.msra.mxu1 %v5223_v13  ;;  %5344 = vrot.lane.b32.xlu0 %v16060_v21, %s10578_s1 }
 0x870   :  { %9624 = vmatprep.subr.msk.bf16.mxu1 %vm1985_vm1, %v13389_v26  ;;  %v4597_v26 = vpop.xlane.xlu1 %4596 }
 0x872   :  { %5354 = vrot.lane.b32.xlu1 %v16061_v14, %s10578_s1 }
 0x873   :  { %5348 = vrot.lane.b32.xlu0 %v16062_v46, %s10578_s1 }
 0x877   :  { %9347 = vmatpush3.bf16.xpose.msra.mxu1 %v5226_v54  ;;  %5352 = vrot.lane.b32.xlu0 %v16063_v8, %s10578_s1 }
 0x878   :  { %9625 = vmatprep.subr.msk.bf16.mxu1 %vm1985_vm1, %v13484_v61 }
 0x87f   :  { %9349 = vmatpush3.bf16.xpose.msra.mxu1 %v5229_v44 }
 0x886   :  { %v4631_v24 = vpop.xlane.xlu0 %4630 }
 0x887   :  { %10159 = vrcp.f32 %v4631_v24 }
 0x88a   :  { %v4627_v6 = vpop.xlane.xlu0 %4626 }
 0x88b   :  { %10161 = vrcp.f32 %v4627_v6 }
 0x88c   :  { %10163 = vrcp.f32 %v4633_v0 }
 0x88e   :  { %v4629_v9 = vpop.xlane.xlu0 %4628 }
 0x88f   :  { %10165 = vrcp.f32 %v4629_v9 }
 0x890   :  { %10167 = vrcp.f32 %v4597_v26 }
 0x891   :  { %v10160_v7 = vpop.eup %10159 }
 0x892   :  { %v4599_v33 = vpop.xlane.xlu0 %4598  ;;  %v4704_v61 = vmul.f32 %v10160_v7, %v13396_v28 }
 0x895   :  { %v10162_v16 = vpop.eup %10161 }
 0x896   :  { %v4595_v38 = vpop.xlane.xlu0 %4594  ;;  %v10164_v41 = vpop.eup %10163  ;;  %v4702_v57 = vmul.f32 %v10162_v16, %v13400_v27  ;;  %v16064_v27 = vld [vmem:[#allocation53_spill] sm:$0xff] }
 0x897   :  { %10169 = vrcp.f32 %v4595_v38  ;;  %v4705_v35 = vmul.f32 %v10164_v41, %v13383_v59 }
 0x898   :  { %10171 = vrcp.f32 %v4599_v33 }
 0x899   :  { %v10166_v60 = vpop.eup %10165  ;;  %v4725_v58 = vpack.c.bf16 %v4705_v35, %v4704_v61 }
 0x89a   :  { %v4635_v55 = vpop.xlane.xlu1 %4634  ;;  %v4601_v4 = vpop.xlane.xlu0 %4600  ;;  %v4703_v50 = vmul.f32 %v10166_v60, %v13406_v2 }
 0x89b   :  { %10173 = vrcp.f32 %v4601_v4  ;;  %v10168_v19 = vpop.eup %10167 }
 0x89c   :  { %v4724_v39 = vpack.c.bf16 %v4703_v50, %v4702_v57  ;;  %v4687_v42 = vmul.f32 %v10168_v19, %v16064_v27 }
 0x89e   :  { %v4641_v1 = vpop.xlane.xlu1 %4640  ;;  %9290 = vmatprep.mubr.bf16.mxu0 %v4724_v39  ;;  %v4639_v43 = vpop.xlane.xlu0 %4638 }
 0x89f   :  { %10175 = vrcp.f32 %v4641_v1  ;;  %9291 = vmatmul.mubr.bf16.gmra.mrb[92].mxu0 %v4725_v58 }
 0x8a0   :  { %10177 = vrcp.f32 %v4639_v43 }
 0x8a1   :  { %v10170_v28 = vpop.eup %10169  ;;  %10179 = vrcp.f32 %v4635_v55 }
 0x8a2   :  { %v4637_v15 = vpop.xlane.xlu1 %4636  ;;  %v4686_v45 = vmul.f32 %v10170_v28, %v13414_v10  ;;  %v10172_v2 = vpop.eup %10171 }
 0x8a3   :  { %10181 = vrcp.f32 %v4637_v15  ;;  %v4688_v40 = vmul.f32 %v10172_v2, %v13410_v5 }
 0x8a4   :  { %v4716_v59 = vpack.c.bf16 %v4687_v42, %v4686_v45 }
 0x8a5   :  { %v10174_v56 = vpop.eup %10173 }
 0x8a6   :  { %v4607_v23 = vpop.xlane.xlu1 %4606  ;;  %9258 = vmatprep.mubr.bf16.mxu1 %v4716_v59  ;;  %v4647_v17 = vpop.xlane.xlu0 %4646  ;;  %v4689_v52 = vmul.f32 %v10174_v56, %v13419_v48 }
 0x8a7   :  { %10183 = vrcp.f32 %v4607_v23 }
 0x8a8   :  { %v4717_v22 = vpack.c.bf16 %v4689_v52, %v4688_v40  ;;  %10185 = vrcp.f32 %v4647_v17  ;;  %v16066_v40 = vld [vmem:[#allocation28_spill] sm:$0xff] }
 0x8a9   :  { %v10176_v53 = vpop.eup %10175 }
 0x8aa   :  { %v10178_v51 = vpop.eup %10177  ;;  %v4603_v3 = vpop.xlane.xlu1 %4602  ;;  %9259 = vmatmul.mubr.bf16.gmra.mrb[108].mxu1 %v4717_v22  ;;  %v4709_v46 = vmul.f32 %v10176_v53, %v13428_v62 }
 0x8ab   :  { %v4643_v13 = vpop.xlane.xlu0 %4642  ;;  %v10180_v21 = vpop.eup %10179  ;;  %v4708_v14 = vmul.f32 %v10178_v51, %v13430_v49  ;;  %10187 = vrcp.f32 %v4603_v3  ;;  %v16067_v51 = vld [vmem:[#allocation29_spill] sm:$0xff]  ;;  %v16068_v3 = vld [vmem:[#allocation30_spill] sm:$0xff] }
 0x8ac   :  { %v4706_v5 = vmul.f32 %v10180_v21, %v13421_v30 }
 0x8ad   :  { %v10182_v10 = vpop.eup %10181  ;;  %v4727_v24 = vpack.c.bf16 %v4709_v46, %v4708_v14  ;;  %v16070_v46 = vld [vmem:[#allocation32_spill] sm:$0xff] }
 0x8ae   :  { %v4609_v54 = vpop.xlane.xlu1 %4608  ;;  %v4707_v48 = vmul.f32 %v10182_v10, %v13436_v29 }
 0x8af   :  { %v4649_v8 = vpop.xlane.xlu0 %4648  ;;  %10189 = vrcp.f32 %v4609_v54 }
 0x8b0   :  { %v4726_v44 = vpack.c.bf16 %v4707_v48, %v4706_v5  ;;  %10191 = vrcp.f32 %v4649_v8  ;;  %v16071_v8 = vld [vmem:[#allocation20_spill] sm:$0xff] }
 0x8b1   :  { %10193 = vrcp.f32 %v4643_v13  ;;  %v10184_v9 = vpop.eup %10183  ;;  %v16069_v13 = vld [vmem:[#allocation31_spill] sm:$0xff] }
 0x8b2   :  { %v4605_v6 = vpop.xlane.xlu1 %4604  ;;  %9294 = vmatprep.mubr.bf16.mxu0 %v4726_v44  ;;  %v10186_v26 = vpop.eup %10185  ;;  %v4692_v1 = vmul.f32 %v10184_v9, %v13441_v36  ;;  %v16074_v9 = vld [vmem:[#allocation21_spill] sm:$0xff] }
 0x8b3   :  { %v4645_v0 = vpop.xlane.xlu0 %4644  ;;  %10195 = vrcp.f32 %v4605_v6  ;;  %9295 = vmatmul.mubr.bf16.gmra.mrb[96].mxu0 %v4727_v24  ;;  %v16072_v24 = vld [vmem:[#allocation13_spill] sm:$0xff]  ;;  %v16073_v6 = vld [vmem:[#allocation14_spill] sm:$0xff] }
 0x8b4   :  { %10197 = vrcp.f32 %v4645_v0 }
 0x8b5   :  { %v10188_v33 = vpop.eup %10187 }
 0x8b6   :  { %v4611_v62 = vpop.xlane.xlu1 %4610  ;;  %v4690_v57 = vmul.f32 %v10188_v33, %v13448_v31 }
 0x8b7   :  { %v4615_v49 = vpop.xlane.xlu0 %4614  ;;  %10199 = vrcp.f32 %v4611_v62 }
 0x8b9   :  { %v10190_v30 = vpop.eup %10189 }
 0x8ba   :  { %v5190_v7 = vpop.permute.xlu1 %5189  ;;  %v10192_v38 = vpop.eup %10191  ;;  %v4693_v60 = vmul.f32 %v10190_v30, %v13455_v18  ;;  %v4712_v18 = vmul.f32 %v10186_v26, %v13443_v63  ;;  %v16075_v26 = vld [vmem:[#allocation22_spill] sm:$0xff] }
 0x8bb   :  { %v4617_v29 = vpop.xlane.xlu0 %4616  ;;  %v10194_v16 = vpop.eup %10193  ;;  %v4713_v35 = vmul.f32 %v10192_v38, %v13457_v34  ;;  %v5235_v52 = vsel %vm1985_vm1, %v5190_v7, 0  ;;  %v16077_v38 = vld [vmem:[#allocation16_spill] sm:$0xff] }
 0x8bc   :  { %10201 = vrcp.f32 %v4617_v29  ;;  %v4710_v39 = vmul.f32 %v10194_v16, %v13450_v12  ;;  %v4719_v28 = vpack.c.bf16 %v4693_v60, %v4692_v1  ;;  %v16065_v12 = vld [vmem:[#allocation12_spill] sm:$0xff]  ;;  %v16076_v29 = vld [vmem:[#allocation15_spill] sm:$0xff] }
 0x8bd   :  { %v10196_v41 = vpop.eup %10195  ;;  %10203 = vrcp.f32 %v4615_v49  ;;  %v4729_v31 = vpack.c.bf16 %v4713_v35, %v4712_v18  ;;  %v16080_v35 = vld [vmem:[#allocation19_spill] sm:$0xff] }
 0x8be   :  { %v10198_v61 = vpop.eup %10197  ;;  %v5192_v55 = vpop.permute.xlu1 %5191  ;;  %v4691_v50 = vmul.f32 %v10196_v41, %v13461_v37 }
 0x8bf   :  { %v4613_v4 = vpop.xlane.xlu0 %4612  ;;  %v4711_v58 = vmul.f32 %v10198_v61, %v13463_v47  ;;  %v16078_v61 = vld [vmem:[#allocation17_spill] sm:$0xff] }
 0x8c0   :  { %10205 = vrcp.f32 %v4613_v4  ;;  %v4718_v43 = vpack.c.bf16 %v4691_v50, %v4690_v57 }
 0x8c1   :  { %v4728_v19 = vpack.c.bf16 %v4711_v58, %v4710_v39  ;;  %v10200_v36 = vpop.eup %10199 }
 0x8c2   :  { %v5194_v15 = vpop.permute.xlu1 %5193  ;;  %9262 = vmatprep.mubr.bf16.mxu1 %v4718_v43  ;;  %v4694_v59 = vmul.f32 %v10200_v36, %v13469_v32 }
 0x8c3   :  { %v5188_v45 = vpop.permute.xlu0 %5187  ;;  %9298 = vmatprep.mubr.bf16.mxu0 %v4728_v19  ;;  %9263 = vmatmul.mubr.bf16.gmra.mrb[112].mxu1 %v4719_v28  ;;  %v5241_v54 = vsel %vm1985_vm1, %v5194_v15, 0 }
 0x8c4   :  { %v5232_v34 = vsel %vm1985_vm1, %v5188_v45, 0  ;;  %9299 = vmatmul.mubr.bf16.gmra.mrb[100].mxu0 %v4729_v31  ;;  %9626 = vmatprep.subr.msk.bf16.mxu1 %vm1985_vm1, %v5188_v45  ;;  %v13670_v31 = vld [vmem:[%s15515_s11 + $0x3] ss:$0 sm:$0xff]  ;;  %s143_s11 = sld [smem:[#allocation2]] }
 0x8c5   :  { %9310 = vmatprep.mubr.msk.bf16.mxu0 %vm250_vm0, %v16065_v12  ;;  %9351 = vmatpush3.bf16.xpose.msra.mxu1 %v5232_v34 }
 0x8c6   :  { %9627 = vmatprep.subr.msk.bf16.mxu1 %vm1985_vm1, %v5190_v7  ;;  %v10202_v37 = vpop.eup %10201  ;;  %v5166_v27 = vpop.permute.xlu1 %5165 }
 0x8c7   :  { %v5164_v63 = vpop.permute.xlu0 %5163  ;;  %v10204_v47 = vpop.eup %10203  ;;  %v4697_v23 = vmul.f32 %v10202_v37, %v13473_v20 }
 0x8c8   :  { %v4696_v22 = vmul.f32 %v10204_v47, %v13467_v25  ;;  %v5238_v25 = vsel %vm1985_vm1, %v5192_v55, 0 }
 0x8ca   :  { %v10206_v42 = vpop.eup %10205  ;;  %v5359_v32 = vpop.permute.xlu1 %5358  ;;  %v4721_v20 = vpack.c.bf16 %v4697_v23, %v4696_v22 }
 0x8cb   :  { %v5357_v2 = vpop.permute.xlu0 %5356  ;;  %v4695_v56 = vmul.f32 %v10206_v42, %v13476_v11  ;;  %v5400_v21 = vsel %vm1985_vm1, %v5359_v32, 0 }
 0x8cc   :  { %9630 = vmatprep.subr.msk.bf16.mxu0 %vm1985_vm1, %v5357_v2  ;;  %v5397_v17 = vsel %vm1985_vm1, %v5357_v2, 0  ;;  %9311 = vmatmul.mubr.msk.bf16.vlgmr.msra.gmra.mrb[120].mxu0 %vm250_vm0, %v16066_v40 }
 0x8cd   :  { %v4720_v53 = vpack.c.bf16 %v4695_v56, %v4694_v59  ;;  %9314 = vmatprep.mubr.msk.bf16.mxu0 %vm250_vm0, %v16067_v51  ;;  %9353 = vmatpush3.bf16.xpose.msra.mxu1 %v5235_v52 }
 0x8ce   :  { %9375 = vmatpush3.bf16.xpose.msra.mxu0 %v5397_v17  ;;  %9628 = vmatprep.subr.msk.bf16.mxu1 %vm1985_vm1, %v5192_v55  ;;  %v5170_v14 = vpop.permute.xlu1 %5169  ;;  %v16079_v55 = vld [vmem:[#allocation18_spill] sm:$0xff] }
 0x8cf   :  { %9631 = vmatprep.subr.msk.bf16.mxu0 %vm1985_vm1, %v5359_v32  ;;  %9266 = vmatprep.mubr.bf16.mxu1 %v4720_v53  ;;  %v5168_v11 = vpop.permute.xlu0 %5167 }
 0x8d0   :  { %9267 = vmatmul.mubr.bf16.gmra.mrb[116].mxu1 %v4721_v20 }
 0x8d1   :  { %9358 = vmatprep.mubr.msk.bf16.mxu1 %vm1985_vm1, %v5164_v63 }
 0x8d2   :  { %v5363_v48 = vpop.permute.xlu1 %5362 }
 0x8d3   :  { %v5361_v10 = vpop.permute.xlu0 %5360  ;;  %v5406_v0 = vsel %vm1985_vm1, %v5363_v48, 0 }
 0x8d4   :  { %9315 = vmatmul.mubr.msk.bf16.gmra.mrb[124].mxu0 %vm250_vm0, %v16068_v3  ;;  %v5403_v5 = vsel %vm1985_vm1, %v5361_v10, 0 }
 0x8d5   :  { %9318 = vmatprep.mubr.msk.bf16.mxu0 %vm250_vm0, %v16069_v13  ;;  %9355 = vmatpush3.bf16.xpose.msra.mxu1 %v5238_v25 }
 0x8d6   :  { %9377 = vmatpush3.bf16.xpose.msra.mxu0 %v5400_v21  ;;  %9629 = vmatprep.subr.msk.bf16.mxu1 %vm1985_vm1, %v5194_v15  ;;  %v5174_v49 = vpop.permute.xlu1 %5173 }
 0x8d7   :  { %9632 = vmatprep.subr.msk.bf16.mxu0 %vm1985_vm1, %v5361_v10  ;;  %v5172_v44 = vpop.permute.xlu0 %5171 }
 0x8da   :  { %v5367_v30 = vpop.permute.xlu1 %5366 }
 0x8db   :  { %v5365_v62 = vpop.permute.xlu0 %5364  ;;  %v5412_v16 = vsel %vm1985_vm1, %v5367_v30, 0 }
 0x8dc   :  { %9319 = vmatmul.mubr.msk.bf16.gmra.mrb[128].mxu0 %vm250_vm0, %v16070_v46  ;;  %v5409_v33 = vsel %vm1985_vm1, %v5365_v62, 0 }
 0x8dd   :  { %9322 = vmatprep.mubr.msk.bf16.mxu0 %vm250_vm0, %v16071_v8  ;;  %9357 = vmatpush3.bf16.xpose.msra.mxu1 %v5241_v54 }
 0x8de   :  { %9379 = vmatpush3.bf16.xpose.msra.mxu0 %v5403_v5  ;;  %v5178_v60 = vpop.permute.xlu1 %5177 }
 0x8df   :  { %9633 = vmatprep.subr.msk.bf16.mxu0 %vm1985_vm1, %v5363_v48  ;;  %v5176_v7 = vpop.permute.xlu0 %5175 }
 0x8e2   :  { %v5371_v57 = vpop.permute.xlu1 %5370 }
 0x8e3   :  { %v5369_v41 = vpop.permute.xlu0 %5368  ;;  %v5418_v39 = vsel %vm1985_vm1, %v5371_v57, 0 }
 0x8e4   :  { %9323 = vmatmul.mubr.msk.bf16.gmra.mrb[132].mxu0 %vm250_vm0, %v16072_v24  ;;  %9359 = vmatmul.mubr.msk.bf16.vlgmr.msra.gmra.mrb[168].mxu1 %vm1985_vm1, %v5166_v27  ;;  %v5415_v4 = vsel %vm1985_vm1, %v5369_v41, 0 }
 0x8e5   :  { %9326 = vmatprep.mubr.msk.bf16.mxu0 %vm250_vm0, %v16073_v6  ;;  %9362 = vmatprep.mubr.msk.bf16.mxu1 %vm1985_vm1, %v5168_v11 }
 0x8e6   :  { %9381 = vmatpush3.bf16.xpose.msra.mxu0 %v5406_v0  ;;  %v5343_v58 = vpop.permute.xlu1 %5342 }
 0x8e7   :  { %9634 = vmatprep.subr.msk.bf16.mxu0 %vm1985_vm1, %v5365_v62  ;;  %v5341_v50 = vpop.permute.xlu0 %5340 }
 0x8ea   :  { %v5347_v43 = vpop.permute.xlu1 %5346 }
 0x8eb   :  { %v5345_v1 = vpop.permute.xlu0 %5344 }
 0x8ec   :  { %9327 = vmatmul.mubr.msk.bf16.gmra.mrb[136].mxu0 %vm250_vm0, %v16074_v9  ;;  %9363 = vmatmul.mubr.msk.bf16.gmra.mrb[172].mxu1 %vm1985_vm1, %v5170_v14 }
 0x8ed   :  { %9330 = vmatprep.mubr.msk.bf16.mxu0 %vm250_vm0, %v16075_v26  ;;  %9366 = vmatprep.mubr.msk.bf16.mxu1 %vm1985_vm1, %v5172_v44 }
 0x8ee   :  { %9383 = vmatpush3.bf16.xpose.msra.mxu0 %v5409_v33  ;;  %v5351_v19 = vpop.permute.xlu1 %5350 }
 0x8ef   :  { %9635 = vmatprep.subr.msk.bf16.mxu0 %vm1985_vm1, %v5367_v30  ;;  %v5349_v18 = vpop.permute.xlu0 %5348 }
 0x8f2   :  { %v5355_v15 = vpop.permute.xlu1 %5354 }
 0x8f3   :  { %v5353_v28 = vpop.permute.xlu0 %5352 }
 0x8f4   :  { %9331 = vmatmul.mubr.msk.bf16.gmra.mrb[140].mxu0 %vm250_vm0, %v16076_v29  ;;  %9367 = vmatmul.mubr.msk.bf16.gmra.mrb[176].mxu1 %vm1985_vm1, %v5174_v49 }
 0x8f5   :  { %9334 = vmatprep.mubr.msk.bf16.mxu0 %vm250_vm0, %v16077_v38  ;;  %9370 = vmatprep.mubr.msk.bf16.mxu1 %vm1985_vm1, %v5176_v7 }
 0x8f6   :  { %9385 = vmatpush3.bf16.xpose.msra.mxu0 %v5412_v16 }
 0x8f7   :  { %9636 = vmatprep.subr.msk.bf16.mxu0 %vm1985_vm1, %v5369_v41 }
 0x8fc   :  { %9335 = vmatmul.mubr.msk.bf16.gmra.mrb[144].mxu0 %vm250_vm0, %v16078_v61  ;;  %9371 = vmatmul.mubr.msk.bf16.gmra.mrb[180].mxu1 %vm1985_vm1, %v5178_v60 }
 0x8fd   :  { %9338 = vmatprep.mubr.msk.bf16.mxu0 %vm250_vm0, %v16079_v55 }
 0x8fe   :  { %9387 = vmatpush3.bf16.xpose.msra.mxu0 %v5415_v4 }
 0x8ff   :  { %9637 = vmatprep.subr.msk.bf16.mxu0 %vm1985_vm1, %v5371_v57 }
 0x904   :  { %9339 = vmatmul.mubr.msk.bf16.gmra.mrb[148].mxu0 %vm250_vm0, %v16080_v35 }
 0x905   :  { %9390 = vmatprep.mubr.msk.bf16.mxu0 %vm1985_vm1, %v5341_v50 }
 0x906   :  { %9389 = vmatpush3.bf16.xpose.msra.mxu0 %v5418_v39 }
 0x90d   :  { %9391 = vmatmul.mubr.msk.bf16.vlgmr.msra.gmra.mrb[152].mxu0 %vm1985_vm1, %v5343_v58 }
 0x90e   :  { %9394 = vmatprep.mubr.msk.bf16.mxu0 %vm1985_vm1, %v5345_v1 }
 0x915   :  { %9395 = vmatmul.mubr.msk.bf16.gmra.mrb[156].mxu0 %vm1985_vm1, %v5347_v43 }
 0x916   :  { %9398 = vmatprep.mubr.msk.bf16.mxu0 %vm1985_vm1, %v5349_v18 }
 0x91d   :  { %9399 = vmatmul.mubr.msk.bf16.gmra.mrb[160].mxu0 %vm1985_vm1, %v5351_v19 }
 0x91e   :  { %9402 = vmatprep.mubr.msk.bf16.mxu0 %vm1985_vm1, %v5353_v28 }
 0x925   :  { %9403 = vmatmul.mubr.msk.bf16.gmra.mrb[164].mxu0 %vm1985_vm1, %v5355_v15 }
 0x99f   :  { %v9312_v45 = vpop.f32.mrb[120].mxu0 }
 0x9a0   :  { %v5020_v34 = vpop.f32.mrb[121].mxu0  ;;  %v5029_v36 = vadd.f32 %v9312_v45, %v13670_v31 }
 0x9a1   :  { %v9313_v12 = vpop.f32.mrb[122].mxu0  ;;  %v5021_v47 = vadd.f32 %v13670_v31, %v5020_v34 }
 0x9a2   :  { %v5032_v63 = vadd.f32 %v9313_v12, %v13670_v31  ;;  %v5023_v37 = vpop.f32.mrb[123].mxu0 }
 0x9a3   :  { %v5024_v27 = vadd.f32 %v13670_v31, %v5023_v37 }
 0x9a4   :  { %v5148_v42 = vpack.c.bf16 %v5032_v63, %v5029_v36 }
 0x9a5   :  { %v5147_v2 = vpack.c.bf16 %v5024_v27, %v5021_v47 }
 0x9a7   :  { %v9316_v59 = vpop.f32.mrb[124].mxu0  ;;  %9406 = vmatprep.subr.bf16.mxu1 %v5147_v2 }
 0x9a8   :  { %v5036_v56 = vpop.f32.mrb[125].mxu0  ;;  %9407 = vmatpush3.bf16.msra.mxu1 %v5147_v2  ;;  %v5045_v17 = vadd.f32 %v9316_v59, %v13670_v31 }
 0x9a9   :  { %v9317_v23 = vpop.f32.mrb[126].mxu0  ;;  %9408 = vmatprep.subr.bf16.mxu1 %v5148_v42  ;;  %v5037_v53 = vadd.f32 %v13670_v31, %v5036_v56 }
 0x9aa   :  { %v5048_v40 = vadd.f32 %v9317_v23, %v13670_v31  ;;  %v5039_v52 = vpop.f32.mrb[127].mxu0 }
 0x9ab   :  { %v5040_v22 = vadd.f32 %v13670_v31, %v5039_v52 }
 0x9ac   :  { %v5150_v51 = vpack.c.bf16 %v5048_v40, %v5045_v17  ;;  %9409 = vmatpush3.bf16.msra.mxu1 %v5148_v42 }
 0x9ad   :  { %v5149_v32 = vpack.c.bf16 %v5040_v22, %v5037_v53 }
 0x9af   :  { %v9320_v20 = vpop.f32.mrb[128].mxu0  ;;  %9410 = vmatprep.subr.bf16.mxu1 %v5149_v32 }
 0x9b0   :  { %v5052_v11 = vpop.f32.mrb[129].mxu0  ;;  %9411 = vmatpush3.bf16.msra.mxu1 %v5149_v32  ;;  %v5061_v25 = vadd.f32 %v9320_v20, %v13670_v31 }
 0x9b1   :  { %v9321_v3 = vpop.f32.mrb[130].mxu0  ;;  %9412 = vmatprep.subr.bf16.mxu1 %v5150_v51  ;;  %v5053_v10 = vadd.f32 %v13670_v31, %v5052_v11 }
 0x9b2   :  { %v5064_v13 = vadd.f32 %v9321_v3, %v13670_v31  ;;  %v5055_v21 = vpop.f32.mrb[131].mxu0 }
 0x9b3   :  { %v5056_v14 = vadd.f32 %v13670_v31, %v5055_v21 }
 0x9b4   :  { %v5152_v46 = vpack.c.bf16 %v5064_v13, %v5061_v25  ;;  %9413 = vmatpush3.bf16.msra.mxu1 %v5150_v51 }
 0x9b5   :  { %v5151_v54 = vpack.c.bf16 %v5056_v14, %v5053_v10 }
 0x9b7   :  { %v9324_v8 = vpop.f32.mrb[132].mxu0  ;;  %v13684_v5 = vpop.f32.mrb[168].mxu1  ;;  %9414 = vmatprep.subr.bf16.mxu1 %v5151_v54 }
 0x9b8   :  { %v5068_v48 = vpop.f32.mrb[133].mxu0  ;;  %v13686_v44 = vpop.f32.mrb[169].mxu1  ;;  %9415 = vmatpush3.bf16.msra.mxu1 %v5151_v54  ;;  %v5077_v0 = vadd.f32 %v9324_v8, %v13670_v31 }
 0x9b9   :  { %v9325_v24 = vpop.f32.mrb[134].mxu0  ;;  %9416 = vmatprep.subr.bf16.mxu1 %v5152_v46  ;;  %5517 = vmax.xlane.f32.xlu0 %v13686_v44  ;;  %v13689_v6 = vpop.f32.mrb[170].mxu1  ;;  %v5069_v26 = vadd.f32 %v13670_v31, %v5068_v48 }
 0x9ba   :  { %v5080_v62 = vadd.f32 %v9325_v24, %v13670_v31  ;;  %v5071_v49 = vpop.f32.mrb[135].mxu0  ;;  %v13693_v9 = vpop.f32.mrb[171].mxu1 }
 0x9bb   :  { %v5072_v33 = vadd.f32 %v13670_v31, %v5071_v49  ;;  %5519 = vmax.xlane.f32.xlu1 %v13693_v9 }
 0x9bc   :  { %v5154_v30 = vpack.c.bf16 %v5080_v62, %v5077_v0  ;;  %9417 = vmatpush3.bf16.msra.mxu1 %v5152_v46 }
 0x9bd   :  { %v5153_v7 = vpack.c.bf16 %v5072_v33, %v5069_v26  ;;  %5521 = vmax.xlane.f32.xlu0 %v13684_v5 }
 0x9bf   :  { %v9328_v29 = vpop.f32.mrb[136].mxu0  ;;  %v13699_v38 = vpop.f32.mrb[172].mxu1  ;;  %9418 = vmatprep.subr.bf16.mxu1 %v5153_v7 }
 0x9c0   :  { %v5084_v16 = vpop.f32.mrb[137].mxu0  ;;  %v13701_v41 = vpop.f32.mrb[173].mxu1  ;;  %9419 = vmatpush3.bf16.msra.mxu1 %v5153_v7  ;;  %v5093_v55 = vadd.f32 %v9328_v29, %v13670_v31 }
 0x9c1   :  { %v9329_v60 = vpop.f32.mrb[138].mxu0  ;;  %9420 = vmatprep.subr.bf16.mxu1 %v5154_v30  ;;  %5523 = vmax.xlane.f32.xlu0 %v13689_v6  ;;  %v13704_v61 = vpop.f32.mrb[174].mxu1  ;;  %v5085_v35 = vadd.f32 %v13670_v31, %v5084_v16 }
 0x9c2   :  { %v5096_v4 = vadd.f32 %v9329_v60, %v13670_v31  ;;  %v5087_v57 = vpop.f32.mrb[139].mxu0  ;;  %v13708_v50 = vpop.f32.mrb[175].mxu1 }
 0x9c3   :  { %v5088_v39 = vadd.f32 %v13670_v31, %v5087_v57  ;;  %5527 = vmax.xlane.f32.xlu1 %v13708_v50 }
 0x9c4   :  { %v5156_v58 = vpack.c.bf16 %v5096_v4, %v5093_v55  ;;  %9421 = vmatpush3.bf16.msra.mxu1 %v5154_v30 }
 0x9c5   :  { %v5155_v1 = vpack.c.bf16 %v5088_v39, %v5085_v35  ;;  %5525 = vmax.xlane.f32.xlu0 %v13701_v41 }
 0x9c7   :  { %v9332_v43 = vpop.f32.mrb[140].mxu0  ;;  %5531 = vmax.xlane.f32.xlu1 %v13704_v61  ;;  %v13715_v18 = vpop.f32.mrb[176].mxu1  ;;  %9438 = vmatprep.subr.bf16.mxu0 %v5155_v1 }
 0x9c8   :  { %v5100_v19 = vpop.f32.mrb[141].mxu0  ;;  %v13717_v28 = vpop.f32.mrb[177].mxu1  ;;  %9439 = vmatpush3.bf16.msra.mxu0 %v5155_v1  ;;  %v5109_v34 = vadd.f32 %v9332_v43, %v13670_v31 }
 0x9c9   :  { %v9333_v15 = vpop.f32.mrb[142].mxu0  ;;  %5529 = vmax.xlane.f32.xlu0 %v13699_v38  ;;  %v13720_v45 = vpop.f32.mrb[178].mxu1  ;;  %9440 = vmatprep.subr.bf16.mxu0 %v5156_v58  ;;  %v5101_v37 = vadd.f32 %v13670_v31, %v5100_v19 }
 0x9ca   :  { %v5112_v12 = vadd.f32 %v9333_v15, %v13670_v31  ;;  %v5103_v36 = vpop.f32.mrb[143].mxu0  ;;  %v13724_v63 = vpop.f32.mrb[179].mxu1 }
 0x9cb   :  { %v5104_v47 = vadd.f32 %v13670_v31, %v5103_v36  ;;  %5535 = vmax.xlane.f32.xlu1 %v13724_v63 }
 0x9cc   :  { %v5158_v27 = vpack.c.bf16 %v5112_v12, %v5109_v34  ;;  %9441 = vmatpush3.bf16.msra.mxu0 %v5156_v58 }
 0x9cd   :  { %v5157_v42 = vpack.c.bf16 %v5104_v47, %v5101_v37  ;;  %5533 = vmax.xlane.f32.xlu0 %v13717_v28 }
 0x9cf   :  { %v9336_v2 = vpop.f32.mrb[144].mxu0  ;;  %5539 = vmax.xlane.f32.xlu1 %v13720_v45  ;;  %v13731_v59 = vpop.f32.mrb[180].mxu1  ;;  %9442 = vmatprep.subr.bf16.mxu0 %v5157_v42 }
 0x9d0   :  { %v5116_v56 = vpop.f32.mrb[145].mxu0  ;;  %v13733_v23 = vpop.f32.mrb[181].mxu1  ;;  %9443 = vmatpush3.bf16.msra.mxu0 %v5157_v42  ;;  %v5125_v52 = vadd.f32 %v9336_v2, %v13670_v31 }
 0x9d1   :  { %v9337_v17 = vpop.f32.mrb[146].mxu0  ;;  %5537 = vmax.xlane.f32.xlu0 %v13715_v18  ;;  %v13736_v40 = vpop.f32.mrb[182].mxu1  ;;  %9444 = vmatprep.subr.bf16.mxu0 %v5158_v27  ;;  %v5117_v32 = vadd.f32 %v13670_v31, %v5116_v56 }
 0x9d2   :  { %v5128_v53 = vadd.f32 %v9337_v17, %v13670_v31  ;;  %v5119_v22 = vpop.f32.mrb[147].mxu0  ;;  %v13740_v51 = vpop.f32.mrb[183].mxu1 }
 0x9d3   :  { %v5120_v20 = vadd.f32 %v13670_v31, %v5119_v22  ;;  %5543 = vmax.xlane.f32.xlu1 %v13740_v51 }
 0x9d4   :  { %v5160_v11 = vpack.c.bf16 %v5128_v53, %v5125_v52  ;;  %9445 = vmatpush3.bf16.msra.mxu0 %v5158_v27 }
 0x9d5   :  { %v5159_v3 = vpack.c.bf16 %v5120_v20, %v5117_v32  ;;  %5541 = vmax.xlane.f32.xlu0 %v13733_v23 }
 0x9d7   :  { %v9340_v25 = vpop.f32.mrb[148].mxu0  ;;  %5547 = vmax.xlane.f32.xlu1 %v13736_v40  ;;  %9446 = vmatprep.subr.bf16.mxu0 %v5159_v3 }
 0x9d8   :  { %v5132_v13 = vpop.f32.mrb[149].mxu0  ;;  %9447 = vmatpush3.bf16.msra.mxu0 %v5159_v3  ;;  %v5141_v10 = vadd.f32 %v9340_v25, %v13670_v31 }
 0x9d9   :  { %v9341_v21 = vpop.f32.mrb[150].mxu0  ;;  %5545 = vmax.xlane.f32.xlu0 %v13731_v59  ;;  %9448 = vmatprep.subr.bf16.mxu0 %v5160_v11  ;;  %v5133_v54 = vadd.f32 %v13670_v31, %v5132_v13 }
 0x9da   :  { %v5144_v14 = vadd.f32 %v9341_v21, %v13670_v31  ;;  %v5135_v46 = vpop.f32.mrb[151].mxu0 }
 0x9db   :  { %v5136_v8 = vadd.f32 %v13670_v31, %v5135_v46 }
 0x9dc   :  { %v5162_v48 = vpack.c.bf16 %v5144_v14, %v5141_v10  ;;  %9449 = vmatpush3.bf16.msra.mxu0 %v5160_v11 }
 0x9dd   :  { %v5161_v24 = vpack.c.bf16 %v5136_v8, %v5133_v54 }
 0x9df   :  { %9450 = vmatprep.subr.bf16.mxu0 %v5161_v24 }
 0x9e0   :  { %v13752_v0 = vpop.f32.mrb[152].mxu0  ;;  %9451 = vmatpush3.bf16.msra.mxu0 %v5161_v24 }
 0x9e1   :  { %v13754_v62 = vpop.f32.mrb[153].mxu0  ;;  %9452 = vmatprep.subr.bf16.mxu0 %v5162_v48 }
 0x9e2   :  { %5549 = vmax.xlane.f32.xlu0 %v13754_v62  ;;  %v13757_v49 = vpop.f32.mrb[154].mxu0 }
 0x9e3   :  { %v13759_v26 = vpop.f32.mrb[155].mxu0 }
 0x9e4   :  { %5551 = vmax.xlane.f32.xlu1 %v13759_v26  ;;  %9453 = vmatpush3.bf16.msra.mxu0 %v5162_v48 }
 0x9e6   :  { %5553 = vmax.xlane.f32.xlu0 %v13752_v0 }
 0x9e8   :  { %5555 = vmax.xlane.f32.xlu1 %v13757_v49  ;;  %v13764_v31 = vpop.f32.mrb[156].mxu0 }
 0x9e9   :  { %v13766_v33 = vpop.f32.mrb[157].mxu0 }
 0x9ea   :  { %5561 = vmax.xlane.f32.xlu0 %v13764_v31  ;;  %v13769_v30 = vpop.f32.mrb[158].mxu0 }
 0x9eb   :  { %v13771_v7 = vpop.f32.mrb[159].mxu0 }
 0x9ec   :  { %5563 = vmax.xlane.f32.xlu1 %v13769_v30 }
 0x9ee   :  { %5557 = vmax.xlane.f32.xlu0 %v13766_v33 }
 0x9f0   :  { %5559 = vmax.xlane.f32.xlu1 %v13771_v7  ;;  %v13776_v29 = vpop.f32.mrb[160].mxu0 }
 0x9f1   :  { %v13778_v16 = vpop.f32.mrb[161].mxu0 }
 0x9f2   :  { %v13780_v60 = vpop.f32.mrb[162].mxu0 }
 0x9f3   :  { %v13782_v55 = vpop.f32.mrb[163].mxu0 }
 0x9f8   :  { %v13784_v4 = vpop.f32.mrb[164].mxu0 }
 0x9f9   :  { %v13786_v57 = vpop.f32.mrb[165].mxu0 }
 0x9fa   :  { %v13788_v35 = vpop.f32.mrb[166].mxu0 }
 0x9fb   :  { %v13790_v39 = vpop.f32.mrb[167].mxu0 }
 0xa46   :  { %v5518_v58 = vpop.xlane.xlu0 %5517 }
 0xa47   :  { %v5581_v1 = vsub.f32 %v13686_v44, %v5518_v58 }
 0xa48   :  { %v5520_v43 = vpop.xlane.xlu1 %5519 }
 0xa49   :  { %v5613_v19 = vmul.f32 1.442695, %v5581_v1  ;;  %v5582_v15 = vsub.f32 %v13693_v9, %v5520_v43 }
 0xa4a   :  { %v5522_v34 = vpop.xlane.xlu0 %5521 }
 0xa4b   :  { %10207 = vpow2.f32 %v5613_v19  ;;  %v5615_v12 = vmul.f32 1.442695, %v5582_v15  ;;  %v5583_v36 = vsub.f32 %v13684_v5, %v5522_v34 }
 0xa4d   :  { %10209 = vpow2.f32 %v5615_v12  ;;  %v5617_v37 = vmul.f32 1.442695, %v5583_v36 }
 0xa4e   :  { %v5524_v47 = vpop.xlane.xlu0 %5523 }
 0xa4f   :  { %10211 = vpow2.f32 %v5617_v37  ;;  %v5584_v27 = vsub.f32 %v13689_v6, %v5524_v47 }
 0xa50   :  { %v5528_v42 = vpop.xlane.xlu1 %5527 }
 0xa51   :  { %v5619_v2 = vmul.f32 1.442695, %v5584_v27  ;;  %v5586_v52 = vsub.f32 %v13708_v50, %v5528_v42 }
 0xa52   :  { %v5526_v56 = vpop.xlane.xlu0 %5525 }
 0xa53   :  { %10213 = vpow2.f32 %v5619_v2  ;;  %v5585_v44 = vsub.f32 %v13701_v41, %v5526_v56  ;;  %v5623_v20 = vmul.f32 1.442695, %v5586_v52 }
 0xa54   :  { %v5532_v9 = vpop.xlane.xlu1 %5531 }
 0xa55   :  { %v13797_v17 = vpop.eup %10207  ;;  %v5621_v22 = vmul.f32 1.442695, %v5585_v44  ;;  %v5588_v11 = vsub.f32 %v13704_v61, %v5532_v9 }
 0xa56   :  { %5677 = vadd.xlane.f32.xlu0 %v13797_v17  ;;  %v5530_v5 = vpop.xlane.xlu0 %5529 }
 0xa57   :  { %v13801_v53 = vpop.eup %10209  ;;  %v5587_v32 = vsub.f32 %v13699_v38, %v5530_v5  ;;  %10215 = vpow2.f32 %v5621_v22  ;;  %v5627_v38 = vmul.f32 1.442695, %v5588_v11 }
 0xa58   :  { %5679 = vadd.xlane.f32.xlu1 %v13801_v53  ;;  %v5536_v3 = vpop.xlane.xlu1 %5535  ;;  %10217 = vpow2.f32 %v5623_v20 }
 0xa59   :  { %v13805_v6 = vpop.eup %10211  ;;  %v5625_v50 = vmul.f32 1.442695, %v5587_v32  ;;  %v5590_v46 = vsub.f32 %v13724_v63, %v5536_v3 }
 0xa5a   :  { %5681 = vadd.xlane.f32.xlu0 %v13805_v6  ;;  %v5534_v41 = vpop.xlane.xlu0 %5533 }
 0xa5b   :  { %10219 = vpow2.f32 %v5625_v50  ;;  %v5589_v61 = vsub.f32 %v13717_v28, %v5534_v41  ;;  %v5631_v1 = vmul.f32 1.442695, %v5590_v46 }
 0xa5c   :  { %v5540_v21 = vpop.xlane.xlu1 %5539  ;;  %10221 = vpow2.f32 %v5627_v38 }
 0xa5d   :  { %v13809_v25 = vpop.eup %10213  ;;  %v5629_v54 = vmul.f32 1.442695, %v5589_v61  ;;  %v5592_v28 = vsub.f32 %v13720_v45, %v5540_v21 }
 0xa5e   :  { %5565 = vmax.xlane.f32.xlu0 %v13778_v16  ;;  %5683 = vadd.xlane.f32.xlu1 %v13809_v25  ;;  %v5538_v13 = vpop.xlane.xlu0 %5537 }
 0xa5f   :  { %v5591_v8 = vsub.f32 %v13715_v18, %v5538_v13  ;;  %10223 = vpow2.f32 %v5629_v54  ;;  %v5635_v34 = vmul.f32 1.442695, %v5592_v28 }
 0xa60   :  { %v5544_v48 = vpop.xlane.xlu1 %5543  ;;  %10225 = vpow2.f32 %v5631_v1 }
 0xa61   :  { %v13816_v10 = vpop.eup %10215  ;;  %v5633_v63 = vmul.f32 1.442695, %v5591_v8  ;;  %v5594_v12 = vsub.f32 %v13740_v51, %v5544_v48 }
 0xa62   :  { %5569 = vmax.xlane.f32.xlu0 %v13776_v29  ;;  %5567 = vmax.xlane.f32.xlu1 %v13782_v55  ;;  %v5542_v14 = vpop.xlane.xlu0 %5541  ;;  %v13822_v24 = vpop.eup %10217 }
 0xa63   :  { %v5593_v43 = vsub.f32 %v13733_v23, %v5542_v14  ;;  %10227 = vpow2.f32 %v5633_v63  ;;  %v5639_v23 = vmul.f32 1.442695, %v5594_v12 }
 0xa64   :  { %v5548_v18 = vpop.xlane.xlu1 %5547  ;;  %10229 = vpow2.f32 %v5635_v34 }
 0xa65   :  { %v13824_v58 = vpop.eup %10219  ;;  %v5637_v45 = vmul.f32 1.442695, %v5593_v43  ;;  %v5596_v27 = vsub.f32 %v13736_v40, %v5548_v18 }
 0xa66   :  { %5571 = vmax.xlane.f32.xlu1 %v13780_v60  ;;  %5685 = vadd.xlane.f32.xlu0 %v13816_v10  ;;  %v5546_v19 = vpop.xlane.xlu0 %5545  ;;  %v13830_v15 = vpop.eup %10221 }
 0xa67   :  { %v5595_v36 = vsub.f32 %v13731_v59, %v5546_v19  ;;  %10231 = vpow2.f32 %v5637_v45  ;;  %v5643_v59 = vmul.f32 1.442695, %v5596_v27 }
 0xa68   :  { %10233 = vpow2.f32 %v5639_v23 }
 0xa69   :  { %v5641_v51 = vmul.f32 1.442695, %v5595_v36  ;;  %v13840_v56 = vpop.eup %10223 }
 0xa6a   :  { %5687 = vadd.xlane.f32.xlu1 %v13822_v24  ;;  %5689 = vadd.xlane.f32.xlu0 %v13824_v58  ;;  %v13846_v22 = vpop.eup %10225 }
 0xa6b   :  { %10235 = vpow2.f32 %v5641_v51 }
 0xa6c   :  { %10237 = vpow2.f32 %v5643_v59 }
 0xa6e   :  { %5691 = vadd.xlane.f32.xlu1 %v13830_v15  ;;  %5573 = vmax.xlane.f32.xlu0 %v13786_v57 }
 0xa6f   :  { %v5550_v37 = vpop.xlane.xlu0 %5549 }
 0xa70   :  { %v5597_v42 = vsub.f32 %v13754_v62, %v5550_v37  ;;  %v13848_v62 = vpop.eup %10227 }
 0xa71   :  { %v5552_v47 = vpop.xlane.xlu1 %5551  ;;  %v13853_v50 = vpop.eup %10229 }
 0xa72   :  { %5575 = vmax.xlane.f32.xlu1 %v13790_v39  ;;  %5577 = vmax.xlane.f32.xlu0 %v13784_v4  ;;  %v5598_v9 = vsub.f32 %v13759_v26, %v5552_v47  ;;  %v5645_v40 = vmul.f32 1.442695, %v5597_v42  ;;  %v13856_v3 = vpop.eup %10231 }
 0xa73   :  { %v5554_v2 = vpop.xlane.xlu0 %5553  ;;  %v13862_v14 = vpop.eup %10233 }
 0xa74   :  { %v5599_v52 = vsub.f32 %v13752_v0, %v5554_v2  ;;  %v5647_v20 = vmul.f32 1.442695, %v5598_v9  ;;  %10239 = vpow2.f32 %v5645_v40 }
 0xa75   :  { %v5556_v44 = vpop.xlane.xlu1 %5555  ;;  %v13864_v46 = vpop.eup %10235 }
 0xa76   :  { %5579 = vmax.xlane.f32.xlu1 %v13788_v35  ;;  %5693 = vadd.xlane.f32.xlu0 %v13840_v56  ;;  %v5600_v41 = vsub.f32 %v13757_v49, %v5556_v44  ;;  %v5649_v26 = vmul.f32 1.442695, %v5599_v52  ;;  %10241 = vpow2.f32 %v5647_v20  ;;  %v13869_v8 = vpop.eup %10237 }
 0xa77   :  { %v5562_v5 = vpop.xlane.xlu0 %5561 }
 0xa78   :  { %v5651_v13 = vmul.f32 1.442695, %v5600_v41  ;;  %v5603_v21 = vsub.f32 %v13764_v31, %v5562_v5  ;;  %10243 = vpow2.f32 %v5649_v26 }
 0xa79   :  { %v5564_v32 = vpop.xlane.xlu1 %5563 }
 0xa7a   :  { %5695 = vadd.xlane.f32.xlu1 %v13846_v22  ;;  %5697 = vadd.xlane.f32.xlu0 %v13848_v62  ;;  %10245 = vpow2.f32 %v5651_v13  ;;  %v5604_v31 = vsub.f32 %v13769_v30, %v5564_v32 }
 0xa7b   :  { %v5558_v11 = vpop.xlane.xlu0 %5557 }
 0xa7c   :  { %v5601_v0 = vsub.f32 %v13766_v33, %v5558_v11  ;;  %v5657_v33 = vmul.f32 1.442695, %v5603_v21 }
 0xa7d   :  { %v5560_v38 = vpop.xlane.xlu1 %5559 }
 0xa7e   :  { %5699 = vadd.xlane.f32.xlu1 %v13853_v50  ;;  %5701 = vadd.xlane.f32.xlu0 %v13856_v3  ;;  %v5653_v49 = vmul.f32 1.442695, %v5601_v0  ;;  %v5602_v61 = vsub.f32 %v13771_v7, %v5560_v38  ;;  %v13871_v48 = vpop.eup %10239  ;;  %v5659_v7 = vmul.f32 1.442695, %v5604_v31 }
 0xa80   :  { %10247 = vpow2.f32 %v5653_v49  ;;  %v5655_v54 = vmul.f32 1.442695, %v5602_v61  ;;  %v13875_v1 = vpop.eup %10241 }
 0xa81   :  { %10249 = vpow2.f32 %v5657_v33 }
 0xa82   :  { %5703 = vadd.xlane.f32.xlu1 %v13862_v14  ;;  %5705 = vadd.xlane.f32.xlu0 %v13864_v46  ;;  %10251 = vpow2.f32 %v5655_v54  ;;  %v13877_v28 = vpop.eup %10243 }
 0xa83   :  { %10253 = vpow2.f32 %v5659_v7 }
 0xa84   :  { %v13881_v30 = vpop.eup %10245 }
 0xa86   :  { %5707 = vadd.xlane.f32.xlu1 %v13869_v8  ;;  %5709 = vadd.xlane.f32.xlu0 %v13871_v48 }
 0xa8a   :  { %5711 = vadd.xlane.f32.xlu1 %v13875_v1  ;;  %5713 = vadd.xlane.f32.xlu0 %v13877_v28  ;;  %v13883_v63 = vpop.eup %10247 }
 0xa8b   :  { %v13887_v43 = vpop.eup %10249 }
 0xa8c   :  { %v13889_v19 = vpop.eup %10251 }
 0xa8d   :  { %v13893_v18 = vpop.eup %10253 }
 0xa8e   :  { %5715 = vadd.xlane.f32.xlu1 %v13881_v30  ;;  %5717 = vadd.xlane.f32.xlu0 %v13883_v63 }
 0xa92   :  { %5719 = vadd.xlane.f32.xlu1 %v13889_v19  ;;  %5721 = vadd.xlane.f32.xlu0 %v13887_v43 }
 0xa96   :  { %5723 = vadd.xlane.f32.xlu1 %v13893_v18 }
 0xae3   :  { %v5678_v34 = vpop.xlane.xlu0 %5677 }
 0xae4   :  { %10255 = vrcp.f32 %v5678_v34 }
 0xae5   :  { %v5680_v12 = vpop.xlane.xlu1 %5679 }
 0xae6   :  { %10257 = vrcp.f32 %v5680_v12 }
 0xae7   :  { %v5682_v45 = vpop.xlane.xlu0 %5681 }
 0xae8   :  { %10259 = vrcp.f32 %v5682_v45 }
 0xaeb   :  { %v5684_v36 = vpop.xlane.xlu1 %5683  ;;  %v5566_v37 = vpop.xlane.xlu0 %5565 }
 0xaec   :  { %10261 = vrcp.f32 %v5684_v36  ;;  %v5605_v47 = vsub.f32 %v13778_v16, %v5566_v37 }
 0xaee   :  { %v10256_v23 = vpop.eup %10255  ;;  %v5661_v27 = vmul.f32 1.442695, %v5605_v47 }
 0xaef   :  { %v5568_v51 = vpop.xlane.xlu1 %5567  ;;  %v5570_v42 = vpop.xlane.xlu0 %5569  ;;  %v5773_v9 = vmul.f32 %v10256_v23, %v13797_v17 }
 0xaf0   :  { %v10258_v2 = vpop.eup %10257  ;;  %10263 = vpow2.f32 %v5661_v27  ;;  %v5606_v44 = vsub.f32 %v13782_v55, %v5568_v51  ;;  %v5607_v59 = vsub.f32 %v13776_v29, %v5570_v42 }
 0xaf1   :  { %v5774_v40 = vmul.f32 %v10258_v2, %v13801_v53 }
 0xaf2   :  { %v5663_v52 = vmul.f32 1.442695, %v5606_v44  ;;  %v5665_v5 = vmul.f32 1.442695, %v5607_v59  ;;  %v10260_v16 = vpop.eup %10259 }
 0xaf3   :  { %v5572_v32 = vpop.xlane.xlu1 %5571  ;;  %v5686_v20 = vpop.xlane.xlu0 %5685  ;;  %v5805_v41 = vpack.c.bf16 %v5774_v40, %v5773_v9  ;;  %v5775_v55 = vmul.f32 %v10260_v16, %v13805_v6 }
 0xaf4   :  { %10265 = vpow2.f32 %v5663_v52  ;;  %v5608_v26 = vsub.f32 %v13780_v60, %v5572_v32 }
 0xaf5   :  { %10267 = vpow2.f32 %v5665_v5  ;;  %9422 = vmatprep.mubr.bf16.mxu1 %v5805_v41 }
 0xaf6   :  { %v10262_v11 = vpop.eup %10261  ;;  %v5667_v0 = vmul.f32 1.442695, %v5608_v26  ;;  %10269 = vrcp.f32 %v5686_v20 }
 0xaf7   :  { %v5776_v29 = vmul.f32 %v10262_v11, %v13809_v25  ;;  %v5688_v17 = vpop.xlane.xlu1 %5687  ;;  %v5690_v53 = vpop.xlane.xlu0 %5689 }
 0xaf8   :  { %10271 = vpow2.f32 %v5667_v0 }
 0xaf9   :  { %10273 = vrcp.f32 %v5688_v17  ;;  %v5806_v38 = vpack.c.bf16 %v5776_v29, %v5775_v55 }
 0xafa   :  { %v13904_v13 = vpop.eup %10263  ;;  %10275 = vrcp.f32 %v5690_v53 }
 0xafb   :  { %v5692_v21 = vpop.xlane.xlu1 %5691  ;;  %9423 = vmatmul.mubr.bf16.vlgmr.msra.gmra.mrb[104].mxu1 %v5806_v38  ;;  %5725 = vadd.xlane.f32.xlu0 %v13904_v13  ;;  %v5574_v60 = vpop.xlane.xlu0 %5573 }
 0xafc   :  { %10277 = vrcp.f32 %v5692_v21  ;;  %v5609_v49 = vsub.f32 %v13786_v57, %v5574_v60 }
 0xafe   :  { %v13908_v6 = vpop.eup %10265  ;;  %v5669_v25 = vmul.f32 1.442695, %v5609_v49 }
 0xaff   :  { %v13910_v61 = vpop.eup %10267  ;;  %5727 = vadd.xlane.f32.xlu1 %v13908_v6  ;;  %v5576_v33 = vpop.xlane.xlu1 %5575 }
 0xb00   :  { %v5578_v31 = vpop.xlane.xlu0 %5577  ;;  %10279 = vpow2.f32 %v5669_v25  ;;  %v5610_v54 = vsub.f32 %v13790_v39, %v5576_v33  ;;  %5729 = vadd.xlane.f32.xlu0 %v13910_v61  ;;  %v10270_v34 = vpop.eup %10269 }
 0xb01   :  { %v5611_v7 = vsub.f32 %v13784_v4, %v5578_v31  ;;  %v5777_v39 = vmul.f32 %v10270_v34, %v13816_v10 }
 0xb02   :  { %v13916_v12 = vpop.eup %10271  ;;  %v5671_v57 = vmul.f32 1.442695, %v5610_v54 }
 0xb03   :  { %v5673_v45 = vmul.f32 1.442695, %v5611_v7  ;;  %v10274_v36 = vpop.eup %10273  ;;  %5731 = vadd.xlane.f32.xlu1 %v13916_v12  ;;  %v5580_v37 = vpop.xlane.xlu1 %5579 }
 0xb04   :  { %v5694_v47 = vpop.xlane.xlu0 %5693  ;;  %v10276_v23 = vpop.eup %10275  ;;  %10281 = vpow2.f32 %v5671_v57  ;;  %v5612_v27 = vsub.f32 %v13788_v35, %v5580_v37  ;;  %v5778_v51 = vmul.f32 %v10274_v36, %v13822_v24 }
 0xb05   :  { %10283 = vpow2.f32 %v5673_v45  ;;  %v5779_v9 = vmul.f32 %v10276_v23, %v13824_v58 }
 0xb06   :  { %v10278_v4 = vpop.eup %10277  ;;  %v5675_v42 = vmul.f32 1.442695, %v5612_v27  ;;  %v5807_v2 = vpack.c.bf16 %v5778_v51, %v5777_v39  ;;  %10285 = vrcp.f32 %v5694_v47 }
 0xb07   :  { %v5696_v44 = vpop.xlane.xlu1 %5695  ;;  %v5780_v40 = vmul.f32 %v10278_v4, %v13830_v15 }
 0xb08   :  { %v5698_v59 = vpop.xlane.xlu0 %5697  ;;  %10287 = vpow2.f32 %v5675_v42  ;;  %9426 = vmatprep.mubr.bf16.mxu1 %v5807_v2 }
 0xb09   :  { %10289 = vrcp.f32 %v5696_v44  ;;  %v5808_v52 = vpack.c.bf16 %v5780_v40, %v5779_v9 }
 0xb0a   :  { %v13924_v35 = vpop.eup %10279  ;;  %10291 = vrcp.f32 %v5698_v59 }
 0xb0b   :  { %v5700_v10 = vpop.xlane.xlu1 %5699  ;;  %9427 = vmatmul.mubr.bf16.gmra.mrb[108].mxu1 %v5808_v52  ;;  %5733 = vadd.xlane.f32.xlu0 %v13924_v35 }
 0xb0c   :  { %v5702_v24 = vpop.xlane.xlu0 %5701  ;;  %10293 = vrcp.f32 %v5700_v10 }
 0xb0d   :  { %10295 = vrcp.f32 %v5702_v24 }
 0xb0e   :  { %v13927_v5 = vpop.eup %10281 }
 0xb0f   :  { %v13929_v32 = vpop.eup %10283  ;;  %5735 = vadd.xlane.f32.xlu1 %v13927_v5  ;;  %v5704_v58 = vpop.xlane.xlu1 %5703 }
 0xb10   :  { %v5706_v15 = vpop.xlane.xlu0 %5705  ;;  %10297 = vrcp.f32 %v5704_v58  ;;  %5737 = vadd.xlane.f32.xlu0 %v13929_v32  ;;  %v10286_v20 = vpop.eup %10285 }
 0xb11   :  { %10299 = vrcp.f32 %v5706_v15  ;;  %v5781_v55 = vmul.f32 %v10286_v20, %v13840_v56 }
 0xb12   :  { %v13933_v41 = vpop.eup %10287 }
 0xb13   :  { %v10290_v16 = vpop.eup %10289  ;;  %5739 = vadd.xlane.f32.xlu1 %v13933_v41  ;;  %v5708_v26 = vpop.xlane.xlu1 %5707 }
 0xb14   :  { %v5710_v11 = vpop.xlane.xlu0 %5709  ;;  %v10292_v0 = vpop.eup %10291  ;;  %10301 = vrcp.f32 %v5708_v26  ;;  %v5782_v29 = vmul.f32 %v10290_v16, %v13846_v22 }
 0xb15   :  { %10303 = vrcp.f32 %v5710_v11  ;;  %v5783_v60 = vmul.f32 %v10292_v0, %v13848_v62 }
 0xb16   :  { %v10294_v17 = vpop.eup %10293  ;;  %v5809_v53 = vpack.c.bf16 %v5782_v29, %v5781_v55 }
 0xb17   :  { %v5712_v38 = vpop.xlane.xlu1 %5711  ;;  %v5784_v49 = vmul.f32 %v10294_v17, %v13853_v50  ;;  %v10296_v25 = vpop.eup %10295 }
 0xb18   :  { %v5714_v21 = vpop.xlane.xlu0 %5713  ;;  %10305 = vrcp.f32 %v5712_v38  ;;  %9430 = vmatprep.mubr.bf16.mxu1 %v5809_v53  ;;  %v5785_v22 = vmul.f32 %v10296_v25, %v13856_v3 }
 0xb19   :  { %v5810_v33 = vpack.c.bf16 %v5784_v49, %v5783_v60  ;;  %10307 = vrcp.f32 %v5714_v21 }
 0xb1a   :  { %v10298_v31 = vpop.eup %10297 }
 0xb1b   :  { %v5716_v54 = vpop.xlane.xlu1 %5715  ;;  %9431 = vmatmul.mubr.bf16.gmra.mrb[112].mxu1 %v5810_v33  ;;  %v5786_v7 = vmul.f32 %v10298_v31, %v13862_v14  ;;  %v10300_v34 = vpop.eup %10299 }
 0xb1c   :  { %v5718_v56 = vpop.xlane.xlu0 %5717  ;;  %10309 = vrcp.f32 %v5716_v54  ;;  %v5787_v36 = vmul.f32 %v10300_v34, %v13864_v46 }
 0xb1d   :  { %v5811_v57 = vpack.c.bf16 %v5786_v7, %v5785_v22  ;;  %10311 = vrcp.f32 %v5718_v56  ;;  %v13963_v56 = vld [vmem:[%s15516_s12] ss:$0 sm:$0xff]  ;;  %v13968_v7 = vstv %s7989_s29 }
 0xb1e   :  { %v10302_v45 = vpop.eup %10301 }
 0xb1f   :  { %v5720_v62 = vpop.xlane.xlu1 %5719  ;;  %9434 = vmatprep.mubr.bf16.mxu1 %v5811_v57  ;;  %v5788_v37 = vmul.f32 %v10302_v45, %v13869_v8  ;;  %v10304_v47 = vpop.eup %10303 }
 0xb20   :  { %v5722_v50 = vpop.xlane.xlu0 %5721  ;;  %10313 = vrcp.f32 %v5720_v62  ;;  %v5789_v14 = vmul.f32 %v10304_v47, %v13871_v48  ;;  %v10530_v62 = vld [vmem:[%s15747_s27 + $0x8] sm:$0xff]  ;;  %v10531_v47 = vld [vmem:[%s15747_s27 + $0x10] sm:$0xff] }
 0xb21   :  { %v5812_v23 = vpack.c.bf16 %v5788_v37, %v5787_v36  ;;  %10315 = vrcp.f32 %v5722_v50 }
 0xb22   :  { %v10306_v27 = vpop.eup %10305 }
 0xb23   :  { %v5724_v3 = vpop.xlane.xlu1 %5723  ;;  %9435 = vmatmul.mubr.bf16.gmra.mrb[116].mxu1 %v5812_v23  ;;  %v5790_v39 = vmul.f32 %v10306_v27, %v13875_v1  ;;  %v10308_v51 = vpop.eup %10307 }
 0xb24   :  { %10317 = vrcp.f32 %v5724_v3  ;;  %v5791_v2 = vmul.f32 %v10308_v51, %v13877_v28 }
 0xb25   :  { %v5813_v4 = vpack.c.bf16 %v5790_v39, %v5789_v14  ;;  %v10532_v39 = vld [vmem:[%s15747_s27 + $0x18] sm:$0xff] }
 0xb26   :  { %v10310_v42 = vpop.eup %10309 }
 0xb27   :  { %v5792_v46 = vmul.f32 %v10310_v42, %v13881_v30  ;;  %9454 = vmatprep.mubr.bf16.mxu0 %v5813_v4  ;;  %v10312_v8 = vpop.eup %10311 }
 0xb28   :  { %v5793_v9 = vmul.f32 %v10312_v8, %v13883_v63 }
 0xb29   :  { %v5814_v44 = vpack.c.bf16 %v5792_v46, %v5791_v2 }
 0xb2a   :  { %v10314_v59 = vpop.eup %10313 }
 0xb2b   :  { %9455 = vmatmul.mubr.bf16.vlgmr.msra.gmra.mrb[88].mxu0 %v5814_v44  ;;  %v5794_v40 = vmul.f32 %v10314_v59, %v13889_v19  ;;  %v10316_v48 = vpop.eup %10315 }
 0xb2c   :  { %v5795_v10 = vmul.f32 %v10316_v48, %v13887_v43 }
 0xb2d   :  { %v5815_v52 = vpack.c.bf16 %v5794_v40, %v5793_v9 }
 0xb2e   :  { %v10318_v1 = vpop.eup %10317 }
 0xb2f   :  { %9458 = vmatprep.mubr.bf16.mxu0 %v5815_v52  ;;  %v5796_v24 = vmul.f32 %v10318_v1, %v13893_v18 }
 0xb31   :  { %v5816_v28 = vpack.c.bf16 %v5796_v24, %v5795_v10  ;;  %v10533_v24 = vld [vmem:[%s15747_s27 + $0x20] sm:$0xff] }
 0xb33   :  { %9459 = vmatmul.mubr.bf16.gmra.mrb[92].mxu0 %v5816_v28 }
 0xb88   :  { %v5726_v30 = vpop.xlane.xlu0 %5725 }
 0xb89   :  { %10319 = vrcp.f32 %v5726_v30 }
 0xb8c   :  { %v5728_v58 = vpop.xlane.xlu1 %5727 }
 0xb8d   :  { %10321 = vrcp.f32 %v5728_v58  ;;  %v5730_v15 = vpop.xlane.xlu0 %5729 }
 0xb8e   :  { %10323 = vrcp.f32 %v5730_v15  ;;  %v10534_v15 = vld [vmem:[%s15747_s27 + $0x28] sm:$0xff] }
 0xb90   :  { %v5732_v20 = vpop.xlane.xlu1 %5731 }
 0xb91   :  { %10325 = vrcp.f32 %v5732_v20 }
 0xb93   :  { %v10320_v63 = vpop.eup %10319 }
 0xb94   :  { %v5797_v26 = vmul.f32 %v10320_v63, %v13904_v13 }
 0xb97   :  { %v10322_v19 = vpop.eup %10321 }
 0xb98   :  { %v5734_v16 = vpop.xlane.xlu0 %5733  ;;  %v5798_v11 = vmul.f32 %v10322_v19, %v13908_v6  ;;  %v10324_v43 = vpop.eup %10323 }
 0xb99   :  { %10327 = vrcp.f32 %v5734_v16  ;;  %v5799_v29 = vmul.f32 %v10324_v43, %v13910_v61  ;;  %v10535_v16 = vld [vmem:[%s15747_s27 + $0x30] sm:$0xff] }
 0xb9a   :  { %v5817_v0 = vpack.c.bf16 %v5798_v11, %v5797_v26 }
 0xb9b   :  { %v10326_v18 = vpop.eup %10325 }
 0xb9c   :  { %v5736_v55 = vpop.xlane.xlu1 %5735  ;;  %9462 = vmatprep.mubr.bf16.mxu0 %v5817_v0  ;;  %v5800_v17 = vmul.f32 %v10326_v18, %v13916_v12  ;;  %v10536_v18 = vld [vmem:[%s15747_s27 + $0x38] sm:$0xff] }
 0xb9d   :  { %10329 = vrcp.f32 %v5736_v55  ;;  %v5738_v53 = vpop.xlane.xlu0 %5737 }
 0xb9e   :  { %v5818_v38 = vpack.c.bf16 %v5800_v17, %v5799_v29  ;;  %10331 = vrcp.f32 %v5738_v53 }
 0xba0   :  { %v5740_v21 = vpop.xlane.xlu1 %5739  ;;  %9463 = vmatmul.mubr.bf16.gmra.mrb[96].mxu0 %v5818_v38 }
 0xba1   :  { %10333 = vrcp.f32 %v5740_v21 }
 0xba3   :  { %v10328_v13 = vpop.eup %10327 }
 0xba4   :  { %v5801_v6 = vmul.f32 %v10328_v13, %v13924_v35  ;;  %v13965_v35 = vstv %s143_s11 }
 0xba5   :  { %v6087_v50 = vmul.f32 %v10530_v62, %v13965_v35  ;;  %v6088_v23 = vmul.f32 %v10531_v47, %v13965_v35  ;;  %v6089_v51 = vmul.f32 %v10532_v39, %v13965_v35  ;;  %v6090_v28 = vmul.f32 %v10533_v24, %v13965_v35  ;;  %v10540_v47 = vld [vmem:[%s15747_s27 + $0x58] sm:$0xff] }
 0xba6   :  { %v6091_v20 = vmul.f32 %v10534_v15, %v13965_v35  ;;  %v6092_v26 = vmul.f32 %v10535_v16, %v13965_v35  ;;  %v6093_v55 = vmul.f32 %v10536_v18, %v13965_v35 }
 0xba7   :  { %v10330_v60 = vpop.eup %10329 }
 0xba8   :  { %v5802_v49 = vmul.f32 %v10330_v60, %v13927_v5  ;;  %v10332_v25 = vpop.eup %10331 }
 0xba9   :  { %v5803_v61 = vmul.f32 %v10332_v25, %v13929_v32  ;;  %v10529_v32 = vld [vmem:[%s15747_s27] sm:$0xff] }
 0xbaa   :  { %v5819_v33 = vpack.c.bf16 %v5802_v49, %v5801_v6 }
 0xbab   :  { %v10334_v31 = vpop.eup %10333 }
 0xbac   :  { %9466 = vmatprep.mubr.bf16.mxu0 %v5819_v33  ;;  %v5804_v12 = vmul.f32 %v10334_v31, %v13933_v41  ;;  %v6086_v41 = vmul.f32 %v10529_v32, %v13965_v35 }
 0xbae   :  { %v5820_v54 = vpack.c.bf16 %v5804_v12, %v5803_v61  ;;  %v10537_v12 = vld [vmem:[%s15747_s27 + $0x40] sm:$0xff] }
 0xbb0   :  { %9467 = vmatmul.mubr.bf16.gmra.mrb[100].mxu0 %v5820_v54  ;;  %v6094_v54 = vmul.f32 %v10537_v12, %v13965_v35 }
 0xbce   :  { %v9424_v5 = vpop.f32.mrb[104].mxu1 }
 0xbcf   :  { %v6055_v22 = vadd.f32 %v9424_v5, %v13963_v56  ;;  %v5855_v34 = vpop.f32.mrb[105].mxu1 }
 0xbd0   :  { %v6053_v57 = vadd.f32 %v13963_v56, %v5855_v34  ;;  %v9425_v45 = vpop.f32.mrb[106].mxu1  ;;  %v10538_v34 = vld [vmem:[%s15747_s27 + $0x48] sm:$0xff] }
 0xbd1   :  { %v6056_v36 = vadd.f32 %v9425_v45, %v13963_v56  ;;  %v5858_v37 = vpop.f32.mrb[107].mxu1  ;;  %v6121_v27 = vmul.f32 %v13968_v7, %v6055_v22  ;;  %v6095_v32 = vmul.f32 %v10538_v34, %v13965_v35  ;;  %v10539_v45 = vld [vmem:[%s15747_s27 + $0x50] sm:$0xff] }
 0xbd2   :  { %v6119_v3 = vmul.f32 %v13968_v7, %v6053_v57  ;;  %v6054_v14 = vadd.f32 %v13963_v56, %v5858_v37  ;;  %v6096_v62 = vmul.f32 %v10539_v45, %v13965_v35 }
 0xbd3   :  { %v6122_v42 = vmul.f32 %v13968_v7, %v6056_v36  ;;  %v13995_v46 = vadd.f32 %v6121_v27, %v6088_v23  ;;  %v6097_v23 = vmul.f32 %v10540_v47, %v13965_v35 }
 0xbd4   :  { %v13991_v4 = vadd.f32 %v6119_v3, %v6086_v41  ;;  %v6120_v2 = vmul.f32 %v13968_v7, %v6054_v14 }
 0xbd5   :  { %v14001_v59 = vadd.f32 %v6122_v42, %v6089_v51  ;;  %v6189_v40 = vsel %vm250_vm0, %v13995_v46, 0.0 }
 0xbd6   :  { %v13997_v8 = vadd.f32 %v6120_v2, %v6087_v50  ;;  %v6183_v44 = vsel %vm250_vm0, %v13991_v4, 0.0 }
 0xbd7   :  { %6184 = vadd.xlane.f32.xlu0 %v6183_v44  ;;  %v6192_v48 = vsel %vm250_vm0, %v14001_v59, 0.0 }
 0xbd8   :  { %v6186_v9 = vsel %vm250_vm0, %v13997_v8, 0.0 }
 0xbd9   :  { %6187 = vadd.xlane.f32.xlu1 %v6186_v9 }
 0xbdb   :  { %6190 = vadd.xlane.f32.xlu0 %v6189_v40  ;;  %v10541_v40 = vld [vmem:[%s15747_s27 + $0x60] sm:$0xff] }
 0xbdd   :  { %6193 = vadd.xlane.f32.xlu1 %v6192_v48  ;;  %v6098_v48 = vmul.f32 %v10541_v40, %v13965_v35 }
 0xbde   :  { %v9428_v52 = vpop.f32.mrb[108].mxu1 }
 0xbdf   :  { %v6059_v1 = vadd.f32 %v9428_v52, %v13963_v56  ;;  %v5871_v10 = vpop.f32.mrb[109].mxu1 }
 0xbe0   :  { %v6057_v30 = vadd.f32 %v13963_v56, %v5871_v10  ;;  %v9429_v58 = vpop.f32.mrb[110].mxu1 }
 0xbe1   :  { %v6060_v63 = vadd.f32 %v9429_v58, %v13963_v56  ;;  %v5874_v19 = vpop.f32.mrb[111].mxu1  ;;  %v6125_v11 = vmul.f32 %v13968_v7, %v6059_v1  ;;  %v10543_v58 = vld [vmem:[%s15747_s27 + $0x70] sm:$0xff] }
 0xbe2   :  { %v6123_v43 = vmul.f32 %v13968_v7, %v6057_v30  ;;  %v6058_v0 = vadd.f32 %v13963_v56, %v5874_v19  ;;  %v6100_v15 = vmul.f32 %v10543_v58, %v13965_v35 }
 0xbe3   :  { %v6126_v17 = vmul.f32 %v13968_v7, %v6060_v63  ;;  %v14035_v38 = vadd.f32 %v6125_v11, %v6092_v26 }
 0xbe4   :  { %v14031_v29 = vadd.f32 %v6123_v43, %v6090_v28  ;;  %v6124_v53 = vmul.f32 %v13968_v7, %v6058_v0  ;;  %v10542_v28 = vld [vmem:[%s15747_s27 + $0x68] sm:$0xff]  ;;  %v10544_v43 = vld [vmem:[%s15747_s27 + $0x78] sm:$0xff] }
 0xbe5   :  { %v14041_v60 = vadd.f32 %v6126_v17, %v6093_v55  ;;  %v6201_v49 = vsel %vm250_vm0, %v14035_v38, 0.0  ;;  %v6099_v30 = vmul.f32 %v10542_v28, %v13965_v35  ;;  %v6101_v0 = vmul.f32 %v10544_v43, %v13965_v35 }
 0xbe6   :  { %v14037_v21 = vadd.f32 %v6124_v53, %v6091_v20  ;;  %v6195_v13 = vsel %vm250_vm0, %v14031_v29, 0.0 }
 0xbe7   :  { %6196 = vadd.xlane.f32.xlu0 %v6195_v13  ;;  %v6204_v25 = vsel %vm250_vm0, %v14041_v60, 0.0 }
 0xbe8   :  { %v6198_v6 = vsel %vm250_vm0, %v14037_v21, 0.0 }
 0xbe9   :  { %6199 = vadd.xlane.f32.xlu1 %v6198_v6 }
 0xbeb   :  { %6202 = vadd.xlane.f32.xlu0 %v6201_v49 }
 0xbed   :  { %6205 = vadd.xlane.f32.xlu1 %v6204_v25 }
 0xbee   :  { %v9432_v33 = vpop.f32.mrb[112].mxu1 }
 0xbef   :  { %v6063_v31 = vadd.f32 %v9432_v33, %v13963_v56  ;;  %v5887_v61 = vpop.f32.mrb[113].mxu1 }
 0xbf0   :  { %v6061_v5 = vadd.f32 %v13963_v56, %v5887_v61  ;;  %v9433_v22 = vpop.f32.mrb[114].mxu1  ;;  %v10545_v61 = vld [vmem:[%s15747_s27 + $0x80] sm:$0xff] }
 0xbf1   :  { %v6064_v41 = vadd.f32 %v9433_v22, %v13963_v56  ;;  %v5890_v57 = vpop.f32.mrb[115].mxu1  ;;  %v6129_v50 = vmul.f32 %v13968_v7, %v6063_v31  ;;  %v6102_v12 = vmul.f32 %v10545_v61, %v13965_v35 }
 0xbf2   :  { %v6127_v36 = vmul.f32 %v13968_v7, %v6061_v5  ;;  %v6062_v37 = vadd.f32 %v13963_v56, %v5890_v57  ;;  %v10547_v57 = vld [vmem:[%s15747_s27 + $0x90] sm:$0xff] }
 0xbf3   :  { %v6130_v3 = vmul.f32 %v13968_v7, %v6064_v41  ;;  %v14075_v39 = vadd.f32 %v6129_v50, %v6096_v62  ;;  %v6104_v45 = vmul.f32 %v10547_v57, %v13965_v35 }
 0xbf4   :  { %v14071_v27 = vadd.f32 %v6127_v36, %v6094_v54  ;;  %v6128_v14 = vmul.f32 %v13968_v7, %v6062_v37 }
 0xbf5   :  { %v14086_v52 = vadd.f32 %v6130_v3, %v6097_v23  ;;  %v6213_v11 = vsel %vm250_vm0, %v14075_v39, 0.0  ;;  %v10548_v3 = vld [vmem:[%s15747_s27 + $0x98] sm:$0xff] }
 0xbf6   :  { %v14077_v51 = vadd.f32 %v6128_v14, %v6095_v32  ;;  %v9436_v42 = vpop.f32.mrb[116].mxu1  ;;  %v6207_v2 = vsel %vm250_vm0, %v14071_v27, 0.0  ;;  %v10546_v32 = vld [vmem:[%s15747_s27 + $0x88] sm:$0xff]  ;;  %v6105_v14 = vmul.f32 %v10548_v3, %v13965_v35 }
 0xbf7   :  { %v6067_v44 = vadd.f32 %v9436_v42, %v13963_v56  ;;  %6208 = vadd.xlane.f32.xlu0 %v6207_v2  ;;  %v5903_v9 = vpop.f32.mrb[117].mxu1  ;;  %v6216_v53 = vsel %vm250_vm0, %v14086_v52, 0.0  ;;  %v6103_v41 = vmul.f32 %v10546_v32, %v13965_v35 }
 0xbf8   :  { %v6065_v1 = vadd.f32 %v13963_v56, %v5903_v9  ;;  %v9437_v10 = vpop.f32.mrb[118].mxu1  ;;  %v6210_v24 = vsel %vm250_vm0, %v14077_v51, 0.0 }
 0xbf9   :  { %v6068_v20 = vadd.f32 %v9437_v10, %v13963_v56  ;;  %6211 = vadd.xlane.f32.xlu1 %v6210_v24  ;;  %v5906_v63 = vpop.f32.mrb[119].mxu1  ;;  %v6133_v19 = vmul.f32 %v13968_v7, %v6067_v44  ;;  %v10549_v24 = vld [vmem:[%s15747_s27 + $0xb0] sm:$0xff] }
 0xbfa   :  { %v6131_v16 = vmul.f32 %v13968_v7, %v6065_v1  ;;  %v6066_v26 = vadd.f32 %v13963_v56, %v5906_v63  ;;  %v6108_v28 = vmul.f32 %v10549_v24, %v13965_v35 }
 0xbfb   :  { %6214 = vadd.xlane.f32.xlu0 %v6213_v11  ;;  %v6134_v55 = vmul.f32 %v13968_v7, %v6068_v20  ;;  %v14115_v13 = vadd.f32 %v6133_v19, %v6100_v15  ;;  %v10550_v15 = vld [vmem:[%s15747_s27 + $0xa0] sm:$0xff]  ;;  %v10551_v11 = vld [vmem:[%s15747_s27 + $0xb8] sm:$0xff] }
 0xbfc   :  { %v14109_v18 = vadd.f32 %v6131_v16, %v6098_v48  ;;  %v6132_v17 = vmul.f32 %v13968_v7, %v6066_v26  ;;  %v6106_v20 = vmul.f32 %v10550_v15, %v13965_v35  ;;  %v6109_v43 = vmul.f32 %v10551_v11, %v13965_v35  ;;  %v10554_v11 = vld [vmem:[%s15747_s27 + $0xd0] sm:$0xff] }
 0xbfd   :  { %6217 = vadd.xlane.f32.xlu1 %v6216_v53  ;;  %16082 = vst [vmem:[#allocation56_spill] sm:$0xff] %v14115_v13  ;;  %v14126_v54 = vadd.f32 %v6134_v55, %v6101_v0  ;;  %v6225_v23 = vsel %vm250_vm0, %v14115_v13, 0.0  ;;  %v10552_v53 = vld [vmem:[%s15747_s27 + $0xa8] sm:$0xff] }
 0xbfe   :  { %16081 = vst [vmem:[#allocation9_spill] sm:$0xff] %v14109_v18  ;;  %v14117_v6 = vadd.f32 %v6132_v17, %v6099_v30  ;;  %v9456_v49 = vpop.f32.mrb[88].mxu0  ;;  %v6219_v25 = vsel %vm250_vm0, %v14109_v18, 0.0 }
 0xbff   :  { %v6071_v33 = vadd.f32 %v9456_v49, %v13963_v56  ;;  %6220 = vadd.xlane.f32.xlu0 %v6219_v25  ;;  %v5952_v31 = vpop.f32.mrb[89].mxu0  ;;  %16084 = vst [vmem:[#allocation34_spill] sm:$0xff] %v14126_v54  ;;  %v6228_v9 = vsel %vm250_vm0, %v14126_v54, 0.0  ;;  %v6107_v49 = vmul.f32 %v10552_v53, %v13965_v35  ;;  %v10555_v53 = vld [vmem:[%s15747_s27 + $0xc8] sm:$0xff] }
 0xc00   :  { %16083 = vst [vmem:[#allocation27_spill] sm:$0xff] %v14117_v6  ;;  %v6069_v5 = vadd.f32 %v13963_v56, %v5952_v31  ;;  %v9457_v22 = vpop.f32.mrb[90].mxu0  ;;  %v6222_v34 = vsel %vm250_vm0, %v14117_v6, 0.0 }
 0xc01   :  { %v6072_v62 = vadd.f32 %v9457_v22, %v13963_v56  ;;  %6223 = vadd.xlane.f32.xlu1 %v6222_v34  ;;  %v5955_v50 = vpop.f32.mrb[91].mxu0  ;;  %v6137_v36 = vmul.f32 %v13968_v7, %v6071_v33 }
 0xc02   :  { %v6135_v37 = vmul.f32 %v13968_v7, %v6069_v5  ;;  %v6070_v47 = vadd.f32 %v13963_v56, %v5955_v50 }
 0xc03   :  { %6226 = vadd.xlane.f32.xlu0 %v6225_v23  ;;  %v6138_v2 = vmul.f32 %v13968_v7, %v6072_v62  ;;  %v14155_v40 = vadd.f32 %v6137_v36, %v6104_v45 }
 0xc04   :  { %v14149_v42 = vadd.f32 %v6135_v37, %v6102_v12  ;;  %v6136_v44 = vmul.f32 %v13968_v7, %v6070_v47 }
 0xc05   :  { %6229 = vadd.xlane.f32.xlu1 %v6228_v9  ;;  %16086 = vst [vmem:[#allocation11_spill] sm:$0xff] %v14155_v40  ;;  %v14170_v63 = vadd.f32 %v6138_v2, %v6105_v14  ;;  %v6237_v31 = vsel %vm250_vm0, %v14155_v40, 0.0 }
 0xc06   :  { %16085 = vst [vmem:[#allocation55_spill] sm:$0xff] %v14149_v42  ;;  %v14157_v48 = vadd.f32 %v6136_v44, %v6103_v41  ;;  %v9460_v1 = vpop.f32.mrb[92].mxu0  ;;  %v6231_v10 = vsel %vm250_vm0, %v14149_v42, 0.0 }
 0xc07   :  { %v6075_v30 = vadd.f32 %v9460_v1, %v13963_v56  ;;  %6232 = vadd.xlane.f32.xlu0 %v6231_v10  ;;  %v5968_v58 = vpop.f32.mrb[93].mxu0  ;;  %16088 = vst [vmem:[#allocation58_spill] sm:$0xff] %v14170_v63  ;;  %v6240_v34 = vsel %vm250_vm0, %v14170_v63, 0.0 }
 0xc08   :  { %16087 = vst [vmem:[#allocation33_spill] sm:$0xff] %v14157_v48  ;;  %v6073_v19 = vadd.f32 %v13963_v56, %v5968_v58  ;;  %v9461_v16 = vpop.f32.mrb[94].mxu0  ;;  %v6234_v26 = vsel %vm250_vm0, %v14157_v48, 0.0 }
 0xc09   :  { %v6141_v0 = vmul.f32 %v13968_v7, %v6075_v30  ;;  %v6076_v55 = vadd.f32 %v9461_v16, %v13963_v56  ;;  %6235 = vadd.xlane.f32.xlu1 %v6234_v26  ;;  %v5971_v17 = vpop.f32.mrb[95].mxu0  ;;  %v10553_v16 = vld [vmem:[%s15747_s27 + $0xc0] sm:$0xff] }
 0xc0a   :  { %v6139_v25 = vmul.f32 %v13968_v7, %v6073_v19  ;;  %v6074_v33 = vadd.f32 %v13963_v56, %v5971_v17  ;;  %v6110_v26 = vmul.f32 %v10553_v16, %v13965_v35 }
 0xc0b   :  { %v14189_v61 = vadd.f32 %v6141_v0, %v6108_v28  ;;  %v6142_v12 = vmul.f32 %v13968_v7, %v6076_v55  ;;  %6238 = vadd.xlane.f32.xlu0 %v6237_v31 }
 0xc0c   :  { %v14192_v5 = vadd.f32 %v6139_v25, %v6106_v20  ;;  %v6140_v22 = vmul.f32 %v13968_v7, %v6074_v33 }
 0xc0d   :  { %16089 = vst [vmem:[#allocation36_spill] sm:$0xff] %v14189_v61  ;;  %v14197_v32 = vadd.f32 %v6142_v12, %v6109_v43  ;;  %6241 = vadd.xlane.f32.xlu1 %v6240_v34  ;;  %v6112_v43 = vmul.f32 %v10554_v11, %v13965_v35 }
 0xc0e   :  { %16090 = vst [vmem:[#allocation57_spill] sm:$0xff] %v14192_v5  ;;  %v14199_v41 = vadd.f32 %v6140_v22, %v6107_v49  ;;  %v6243_v28 = vsel %vm250_vm0, %v14192_v5, 0.0  ;;  %v6111_v49 = vmul.f32 %v10555_v53, %v13965_v35  ;;  %v10556_v22 = vld [vmem:[%s15747_s27 + $0xd8] sm:$0xff] }
 0xc0f   :  { %16091 = vst [vmem:[#allocation39_spill] sm:$0xff] %v14197_v32  ;;  %v6113_v34 = vmul.f32 %v10556_v22, %v13965_v35 }
 0xc10   :  { %16092 = vst [vmem:[#allocation35_spill] sm:$0xff] %v14199_v41  ;;  %v6246_v58 = vsel %vm250_vm0, %v14199_v41, 0.0 }
 0xc64   :  { %v6185_v57 = vpop.xlane.xlu0 %6184 }
 0xc65   :  { %v6279_v45 = vmul.f32 0.015625, %v6185_v57 }
 0xc66   :  { %v6188_v62 = vpop.xlane.xlu1 %6187 }
 0xc67   :  { %v14202_v50 = vsub.f32 %v13991_v4, %v6279_v45  ;;  %v6280_v36 = vmul.f32 0.015625, %v6188_v62 }
 0xc68   :  { %v6191_v37 = vpop.xlane.xlu0 %6190 }
 0xc69   :  { %v14205_v47 = vsub.f32 %v13997_v8, %v6280_v36  ;;  %v6281_v23 = vmul.f32 0.015625, %v6191_v37  ;;  %v6343_v3 = vmul.f32 %v14202_v50, %v14202_v50  ;;  %v6249_v37 = vsel %vm250_vm0, %v14189_v61, 0.0 }
 0xc6a   :  { %v6194_v14 = vpop.xlane.xlu1 %6193 }
 0xc6b   :  { %v14210_v2 = vsub.f32 %v13995_v46, %v6281_v23  ;;  %v6282_v44 = vmul.f32 0.015625, %v6194_v14  ;;  %v6375_v9 = vsel %vm250_vm0, %v6343_v3, 0.0  ;;  %v6344_v1 = vmul.f32 %v14205_v47, %v14205_v47 }
 0xc6c   :  { %6376 = vadd.xlane.f32.xlu0 %v6375_v9 }
 0xc6d   :  { %v14216_v10 = vsub.f32 %v14001_v59, %v6282_v44  ;;  %v6378_v24 = vsel %vm250_vm0, %v6344_v1, 0.0  ;;  %v6345_v30 = vmul.f32 %v14210_v2, %v14210_v2 }
 0xc6e   :  { %6379 = vadd.xlane.f32.xlu1 %v6378_v24 }
 0xc6f   :  { %v6346_v15 = vmul.f32 %v14216_v10, %v14216_v10  ;;  %v6381_v19 = vsel %vm250_vm0, %v6345_v30, 0.0 }
 0xc70   :  { %6244 = vadd.xlane.f32.xlu0 %v6243_v28  ;;  %v6252_v28 = vsel %vm250_vm0, %v14197_v32, 0.0 }
 0xc71   :  { %v6384_v12 = vsel %vm250_vm0, %v6346_v15, 0.0 }
 0xc72   :  { %6247 = vadd.xlane.f32.xlu1 %v6246_v58 }
 0xc73   :  { %v9464_v20 = vpop.f32.mrb[96].mxu0 }
 0xc74   :  { %v6079_v0 = vadd.f32 %v9464_v20, %v13963_v56  ;;  %v5984_v55 = vpop.f32.mrb[97].mxu0  ;;  %6382 = vadd.xlane.f32.xlu0 %v6381_v19  ;;  %v6197_v17 = vpop.xlane.xlu0 %6196 }
 0xc75   :  { %v6077_v25 = vadd.f32 %v13963_v56, %v5984_v55  ;;  %v6283_v33 = vmul.f32 0.015625, %v6197_v17  ;;  %v9465_v31 = vpop.f32.mrb[98].mxu0 }
 0xc76   :  { %v6145_v57 = vmul.f32 %v13968_v7, %v6079_v0  ;;  %v6080_v45 = vadd.f32 %v9465_v31, %v13963_v56  ;;  %v6200_v62 = vpop.xlane.xlu1 %6199  ;;  %6385 = vadd.xlane.f32.xlu1 %v6384_v12  ;;  %v5987_v36 = vpop.f32.mrb[99].mxu0 }
 0xc77   :  { %v6143_v23 = vmul.f32 %v13968_v7, %v6077_v25  ;;  %v14253_v3 = vsub.f32 %v14031_v29, %v6283_v33  ;;  %v6284_v14 = vmul.f32 0.015625, %v6200_v62  ;;  %v6078_v44 = vadd.f32 %v13963_v56, %v5987_v36  ;;  %v10558_v62 = vld [vmem:[%s15747_s27 + $0xf0] sm:$0xff] }
 0xc78   :  { %v14256_v9 = vadd.f32 %v6145_v57, %v6112_v43  ;;  %v6146_v1 = vmul.f32 %v13968_v7, %v6080_v45  ;;  %6250 = vadd.xlane.f32.xlu0 %v6249_v37  ;;  %v6203_v24 = vpop.xlane.xlu0 %6202  ;;  %v10557_v57 = vld [vmem:[%s15747_s27 + $0xe0] sm:$0xff]  ;;  %v6116_v36 = vmul.f32 %v10558_v62, %v13965_v35 }
 0xc79   :  { %v14261_v30 = vadd.f32 %v6143_v23, %v6110_v26  ;;  %v14264_v58 = vsub.f32 %v14037_v21, %v6284_v14  ;;  %v6144_v15 = vmul.f32 %v13968_v7, %v6078_v44  ;;  %v6285_v20 = vmul.f32 0.015625, %v6203_v24  ;;  %v10559_v24 = vld [vmem:[%s15747_s27 + $0xe8] sm:$0xff] }
 0xc7a   :  { %16093 = vst [vmem:[#allocation60_spill] sm:$0xff] %v14256_v9  ;;  %v14267_v19 = vadd.f32 %v6146_v1, %v6113_v34  ;;  %v6206_v16 = vpop.xlane.xlu1 %6205  ;;  %6253 = vadd.xlane.f32.xlu1 %v6252_v28  ;;  %v6347_v11 = vmul.f32 %v14253_v3, %v14253_v3  ;;  %v9669_v34 = vld [vmem:[%s15519_s15 + $0x4] ss:$8 sps:$4 sm:$0xff]   ;;  %v6114_v45 = vmul.f32 %v10557_v57, %v13965_v35  ;;  %v9667_v1 = vld [vmem:[%s15519_s15] ss:$8 sps:$4 sm:$0xff]  }
 0xc7b   :  { %16094 = vst [vmem:[#allocation38_spill] sm:$0xff] %v14261_v30  ;;  %v14271_v43 = vadd.f32 %v6144_v15, %v6111_v49  ;;  %v6286_v0 = vmul.f32 0.015625, %v6206_v16  ;;  %v6348_v26 = vmul.f32 %v14264_v58, %v14264_v58  ;;  %v14276_v55 = vsub.f32 %v14035_v38, %v6285_v20  ;;  %6790 = vmatprep.subr.bf16.mxu1 %v9669_v34 }
 0xc7c   :  { %16095 = vst [vmem:[#allocation59_spill] sm:$0xff] %v14267_v19  ;;  %v6387_v17 = vsel %vm250_vm0, %v6347_v11, 0.0  ;;  %v6255_v49 = vsel %vm250_vm0, %v14261_v30, 0.0  ;;  %v6115_v28 = vmul.f32 %v10559_v24, %v13965_v35  ;;  %6791 = vmatpush1.bf16.msra.mxu1 %v9667_v1 }
 0xc7d   :  { %16096 = vst [vmem:[#allocation37_spill] sm:$0xff] %v14271_v43  ;;  %v14280_v53 = vsub.f32 %v14041_v60, %v6286_v0  ;;  %6388 = vadd.xlane.f32.xlu0 %v6387_v17  ;;  %v6390_v25 = vsel %vm250_vm0, %v6348_v26, 0.0  ;;  %v6349_v33 = vmul.f32 %v14276_v55, %v14276_v55  ;;  %v6258_v31 = vsel %vm250_vm0, %v14271_v43, 0.0  ;;  %v10560_v0 = vld [vmem:[%s15747_s27 + $0xf8] sm:$0xff] }
 0xc7e   :  { %6391 = vadd.xlane.f32.xlu1 %v6390_v25  ;;  %v6117_v26 = vmul.f32 %v10560_v0, %v13965_v35  ;;  %v9672_v35 = vld [vmem:[%s15519_s15 + $0x14] ss:$8 sps:$4 sm:$0xff]  }
 0xc7f   :  { %v6350_v12 = vmul.f32 %v14280_v53, %v14280_v53  ;;  %v6393_v14 = vsel %vm250_vm0, %v6349_v33, 0.0  ;;  %6792 = vmatprep.subr.bf16.mxu1 %v9672_v35 }
 0xc81   :  { %6256 = vadd.xlane.f32.xlu0 %v6255_v49  ;;  %v6396_v11 = vsel %vm250_vm0, %v6350_v12, 0.0 }
 0xc82   :  { %6259 = vadd.xlane.f32.xlu1 %v6258_v31 }
 0xc83   :  { %v9468_v22 = vpop.f32.mrb[100].mxu0 }
 0xc84   :  { %v6083_v37 = vadd.f32 %v9468_v22, %v13963_v56  ;;  %v6000_v23 = vpop.f32.mrb[101].mxu0  ;;  %v6209_v44 = vpop.xlane.xlu0 %6208 }
 0xc85   :  { %v6081_v15 = vadd.f32 %v13963_v56, %v6000_v23  ;;  %6394 = vadd.xlane.f32.xlu0 %v6393_v14  ;;  %v6287_v20 = vmul.f32 0.015625, %v6209_v44  ;;  %v9469_v16 = vpop.f32.mrb[102].mxu0  ;;  %v6264_v14 = vsel %vm250_vm0, %v14267_v19, 0.0  ;;  %v9670_v44 = vld [vmem:[%s15519_s15 + $0x10] ss:$8 sps:$4 sm:$0xff]  }
 0xc86   :  { %v6149_v17 = vmul.f32 %v13968_v7, %v6083_v37  ;;  %v6084_v25 = vadd.f32 %v9469_v16, %v13963_v56  ;;  %v6212_v49 = vpop.xlane.xlu1 %6211  ;;  %6397 = vadd.xlane.f32.xlu1 %v6396_v11  ;;  %v6003_v33 = vpop.f32.mrb[103].mxu0  ;;  %v6261_v37 = vsel %vm250_vm0, %v14256_v9, 0.0  ;;  %6793 = vmatpush1.bf16.msra.mxu1 %v9670_v44 }
 0xc87   :  { %v6147_v31 = vmul.f32 %v13968_v7, %v6081_v15  ;;  %v14321_v22 = vsub.f32 %v14071_v27, %v6287_v20  ;;  %v6288_v12 = vmul.f32 0.015625, %v6212_v49  ;;  %v6082_v34 = vadd.f32 %v13963_v56, %v6003_v33  ;;  %v9673_v49 = vld [vmem:[%s15519_s15 + $0x20] ss:$8 sps:$4 sm:$0xff]  }
 0xc88   :  { %v14327_v57 = vadd.f32 %v6149_v17, %v6116_v36  ;;  %v6150_v62 = vmul.f32 %v13968_v7, %v6084_v25  ;;  %v6215_v23 = vpop.xlane.xlu0 %6214 }
 0xc89   :  { %v14337_v56 = vadd.f32 %v6147_v31, %v6114_v45  ;;  %v14340_v1 = vsub.f32 %v14077_v51, %v6288_v12  ;;  %v6148_v36 = vmul.f32 %v13968_v7, %v6082_v34  ;;  %6262 = vadd.xlane.f32.xlu0 %v6261_v37  ;;  %v6289_v24 = vmul.f32 0.015625, %v6215_v23  ;;  %v9675_v7 = vld [vmem:[%s15519_s15 + $0x24] ss:$8 sps:$4 sm:$0xff]   ;;  %v9678_v12 = vld [vmem:[%s15519_s15 + $0x34] ss:$8 sps:$4 sm:$0xff]  }
 0xc8a   :  { %16097 = vst [vmem:[#allocation83_spill] sm:$0xff] %v14327_v57  ;;  %v14343_v15 = vadd.f32 %v6150_v62, %v6117_v26  ;;  %v6218_v20 = vpop.xlane.xlu1 %6217  ;;  %6265 = vadd.xlane.f32.xlu1 %v6264_v14  ;;  %v6351_v16 = vmul.f32 %v14321_v22, %v14321_v22  ;;  %6794 = vmatprep.subr.bf16.mxu1 %v9675_v7  ;;  %v9676_v23 = vld [vmem:[%s15519_s15 + $0x30] ss:$8 sps:$4 sm:$0xff]  }
 0xc8b   :  { %16098 = vst [vmem:[#allocation82_spill] sm:$0xff] %v14337_v56  ;;  %v14347_v11 = vadd.f32 %v6148_v36, %v6115_v28  ;;  %v6290_v45 = vmul.f32 0.015625, %v6218_v20  ;;  %v6352_v0 = vmul.f32 %v14340_v1, %v14340_v1  ;;  %v14355_v17 = vsub.f32 %v14075_v39, %v6289_v24  ;;  %6795 = vmatpush1.bf16.msra.mxu1 %v9673_v49 }
 0xc8c   :  { %16099 = vst [vmem:[#allocation42_spill] sm:$0xff] %v14343_v15  ;;  %v6399_v26 = vsel %vm250_vm0, %v6351_v16, 0.0  ;;  %v6221_v25 = vpop.xlane.xlu0 %6220  ;;  %v6267_v35 = vsel %vm250_vm0, %v14337_v56, 0.0  ;;  %6796 = vmatprep.subr.bf16.mxu1 %v9678_v12  ;;  %v15719_v49 = vmov 0  }
 0xc8d   :  { %16100 = vst [vmem:[#allocation41_spill] sm:$0xff] %v14347_v11  ;;  %v14362_v28 = vsub.f32 %v14086_v52, %v6290_v45  ;;  %6400 = vadd.xlane.f32.xlu0 %v6399_v26  ;;  %v6402_v33 = vsel %vm250_vm0, %v6352_v0, 0.0  ;;  %v6291_v34 = vmul.f32 0.015625, %v6221_v25  ;;  %v6353_v37 = vmul.f32 %v14355_v17, %v14355_v17  ;;  %6822 = vmatprep.mubr.bf16.mxu1 %v15719_v49 }
 0xc8e   :  { %v6224_v31 = vpop.xlane.xlu1 %6223  ;;  %6403 = vadd.xlane.f32.xlu1 %v6402_v33  ;;  %v6270_v44 = vsel %vm250_vm0, %v14347_v11, 0.0 }
 0xc8f   :  { %v6292_v14 = vmul.f32 0.015625, %v6224_v31  ;;  %v6354_v36 = vmul.f32 %v14362_v28, %v14362_v28  ;;  %6797 = vmatpush1.bf16.msra.mxu1 %v9676_v23  ;;  %v14380_v20 = vsub.f32 %v14109_v18, %v6291_v34  ;;  %v6405_v45 = vsel %vm250_vm0, %v6353_v37, 0.0 }
 0xc90   :  { %v6227_v62 = vpop.xlane.xlu0 %6226  ;;  %v6273_v34 = vsel %vm250_vm0, %v14327_v57, 0.0 }
 0xc91   :  { %6268 = vadd.xlane.f32.xlu0 %v6267_v35  ;;  %v6293_v16 = vmul.f32 0.015625, %v6227_v62  ;;  %v14384_v7 = vsub.f32 %v14117_v6, %v6292_v14  ;;  %v6408_v25 = vsel %vm250_vm0, %v6354_v36, 0.0  ;;  %v6355_v35 = vmul.f32 %v14380_v20, %v14380_v20 }
 0xc92   :  { %v6230_v24 = vpop.xlane.xlu1 %6229  ;;  %6271 = vadd.xlane.f32.xlu1 %v6270_v44  ;;  %v6276_v14 = vsel %vm250_vm0, %v14343_v15, 0.0 }
 0xc93   :  { %v6294_v26 = vmul.f32 0.015625, %v6230_v24  ;;  %v14389_v31 = vsub.f32 %v14115_v13, %v6293_v16  ;;  %v6356_v44 = vmul.f32 %v14384_v7, %v14384_v7 }
 0xc94   :  { %v6233_v0 = vpop.xlane.xlu0 %6232 }
 0xc95   :  { %6406 = vadd.xlane.f32.xlu0 %v6405_v45  ;;  %v6295_v12 = vmul.f32 0.015625, %v6233_v0  ;;  %v14396_v62 = vsub.f32 %v14126_v54, %v6294_v26  ;;  %v6411_v45 = vsel %vm250_vm0, %v6355_v35, 0.0  ;;  %v6357_v0 = vmul.f32 %v14389_v31, %v14389_v31 }
 0xc96   :  { %v6236_v33 = vpop.xlane.xlu1 %6235  ;;  %6409 = vadd.xlane.f32.xlu1 %v6408_v25 }
 0xc97   :  { %v6296_v37 = vmul.f32 0.015625, %v6236_v33  ;;  %v14403_v24 = vsub.f32 %v14149_v42, %v6295_v12  ;;  %v6414_v33 = vsel %vm250_vm0, %v6356_v44, 0.0 }
 0xc98   :  { %v6239_v23 = vpop.xlane.xlu0 %6238 }
 0xc99   :  { %6274 = vadd.xlane.f32.xlu0 %v6273_v34  ;;  %v6297_v16 = vmul.f32 0.015625, %v6239_v23  ;;  %v14409_v26 = vsub.f32 %v14157_v48, %v6296_v37  ;;  %v6358_v34 = vmul.f32 %v14396_v62, %v14396_v62  ;;  %v6417_v23 = vsel %vm250_vm0, %v6357_v0, 0.0 }
 0xc9a   :  { %v6242_v36 = vpop.xlane.xlu1 %6241  ;;  %6277 = vadd.xlane.f32.xlu1 %v6276_v14  ;;  %v6359_v35 = vmul.f32 %v14403_v24, %v14403_v24 }
 0xc9b   :  { %v6298_v25 = vmul.f32 0.015625, %v6242_v36  ;;  %v14415_v12 = vsub.f32 %v14155_v40, %v6297_v16  ;;  %v6420_v37 = vsel %vm250_vm0, %v6358_v34, 0.0  ;;  %v6360_v44 = vmul.f32 %v14409_v26, %v14409_v26 }
 0xc9c   :  { %v6423_v36 = vsel %vm250_vm0, %v6359_v35, 0.0 }
 0xc9d   :  { %6412 = vadd.xlane.f32.xlu0 %v6411_v45  ;;  %v14421_v14 = vsub.f32 %v14170_v63, %v6298_v25  ;;  %v6361_v16 = vmul.f32 %v14415_v12, %v14415_v12  ;;  %v6426_v45 = vsel %vm250_vm0, %v6360_v44, 0.0 }
 0xc9e   :  { %6415 = vadd.xlane.f32.xlu1 %v6414_v33 }
 0xc9f   :  { %v6362_v0 = vmul.f32 %v14421_v14, %v14421_v14  ;;  %v6429_v25 = vsel %vm250_vm0, %v6361_v16, 0.0 }
 0xca1   :  { %6418 = vadd.xlane.f32.xlu0 %v6417_v23  ;;  %v6432_v33 = vsel %vm250_vm0, %v6362_v0, 0.0 }
 0xca2   :  { %6421 = vadd.xlane.f32.xlu1 %v6420_v37 }
 0xca5   :  { %6424 = vadd.xlane.f32.xlu0 %v6423_v36 }
 0xca6   :  { %6427 = vadd.xlane.f32.xlu1 %v6426_v45 }
 0xca9   :  { %6430 = vadd.xlane.f32.xlu0 %v6429_v25 }
 0xcaa   :  { %6433 = vadd.xlane.f32.xlu1 %v6432_v33 }
 0xcf9   :  { %v6377_v34 = vpop.xlane.xlu0 %6376 }
 0xcfa   :  { %v6471_v23 = vmul.f32 0.015625, %v6377_v34 }
 0xcfb   :  { %v6380_v37 = vpop.xlane.xlu1 %6379 }
 0xcfc   :  { %v6503_v35 = vadd.f32 1e-05, %v6471_v23  ;;  %v6472_v49 = vmul.f32 0.015625, %v6380_v37 }
 0xcfd   :  { %v6245_v63 = vpop.xlane.xlu0 %6244 }
 0xcfe   :  { %10335 = vrsqrt.f32 %v6503_v35  ;;  %v6504_v36 = vadd.f32 1e-05, %v6472_v49  ;;  %v6299_v40 = vmul.f32 0.015625, %v6245_v63 }
 0xcff   :  { %v6248_v44 = vpop.xlane.xlu1 %6247 }
 0xd00   :  { %10337 = vrsqrt.f32 %v6504_v36  ;;  %v14435_v48 = vsub.f32 %v14192_v5, %v6299_v40  ;;  %v6300_v45 = vmul.f32 0.015625, %v6248_v44 }
 0xd01   :  { %v6383_v16 = vpop.xlane.xlu0 %6382 }
 0xd02   :  { %v14438_v25 = vsub.f32 %v14199_v41, %v6300_v45  ;;  %v6473_v0 = vmul.f32 0.015625, %v6383_v16  ;;  %v6363_v33 = vmul.f32 %v14435_v48, %v14435_v48 }
 0xd03   :  { %v6386_v34 = vpop.xlane.xlu1 %6385 }
 0xd04   :  { %v6505_v23 = vadd.f32 1e-05, %v6473_v0  ;;  %v6474_v37 = vmul.f32 0.015625, %v6386_v34  ;;  %v6435_v49 = vsel %vm250_vm0, %v6363_v33, 0.0  ;;  %v6364_v63 = vmul.f32 %v14438_v25, %v14438_v25  ;;  %v14449_v0 = vld [vmem:[%s15517_s13] ss:$0 sm:$0xff] }
 0xd05   :  { %6436 = vadd.xlane.f32.xlu0 %v6435_v49  ;;  %v6251_v40 = vpop.xlane.xlu0 %6250 }
 0xd06   :  { %10339 = vrsqrt.f32 %v6505_v23  ;;  %v6506_v35 = vadd.f32 1e-05, %v6474_v37  ;;  %v6301_v36 = vmul.f32 0.015625, %v6251_v40  ;;  %v6438_v44 = vsel %vm250_vm0, %v6364_v63, 0.0 }
 0xd07   :  { %v6254_v45 = vpop.xlane.xlu1 %6253  ;;  %6439 = vadd.xlane.f32.xlu1 %v6438_v44 }
 0xd08   :  { %v10336_v16 = vpop.eup %10335  ;;  %10341 = vrsqrt.f32 %v6506_v35  ;;  %v14452_v33 = vsub.f32 %v14189_v61, %v6301_v36  ;;  %v6302_v34 = vmul.f32 0.015625, %v6254_v45  ;;  %v14465_v36 = vld [vmem:[%s15518_s14] ss:$0 sm:$0xff] }
 0xd09   :  { %v6567_v49 = vmul.f32 %v10336_v16, %v14202_v50 }
 0xd0a   :  { %v10338_v23 = vpop.eup %10337  ;;  %v14456_v37 = vsub.f32 %v14197_v32, %v6302_v34  ;;  %v6389_v63 = vpop.xlane.xlu0 %6388  ;;  %v6365_v40 = vmul.f32 %v14452_v33, %v14452_v33 }
 0xd0b   :  { %v6605_v44 = vmul.f32 %v14449_v0, %v6567_v49  ;;  %v6568_v41 = vmul.f32 %v10338_v23, %v14205_v47  ;;  %v6475_v5 = vmul.f32 0.015625, %v6389_v63  ;;  %v6392_v35 = vpop.xlane.xlu1 %6391 }
 0xd0c   :  { %v6476_v50 = vmul.f32 0.015625, %v6392_v35  ;;  %v6441_v45 = vsel %vm250_vm0, %v6365_v40, 0.0  ;;  %v6366_v16 = vmul.f32 %v14456_v37, %v14456_v37 }
 0xd0d   :  { %v6606_v34 = vmul.f32 %v14449_v0, %v6568_v41  ;;  %v6507_v32 = vadd.f32 1e-05, %v6475_v5  ;;  %6442 = vadd.xlane.f32.xlu0 %v6441_v45  ;;  %v6643_v23 = vadd.f32 %v14465_v36, %v6605_v44 }
 0xd0e   :  { %v6508_v49 = vadd.f32 1e-05, %v6476_v50  ;;  %v6257_v61 = vpop.xlane.xlu0 %6256  ;;  %v6444_v47 = vsel %vm250_vm0, %v6366_v16, 0.0 }
 0xd0f   :  { %v6644_v63 = vadd.f32 %v14465_v36, %v6606_v34  ;;  %10343 = vrsqrt.f32 %v6507_v32  ;;  %v6303_v42 = vmul.f32 0.015625, %v6257_v61  ;;  %v6260_v35 = vpop.xlane.xlu1 %6259  ;;  %6445 = vadd.xlane.f32.xlu1 %v6444_v47  ;;  %v16101_v47 = vmov 0  }
 0xd10   :  { %v10340_v40 = vpop.eup %10339  ;;  %10345 = vrsqrt.f32 %v6508_v49  ;;  %v6304_v54 = vmul.f32 0.015625, %v6260_v35 }
 0xd11   :  { %v6569_v13 = vmul.f32 %v10340_v40, %v14210_v2  ;;  %v14476_v5 = vsub.f32 %v14261_v30, %v6303_v42  ;;  %v6675_v41 = vpack.c.bf16 %v6644_v63, %v6643_v23 }
 0xd12   :  { %v10342_v50 = vpop.eup %10341  ;;  %v14479_v45 = vsub.f32 %v14271_v43, %v6304_v54  ;;  %v6395_v44 = vpop.xlane.xlu0 %6394 }
 0xd13   :  { %v6570_v16 = vmul.f32 %v10342_v50, %v14216_v10  ;;  %v6477_v32 = vmul.f32 0.015625, %v6395_v44  ;;  %v6398_v61 = vpop.xlane.xlu1 %6397  ;;  %8197 = vmatmul.mubr.msk.bf16.vlgmr.msra.gmra.mrb[184].mxu1 %vm250_vm0, %v6675_v41  ;;  %v6367_v34 = vmul.f32 %v14476_v5, %v14476_v5  ;;  %v6607_v2 = vmul.f32 %v14449_v0, %v6569_v13 }
 0xd14   :  { %v6478_v49 = vmul.f32 0.015625, %v6398_v61  ;;  %v6368_v42 = vmul.f32 %v14479_v45, %v14479_v45  ;;  %6832 = vmatprep.mubr.bf16.mxu1 %v16101_v47 }
 0xd15   :  { %v6509_v54 = vadd.f32 1e-05, %v6477_v32  ;;  %v6447_v23 = vsel %vm250_vm0, %v6367_v34, 0.0  ;;  %v6608_v10 = vmul.f32 %v14449_v0, %v6570_v16  ;;  %v6645_v13 = vadd.f32 %v14465_v36, %v6607_v2 }
 0xd16   :  { %v6510_v63 = vadd.f32 1e-05, %v6478_v49  ;;  %6448 = vadd.xlane.f32.xlu0 %v6447_v23  ;;  %v6263_v35 = vpop.xlane.xlu0 %6262  ;;  %v6450_v40 = vsel %vm250_vm0, %v6368_v42, 0.0 }
 0xd17   :  { %10347 = vrsqrt.f32 %v6509_v54  ;;  %v6305_v41 = vmul.f32 0.015625, %v6263_v35  ;;  %v6266_v50 = vpop.xlane.xlu1 %6265  ;;  %6451 = vadd.xlane.f32.xlu1 %v6450_v40  ;;  %v6646_v44 = vadd.f32 %v14465_v36, %v6608_v10 }
 0xd18   :  { %10349 = vrsqrt.f32 %v6510_v63  ;;  %v6306_v61 = vmul.f32 0.015625, %v6266_v50 }
 0xd19   :  { %v10344_v32 = vpop.eup %10343  ;;  %v14495_v34 = vsub.f32 %v14256_v9, %v6305_v41  ;;  %v6676_v16 = vpack.c.bf16 %v6646_v44, %v6645_v13 }
 0xd1a   :  { %v10346_v49 = vpop.eup %10345  ;;  %v6571_v23 = vmul.f32 %v10344_v32, %v14253_v3  ;;  %v14499_v42 = vsub.f32 %v14267_v19, %v6306_v61  ;;  %v6401_v54 = vpop.xlane.xlu0 %6400 }
 0xd1b   :  { %v6572_v35 = vmul.f32 %v10346_v49, %v14264_v58  ;;  %v6479_v40 = vmul.f32 0.015625, %v6401_v54  ;;  %v6404_v2 = vpop.xlane.xlu1 %6403  ;;  %8198 = vmatmul.mubr.msk.bf16.gmra.mrb[188].mxu1 %vm250_vm0, %v6676_v16  ;;  %v6369_v10 = vmul.f32 %v14495_v34, %v14495_v34 }
 0xd1c   :  { %v6480_v63 = vmul.f32 0.015625, %v6404_v2  ;;  %v6370_v41 = vmul.f32 %v14499_v42, %v14499_v42  ;;  %6842 = vmatprep.mubr.bf16.mxu1 %v16101_v47  ;;  %v6609_v3 = vmul.f32 %v14449_v0, %v6571_v23 }
 0xd1d   :  { %v6511_v50 = vadd.f32 1e-05, %v6479_v40  ;;  %v6453_v13 = vsel %vm250_vm0, %v6369_v10, 0.0  ;;  %v6610_v58 = vmul.f32 %v14449_v0, %v6572_v35 }
 0xd1e   :  { %v6512_v44 = vadd.f32 1e-05, %v6480_v63  ;;  %6454 = vadd.xlane.f32.xlu0 %v6453_v13  ;;  %v6269_v61 = vpop.xlane.xlu0 %6268  ;;  %v6456_v32 = vsel %vm250_vm0, %v6370_v41, 0.0  ;;  %v6647_v54 = vadd.f32 %v14465_v36, %v6609_v3 }
 0xd1f   :  { %10351 = vrsqrt.f32 %v6511_v50  ;;  %v6307_v16 = vmul.f32 0.015625, %v6269_v61  ;;  %6457 = vadd.xlane.f32.xlu1 %v6456_v32  ;;  %v6272_v49 = vpop.xlane.xlu1 %6271  ;;  %v6648_v2 = vadd.f32 %v14465_v36, %v6610_v58 }
 0xd20   :  { %10353 = vrsqrt.f32 %v6512_v44  ;;  %v6308_v23 = vmul.f32 0.015625, %v6272_v49 }
 0xd21   :  { %v10348_v40 = vpop.eup %10347  ;;  %v14515_v10 = vsub.f32 %v14337_v56, %v6307_v16  ;;  %v6677_v35 = vpack.c.bf16 %v6648_v2, %v6647_v54 }
 0xd22   :  { %v10350_v63 = vpop.eup %10349  ;;  %v6573_v13 = vmul.f32 %v10348_v40, %v14276_v55  ;;  %v14519_v41 = vsub.f32 %v14347_v11, %v6308_v23  ;;  %v6407_v50 = vpop.xlane.xlu0 %6406 }
 0xd23   :  { %v6574_v61 = vmul.f32 %v10350_v63, %v14280_v53  ;;  %v6481_v32 = vmul.f32 0.015625, %v6407_v50  ;;  %v6410_v3 = vpop.xlane.xlu1 %6409  ;;  %8199 = vmatmul.mubr.msk.bf16.gmra.mrb[192].mxu1 %vm250_vm0, %v6677_v35  ;;  %v6371_v58 = vmul.f32 %v14515_v10, %v14515_v10 }
 0xd24   :  { %v6482_v44 = vmul.f32 0.015625, %v6410_v3  ;;  %v6372_v16 = vmul.f32 %v14519_v41, %v14519_v41  ;;  %6852 = vmatprep.mubr.bf16.mxu1 %v16101_v47  ;;  %v6611_v55 = vmul.f32 %v14449_v0, %v6573_v13 }
 0xd25   :  { %v6513_v49 = vadd.f32 1e-05, %v6481_v32  ;;  %v6459_v54 = vsel %vm250_vm0, %v6371_v58, 0.0  ;;  %v6612_v53 = vmul.f32 %v14449_v0, %v6574_v61 }
 0xd26   :  { %v6514_v2 = vadd.f32 1e-05, %v6482_v44  ;;  %6460 = vadd.xlane.f32.xlu0 %v6459_v54  ;;  %v6275_v23 = vpop.xlane.xlu0 %6274  ;;  %v6462_v40 = vsel %vm250_vm0, %v6372_v16, 0.0  ;;  %v6649_v50 = vadd.f32 %v14465_v36, %v6611_v55 }
 0xd27   :  { %10355 = vrsqrt.f32 %v6513_v49  ;;  %v6309_v35 = vmul.f32 0.015625, %v6275_v23  ;;  %6463 = vadd.xlane.f32.xlu1 %v6462_v40  ;;  %v6278_v63 = vpop.xlane.xlu1 %6277  ;;  %v6650_v3 = vadd.f32 %v14465_v36, %v6612_v53 }
 0xd28   :  { %10357 = vrsqrt.f32 %v6514_v2  ;;  %v6310_v13 = vmul.f32 0.015625, %v6278_v63 }
 0xd29   :  { %v10352_v32 = vpop.eup %10351  ;;  %v14535_v58 = vsub.f32 %v14327_v57, %v6309_v35  ;;  %v6678_v61 = vpack.c.bf16 %v6650_v3, %v6649_v50 }
 0xd2a   :  { %v10354_v44 = vpop.eup %10353  ;;  %v6575_v54 = vmul.f32 %v10352_v32, %v14321_v22  ;;  %v14539_v16 = vsub.f32 %v14343_v15, %v6310_v13  ;;  %v6413_v49 = vpop.xlane.xlu0 %6412 }
 0xd2b   :  { %v6576_v23 = vmul.f32 %v10354_v44, %v14340_v1  ;;  %v6483_v40 = vmul.f32 0.015625, %v6413_v49  ;;  %v6416_v55 = vpop.xlane.xlu1 %6415  ;;  %8200 = vmatmul.mubr.msk.bf16.gmra.mrb[196].mxu1 %vm250_vm0, %v6678_v61  ;;  %v6373_v53 = vmul.f32 %v14535_v58, %v14535_v58 }
 0xd2c   :  { %v6484_v2 = vmul.f32 0.015625, %v6416_v55  ;;  %v6374_v35 = vmul.f32 %v14539_v16, %v14539_v16  ;;  %6862 = vmatprep.mubr.bf16.mxu1 %v16101_v47  ;;  %v6613_v22 = vmul.f32 %v14449_v0, %v6575_v54 }
 0xd2d   :  { %v6515_v63 = vadd.f32 1e-05, %v6483_v40  ;;  %v6465_v50 = vsel %vm250_vm0, %v6373_v53, 0.0  ;;  %v6614_v1 = vmul.f32 %v14449_v0, %v6576_v23 }
 0xd2e   :  { %v6516_v3 = vadd.f32 1e-05, %v6484_v2  ;;  %6466 = vadd.xlane.f32.xlu0 %v6465_v50  ;;  %v6419_v13 = vpop.xlane.xlu0 %6418  ;;  %v6468_v32 = vsel %vm250_vm0, %v6374_v35, 0.0  ;;  %v6651_v49 = vadd.f32 %v14465_v36, %v6613_v22 }
 0xd2f   :  { %10359 = vrsqrt.f32 %v6515_v63  ;;  %v6485_v61 = vmul.f32 0.015625, %v6419_v13  ;;  %6469 = vadd.xlane.f32.xlu1 %v6468_v32  ;;  %v6422_v44 = vpop.xlane.xlu1 %6421  ;;  %v6652_v55 = vadd.f32 %v14465_v36, %v6614_v1 }
 0xd30   :  { %10361 = vrsqrt.f32 %v6516_v3  ;;  %v6486_v54 = vmul.f32 0.015625, %v6422_v44 }
 0xd31   :  { %v10356_v40 = vpop.eup %10355  ;;  %v6517_v15 = vadd.f32 1e-05, %v6485_v61  ;;  %v6679_v53 = vpack.c.bf16 %v6652_v55, %v6651_v49 }
 0xd32   :  { %v10358_v57 = vpop.eup %10357  ;;  %v6577_v23 = vmul.f32 %v10356_v40, %v14355_v17  ;;  %v6518_v2 = vadd.f32 1e-05, %v6486_v54  ;;  %v6425_v50 = vpop.xlane.xlu0 %6424 }
 0xd33   :  { %v6578_v35 = vmul.f32 %v10358_v57, %v14362_v28  ;;  %10363 = vrsqrt.f32 %v6517_v15  ;;  %v6487_v63 = vmul.f32 0.015625, %v6425_v50  ;;  %v6428_v13 = vpop.xlane.xlu1 %6427  ;;  %8201 = vmatmul.mubr.msk.bf16.gmra.mrb[200].mxu1 %vm250_vm0, %v6679_v53 }
 0xd34   :  { %10365 = vrsqrt.f32 %v6518_v2  ;;  %v6488_v22 = vmul.f32 0.015625, %v6428_v13  ;;  %6872 = vmatprep.mubr.bf16.mxu1 %v16101_v47  ;;  %v6615_v1 = vmul.f32 %v14449_v0, %v6577_v23 }
 0xd35   :  { %v6616_v3 = vmul.f32 %v14449_v0, %v6578_v35  ;;  %v6519_v32 = vadd.f32 1e-05, %v6487_v63 }
 0xd36   :  { %v6520_v61 = vadd.f32 1e-05, %v6488_v22  ;;  %v6431_v17 = vpop.xlane.xlu0 %6430  ;;  %v6653_v49 = vadd.f32 %v14465_v36, %v6615_v1 }
 0xd37   :  { %v6434_v44 = vpop.xlane.xlu1 %6433  ;;  %v6654_v57 = vadd.f32 %v14465_v36, %v6616_v3  ;;  %v6489_v53 = vmul.f32 0.015625, %v6431_v17 }
 0xd38   :  { %10367 = vrsqrt.f32 %v6520_v61  ;;  %v6490_v15 = vmul.f32 0.015625, %v6434_v44 }
 0xd39   :  { %v10360_v28 = vpop.eup %10359  ;;  %v6680_v55 = vpack.c.bf16 %v6654_v57, %v6653_v49  ;;  %10369 = vrsqrt.f32 %v6519_v32  ;;  %v6521_v22 = vadd.f32 1e-05, %v6489_v53 }
 0xd3a   :  { %v10362_v54 = vpop.eup %10361  ;;  %v6579_v40 = vmul.f32 %v10360_v28, %v14380_v20  ;;  %v6522_v2 = vadd.f32 1e-05, %v6490_v15 }
 0xd3b   :  { %v6580_v23 = vmul.f32 %v10362_v54, %v14384_v7  ;;  %8202 = vmatmul.mubr.msk.bf16.gmra.mrb[204].mxu1 %vm250_vm0, %v6680_v55 }
 0xd3c   :  { %6882 = vmatprep.mubr.bf16.mxu1 %v16101_v47  ;;  %v6617_v50 = vmul.f32 %v14449_v0, %v6579_v40  ;;  %10371 = vrsqrt.f32 %v6522_v2 }
 0xd3d   :  { %v10364_v35 = vpop.eup %10363  ;;  %v6618_v63 = vmul.f32 %v14449_v0, %v6580_v23  ;;  %10373 = vrsqrt.f32 %v6521_v22 }
 0xd3e   :  { %v10366_v13 = vpop.eup %10365  ;;  %v6581_v1 = vmul.f32 %v10364_v35, %v14389_v31  ;;  %v6655_v3 = vadd.f32 %v14465_v36, %v6617_v50 }
 0xd3f   :  { %v6582_v20 = vmul.f32 %v10366_v13, %v14396_v62  ;;  %v6656_v7 = vadd.f32 %v14465_v36, %v6618_v63 }
 0xd40   :  { %v6619_v44 = vmul.f32 %v14449_v0, %v6581_v1  ;;  %v9680_v1 = vld [vmem:[%s15521_s17] sm:$0xff]  }
 0xd41   :  { %v6681_v32 = vpack.c.bf16 %v6656_v7, %v6655_v3  ;;  %v6620_v61 = vmul.f32 %v14449_v0, %v6582_v20  ;;  %v9681_v20 = vld [vmem:[%s15521_s17 + $0x48] sm:$0xff]   ;;  %v9683_v7 = vld [vmem:[%s15521_s17 + $0x50] sm:$0xff]  }
 0xd42   :  { %v10368_v17 = vpop.eup %10367  ;;  %v6657_v15 = vadd.f32 %v14465_v36, %v6619_v44  ;;  %v9682_v3 = vld [vmem:[%s15521_s17 + $0x8] sm:$0xff]   ;;  %v9687_v44 = vld [vmem:[%s15521_s17 + $0x60] sm:$0xff]  }
 0xd43   :  { %8203 = vmatmul.mubr.msk.bf16.gmra.mrb[208].mxu1 %vm250_vm0, %v6681_v32  ;;  %v10370_v49 = vpop.eup %10369  ;;  %v6584_v31 = vmul.f32 %v10368_v17, %v14409_v26  ;;  %v6658_v62 = vadd.f32 %v14465_v36, %v6620_v61  ;;  %v9684_v32 = vld [vmem:[%s15521_s17 + $0x10] sm:$0xff]   ;;  %v9685_v61 = vld [vmem:[%s15521_s17 + $0x58] sm:$0xff]  }
 0xd44   :  { %6892 = vmatprep.mubr.bf16.mxu1 %v16101_v47  ;;  %v6583_v57 = vmul.f32 %v10370_v49, %v14403_v24  ;;  %v9686_v17 = vld [vmem:[%s15521_s17 + $0x18] sm:$0xff]   ;;  %v9688_v49 = vld [vmem:[%s15521_s17 + $0x20] sm:$0xff]  }
 0xd45   :  { %v6682_v28 = vpack.c.bf16 %v6658_v62, %v6657_v15  ;;  %v6622_v55 = vmul.f32 %v14449_v0, %v6584_v31  ;;  %v9689_v31 = vld [vmem:[%s15521_s17 + $0x68] sm:$0xff]   ;;  %v9692_v15 = vld [vmem:[%s15521_s17 + $0x30] sm:$0xff]  }
 0xd46   :  { %v10372_v54 = vpop.eup %10371  ;;  %v6621_v40 = vmul.f32 %v14449_v0, %v6583_v57  ;;  %v9690_v62 = vld [vmem:[%s15521_s17 + $0x28] sm:$0xff]   ;;  %v9691_v57 = vld [vmem:[%s15521_s17 + $0x70] sm:$0xff]  }
 0xd47   :  { %v10374_v53 = vpop.eup %10373  ;;  %v6586_v23 = vmul.f32 %v10372_v54, %v14421_v14  ;;  %v6660_v26 = vadd.f32 %v14465_v36, %v6622_v55  ;;  %v9694_v55 = vld [vmem:[%s15521_s17 + $0x38] sm:$0xff]  }
 0xd48   :  { %v6585_v2 = vmul.f32 %v10374_v53, %v14415_v12  ;;  %v6659_v24 = vadd.f32 %v14465_v36, %v6621_v40  ;;  %v9679_v12 = vld [vmem:[%s15521_s17 + $0x40] sm:$0xff]  }
 0xd49   :  { %v6624_v35 = vmul.f32 %v14449_v0, %v6586_v23  ;;  %8606 = vmatprep.subr.bf16.mxu0 %v9679_v12 }
 0xd4a   :  { %v6683_v50 = vpack.c.bf16 %v6660_v26, %v6659_v24  ;;  %v6623_v63 = vmul.f32 %v14449_v0, %v6585_v2  ;;  %8607 = vmatpush3.bf16.msra.mxu0 %v9680_v1 }
 0xd4b   :  { %8204 = vmatmul.mubr.msk.bf16.gmra.mrb[212].mxu1 %vm250_vm0, %v6682_v28  ;;  %v6662_v13 = vadd.f32 %v14465_v36, %v6624_v35  ;;  %8608 = vmatprep.subr.bf16.mxu0 %v9681_v20  ;;  %v9693_v28 = vld [vmem:[%s15521_s17 + $0x78] sm:$0xff]  }
 0xd4c   :  { %6902 = vmatprep.mubr.bf16.mxu1 %v16101_v47  ;;  %v6661_v22 = vadd.f32 %v14465_v36, %v6623_v63 }
 0xd4e   :  { %v6684_v14 = vpack.c.bf16 %v6662_v13, %v6661_v22  ;;  %8609 = vmatpush3.bf16.msra.mxu0 %v9682_v3 }
 0xd4f   :  { %8610 = vmatprep.subr.bf16.mxu0 %v9683_v7 }
 0xd52   :  { %8611 = vmatpush3.bf16.msra.mxu0 %v9684_v32 }
 0xd53   :  { %8205 = vmatmul.mubr.msk.bf16.gmra.mrb[216].mxu1 %vm250_vm0, %v6683_v50  ;;  %8612 = vmatprep.subr.bf16.mxu0 %v9685_v61 }
 0xd54   :  { %6912 = vmatprep.mubr.bf16.mxu1 %v16101_v47 }
 0xd56   :  { %8613 = vmatpush3.bf16.msra.mxu0 %v9686_v17 }
 0xd57   :  { %8614 = vmatprep.subr.bf16.mxu0 %v9687_v44 }
 0xd5a   :  { %8615 = vmatpush3.bf16.msra.mxu0 %v9688_v49 }
 0xd5b   :  { %8206 = vmatmul.mubr.msk.bf16.gmra.mrb[220].mxu1 %vm250_vm0, %v6684_v14  ;;  %8616 = vmatprep.subr.bf16.mxu0 %v9689_v31 }
 0xd5c   :  { %6922 = vmatprep.mubr.bf16.mxu1 %v16101_v47 }
 0xd5e   :  { %8617 = vmatpush3.bf16.msra.mxu0 %v9690_v62 }
 0xd5f   :  { %8618 = vmatprep.subr.bf16.mxu0 %v9691_v57 }
 0xd62   :  { %8619 = vmatpush3.bf16.msra.mxu0 %v9692_v15 }
 0xd63   :  { %8620 = vmatprep.subr.bf16.mxu0 %v9693_v28 }
 0xd66   :  { %8621 = vmatpush3.bf16.msra.mxu0 %v9694_v55 }
 0xd92   :  { %v6437_v54 = vpop.xlane.xlu0 %6436 }
 0xd93   :  { %v6491_v40 = vmul.f32 0.015625, %v6437_v54 }
 0xd94   :  { %v6440_v53 = vpop.xlane.xlu1 %6439 }
 0xd95   :  { %v6523_v23 = vadd.f32 1e-05, %v6491_v40  ;;  %v6492_v26 = vmul.f32 0.015625, %v6440_v53 }
 0xd97   :  { %10375 = vrsqrt.f32 %v6523_v23  ;;  %v6524_v2 = vadd.f32 1e-05, %v6492_v26 }
 0xd99   :  { %10377 = vrsqrt.f32 %v6524_v2 }
 0xd9a   :  { %v6443_v24 = vpop.xlane.xlu0 %6442 }
 0xd9b   :  { %v6493_v50 = vmul.f32 0.015625, %v6443_v24 }
 0xd9c   :  { %v6446_v35 = vpop.xlane.xlu1 %6445 }
 0xd9d   :  { %v6525_v63 = vadd.f32 1e-05, %v6493_v50  ;;  %v6494_v13 = vmul.f32 0.015625, %v6446_v35 }
 0xd9f   :  { %10379 = vrsqrt.f32 %v6525_v63  ;;  %v6526_v22 = vadd.f32 1e-05, %v6494_v13 }
 0xda1   :  { %v10376_v14 = vpop.eup %10375  ;;  %10381 = vrsqrt.f32 %v6526_v22 }
 0xda2   :  { %v6587_v12 = vmul.f32 %v10376_v14, %v14435_v48 }
 0xda3   :  { %v10378_v1 = vpop.eup %10377  ;;  %v6449_v20 = vpop.xlane.xlu0 %6448 }
 0xda4   :  { %v6588_v3 = vmul.f32 %v10378_v1, %v14438_v25  ;;  %v6495_v7 = vmul.f32 0.015625, %v6449_v20  ;;  %v6452_v32 = vpop.xlane.xlu1 %6451  ;;  %v6625_v61 = vmul.f32 %v14449_v0, %v6587_v12 }
 0xda5   :  { %v6496_v17 = vmul.f32 0.015625, %v6452_v32 }
 0xda6   :  { %v6527_v44 = vadd.f32 1e-05, %v6495_v7  ;;  %v6626_v49 = vmul.f32 %v14449_v0, %v6588_v3  ;;  %v6663_v62 = vadd.f32 %v14465_v36, %v6625_v61 }
 0xda7   :  { %v6528_v31 = vadd.f32 1e-05, %v6496_v17 }
 0xda8   :  { %10383 = vrsqrt.f32 %v6527_v44  ;;  %v6664_v57 = vadd.f32 %v14465_v36, %v6626_v49 }
 0xda9   :  { %v10380_v15 = vpop.eup %10379  ;;  %10385 = vrsqrt.f32 %v6528_v31 }
 0xdaa   :  { %v6589_v48 = vmul.f32 %v10380_v15, %v14452_v33  ;;  %v6685_v28 = vpack.c.bf16 %v6664_v57, %v6663_v62 }
 0xdab   :  { %v10382_v25 = vpop.eup %10381  ;;  %v6455_v55 = vpop.xlane.xlu0 %6454 }
 0xdac   :  { %v6590_v54 = vmul.f32 %v10382_v25, %v14456_v37  ;;  %v6497_v40 = vmul.f32 0.015625, %v6455_v55  ;;  %v6458_v53 = vpop.xlane.xlu1 %6457  ;;  %8207 = vmatmul.mubr.msk.bf16.gmra.mrb[224].mxu1 %vm250_vm0, %v6685_v28  ;;  %v6627_v23 = vmul.f32 %v14449_v0, %v6589_v48 }
 0xdad   :  { %v6498_v26 = vmul.f32 0.015625, %v6458_v53  ;;  %6932 = vmatprep.mubr.bf16.mxu1 %v16101_v47 }
 0xdae   :  { %v6529_v2 = vadd.f32 1e-05, %v6497_v40  ;;  %v6628_v24 = vmul.f32 %v14449_v0, %v6590_v54  ;;  %v6665_v33 = vadd.f32 %v14465_v36, %v6627_v23 }
 0xdaf   :  { %v6530_v50 = vadd.f32 1e-05, %v6498_v26 }
 0xdb0   :  { %10387 = vrsqrt.f32 %v6529_v2  ;;  %v6666_v35 = vadd.f32 %v14465_v36, %v6628_v24 }
 0xdb1   :  { %10389 = vrsqrt.f32 %v6530_v50 }
 0xdb2   :  { %v10384_v37 = vpop.eup %10383  ;;  %v6686_v63 = vpack.c.bf16 %v6666_v35, %v6665_v33 }
 0xdb3   :  { %v10386_v13 = vpop.eup %10385  ;;  %v6591_v22 = vmul.f32 %v10384_v37, %v14476_v5  ;;  %v6461_v14 = vpop.xlane.xlu0 %6460 }
 0xdb4   :  { %v6592_v12 = vmul.f32 %v10386_v13, %v14479_v45  ;;  %v6499_v1 = vmul.f32 0.015625, %v6461_v14  ;;  %v6464_v20 = vpop.xlane.xlu1 %6463  ;;  %8208 = vmatmul.mubr.msk.bf16.gmra.mrb[228].mxu1 %vm250_vm0, %v6686_v63 }
 0xdb5   :  { %v6500_v3 = vmul.f32 0.015625, %v6464_v20  ;;  %6942 = vmatprep.mubr.bf16.mxu1 %v16101_v47  ;;  %v6629_v7 = vmul.f32 %v14449_v0, %v6591_v22 }
 0xdb6   :  { %v6531_v32 = vadd.f32 1e-05, %v6499_v1  ;;  %v6630_v61 = vmul.f32 %v14449_v0, %v6592_v12 }
 0xdb7   :  { %v6532_v17 = vadd.f32 1e-05, %v6500_v3  ;;  %v6667_v44 = vadd.f32 %v14465_v36, %v6629_v7 }
 0xdb8   :  { %10391 = vrsqrt.f32 %v6531_v32  ;;  %v6668_v5 = vadd.f32 %v14465_v36, %v6630_v61  ;;  %v6692_v32 = vlaneseq }
 0xdb9   :  { %10393 = vrsqrt.f32 %v6532_v17 }
 0xdba   :  { %v10388_v45 = vpop.eup %10387  ;;  %v6687_v49 = vpack.c.bf16 %v6668_v5, %v6667_v44  ;;  %v6693_v61 = vshrl.u32 %v6692_v32, 7 }
 0xdbb   :  { %v10390_v31 = vpop.eup %10389  ;;  %v6593_v62 = vmul.f32 %v10388_v45, %v14495_v34  ;;  %v6467_v57 = vpop.xlane.xlu0 %6466 }
 0xdbc   :  { %v6594_v15 = vmul.f32 %v10390_v31, %v14499_v42  ;;  %v6501_v48 = vmul.f32 0.015625, %v6467_v57  ;;  %v6470_v28 = vpop.xlane.xlu1 %6469  ;;  %8209 = vmatmul.mubr.msk.bf16.gmra.mrb[232].mxu1 %vm250_vm0, %v6687_v49  ;;  %v6698_v17 = vsub.s32 1, %v6693_v61 }
 0xdbd   :  { %v6502_v25 = vmul.f32 0.015625, %v6470_v28  ;;  %6952 = vmatprep.mubr.bf16.mxu1 %v16101_v47  ;;  %v6631_v55 = vmul.f32 %v14449_v0, %v6593_v62 }
 0xdbe   :  { %v6533_v54 = vadd.f32 1e-05, %v6501_v48  ;;  %v6632_v40 = vmul.f32 %v14449_v0, %v6594_v15 }
 0xdbf   :  { %v6534_v53 = vadd.f32 1e-05, %v6502_v25  ;;  %v6669_v23 = vadd.f32 %v14465_v36, %v6631_v55 }
 0xdc0   :  { %10395 = vrsqrt.f32 %v6533_v54  ;;  %v6670_v34 = vadd.f32 %v14465_v36, %v6632_v40 }
 0xdc1   :  { %10397 = vrsqrt.f32 %v6534_v53 }
 0xdc2   :  { %v10392_v42 = vpop.eup %10391  ;;  %v6688_v26 = vpack.c.bf16 %v6670_v34, %v6669_v23 }
 0xdc3   :  { %v10394_v2 = vpop.eup %10393  ;;  %v6595_v24 = vmul.f32 %v10392_v42, %v14515_v10 }
 0xdc4   :  { %v6596_v50 = vmul.f32 %v10394_v2, %v14519_v41  ;;  %8210 = vmatmul.mubr.msk.bf16.gmra.mrb[236].mxu1 %vm250_vm0, %v6688_v26 }
 0xdc5   :  { %6962 = vmatprep.mubr.bf16.mxu1 %v16101_v47  ;;  %v6633_v33 = vmul.f32 %v14449_v0, %v6595_v24 }
 0xdc6   :  { %v6634_v35 = vmul.f32 %v14449_v0, %v6596_v50 }
 0xdc7   :  { %v6671_v37 = vadd.f32 %v14465_v36, %v6633_v33 }
 0xdc8   :  { %v6672_v63 = vadd.f32 %v14465_v36, %v6634_v35 }
 0xdca   :  { %v10396_v13 = vpop.eup %10395  ;;  %v6689_v22 = vpack.c.bf16 %v6672_v63, %v6671_v37 }
 0xdcb   :  { %v10398_v14 = vpop.eup %10397  ;;  %v6597_v12 = vmul.f32 %v10396_v13, %v14535_v58  ;;  %v6694_v58 = vsub.s32 0, %v6693_v61 }
 0xdcc   :  { %v6598_v10 = vmul.f32 %v10398_v14, %v14539_v16  ;;  %8211 = vmatmul.mubr.msk.bf16.gmra.mrb[240].mxu1 %vm250_vm0, %v6689_v22  ;;  %v216_v16 = vld [vmem:[%s15520_s16] sm:$0x3]  ;;  %s7990_s16 = sld [smem:[#allocation2 + $0x2]] }
 0xdcd   :  { %6972 = vmatprep.mubr.bf16.mxu1 %v16101_v47  ;;  %v6635_v41 = vmul.f32 %v14449_v0, %v6597_v12  ;;  %v14694_v47 = vrot.slane %v216_v16, %v6694_v58  ;;  %v14696_v44 = vrot.slane %v216_v16, %v6698_v17 }
 0xdce   :  { %v6636_v1 = vmul.f32 %v14449_v0, %v6598_v10 }
 0xdcf   :  { %v6673_v20 = vadd.f32 %v14465_v36, %v6635_v41 }
 0xdd0   :  { %v6674_v3 = vadd.f32 %v14465_v36, %v6636_v1 }
 0xdd2   :  { %v6690_v7 = vpack.c.bf16 %v6674_v3, %v6673_v20 }
 0xdd4   :  { %8212 = vmatmul.mubr.msk.bf16.gmra.mrb[244].mxu1 %vm250_vm0, %v6690_v7 }
 0xde6   :  { %v6824_v0 = vpop.f32.mrb[184].mxu1 }
 0xde7   :  { %v6825_v5 = vadd.f32 %v6824_v0, %v14694_v47  ;;  %v6826_v45 = vpop.f32.mrb[185].mxu1 }
 0xde8   :  { %v14700_v36 = vadd.f32 %v6826_v45, %v14696_v44  ;;  %v6828_v49 = vpop.f32.mrb[186].mxu1 }
 0xde9   :  { %v7047_v31 = vmul.f32 0.044715, %v6825_v5  ;;  %v14703_v62 = vadd.f32 %v6828_v49, %v14694_v47  ;;  %v6830_v57 = vpop.f32.mrb[187].mxu1 }
 0xdea   :  { %v7048_v15 = vmul.f32 0.044715, %v14700_v36  ;;  %v14707_v48 = vadd.f32 %v6830_v57, %v14696_v44 }
 0xdeb   :  { %v7111_v28 = vmul.f32 %v7047_v31, %v6825_v5  ;;  %v7049_v25 = vmul.f32 0.044715, %v14703_v62 }
 0xdec   :  { %v7112_v55 = vmul.f32 %v7048_v15, %v14700_v36  ;;  %v7050_v54 = vmul.f32 0.044715, %v14707_v48 }
 0xded   :  { %v7175_v40 = vmul.f32 %v7111_v28, %v6825_v5  ;;  %v7113_v53 = vmul.f32 %v7049_v25, %v14703_v62 }
 0xdee   :  { %v7176_v23 = vmul.f32 %v7112_v55, %v14700_v36  ;;  %v7114_v34 = vmul.f32 %v7050_v54, %v14707_v48  ;;  %v6834_v42 = vpop.f32.mrb[188].mxu1 }
 0xdef   :  { %v7239_v26 = vadd.f32 %v7175_v40, %v6825_v5  ;;  %v7177_v2 = vmul.f32 %v7113_v53, %v14703_v62  ;;  %v14717_v24 = vadd.f32 %v6834_v42, %v14694_v47  ;;  %v6836_v50 = vpop.f32.mrb[189].mxu1 }
 0xdf0   :  { %v7178_v33 = vmul.f32 %v7114_v34, %v14707_v48  ;;  %v6837_v35 = vadd.f32 %v6836_v50, %v14696_v44  ;;  %v6838_v37 = vpop.f32.mrb[190].mxu1  ;;  %v7240_v63 = vadd.f32 %v7176_v23, %v14700_v36  ;;  %v6983_v23 = vmul.f32 0.5, %v6825_v5 }
 0xdf1   :  { %v7303_v13 = vmul.f32 0.7978846, %v7239_v26  ;;  %v7241_v22 = vadd.f32 %v7177_v2, %v14703_v62  ;;  %v7051_v14 = vmul.f32 0.044715, %v14717_v24  ;;  %v14725_v12 = vadd.f32 %v6838_v37, %v14694_v47  ;;  %v6840_v10 = vpop.f32.mrb[191].mxu1 }
 0xdf2   :  { %v7052_v41 = vmul.f32 0.044715, %v6837_v35  ;;  %v6841_v1 = vadd.f32 %v6840_v10, %v14696_v44  ;;  %v7242_v20 = vadd.f32 %v7178_v33, %v14707_v48  ;;  %v7304_v3 = vmul.f32 0.7978846, %v7240_v63 }
 0xdf3   :  { %10399 = vtanh.f32 %v7303_v13  ;;  %v7305_v7 = vmul.f32 0.7978846, %v7241_v22  ;;  %v7115_v32 = vmul.f32 %v7051_v14, %v14717_v24  ;;  %v7053_v61 = vmul.f32 0.044715, %v14725_v12 }
 0xdf4   :  { %v7116_v58 = vmul.f32 %v7052_v41, %v6837_v35  ;;  %v7054_v16 = vmul.f32 0.044715, %v6841_v1  ;;  %v7306_v17 = vmul.f32 0.7978846, %v7242_v20  ;;  %10401 = vtanh.f32 %v7304_v3 }
 0xdf5   :  { %10403 = vtanh.f32 %v7305_v7  ;;  %v7179_v0 = vmul.f32 %v7115_v32, %v14717_v24  ;;  %v7117_v45 = vmul.f32 %v7053_v61, %v14725_v12  ;;  %v6984_v13 = vmul.f32 0.5, %v14700_v36 }
 0xdf6   :  { %v7180_v49 = vmul.f32 %v7116_v58, %v6837_v35  ;;  %v7118_v31 = vmul.f32 %v7054_v16, %v6841_v1  ;;  %v6844_v57 = vpop.f32.mrb[192].mxu1  ;;  %10405 = vtanh.f32 %v7306_v17  ;;  %v6985_v3 = vmul.f32 0.5, %v14703_v62 }
 0xdf7   :  { %v7181_v15 = vmul.f32 %v7117_v45, %v14725_v12  ;;  %v6846_v28 = vpop.f32.mrb[193].mxu1  ;;  %v7243_v53 = vadd.f32 %v7179_v0, %v14717_v24  ;;  %v14739_v34 = vadd.f32 %v6844_v57, %v14694_v47  ;;  %v6986_v7 = vmul.f32 0.5, %v14707_v48 }
 0xdf8   :  { %v7182_v25 = vmul.f32 %v7118_v31, %v6841_v1  ;;  %v14735_v55 = vadd.f32 %v6846_v28, %v14696_v44  ;;  %v6848_v54 = vpop.f32.mrb[194].mxu1  ;;  %v7244_v40 = vadd.f32 %v7180_v49, %v6837_v35  ;;  %v14754_v32 = vmul.f32 0.5, %v6837_v35 }
 0xdf9   :  { %v6850_v42 = vpop.f32.mrb[195].mxu1  ;;  %v7245_v26 = vadd.f32 %v7181_v15, %v14725_v12  ;;  %v14747_v63 = vadd.f32 %v6848_v54, %v14694_v47  ;;  %v7307_v22 = vmul.f32 0.7978846, %v7243_v53  ;;  %v7055_v58 = vmul.f32 0.044715, %v14739_v34 }
 0xdfa   :  { %v7056_v2 = vmul.f32 0.044715, %v14735_v55  ;;  %v14744_v50 = vadd.f32 %v6850_v42, %v14696_v44  ;;  %v7246_v33 = vadd.f32 %v7182_v25, %v6841_v1  ;;  %v7308_v37 = vmul.f32 0.7978846, %v7244_v40 }
 0xdfb   :  { %v7309_v5 = vmul.f32 0.7978846, %v7245_v26  ;;  %v7057_v49 = vmul.f32 0.044715, %v14747_v63  ;;  %v6990_v25 = vmul.f32 0.5, %v6841_v1  ;;  %v6987_v42 = vmul.f32 0.5, %v14717_v24 }
 0xdfc   :  { %v7120_v14 = vmul.f32 %v7056_v2, %v14735_v55  ;;  %v7058_v10 = vmul.f32 0.044715, %v14744_v50  ;;  %v7310_v41 = vmul.f32 0.7978846, %v7246_v33  ;;  %10407 = vtanh.f32 %v7308_v37 }
 0xdfd   :  { %v10400_v20 = vpop.eup %10399  ;;  %10409 = vtanh.f32 %v7307_v22  ;;  %v6989_v26 = vmul.f32 0.5, %v14725_v12  ;;  %v7119_v2 = vmul.f32 %v7055_v58, %v14739_v34  ;;  %v14778_v12 = vmul.f32 0.5, %v14739_v34 }
 0xdfe   :  { %v10402_v61 = vpop.eup %10401  ;;  %v7122_v36 = vmul.f32 %v7058_v10, %v14744_v50  ;;  %v6854_v16 = vpop.f32.mrb[196].mxu1  ;;  %v7431_v17 = vadd.f32 1.0, %v10400_v20  ;;  %10411 = vtanh.f32 %v7310_v41  ;;  %v7184_v45 = vmul.f32 %v7120_v14, %v14735_v55 }
 0xdff   :  { %v10404_v0 = vpop.eup %10403  ;;  %v6856_v31 = vpop.f32.mrb[197].mxu1  ;;  %v7432_v62 = vadd.f32 1.0, %v10402_v61  ;;  %10413 = vtanh.f32 %v7309_v5  ;;  %v14762_v57 = vadd.f32 %v6854_v16, %v14694_v47  ;;  %v7121_v5 = vmul.f32 %v7057_v49, %v14747_v63 }
 0xe00   :  { %v10406_v48 = vpop.eup %10405  ;;  %v7186_v35 = vmul.f32 %v7122_v36, %v14744_v50  ;;  %v6858_v15 = vpop.f32.mrb[198].mxu1  ;;  %v7433_v28 = vadd.f32 1.0, %v10404_v0  ;;  %v14765_v54 = vadd.f32 %v6856_v31, %v14696_v44  ;;  %v7495_v37 = vmul.f32 %v7431_v17, %v6983_v23 }
 0xe01   :  { %v6860_v40 = vpop.f32.mrb[199].mxu1  ;;  %v7434_v53 = vadd.f32 1.0, %v10406_v48  ;;  %v7496_v14 = vmul.f32 %v7432_v62, %v6984_v13  ;;  %v7248_v10 = vadd.f32 %v7184_v45, %v14735_v55  ;;  %v7059_v41 = vmul.f32 0.044715, %v14762_v57 }
 0xe02   :  { %v14771_v33 = vadd.f32 %v6860_v40, %v14696_v44  ;;  %v7497_v22 = vmul.f32 %v7433_v28, %v6985_v3  ;;  %v7250_v24 = vadd.f32 %v7186_v35, %v14744_v50  ;;  %v7060_v61 = vmul.f32 0.044715, %v14765_v54 }
 0xe03   :  { %v7498_v1 = vmul.f32 %v7434_v53, %v6986_v7  ;;  %v7312_v3 = vmul.f32 0.7978846, %v7248_v10  ;;  %v7183_v13 = vmul.f32 %v7119_v2, %v14739_v34  ;;  %v14784_v7 = vadd.f32 %v6858_v15, %v14694_v47 }
 0xe04   :  { %v7559_v20 = vpack.c.bf16 %v7497_v22, %v7495_v37  ;;  %v7062_v58 = vmul.f32 0.044715, %v14771_v33  ;;  %v14787_v17 = vmul.f32 0.5, %v14735_v55  ;;  %v7314_v0 = vmul.f32 0.7978846, %v7250_v24 }
 0xe05   :  { %v7560_v23 = vpack.c.bf16 %v7498_v1, %v7496_v14  ;;  %v7185_v49 = vmul.f32 %v7121_v5, %v14747_v63  ;;  %10415 = vtanh.f32 %v7312_v3  ;;  %v7123_v28 = vmul.f32 %v7059_v41, %v14762_v57 }
 0xe06   :  { %v10408_v36 = vpop.eup %10407  ;;  %v6864_v16 = vpop.f32.mrb[200].mxu1  ;;  %10417 = vtanh.f32 %v7314_v0  ;;  %v7124_v2 = vmul.f32 %v7060_v61, %v14765_v54  ;;  %v7126_v37 = vmul.f32 %v7062_v58, %v14771_v33  ;;  %v7061_v1 = vmul.f32 0.044715, %v14784_v7 }
 0xe07   :  { %v10410_v45 = vpop.eup %10409  ;;  %v14791_v31 = vadd.f32 %v6864_v16, %v14694_v47  ;;  %v6866_v62 = vpop.f32.mrb[201].mxu1  ;;  %7725 = vmatprep.mubr.bf16.mxu0 %v7560_v23  ;;  %v7436_v48 = vadd.f32 1.0, %v10408_v36  ;;  %v7247_v58 = vadd.f32 %v7183_v13, %v14739_v34  ;;  %v7249_v0 = vadd.f32 %v7185_v49, %v14747_v63 }
 0xe08   :  { %v10412_v35 = vpop.eup %10411  ;;  %v14795_v15 = vadd.f32 %v6866_v62, %v14696_v44  ;;  %v6868_v40 = vpop.f32.mrb[202].mxu1  ;;  %7726 = vmatmul.mubr.bf16.vlgmr.msra.gmra.mrb[168].mxu0 %v7559_v20  ;;  %v7435_v55 = vadd.f32 1.0, %v10410_v45  ;;  %v7188_v45 = vmul.f32 %v7124_v2, %v14765_v54  ;;  %v7190_v62 = vmul.f32 %v7126_v37, %v14771_v33 }
 0xe09   :  { %v10414_v53 = vpop.eup %10413  ;;  %v14800_v22 = vadd.f32 %v6868_v40, %v14694_v47  ;;  %v6870_v5 = vpop.f32.mrb[203].mxu1  ;;  %v7438_v14 = vadd.f32 1.0, %v10412_v35  ;;  %v7063_v10 = vmul.f32 0.044715, %v14791_v31  ;;  %v7500_v23 = vmul.f32 %v7436_v48, %v14754_v32 }
 0xe0a   :  { %v14805_v41 = vadd.f32 %v6870_v5, %v14696_v44  ;;  %v7437_v20 = vadd.f32 1.0, %v10414_v53  ;;  %v7064_v24 = vmul.f32 0.044715, %v14795_v15  ;;  %v7499_v36 = vmul.f32 %v7435_v55, %v6987_v42 }
 0xe0b   :  { %v7502_v61 = vmul.f32 %v7438_v14, %v6990_v25  ;;  %v7065_v3 = vmul.f32 0.044715, %v14800_v22  ;;  %v7311_v40 = vmul.f32 0.7978846, %v7247_v58  ;;  %v7125_v53 = vmul.f32 %v7061_v1, %v14784_v7 }
 0xe0c   :  { %v7501_v16 = vmul.f32 %v7437_v20, %v6989_v26  ;;  %v7066_v5 = vmul.f32 0.044715, %v14805_v41  ;;  %v7313_v48 = vmul.f32 0.7978846, %v7249_v0  ;;  %v7127_v34 = vmul.f32 %v7063_v10, %v14791_v31 }
 0xe0d   :  { %v7562_v35 = vpack.c.bf16 %v7502_v61, %v7500_v23  ;;  %v6994_v13 = vmul.f32 0.5, %v14744_v50  ;;  %10419 = vtanh.f32 %v7311_v40  ;;  %v7187_v49 = vmul.f32 %v7123_v28, %v14762_v57 }
 0xe0e   :  { %v6874_v32 = vpop.f32.mrb[204].mxu1  ;;  %v7561_v25 = vpack.c.bf16 %v7501_v16, %v7499_v36  ;;  %v7128_v55 = vmul.f32 %v7064_v24, %v14795_v15  ;;  %v7129_v2 = vmul.f32 %v7065_v3, %v14800_v22  ;;  %10421 = vtanh.f32 %v7313_v48 }
 0xe0f   :  { %v14818_v42 = vadd.f32 %v6874_v32, %v14694_v47  ;;  %v6876_v26 = vpop.f32.mrb[205].mxu1  ;;  %7733 = vmatprep.mubr.bf16.mxu0 %v7562_v35  ;;  %v10416_v14 = vpop.eup %10415  ;;  %v6993_v20 = vmul.f32 0.5, %v14747_v63  ;;  %v7252_v23 = vadd.f32 %v7188_v45, %v14765_v54  ;;  %v7254_v50 = vadd.f32 %v7190_v62, %v14771_v33 }
 0xe10   :  { %v6878_v37 = vpop.f32.mrb[206].mxu1  ;;  %7734 = vmatmul.mubr.bf16.gmra.mrb[172].mxu0 %v7561_v25  ;;  %v14825_v1 = vadd.f32 %v6876_v26, %v14696_v44  ;;  %v10418_v61 = vpop.eup %10417  ;;  %v7189_v28 = vmul.f32 %v7125_v53, %v14784_v7  ;;  %v7130_v24 = vmul.f32 %v7066_v5, %v14805_v41  ;;  %v7440_v3 = vadd.f32 1.0, %v10416_v14 }
 0xe11   :  { %v6880_v10 = vpop.f32.mrb[207].mxu1  ;;  %v14833_v58 = vadd.f32 %v6878_v37, %v14694_v47  ;;  %v14836_v36 = vmul.f32 %v7127_v34, %v14791_v31  ;;  %v7067_v16 = vmul.f32 0.044715, %v14818_v42  ;;  %v7442_v0 = vadd.f32 1.0, %v10418_v61 }
 0xe12   :  { %v7316_v63 = vmul.f32 0.7978846, %v7252_v23  ;;  %v7192_v45 = vmul.f32 %v7128_v55, %v14795_v15  ;;  %v14841_v62 = vmul.f32 %v7129_v2, %v14800_v22  ;;  %v14844_v35 = vadd.f32 %v6880_v10, %v14696_v44 }
 0xe13   :  { %v7318_v40 = vmul.f32 0.7978846, %v7254_v50  ;;  %v7068_v53 = vmul.f32 0.044715, %v14825_v1  ;;  %v7504_v5 = vmul.f32 %v7440_v3, %v14787_v17  ;;  %v7506_v32 = vmul.f32 %v7442_v0, %v6994_v13 }
 0xe14   :  { %10423 = vtanh.f32 %v7316_v63  ;;  %v7194_v25 = vmul.f32 %v7130_v24, %v14805_v41  ;;  %v7069_v48 = vmul.f32 0.044715, %v14833_v58  ;;  %v14851_v26 = vmul.f32 0.5, %v14765_v54 }
 0xe15   :  { %10425 = vtanh.f32 %v7318_v40  ;;  %v7131_v55 = vmul.f32 %v7067_v16, %v14818_v42  ;;  %v7564_v14 = vpack.c.bf16 %v7506_v32, %v7504_v5  ;;  %v7251_v17 = vadd.f32 %v7187_v49, %v14762_v57 }
 0xe16   :  { %v6884_v34 = vpop.f32.mrb[208].mxu1  ;;  %v7070_v13 = vmul.f32 0.044715, %v14844_v35  ;;  %v6998_v50 = vmul.f32 0.5, %v14771_v33  ;;  %v7253_v54 = vadd.f32 %v7189_v28, %v14784_v7  ;;  %v7132_v24 = vmul.f32 %v7068_v53, %v14825_v1 }
 0xe17   :  { %v14855_v2 = vadd.f32 %v6884_v34, %v14694_v47  ;;  %v6886_v37 = vpop.f32.mrb[209].mxu1  ;;  %v10420_v61 = vpop.eup %10419  ;;  %7741 = vmatprep.mubr.bf16.mxu0 %v7564_v14  ;;  %v14869_v49 = vmul.f32 0.5, %v14762_v57  ;;  %v7315_v0 = vmul.f32 0.7978846, %v7251_v17  ;;  %v7133_v40 = vmul.f32 %v7069_v48, %v14833_v58 }
 0xe18   :  { %v14860_v10 = vadd.f32 %v6886_v37, %v14696_v44  ;;  %v6888_v23 = vpop.f32.mrb[210].mxu1  ;;  %v10422_v63 = vpop.eup %10421  ;;  %v7439_v5 = vadd.f32 1.0, %v10420_v61  ;;  %v7317_v28 = vmul.f32 0.7978846, %v7253_v54  ;;  %v14876_v32 = vmul.f32 %v7131_v55, %v14818_v42 }
 0xe19   :  { %v14866_v3 = vadd.f32 %v6888_v23, %v14694_v47  ;;  %v6890_v16 = vpop.f32.mrb[211].mxu1  ;;  %v7071_v53 = vmul.f32 0.044715, %v14855_v2  ;;  %v7441_v34 = vadd.f32 1.0, %v10422_v63  ;;  %10427 = vtanh.f32 %v7315_v0 }
 0xe1a   :  { %v14873_v33 = vadd.f32 %v6890_v16, %v14696_v44  ;;  %v7134_v37 = vmul.f32 %v7070_v13, %v14844_v35  ;;  %v7072_v57 = vmul.f32 0.044715, %v14860_v10  ;;  %10429 = vtanh.f32 %v7317_v28 }
 0xe1b   :  { %v7073_v14 = vmul.f32 0.044715, %v14866_v3  ;;  %v7503_v48 = vmul.f32 %v7439_v5, %v14778_v12  ;;  %v7505_v17 = vmul.f32 %v7441_v34, %v6993_v20  ;;  %v7256_v54 = vadd.f32 %v7192_v45, %v14795_v15 }
 0xe1c   :  { %v7074_v23 = vmul.f32 0.044715, %v14873_v33  ;;  %v14886_v55 = vmul.f32 %v7132_v24, %v14825_v1  ;;  %v14889_v61 = vmul.f32 %v7133_v40, %v14833_v58  ;;  %v6997_v13 = vmul.f32 0.5, %v14784_v7 }
 0xe1d   :  { %v7258_v0 = vadd.f32 %v7194_v25, %v14805_v41  ;;  %v7135_v28 = vmul.f32 %v7071_v53, %v14855_v2  ;;  %v7563_v12 = vpack.c.bf16 %v7505_v17, %v7503_v48  ;;  %v7320_v45 = vmul.f32 0.7978846, %v7256_v54 }
 0xe1e   :  { %v6894_v16 = vpop.f32.mrb[212].mxu1  ;;  %v10424_v63 = vpop.eup %10423  ;;  %v7198_v24 = vmul.f32 %v7134_v37, %v14844_v35  ;;  %v7136_v40 = vmul.f32 %v7072_v57, %v14860_v10  ;;  %v7137_v7 = vmul.f32 %v7073_v14, %v14866_v3  ;;  %v7138_v25 = vmul.f32 %v7074_v23, %v14873_v33 }
 0xe1f   :  { %v14895_v20 = vadd.f32 %v6894_v16, %v14694_v47  ;;  %v6896_v5 = vpop.f32.mrb[213].mxu1  ;;  %v10426_v34 = vpop.eup %10425  ;;  %v7444_v11 = vadd.f32 1.0, %v10424_v63  ;;  %v7322_v19 = vmul.f32 0.7978846, %v7258_v0  ;;  %7742 = vmatmul.mubr.bf16.gmra.mrb[176].mxu0 %v7563_v12  ;;  %10431 = vtanh.f32 %v7320_v45 }
 0xe20   :  { %v6898_v56 = vpop.f32.mrb[214].mxu1  ;;  %v7446_v53 = vadd.f32 1.0, %v10426_v34  ;;  %v14902_v17 = vadd.f32 %v6896_v5, %v14696_v44  ;;  %v14905_v54 = vmul.f32 0.5, %v14795_v15  ;;  %v14908_v37 = vmul.f32 0.5, %v14805_v41 }
 0xe21   :  { %v6900_v48 = vpop.f32.mrb[215].mxu1  ;;  %10433 = vtanh.f32 %v7322_v19  ;;  %v14911_v57 = vmul.f32 %v7135_v28, %v14855_v2  ;;  %v7075_v14 = vmul.f32 0.044715, %v14895_v20  ;;  %v7508_v23 = vmul.f32 %v7444_v11, %v14851_v26 }
 0xe22   :  { %v7510_v16 = vmul.f32 %v7446_v53, %v6998_v50  ;;  %v14916_v0 = vmul.f32 %v7136_v40, %v14860_v10  ;;  %v14919_v63 = vadd.f32 %v6898_v56, %v14694_v47  ;;  %v7255_v15 = vadd.f32 %v14836_v36, %v14791_v31 }
 0xe23   :  { %v7257_v19 = vadd.f32 %v14841_v62, %v14800_v22  ;;  %v10428_v41 = vpop.eup %10427  ;;  %v14926_v28 = vmul.f32 %v7137_v7, %v14866_v3  ;;  %v14929_v12 = vmul.f32 %v7138_v25, %v14873_v33  ;;  %v14932_v26 = vmul.f32 0.5, %v14791_v31 }
 0xe24   :  { %v7566_v11 = vpack.c.bf16 %v7510_v16, %v7508_v23  ;;  %v10430_v50 = vpop.eup %10429  ;;  %v7076_v56 = vmul.f32 0.044715, %v14902_v17  ;;  %v7443_v5 = vadd.f32 1.0, %v10428_v41  ;;  %v14936_v36 = vadd.f32 %v6900_v48, %v14696_v44 }
 0xe25   :  { %v7319_v62 = vmul.f32 0.7978846, %v7255_v15  ;;  %v7139_v34 = vmul.f32 %v7075_v14, %v14895_v20  ;;  %v7445_v40 = vadd.f32 1.0, %v10430_v50  ;;  %v7321_v53 = vmul.f32 0.7978846, %v7257_v19 }
 0xe26   :  { %v6904_v45 = vpop.f32.mrb[216].mxu1  ;;  %7749 = vmatprep.mubr.bf16.mxu0 %v7566_v11  ;;  %v7077_v31 = vmul.f32 0.044715, %v14919_v63  ;;  %v14947_v48 = vmul.f32 0.5, %v14800_v22  ;;  %v7507_v15 = vmul.f32 %v7443_v5, %v14869_v49  ;;  %v7078_v19 = vmul.f32 0.044715, %v14936_v36 }
 0xe27   :  { %v14940_v7 = vadd.f32 %v6904_v45, %v14694_v47  ;;  %v6906_v25 = vpop.f32.mrb[217].mxu1  ;;  %10435 = vtanh.f32 %v7319_v62  ;;  %v7509_v14 = vmul.f32 %v7445_v40, %v6997_v13  ;;  %v7260_v22 = vadd.f32 %v14886_v55, %v14825_v1 }
 0xe28   :  { %v14944_v23 = vadd.f32 %v6906_v25, %v14696_v44  ;;  %v6908_v16 = vpop.f32.mrb[218].mxu1  ;;  %10437 = vtanh.f32 %v7321_v53  ;;  %v7140_v62 = vmul.f32 %v7076_v56, %v14902_v17  ;;  %v7262_v5 = vadd.f32 %v7198_v24, %v14844_v35 }
 0xe29   :  { %v14951_v41 = vadd.f32 %v6908_v16, %v14694_v47  ;;  %v6910_v11 = vpop.f32.mrb[219].mxu1  ;;  %v7079_v50 = vmul.f32 0.044715, %v14940_v7  ;;  %v10432_v25 = vpop.eup %10431  ;;  %v7565_v49 = vpack.c.bf16 %v7509_v14, %v7507_v15  ;;  %v7141_v53 = vmul.f32 %v7077_v31, %v14919_v63 }
 0xe2a   :  { %v14956_v45 = vadd.f32 %v6910_v11, %v14696_v44  ;;  %v7080_v13 = vmul.f32 0.044715, %v14944_v23  ;;  %v7448_v16 = vadd.f32 1.0, %v10432_v25  ;;  %v7324_v43 = vmul.f32 0.7978846, %v7260_v22 }
 0xe2b   :  { %v10434_v40 = vpop.eup %10433  ;;  %v7081_v9 = vmul.f32 0.044715, %v14951_v41  ;;  %v14966_v11 = vmul.f32 %v7139_v34, %v14895_v20  ;;  %7750 = vmatmul.mubr.bf16.gmra.mrb[180].mxu0 %v7565_v49  ;;  %v7326_v56 = vmul.f32 0.7978846, %v7262_v5  ;;  %v7142_v15 = vmul.f32 %v7078_v19, %v14936_v36 }
 0xe2c   :  { %v7450_v55 = vadd.f32 1.0, %v10434_v40  ;;  %v7082_v30 = vmul.f32 0.044715, %v14956_v45  ;;  %v7143_v14 = vmul.f32 %v7079_v50, %v14940_v7  ;;  %v7004_v6 = vmul.f32 0.5, %v14825_v1 }
 0xe2d   :  { %10439 = vtanh.f32 %v7324_v43  ;;  %v7144_v31 = vmul.f32 %v7080_v13, %v14944_v23  ;;  %v7512_v22 = vmul.f32 %v7448_v16, %v14905_v54  ;;  %v7204_v49 = vmul.f32 %v7140_v62, %v14902_v17 }
 0xe2e   :  { %v6914_v24 = vpop.f32.mrb[220].mxu1  ;;  %v7514_v34 = vmul.f32 %v7450_v55, %v14908_v37  ;;  %10441 = vtanh.f32 %v7326_v56  ;;  %v14977_v5 = vmul.f32 %v7141_v53, %v14919_v63  ;;  %v7145_v19 = vmul.f32 %v7081_v9, %v14951_v41 }
 0xe2f   :  { %v6916_v25 = vpop.f32.mrb[221].mxu1  ;;  %v14981_v50 = vadd.f32 %v6914_v24, %v14694_v47  ;;  %v7146_v13 = vmul.f32 %v7082_v30, %v14956_v45  ;;  %v7259_v37 = vadd.f32 %v14876_v32, %v14818_v42  ;;  %v7206_v53 = vmul.f32 %v7142_v15, %v14936_v36 }
 0xe30   :  { %v6918_v1 = vpop.f32.mrb[222].mxu1  ;;  %v7568_v43 = vpack.c.bf16 %v7514_v34, %v7512_v22  ;;  %v14985_v54 = vadd.f32 %v6916_v25, %v14696_v44  ;;  %v7006_v16 = vmul.f32 0.5, %v14844_v35  ;;  %v7261_v55 = vadd.f32 %v14889_v61, %v14833_v58 }
 0xe31   :  { %v6920_v40 = vpop.f32.mrb[223].mxu1  ;;  %v10436_v62 = vpop.eup %10435  ;;  %v14992_v9 = vadd.f32 %v6918_v1, %v14694_v47  ;;  %v14997_v30 = vmul.f32 %v7143_v14, %v14940_v7  ;;  %v7208_v24 = vmul.f32 %v7144_v31, %v14944_v23  ;;  %v7323_v22 = vmul.f32 0.7978846, %v7259_v37 }
 0xe32   :  { %v10438_v56 = vpop.eup %10437  ;;  %7757 = vmatprep.mubr.bf16.mxu0 %v7568_v43  ;;  %v7447_v32 = vadd.f32 1.0, %v10436_v62  ;;  %v7083_v15 = vmul.f32 0.044715, %v14981_v50  ;;  %v7325_v25 = vmul.f32 0.7978846, %v7261_v55  ;;  %v15002_v35 = vadd.f32 %v6920_v40, %v14696_v44 }
 0xe33   :  { %v7449_v34 = vadd.f32 1.0, %v10438_v56  ;;  %v15005_v1 = vmul.f32 %v7145_v19, %v14951_v41  ;;  %v7210_v61 = vmul.f32 %v7146_v13, %v14956_v45  ;;  %v7084_v14 = vmul.f32 0.044715, %v14985_v54 }
 0xe34   :  { %10443 = vtanh.f32 %v7323_v22  ;;  %v7511_v31 = vmul.f32 %v7447_v32, %v14932_v26  ;;  %v7085_v37 = vmul.f32 0.044715, %v14992_v9  ;;  %v7003_v62 = vmul.f32 0.5, %v14818_v42 }
 0xe35   :  { %v7513_v43 = vmul.f32 %v7449_v34, %v14947_v48  ;;  %10445 = vtanh.f32 %v7325_v25  ;;  %v7005_v40 = vmul.f32 0.5, %v14833_v58  ;;  %v7264_v19 = vadd.f32 %v14916_v0, %v14860_v10 }
 0xe36   :  { %v7266_v13 = vadd.f32 %v14929_v12, %v14873_v33  ;;  %v7147_v22 = vmul.f32 %v7083_v15, %v14981_v50  ;;  %v7086_v26 = vmul.f32 0.044715, %v15002_v35  ;;  %v15021_v48 = vmul.f32 0.5, %v14860_v10 }
 0xe37   :  { %v10440_v55 = vpop.eup %10439  ;;  %v7567_v56 = vpack.c.bf16 %v7513_v43, %v7511_v31  ;;  %v7328_v42 = vmul.f32 0.7978846, %v7264_v19  ;;  %v7263_v58 = vadd.f32 %v14911_v57, %v14855_v2  ;;  %v7148_v0 = vmul.f32 %v7084_v14, %v14985_v54 }
 0xe38   :  { %v10442_v32 = vpop.eup %10441  ;;  %v7452_v34 = vadd.f32 1.0, %v10440_v55  ;;  %v7330_v25 = vmul.f32 0.7978846, %v7266_v13  ;;  %v7149_v31 = vmul.f32 %v7085_v37, %v14992_v9  ;;  %v7265_v15 = vadd.f32 %v14926_v28, %v14866_v3 }
 0xe39   :  { %7758 = vmatmul.mubr.bf16.gmra.mrb[184].mxu0 %v7567_v56  ;;  %v7454_v12 = vadd.f32 1.0, %v10442_v32  ;;  %10447 = vtanh.f32 %v7328_v42  ;;  %v7327_v10 = vmul.f32 0.7978846, %v7263_v58  ;;  %v7268_v18 = vadd.f32 %v7204_v49, %v14902_v17 }
 0xe3a   :  { %v7516_v43 = vmul.f32 %v7452_v34, %v7004_v6  ;;  %10449 = vtanh.f32 %v7330_v25  ;;  %v7329_v19 = vmul.f32 0.7978846, %v7265_v15  ;;  %v7270_v13 = vadd.f32 %v7206_v53, %v14936_v36 }
 0xe3b   :  { %v7518_v55 = vmul.f32 %v7454_v12, %v7006_v16  ;;  %v7211_v57 = vmul.f32 %v7147_v22, %v14981_v50  ;;  %v7150_v14 = vmul.f32 %v7086_v26, %v15002_v35  ;;  %10451 = vtanh.f32 %v7327_v10 }
 0xe3c   :  { %v7332_v56 = vmul.f32 0.7978846, %v7268_v18  ;;  %10453 = vtanh.f32 %v7329_v19  ;;  %v7334_v32 = vmul.f32 0.7978846, %v7270_v13  ;;  %v7267_v6 = vadd.f32 %v14966_v11, %v14895_v20 }
 0xe3d   :  { %v7570_v37 = vpack.c.bf16 %v7518_v55, %v7516_v43  ;;  %v7212_v49 = vmul.f32 %v7148_v0, %v14985_v54  ;;  %v7213_v16 = vmul.f32 %v7149_v31, %v14992_v9  ;;  %v7269_v53 = vadd.f32 %v14977_v5, %v14919_v63 }
 0xe3e   :  { %v10444_v28 = vpop.eup %10443  ;;  %10455 = vtanh.f32 %v7332_v56  ;;  %v7331_v18 = vmul.f32 0.7978846, %v7267_v6  ;;  %v7272_v34 = vadd.f32 %v7208_v24, %v14944_v23  ;;  %v7010_v25 = vmul.f32 0.5, %v14873_v33 }
 0xe3f   :  { %v10446_v22 = vpop.eup %10445  ;;  %7765 = vmatprep.mubr.bf16.mxu0 %v7570_v37  ;;  %v7451_v26 = vadd.f32 1.0, %v10444_v28  ;;  %10457 = vtanh.f32 %v7334_v32  ;;  %v7333_v11 = vmul.f32 0.7978846, %v7269_v53  ;;  %v7274_v58 = vadd.f32 %v7210_v61, %v14956_v45 }
 0xe40   :  { %v7453_v42 = vadd.f32 1.0, %v10446_v22  ;;  %v7214_v12 = vmul.f32 %v7150_v14, %v15002_v35  ;;  %10459 = vtanh.f32 %v7331_v18  ;;  %v7336_v31 = vmul.f32 0.7978846, %v7272_v34 }
 0xe41   :  { %v7515_v0 = vmul.f32 %v7451_v26, %v7003_v62  ;;  %10461 = vtanh.f32 %v7333_v11  ;;  %v7338_v5 = vmul.f32 0.7978846, %v7274_v58  ;;  %v7271_v43 = vadd.f32 %v14997_v30, %v14940_v7 }
 0xe42   :  { %v7517_v15 = vmul.f32 %v7453_v42, %v7005_v40  ;;  %v7007_v10 = vmul.f32 0.5, %v14855_v2  ;;  %v7009_v24 = vmul.f32 0.5, %v14866_v3  ;;  %10463 = vtanh.f32 %v7336_v31 }
 0xe43   :  { %v7273_v33 = vadd.f32 %v15005_v1, %v14951_v41  ;;  %v10448_v61 = vpop.eup %10447  ;;  %10465 = vtanh.f32 %v7338_v5  ;;  %v7335_v55 = vmul.f32 0.7978846, %v7271_v43  ;;  %v7276_v19 = vadd.f32 %v7212_v49, %v14985_v54 }
 0xe44   :  { %v7569_v62 = vpack.c.bf16 %v7517_v15, %v7515_v0  ;;  %v10450_v40 = vpop.eup %10449  ;;  %v7456_v13 = vadd.f32 1.0, %v10448_v61  ;;  %v7012_v14 = vmul.f32 0.5, %v14902_v17  ;;  %v7278_v30 = vadd.f32 %v7214_v12, %v15002_v35 }
 0xe45   :  { %v7337_v56 = vmul.f32 0.7978846, %v7273_v33  ;;  %v10452_v2 = vpop.eup %10451  ;;  %v7458_v3 = vadd.f32 1.0, %v10450_v40  ;;  %v7014_v37 = vmul.f32 0.5, %v14936_v36  ;;  %10467 = vtanh.f32 %v7335_v55 }
 0xe46   :  { %7766 = vmatmul.mubr.bf16.gmra.mrb[188].mxu0 %v7569_v62  ;;  %v7340_v1 = vmul.f32 0.7978846, %v7276_v19  ;;  %v10454_v32 = vpop.eup %10453  ;;  %v7520_v6 = vmul.f32 %v7456_v13, %v15021_v48  ;;  %v7455_v28 = vadd.f32 1.0, %v10452_v2  ;;  %v7342_v49 = vmul.f32 0.7978846, %v7278_v30 }
 0xe47   :  { %10469 = vtanh.f32 %v7337_v56  ;;  %v7522_v22 = vmul.f32 %v7458_v3, %v7010_v25  ;;  %v7457_v26 = vadd.f32 1.0, %v10454_v32  ;;  %v7275_v17 = vadd.f32 %v7211_v57, %v14981_v50 }
 0xe48   :  { %v10456_v53 = vpop.eup %10455  ;;  %10471 = vtanh.f32 %v7340_v1  ;;  %v7519_v34 = vmul.f32 %v7455_v28, %v7007_v10  ;;  %v7277_v36 = vadd.f32 %v7213_v16, %v14992_v9  ;;  %v7011_v10 = vmul.f32 0.5, %v14895_v20 }
 0xe49   :  { %v10458_v18 = vpop.eup %10457  ;;  %v7460_v42 = vadd.f32 1.0, %v10456_v53  ;;  %10473 = vtanh.f32 %v7342_v49  ;;  %v7572_v11 = vpack.c.bf16 %v7522_v22, %v7520_v6  ;;  %v7521_v58 = vmul.f32 %v7457_v26, %v7009_v24 }
 0xe4a   :  { %v7462_v0 = vadd.f32 1.0, %v10458_v18  ;;  %v7339_v12 = vmul.f32 0.7978846, %v7275_v17  ;;  %v10460_v48 = vpop.eup %10459  ;;  %v7341_v15 = vmul.f32 0.7978846, %v7277_v36  ;;  %v7013_v61 = vmul.f32 0.5, %v14919_v63 }
 0xe4b   :  { %v7524_v31 = vmul.f32 %v7460_v42, %v7012_v14  ;;  %v10462_v5 = vpop.eup %10461  ;;  %7773 = vmatprep.mubr.bf16.mxu0 %v7572_v11  ;;  %v7571_v25 = vpack.c.bf16 %v7521_v58, %v7519_v34  ;;  %v7459_v33 = vadd.f32 1.0, %v10460_v48  ;;  %v7016_v55 = vmul.f32 0.5, %v14944_v23 }
 0xe4c   :  { %v7526_v43 = vmul.f32 %v7462_v0, %v7014_v37  ;;  %10475 = vtanh.f32 %v7339_v12  ;;  %v10464_v57 = vpop.eup %10463  ;;  %v7461_v62 = vadd.f32 1.0, %v10462_v5  ;;  %v7018_v14 = vmul.f32 0.5, %v14956_v45 }
 0xe4d   :  { %10477 = vtanh.f32 %v7341_v15  ;;  %v10466_v16 = vpop.eup %10465  ;;  %v7464_v19 = vadd.f32 1.0, %v10464_v57  ;;  %v7523_v40 = vmul.f32 %v7459_v33, %v7011_v10  ;;  %v7015_v32 = vmul.f32 0.5, %v14940_v7 }
 0xe4e   :  { %7774 = vmatmul.mubr.bf16.gmra.mrb[192].mxu0 %v7571_v25  ;;  %v7574_v24 = vpack.c.bf16 %v7526_v43, %v7524_v31  ;;  %v7525_v13 = vmul.f32 %v7461_v62, %v7013_v61  ;;  %v7466_v56 = vadd.f32 1.0, %v10466_v16  ;;  %v7017_v6 = vmul.f32 0.5, %v14951_v41 }
 0xe4f   :  { %v10468_v30 = vpop.eup %10467  ;;  %v7528_v20 = vmul.f32 %v7464_v19, %v7016_v55  ;;  %v7020_v53 = vmul.f32 0.5, %v14985_v54  ;;  %v7022_v17 = vmul.f32 0.5, %v15002_v35  ;;  %v7019_v0 = vmul.f32 0.5, %v14981_v50 }
 0xe50   :  { %7781 = vmatprep.mubr.bf16.mxu0 %v7574_v24  ;;  %v7573_v3 = vpack.c.bf16 %v7525_v13, %v7523_v40  ;;  %v7530_v37 = vmul.f32 %v7466_v56, %v7018_v14  ;;  %v7463_v63 = vadd.f32 1.0, %v10468_v30  ;;  %v7021_v12 = vmul.f32 0.5, %v14992_v9 }
 0xe51   :  { %v10470_v2 = vpop.eup %10469 }
 0xe52   :  { %v10472_v1 = vpop.eup %10471  ;;  %v7465_v28 = vadd.f32 1.0, %v10470_v2  ;;  %v7576_v49 = vpack.c.bf16 %v7530_v37, %v7528_v20  ;;  %v7527_v45 = vmul.f32 %v7463_v63, %v7015_v32 }
 0xe53   :  { %v10474_v23 = vpop.eup %10473  ;;  %v7468_v22 = vadd.f32 1.0, %v10472_v1 }
 0xe54   :  { %v7529_v26 = vmul.f32 %v7465_v28, %v7017_v6  ;;  %v7470_v18 = vadd.f32 1.0, %v10474_v23 }
 0xe55   :  { %v7532_v36 = vmul.f32 %v7468_v22, %v7020_v53 }
 0xe56   :  { %v10476_v34 = vpop.eup %10475  ;;  %7782 = vmatmul.mubr.bf16.gmra.mrb[196].mxu0 %v7573_v3  ;;  %v7575_v42 = vpack.c.bf16 %v7529_v26, %v7527_v45  ;;  %v7534_v11 = vmul.f32 %v7470_v18, %v7022_v17 }
 0xe57   :  { %v10478_v58 = vpop.eup %10477  ;;  %7789 = vmatprep.mubr.bf16.mxu0 %v7576_v49  ;;  %v7467_v7 = vadd.f32 1.0, %v10476_v34 }
 0xe58   :  { %v7578_v41 = vpack.c.bf16 %v7534_v11, %v7532_v36  ;;  %v7469_v54 = vadd.f32 1.0, %v10478_v58 }
 0xe59   :  { %v7531_v48 = vmul.f32 %v7467_v7, %v7019_v0 }
 0xe5a   :  { %v7533_v31 = vmul.f32 %v7469_v54, %v7021_v12 }
 0xe5c   :  { %v7577_v15 = vpack.c.bf16 %v7533_v31, %v7531_v48 }
 0xe5e   :  { %7790 = vmatmul.mubr.bf16.gmra.mrb[200].mxu0 %v7575_v42 }
 0xe5f   :  { %7797 = vmatprep.mubr.bf16.mxu0 %v7578_v41 }
 0xe66   :  { %7798 = vmatmul.mubr.bf16.gmra.mrb[204].mxu0 %v7577_v15 }
 0xe7f   :  { %v6924_v35 = vpop.f32.mrb[224].mxu1 }
 0xe80   :  { %v6925_v5 = vadd.f32 %v6924_v35, %v14694_v47  ;;  %v6926_v25 = vpop.f32.mrb[225].mxu1 }
 0xe81   :  { %v15068_v43 = vadd.f32 %v6926_v25, %v14696_v44  ;;  %v6928_v33 = vpop.f32.mrb[226].mxu1 }
 0xe82   :  { %v7087_v57 = vmul.f32 0.044715, %v6925_v5  ;;  %v6929_v50 = vadd.f32 %v6928_v33, %v14694_v47  ;;  %v6930_v10 = vpop.f32.mrb[227].mxu1 }
 0xe83   :  { %v7088_v9 = vmul.f32 0.044715, %v15068_v43  ;;  %v15073_v61 = vadd.f32 %v6930_v10, %v14696_v44 }
 0xe84   :  { %v7151_v62 = vmul.f32 %v7087_v57, %v6925_v5  ;;  %v7089_v16 = vmul.f32 0.044715, %v6929_v50 }
 0xe85   :  { %v7152_v24 = vmul.f32 %v7088_v9, %v15068_v43  ;;  %v7090_v55 = vmul.f32 0.044715, %v15073_v61 }
 0xe86   :  { %v7215_v19 = vmul.f32 %v7151_v62, %v6925_v5  ;;  %v7153_v40 = vmul.f32 %v7089_v16, %v6929_v50  ;;  %v7023_v16 = vmul.f32 0.5, %v6925_v5 }
 0xe87   :  { %v7216_v13 = vmul.f32 %v7152_v24, %v15068_v43  ;;  %v7154_v14 = vmul.f32 %v7090_v55, %v15073_v61  ;;  %v6934_v56 = vpop.f32.mrb[228].mxu1 }
 0xe88   :  { %v7217_v30 = vmul.f32 %v7153_v40, %v6929_v50  ;;  %v15080_v2 = vadd.f32 %v6934_v56, %v14694_v47  ;;  %v6936_v3 = vpop.f32.mrb[229].mxu1  ;;  %v7279_v20 = vadd.f32 %v7215_v19, %v6925_v5  ;;  %v7025_v56 = vmul.f32 0.5, %v6929_v50 }
 0xe89   :  { %v7218_v37 = vmul.f32 %v7154_v14, %v15073_v61  ;;  %v6937_v63 = vadd.f32 %v6936_v3, %v14696_v44  ;;  %v6938_v1 = vpop.f32.mrb[230].mxu1  ;;  %v7280_v32 = vadd.f32 %v7216_v13, %v15068_v43  ;;  %v7024_v14 = vmul.f32 0.5, %v15068_v43 }
 0xe8a   :  { %v7091_v6 = vmul.f32 0.044715, %v15080_v2  ;;  %v15087_v28 = vadd.f32 %v6938_v1, %v14694_v47  ;;  %v6940_v23 = vpop.f32.mrb[231].mxu1  ;;  %v7281_v49 = vadd.f32 %v7217_v30, %v6929_v50  ;;  %v7343_v53 = vmul.f32 0.7978846, %v7279_v20 }
 0xe8b   :  { %v7092_v22 = vmul.f32 0.044715, %v6937_v63  ;;  %v6941_v45 = vadd.f32 %v6940_v23, %v14696_v44  ;;  %v7282_v26 = vadd.f32 %v7218_v37, %v15073_v61  ;;  %v7344_v17 = vmul.f32 0.7978846, %v7280_v32 }
 0xe8c   :  { %v7155_v18 = vmul.f32 %v7091_v6, %v15080_v2  ;;  %v7093_v34 = vmul.f32 0.044715, %v15087_v28  ;;  %v7345_v42 = vmul.f32 0.7978846, %v7281_v49  ;;  %10479 = vtanh.f32 %v7343_v53 }
 0xe8d   :  { %v7156_v36 = vmul.f32 %v7092_v22, %v6937_v63  ;;  %v7094_v11 = vmul.f32 0.044715, %v6941_v45  ;;  %v7346_v58 = vmul.f32 0.7978846, %v7282_v26  ;;  %10481 = vtanh.f32 %v7344_v17 }
 0xe8e   :  { %v7219_v7 = vmul.f32 %v7155_v18, %v15080_v2  ;;  %v7157_v41 = vmul.f32 %v7093_v34, %v15087_v28  ;;  %10483 = vtanh.f32 %v7345_v42  ;;  %v7026_v6 = vmul.f32 0.5, %v15073_v61 }
 0xe8f   :  { %v7220_v0 = vmul.f32 %v7156_v36, %v6937_v63  ;;  %v7158_v12 = vmul.f32 %v7094_v11, %v6941_v45  ;;  %v6944_v54 = vpop.f32.mrb[232].mxu1  ;;  %10485 = vtanh.f32 %v7346_v58  ;;  %v15116_v23 = vmul.f32 0.5, %v6937_v63 }
 0xe90   :  { %v7221_v48 = vmul.f32 %v7157_v41, %v15087_v28  ;;  %v6946_v31 = vpop.f32.mrb[233].mxu1  ;;  %v7283_v57 = vadd.f32 %v7219_v7, %v15080_v2  ;;  %v15101_v10 = vadd.f32 %v6944_v54, %v14694_v47  ;;  %v7030_v42 = vmul.f32 0.5, %v6941_v45 }
 0xe91   :  { %v7222_v15 = vmul.f32 %v7158_v12, %v6941_v45  ;;  %v15097_v35 = vadd.f32 %v6946_v31, %v14696_v44  ;;  %v6948_v25 = vpop.f32.mrb[234].mxu1  ;;  %v7284_v33 = vadd.f32 %v7220_v0, %v6937_v63 }
 0xe92   :  { %v15104_v9 = vadd.f32 %v6948_v25, %v14694_v47  ;;  %v6950_v62 = vpop.f32.mrb[235].mxu1  ;;  %v7285_v24 = vadd.f32 %v7221_v48, %v15087_v28  ;;  %v7347_v30 = vmul.f32 0.7978846, %v7283_v57  ;;  %v7095_v32 = vmul.f32 0.044715, %v15101_v10 }
 0xe93   :  { %v7096_v55 = vmul.f32 0.044715, %v15097_v35  ;;  %v15109_v19 = vadd.f32 %v6950_v62, %v14696_v44  ;;  %v7286_v40 = vadd.f32 %v7222_v15, %v6941_v45  ;;  %v7348_v13 = vmul.f32 0.7978846, %v7284_v33 }
 0xe94   :  { %v7349_v3 = vmul.f32 0.7978846, %v7285_v24  ;;  %v7097_v43 = vmul.f32 0.044715, %v15104_v9  ;;  %v7159_v41 = vmul.f32 %v7095_v32, %v15101_v10  ;;  %v7027_v45 = vmul.f32 0.5, %v15080_v2 }
 0xe95   :  { %v7160_v20 = vmul.f32 %v7096_v55, %v15097_v35  ;;  %v7098_v37 = vmul.f32 0.044715, %v15109_v19  ;;  %v7350_v1 = vmul.f32 0.7978846, %v7286_v40  ;;  %10487 = vtanh.f32 %v7348_v13 }
 0xe96   :  { %v10480_v5 = vpop.eup %10479  ;;  %10489 = vtanh.f32 %v7347_v30  ;;  %v7161_v48 = vmul.f32 %v7097_v43, %v15104_v9  ;;  %v7029_v62 = vmul.f32 0.5, %v15087_v28 }
 0xe97   :  { %v10482_v49 = vpop.eup %10481  ;;  %v7162_v50 = vmul.f32 %v7098_v37, %v15109_v19  ;;  %v6954_v53 = vpop.f32.mrb[236].mxu1  ;;  %v7471_v22 = vadd.f32 1.0, %v10480_v5  ;;  %10491 = vtanh.f32 %v7350_v1  ;;  %v7224_v17 = vmul.f32 %v7160_v20, %v15097_v35 }
 0xe98   :  { %v10484_v26 = vpop.eup %10483  ;;  %v6956_v18 = vpop.f32.mrb[237].mxu1  ;;  %v7472_v34 = vadd.f32 1.0, %v10482_v49  ;;  %10493 = vtanh.f32 %v7349_v3  ;;  %v15123_v63 = vadd.f32 %v6954_v53, %v14694_v47  ;;  %v7225_v28 = vmul.f32 %v7161_v48, %v15104_v9 }
 0xe99   :  { %v10486_v36 = vpop.eup %10485  ;;  %v7226_v61 = vmul.f32 %v7162_v50, %v15109_v19  ;;  %v15126_v11 = vadd.f32 %v6956_v18, %v14696_v44  ;;  %v6958_v58 = vpop.f32.mrb[238].mxu1  ;;  %v7473_v7 = vadd.f32 1.0, %v10484_v26  ;;  %v7535_v15 = vmul.f32 %v7471_v22, %v7023_v16 }
 0xe9a   :  { %v15130_v0 = vadd.f32 %v6958_v58, %v14694_v47  ;;  %v6960_v12 = vpop.f32.mrb[239].mxu1  ;;  %v7474_v54 = vadd.f32 1.0, %v10486_v36  ;;  %v7536_v33 = vmul.f32 %v7472_v34, %v7024_v14  ;;  %v7288_v24 = vadd.f32 %v7224_v17, %v15097_v35 }
 0xe9b   :  { %v15135_v31 = vadd.f32 %v6960_v12, %v14696_v44  ;;  %v7537_v25 = vmul.f32 %v7473_v7, %v7025_v56  ;;  %v7099_v55 = vmul.f32 0.044715, %v15123_v63  ;;  %v7100_v40 = vmul.f32 0.044715, %v15126_v11 }
 0xe9c   :  { %v7538_v57 = vmul.f32 %v7474_v54, %v7026_v6  ;;  %v7290_v2 = vadd.f32 %v7226_v61, %v15109_v19  ;;  %v7101_v30 = vmul.f32 0.044715, %v15130_v0  ;;  %v7352_v16 = vmul.f32 0.7978846, %v7288_v24 }
 0xe9d   :  { %v7579_v13 = vpack.c.bf16 %v7537_v25, %v7535_v15  ;;  %v7102_v3 = vmul.f32 0.044715, %v15135_v31  ;;  %v7223_v14 = vmul.f32 %v7159_v41, %v15101_v10  ;;  %v15147_v1 = vmul.f32 0.5, %v15097_v35 }
 0xe9e   :  { %v7580_v20 = vpack.c.bf16 %v7538_v57, %v7536_v33  ;;  %v7354_v5 = vmul.f32 0.7978846, %v7290_v2  ;;  %v15153_v50 = vmul.f32 0.5, %v15109_v19  ;;  %10495 = vtanh.f32 %v7352_v16 }
 0xe9f   :  { %v10488_v56 = vpop.eup %10487  ;;  %v6964_v37 = vpop.f32.mrb[240].mxu1  ;;  %v7163_v22 = vmul.f32 %v7099_v55, %v15123_v63  ;;  %v7164_v34 = vmul.f32 %v7100_v40, %v15126_v11  ;;  %v7165_v36 = vmul.f32 %v7101_v30, %v15130_v0  ;;  %v7166_v61 = vmul.f32 %v7102_v3, %v15135_v31 }
 0xea0   :  { %v10490_v32 = vpop.eup %10489  ;;  %v15150_v6 = vadd.f32 %v6964_v37, %v14694_v47  ;;  %v6966_v49 = vpop.f32.mrb[241].mxu1  ;;  %7805 = vmatprep.mubr.bf16.mxu0 %v7580_v20  ;;  %v7476_v43 = vadd.f32 1.0, %v10488_v56  ;;  %10497 = vtanh.f32 %v7354_v5  ;;  %v7287_v33 = vadd.f32 %v7223_v14, %v15101_v10 }
 0xea1   :  { %v10492_v53 = vpop.eup %10491  ;;  %v15157_v26 = vadd.f32 %v6966_v49, %v14696_v44  ;;  %v6968_v35 = vpop.f32.mrb[242].mxu1  ;;  %7806 = vmatmul.mubr.bf16.gmra.mrb[208].mxu0 %v7579_v13  ;;  %v7475_v17 = vadd.f32 1.0, %v10490_v32  ;;  %v7289_v40 = vadd.f32 %v7225_v28, %v15104_v9  ;;  %v7228_v13 = vmul.f32 %v7164_v34, %v15126_v11 }
 0xea2   :  { %v10494_v18 = vpop.eup %10493  ;;  %v6970_v19 = vpop.f32.mrb[243].mxu1  ;;  %v7478_v58 = vadd.f32 1.0, %v10492_v53  ;;  %v7103_v7 = vmul.f32 0.044715, %v15150_v6  ;;  %v15164_v41 = vadd.f32 %v6968_v35, %v14694_v47  ;;  %v7540_v15 = vmul.f32 %v7476_v43, %v15116_v23 }
 0xea3   :  { %v15167_v12 = vadd.f32 %v6970_v19, %v14696_v44  ;;  %v7477_v54 = vadd.f32 1.0, %v10494_v18  ;;  %v7104_v48 = vmul.f32 0.044715, %v15157_v26  ;;  %v7539_v24 = vmul.f32 %v7475_v17, %v7027_v45 }
 0xea4   :  { %v7542_v25 = vmul.f32 %v7478_v58, %v7030_v42  ;;  %v7230_v2 = vmul.f32 %v7166_v61, %v15135_v31  ;;  %v7351_v3 = vmul.f32 0.7978846, %v7287_v33  ;;  %v7227_v20 = vmul.f32 %v7163_v22, %v15123_v63 }
 0xea5   :  { %v7106_v57 = vmul.f32 0.044715, %v15167_v12  ;;  %v7541_v55 = vmul.f32 %v7477_v54, %v7029_v62  ;;  %v7105_v16 = vmul.f32 0.044715, %v15164_v41  ;;  %v7353_v56 = vmul.f32 0.7978846, %v7289_v40 }
 0xea6   :  { %v7582_v30 = vpack.c.bf16 %v7542_v25, %v7540_v15  ;;  %v7168_v14 = vmul.f32 %v7104_v48, %v15157_v26  ;;  %10499 = vtanh.f32 %v7351_v3  ;;  %v7229_v37 = vmul.f32 %v7165_v36, %v15130_v0 }
 0xea7   :  { %v6974_v23 = vpop.f32.mrb[244].mxu1  ;;  %v7581_v42 = vpack.c.bf16 %v7541_v55, %v7539_v24  ;;  %v7170_v45 = vmul.f32 %v7106_v57, %v15167_v12  ;;  %v7167_v5 = vmul.f32 %v7103_v7, %v15150_v6  ;;  %10501 = vtanh.f32 %v7353_v56 }
 0xea8   :  { %v15181_v62 = vadd.f32 %v6974_v23, %v14694_v47  ;;  %v6976_v28 = vpop.f32.mrb[245].mxu1  ;;  %7813 = vmatprep.mubr.bf16.mxu0 %v7582_v30  ;;  %v10496_v43 = vpop.eup %10495  ;;  %v7292_v17 = vadd.f32 %v7228_v13, %v15126_v11  ;;  %v7294_v18 = vadd.f32 %v7230_v2, %v15135_v31  ;;  %v7169_v36 = vmul.f32 %v7105_v16, %v15164_v41 }
 0xea9   :  { %v15186_v32 = vadd.f32 %v6976_v28, %v14696_v44  ;;  %v6978_v49 = vpop.f32.mrb[246].mxu1  ;;  %7814 = vmatmul.mubr.bf16.gmra.mrb[212].mxu0 %v7581_v42  ;;  %v7480_v58 = vadd.f32 1.0, %v10496_v43  ;;  %v7232_v7 = vmul.f32 %v7168_v14, %v15157_v26  ;;  %v7234_v54 = vmul.f32 %v7170_v45, %v15167_v12 }
 0xeaa   :  { %v7107_v53 = vmul.f32 0.044715, %v15181_v62  ;;  %v15190_v22 = vadd.f32 %v6978_v49, %v14694_v47  ;;  %v6980_v35 = vpop.f32.mrb[247].mxu1  ;;  %v10498_v34 = vpop.eup %10497  ;;  %v7356_v48 = vmul.f32 0.7978846, %v7292_v17  ;;  %v7231_v40 = vmul.f32 %v7167_v5, %v15150_v6 }
 0xeab   :  { %v7108_v61 = vmul.f32 0.044715, %v15186_v32  ;;  %v15197_v19 = vadd.f32 %v6980_v35, %v14696_v44  ;;  %v7482_v47 = vadd.f32 1.0, %v10498_v34  ;;  %v7358_v57 = vmul.f32 0.7978846, %v7294_v18 }
 0xeac   :  { %v7171_v15 = vmul.f32 %v7107_v53, %v15181_v62  ;;  %v7109_v25 = vmul.f32 0.044715, %v15190_v22  ;;  %v7544_v55 = vmul.f32 %v7480_v58, %v15147_v1  ;;  %10503 = vtanh.f32 %v7356_v48 }
 0xead   :  { %v7110_v33 = vmul.f32 0.044715, %v15197_v19  ;;  %v7172_v24 = vmul.f32 %v7108_v61, %v15186_v32  ;;  %v7546_v44 = vmul.f32 %v7482_v47, %v15153_v50  ;;  %v7031_v2 = vmul.f32 0.5, %v15101_v10 }
 0xeae   :  { %10505 = vtanh.f32 %v7358_v57  ;;  %v7233_v30 = vmul.f32 %v7169_v36, %v15164_v41  ;;  %v7291_v16 = vadd.f32 %v7227_v20, %v15123_v63  ;;  %v7293_v23 = vadd.f32 %v7229_v37, %v15130_v0 }
 0xeaf   :  { %v7174_v13 = vmul.f32 %v7110_v33, %v15197_v19  ;;  %v7584_v3 = vpack.c.bf16 %v7546_v44, %v7544_v55  ;;  %v7235_v42 = vmul.f32 %v7171_v15, %v15181_v62  ;;  %v7173_v1 = vmul.f32 %v7109_v25, %v15190_v22 }
 0xeb0   :  { %v7033_v50 = vmul.f32 0.5, %v15104_v9  ;;  %v7296_v56 = vadd.f32 %v7232_v7, %v15157_v26  ;;  %v10500_v14 = vpop.eup %10499  ;;  %v7236_v45 = vmul.f32 %v7172_v24, %v15186_v32  ;;  %v7355_v10 = vmul.f32 0.7978846, %v7291_v16 }
 0xeb1   :  { %7821 = vmatprep.mubr.bf16.mxu0 %v7584_v3  ;;  %v7357_v28 = vmul.f32 0.7978846, %v7293_v23  ;;  %v7298_v5 = vadd.f32 %v7234_v54, %v15167_v12  ;;  %v10502_v49 = vpop.eup %10501  ;;  %v7238_v20 = vmul.f32 %v7174_v13, %v15197_v19  ;;  %v7479_v37 = vadd.f32 1.0, %v10500_v14 }
 0xeb2   :  { %v7360_v43 = vmul.f32 0.7978846, %v7296_v56  ;;  %v7295_v53 = vadd.f32 %v7231_v40, %v15150_v6  ;;  %v7481_v35 = vadd.f32 1.0, %v10502_v49  ;;  %10507 = vtanh.f32 %v7355_v10 }
 0xeb3   :  { %v7362_v9 = vmul.f32 0.7978846, %v7298_v5  ;;  %v7297_v17 = vadd.f32 %v7233_v30, %v15164_v41  ;;  %v7237_v18 = vmul.f32 %v7173_v1, %v15190_v22  ;;  %10509 = vtanh.f32 %v7357_v28 }
 0xeb4   :  { %v7359_v34 = vmul.f32 0.7978846, %v7295_v53  ;;  %v7543_v36 = vmul.f32 %v7479_v37, %v7031_v2  ;;  %v7545_v61 = vmul.f32 %v7481_v35, %v7033_v50  ;;  %10511 = vtanh.f32 %v7360_v43 }
 0xeb5   :  { %v7361_v58 = vmul.f32 0.7978846, %v7297_v17  ;;  %10513 = vtanh.f32 %v7362_v9  ;;  %v7300_v7 = vadd.f32 %v7236_v45, %v15186_v32  ;;  %v7302_v54 = vadd.f32 %v7238_v20, %v15197_v19 }
 0xeb6   :  { %v10504_v47 = vpop.eup %10503  ;;  %v7583_v48 = vpack.c.bf16 %v7545_v61, %v7543_v36  ;;  %v7036_v15 = vmul.f32 0.5, %v15126_v11  ;;  %10515 = vtanh.f32 %v7359_v34  ;;  %v7299_v25 = vadd.f32 %v7235_v42, %v15181_v62 }
 0xeb7   :  { %v7484_v57 = vadd.f32 1.0, %v10504_v47  ;;  %10517 = vtanh.f32 %v7361_v58  ;;  %v7364_v24 = vmul.f32 0.7978846, %v7300_v7  ;;  %v7366_v55 = vmul.f32 0.7978846, %v7302_v54 }
 0xeb8   :  { %v10506_v33 = vpop.eup %10505  ;;  %7822 = vmatmul.mubr.bf16.gmra.mrb[216].mxu0 %v7583_v48  ;;  %v7038_v44 = vmul.f32 0.5, %v15135_v31  ;;  %v7301_v13 = vadd.f32 %v7237_v18, %v15190_v22  ;;  %v7363_v2 = vmul.f32 0.7978846, %v7299_v25  ;;  %v7035_v56 = vmul.f32 0.5, %v15123_v63 }
 0xeb9   :  { %v7486_v40 = vadd.f32 1.0, %v10506_v33  ;;  %10519 = vtanh.f32 %v7364_v24  ;;  %v7548_v30 = vmul.f32 %v7484_v57, %v7036_v15  ;;  %v7037_v31 = vmul.f32 0.5, %v15130_v0 }
 0xeba   :  { %10521 = vtanh.f32 %v7366_v55  ;;  %v7365_v11 = vmul.f32 0.7978846, %v7301_v13  ;;  %v7040_v10 = vmul.f32 0.5, %v15157_v26  ;;  %v7042_v37 = vmul.f32 0.5, %v15167_v12 }
 0xebb   :  { %v7550_v3 = vmul.f32 %v7486_v40, %v7038_v44  ;;  %10523 = vtanh.f32 %v7363_v2  ;;  %v7039_v35 = vmul.f32 0.5, %v15150_v6  ;;  %v7041_v9 = vmul.f32 0.5, %v15164_v41 }
 0xebc   :  { %v10508_v16 = vpop.eup %10507  ;;  %10525 = vtanh.f32 %v7365_v11  ;;  %v7044_v12 = vmul.f32 0.5, %v15186_v32  ;;  %v7046_v48 = vmul.f32 0.5, %v15197_v19  ;;  %v7043_v25 = vmul.f32 0.5, %v15181_v62  ;;  %v15242_v62 = vld [vmem:[%s15522_s18] ss:$0 sm:$0xff] }
 0xebd   :  { %v7586_v23 = vpack.c.bf16 %v7550_v3, %v7548_v30  ;;  %v10510_v42 = vpop.eup %10509  ;;  %v7483_v1 = vadd.f32 1.0, %v10508_v16  ;;  %v7045_v55 = vmul.f32 0.5, %v15190_v22  ;;  %v15244_v22 = vstv %s7990_s16 }
 0xebe   :  { %v10512_v50 = vpop.eup %10511  ;;  %v7485_v14 = vadd.f32 1.0, %v10510_v42  ;;  %v15246_v16 = vstv %s7991_s10 }
 0xebf   :  { %7829 = vmatprep.mubr.bf16.mxu0 %v7586_v23  ;;  %v10514_v45 = vpop.eup %10513  ;;  %v7488_v28 = vadd.f32 1.0, %v10512_v50  ;;  %v7547_v49 = vmul.f32 %v7483_v1, %v7035_v56  ;;  %v7855_v50 = vmul.f32 %v15244_v22, %v13991_v4 }
 0xec0   :  { %v10516_v5 = vpop.eup %10515  ;;  %v7549_v20 = vmul.f32 %v7485_v14, %v7037_v31  ;;  %v7490_v43 = vadd.f32 1.0, %v10514_v45  ;;  %v7856_v45 = vmul.f32 %v15244_v22, %v13997_v8 }
 0xec1   :  { %v10518_v53 = vpop.eup %10517  ;;  %v7487_v17 = vadd.f32 1.0, %v10516_v5  ;;  %v7552_v18 = vmul.f32 %v7488_v28, %v7040_v10 }
 0xec2   :  { %v7585_v63 = vpack.c.bf16 %v7549_v20, %v7547_v49  ;;  %v7554_v0 = vmul.f32 %v7490_v43, %v7042_v37  ;;  %v7489_v34 = vadd.f32 1.0, %v10518_v53  ;;  %v7857_v53 = vmul.f32 %v15244_v22, %v13995_v46 }
 0xec3   :  { %v10520_v36 = vpop.eup %10519  ;;  %v7551_v58 = vmul.f32 %v7487_v17, %v7039_v35 }
 0xec4   :  { %v10522_v61 = vpop.eup %10521  ;;  %7830 = vmatmul.mubr.bf16.gmra.mrb[220].mxu0 %v7585_v63  ;;  %v7588_v26 = vpack.c.bf16 %v7554_v0, %v7552_v18  ;;  %v7553_v7 = vmul.f32 %v7489_v34, %v7041_v9  ;;  %v7492_v54 = vadd.f32 1.0, %v10520_v36  ;;  %v7858_v63 = vmul.f32 %v15244_v22, %v14001_v59 }
 0xec5   :  { %v10524_v47 = vpop.eup %10523  ;;  %v7494_v6 = vadd.f32 1.0, %v10522_v61 }
 0xec6   :  { %v10526_v15 = vpop.eup %10525  ;;  %7837 = vmatprep.mubr.bf16.mxu0 %v7588_v26  ;;  %v7587_v41 = vpack.c.bf16 %v7553_v7, %v7551_v58  ;;  %v7491_v33 = vadd.f32 1.0, %v10524_v47  ;;  %v7556_v57 = vmul.f32 %v7492_v54, %v7044_v12  ;;  %v7859_v7 = vmul.f32 %v15244_v22, %v14031_v29 }
 0xec7   :  { %v7558_v24 = vmul.f32 %v7494_v6, %v7046_v48  ;;  %v7493_v44 = vadd.f32 1.0, %v10526_v15  ;;  %v7860_v48 = vmul.f32 %v15244_v22, %v14037_v21 }
 0xec8   :  { %v7555_v13 = vmul.f32 %v7491_v33, %v7043_v25 }
 0xec9   :  { %v7590_v40 = vpack.c.bf16 %v7558_v24, %v7556_v57  ;;  %v7557_v2 = vmul.f32 %v7493_v44, %v7045_v55  ;;  %v7861_v55 = vmul.f32 %v15244_v22, %v14035_v38 }
 0xecb   :  { %v7589_v30 = vpack.c.bf16 %v7557_v2, %v7555_v13  ;;  %v7862_v2 = vmul.f32 %v15244_v22, %v14041_v60 }
 0xecc   :  { %7838 = vmatmul.mubr.bf16.gmra.mrb[224].mxu0 %v7587_v41 }
 0xecd   :  { %7845 = vmatprep.mubr.bf16.mxu0 %v7590_v40 }
 0xed4   :  { %7846 = vmatmul.mubr.bf16.gmra.mrb[228].mxu0 %v7589_v30 }
 0xedb   :  { %v8622_v32 = vpop.f32.mrb[168].mxu0 }
 0xedc   :  { %v8623_v19 = vpop.f32.mrb[169].mxu0 }
 0xedd   :  { %v8624_v3 = vadd.f32 %v8623_v19, %v8622_v32  ;;  %v8625_v11 = vpop.f32.mrb[170].mxu0 }
 0xede   :  { %v8626_v23 = vpop.f32.mrb[171].mxu0 }
 0xedf   :  { %v7728_v42 = vadd.f32 %v8624_v3, %v15242_v62  ;;  %v8627_v1 = vadd.f32 %v8626_v23, %v8625_v11 }
 0xee1   :  { %v7888_v56 = vmul.f32 %v15246_v16, %v7728_v42  ;;  %v7731_v31 = vadd.f32 %v8627_v1, %v15242_v62  ;;  %v7863_v1 = vmul.f32 %v15244_v22, %v14071_v27 }
 0xee3   :  { %v7920_v14 = vadd.f32 %v7888_v56, %v7855_v50  ;;  %v7889_v10 = vmul.f32 %v15246_v16, %v7731_v31  ;;  %v8628_v28 = vpop.f32.mrb[172].mxu0 }
 0xee4   :  { %v8629_v5 = vpop.f32.mrb[173].mxu0 }
 0xee5   :  { %7952 = vst.msk [vmem:[%s15524_s20] sm:$0xff] %vm250_vm0, %v7920_v14  ;;  %v7921_v49 = vadd.f32 %v7889_v10, %v7856_v45  ;;  %v8630_v20 = vadd.f32 %v8629_v5, %v8628_v28  ;;  %v8631_v4 = vpop.f32.mrb[174].mxu0  ;;  %v7864_v14 = vmul.f32 %v15244_v22, %v14077_v51 }
 0xee6   :  { %v8632_v37 = vpop.f32.mrb[175].mxu0 }
 0xee7   :  { %7953 = vst.msk [vmem:[%s15524_s20 + $0x8] sm:$0xff] %vm250_vm0, %v7921_v49  ;;  %v7736_v8 = vadd.f32 %v8630_v20, %v15242_v62  ;;  %v8633_v43 = vadd.f32 %v8632_v37, %v8631_v4  ;;  %v7865_v37 = vmul.f32 %v15244_v22, %v14075_v39 }
 0xee9   :  { %v7890_v35 = vmul.f32 %v15246_v16, %v7736_v8  ;;  %v7739_v9 = vadd.f32 %v8633_v43, %v15242_v62 }
 0xeeb   :  { %v7922_v17 = vadd.f32 %v7890_v35, %v7857_v53  ;;  %v7891_v18 = vmul.f32 %v15246_v16, %v7739_v9  ;;  %v7866_v35 = vmul.f32 %v15244_v22, %v14086_v52 }
 0xeed   :  { %7954 = vst.msk [vmem:[%s15524_s20 + $0x10] sm:$0xff] %vm250_vm0, %v7922_v17  ;;  %v7923_v0 = vadd.f32 %v7891_v18, %v7858_v63 }
 0xeef   :  { %7955 = vst.msk [vmem:[%s15524_s20 + $0x18] sm:$0xff] %vm250_vm0, %v7923_v0 }
 0xef2   :  { %v8634_v46 = vpop.f32.mrb[176].mxu0 }
 0xef3   :  { %v8635_v34 = vpop.f32.mrb[177].mxu0 }
 0xef4   :  { %v8636_v36 = vadd.f32 %v8635_v34, %v8634_v46  ;;  %v8637_v61 = vpop.f32.mrb[178].mxu0 }
 0xef5   :  { %v8638_v26 = vpop.f32.mrb[179].mxu0 }
 0xef6   :  { %v7744_v59 = vadd.f32 %v8636_v36, %v15242_v62  ;;  %v8639_v58 = vadd.f32 %v8638_v26, %v8637_v61  ;;  %v16102_v36 = vld [vmem:[#allocation9_spill] sm:$0xff] }
 0xef7   :  { %v7867_v61 = vmul.f32 %v15244_v22, %v16102_v36 }
 0xef8   :  { %v7892_v54 = vmul.f32 %v15246_v16, %v7744_v59  ;;  %v7747_v47 = vadd.f32 %v8639_v58, %v15242_v62 }
 0xefa   :  { %v7924_v12 = vadd.f32 %v7892_v54, %v7859_v7  ;;  %v7893_v6 = vmul.f32 %v15246_v16, %v7747_v47  ;;  %v16103_v7 = vld [vmem:[#allocation27_spill] sm:$0xff] }
 0xefb   :  { %v7868_v54 = vmul.f32 %v15244_v22, %v16103_v7 }
 0xefc   :  { %7956 = vst.msk [vmem:[%s15524_s20 + $0x20] sm:$0xff] %vm250_vm0, %v7924_v12  ;;  %v7925_v15 = vadd.f32 %v7893_v6, %v7860_v48 }
 0xefe   :  { %7957 = vst.msk [vmem:[%s15524_s20 + $0x28] sm:$0xff] %vm250_vm0, %v7925_v15  ;;  %v8640_v29 = vpop.f32.mrb[180].mxu0 }
 0xeff   :  { %v8641_v41 = vpop.f32.mrb[181].mxu0 }
 0xf00   :  { %v8642_v25 = vadd.f32 %v8641_v41, %v8640_v29  ;;  %v8643_v33 = vpop.f32.mrb[182].mxu0 }
 0xf01   :  { %v8644_v57 = vpop.f32.mrb[183].mxu0 }
 0xf02   :  { %v7752_v21 = vadd.f32 %v8642_v25, %v15242_v62  ;;  %v8645_v24 = vadd.f32 %v8644_v57, %v8643_v33  ;;  %v16104_v57 = vld [vmem:[#allocation56_spill] sm:$0xff] }
 0xf04   :  { %v7894_v44 = vmul.f32 %v15246_v16, %v7752_v21  ;;  %v7755_v40 = vadd.f32 %v8645_v24, %v15242_v62  ;;  %v7869_v21 = vmul.f32 %v15244_v22, %v16104_v57 }
 0xf06   :  { %v7926_v13 = vadd.f32 %v7894_v44, %v7861_v55  ;;  %v7895_v30 = vmul.f32 %v15246_v16, %v7755_v40  ;;  %v16105_v40 = vld [vmem:[#allocation34_spill] sm:$0xff] }
 0xf08   :  { %7958 = vst.msk [vmem:[%s15524_s20 + $0x30] sm:$0xff] %vm250_vm0, %v7926_v13  ;;  %v7927_v32 = vadd.f32 %v7895_v30, %v7862_v2  ;;  %v7870_v13 = vmul.f32 %v15244_v22, %v16105_v40 }
 0xf0a   :  { %7959 = vst.msk [vmem:[%s15524_s20 + $0x38] sm:$0xff] %vm250_vm0, %v7927_v32 }
 0xf0c   :  { %v8646_v38 = vpop.f32.mrb[184].mxu0 }
 0xf0d   :  { %v8647_v19 = vpop.f32.mrb[185].mxu0 }
 0xf0e   :  { %v8648_v3 = vadd.f32 %v8647_v19, %v8646_v38  ;;  %v8649_v11 = vpop.f32.mrb[186].mxu0 }
 0xf0f   :  { %v8650_v23 = vpop.f32.mrb[187].mxu0 }
 0xf10   :  { %v7760_v60 = vadd.f32 %v8648_v3, %v15242_v62  ;;  %v8651_v42 = vadd.f32 %v8650_v23, %v8649_v11 }
 0xf12   :  { %v7896_v50 = vmul.f32 %v15246_v16, %v7760_v60  ;;  %v7763_v56 = vadd.f32 %v8651_v42, %v15242_v62  ;;  %v16106_v42 = vld [vmem:[#allocation55_spill] sm:$0xff] }
 0xf14   :  { %v7928_v31 = vadd.f32 %v7896_v50, %v7863_v1  ;;  %v7897_v45 = vmul.f32 %v15246_v16, %v7763_v56  ;;  %v7871_v1 = vmul.f32 %v15244_v22, %v16106_v42 }
 0xf16   :  { %7960 = vst.msk [vmem:[%s15524_s20 + $0x40] sm:$0xff] %vm250_vm0, %v7928_v31  ;;  %v7929_v10 = vadd.f32 %v7897_v45, %v7864_v14  ;;  %v16107_v14 = vld [vmem:[#allocation33_spill] sm:$0xff] }
 0xf17   :  { %v7872_v45 = vmul.f32 %v15244_v22, %v16107_v14 }
 0xf18   :  { %7961 = vst.msk [vmem:[%s15524_s20 + $0x48] sm:$0xff] %vm250_vm0, %v7929_v10 }
 0xf19   :  { %v8652_v27 = vpop.f32.mrb[188].mxu0 }
 0xf1a   :  { %v8653_v28 = vpop.f32.mrb[189].mxu0 }
 0xf1b   :  { %v8654_v5 = vadd.f32 %v8653_v28, %v8652_v27  ;;  %v8655_v49 = vpop.f32.mrb[190].mxu0 }
 0xf1c   :  { %v8656_v20 = vpop.f32.mrb[191].mxu0 }
 0xf1d   :  { %v7768_v51 = vadd.f32 %v8654_v5, %v15242_v62  ;;  %v8657_v4 = vadd.f32 %v8656_v20, %v8655_v49 }
 0xf1f   :  { %v7898_v8 = vmul.f32 %v15246_v16, %v7768_v51  ;;  %v7771_v43 = vadd.f32 %v8657_v4, %v15242_v62 }
 0xf21   :  { %v7930_v53 = vadd.f32 %v7898_v8, %v7865_v37  ;;  %v7899_v9 = vmul.f32 %v15246_v16, %v7771_v43  ;;  %v8658_v17 = vpop.f32.mrb[192].mxu0  ;;  %v16108_v8 = vld [vmem:[#allocation11_spill] sm:$0xff] }
 0xf22   :  { %v8659_v63 = vpop.f32.mrb[193].mxu0  ;;  %v7873_v43 = vmul.f32 %v15244_v22, %v16108_v8 }
 0xf23   :  { %7962 = vst.msk [vmem:[%s15524_s20 + $0x50] sm:$0xff] %vm250_vm0, %v7930_v53  ;;  %v7931_v18 = vadd.f32 %v7899_v9, %v7866_v35  ;;  %v8660_v0 = vadd.f32 %v8659_v63, %v8658_v17  ;;  %v8661_v39 = vpop.f32.mrb[194].mxu0  ;;  %v16109_v17 = vld [vmem:[#allocation58_spill] sm:$0xff] }
 0xf24   :  { %v8662_v46 = vpop.f32.mrb[195].mxu0  ;;  %v7874_v63 = vmul.f32 %v15244_v22, %v16109_v17 }
 0xf25   :  { %7963 = vst.msk [vmem:[%s15524_s20 + $0x58] sm:$0xff] %vm250_vm0, %v7931_v18  ;;  %v7776_v52 = vadd.f32 %v8660_v0, %v15242_v62  ;;  %v8663_v34 = vadd.f32 %v8662_v46, %v8661_v39 }
 0xf27   :  { %v7900_v26 = vmul.f32 %v15246_v16, %v7776_v52  ;;  %v7779_v59 = vadd.f32 %v8663_v34, %v15242_v62 }
 0xf29   :  { %v7932_v58 = vadd.f32 %v7900_v26, %v7867_v61  ;;  %v7901_v47 = vmul.f32 %v15246_v16, %v7779_v59  ;;  %v8664_v12 = vpop.f32.mrb[196].mxu0  ;;  %v16110_v59 = vld [vmem:[#allocation57_spill] sm:$0xff] }
 0xf2a   :  { %v8665_v48 = vpop.f32.mrb[197].mxu0 }
 0xf2b   :  { %7964 = vst.msk [vmem:[%s15524_s20 + $0x60] sm:$0xff] %vm250_vm0, %v7932_v58  ;;  %v7933_v6 = vadd.f32 %v7901_v47, %v7868_v54  ;;  %v8666_v15 = vadd.f32 %v8665_v48, %v8664_v12  ;;  %v8667_v29 = vpop.f32.mrb[198].mxu0  ;;  %v7875_v58 = vmul.f32 %v15244_v22, %v16110_v59  ;;  %v16111_v12 = vld [vmem:[#allocation35_spill] sm:$0xff] }
 0xf2c   :  { %v8668_v41 = vpop.f32.mrb[199].mxu0  ;;  %v7876_v48 = vmul.f32 %v15244_v22, %v16111_v12 }
 0xf2d   :  { %7965 = vst.msk [vmem:[%s15524_s20 + $0x68] sm:$0xff] %vm250_vm0, %v7933_v6  ;;  %v7784_v25 = vadd.f32 %v8666_v15, %v15242_v62  ;;  %v8669_v33 = vadd.f32 %v8668_v41, %v8667_v29 }
 0xf2f   :  { %v7902_v24 = vmul.f32 %v15246_v16, %v7784_v25  ;;  %v7787_v55 = vadd.f32 %v8669_v33, %v15242_v62 }
 0xf31   :  { %v7934_v44 = vadd.f32 %v7902_v24, %v7869_v21  ;;  %v7903_v2 = vmul.f32 %v15246_v16, %v7787_v55  ;;  %v8670_v30 = vpop.f32.mrb[200].mxu0  ;;  %v16112_v55 = vld [vmem:[#allocation36_spill] sm:$0xff] }
 0xf32   :  { %v8671_v32 = vpop.f32.mrb[201].mxu0 }
 0xf33   :  { %7966 = vst.msk [vmem:[%s15524_s20 + $0x70] sm:$0xff] %vm250_vm0, %v7934_v44  ;;  %v7935_v38 = vadd.f32 %v7903_v2, %v7870_v13  ;;  %v8672_v19 = vadd.f32 %v8671_v32, %v8670_v30  ;;  %v8673_v3 = vpop.f32.mrb[202].mxu0  ;;  %v7877_v44 = vmul.f32 %v15244_v22, %v16112_v55  ;;  %v16113_v30 = vld [vmem:[#allocation39_spill] sm:$0xff] }
 0xf34   :  { %v8674_v11 = vpop.f32.mrb[203].mxu0  ;;  %v7878_v32 = vmul.f32 %v15244_v22, %v16113_v30 }
 0xf35   :  { %7967 = vst.msk [vmem:[%s15524_s20 + $0x78] sm:$0xff] %vm250_vm0, %v7935_v38  ;;  %v7792_v23 = vadd.f32 %v8672_v19, %v15242_v62  ;;  %v8675_v60 = vadd.f32 %v8674_v11, %v8673_v3 }
 0xf37   :  { %v7904_v50 = vmul.f32 %v15246_v16, %v7792_v23  ;;  %v7795_v56 = vadd.f32 %v8675_v60, %v15242_v62 }
 0xf39   :  { %v7936_v31 = vadd.f32 %v7904_v50, %v7871_v1  ;;  %v7905_v10 = vmul.f32 %v15246_v16, %v7795_v56  ;;  %v8676_v27 = vpop.f32.mrb[204].mxu0  ;;  %v16114_v56 = vld [vmem:[#allocation38_spill] sm:$0xff] }
 0xf3a   :  { %v8677_v28 = vpop.f32.mrb[205].mxu0 }
 0xf3b   :  { %7968 = vst.msk [vmem:[%s15524_s20 + $0x80] sm:$0xff] %vm250_vm0, %v7936_v31  ;;  %v7937_v5 = vadd.f32 %v7905_v10, %v7872_v45  ;;  %v8678_v49 = vadd.f32 %v8677_v28, %v8676_v27  ;;  %v8679_v20 = vpop.f32.mrb[206].mxu0  ;;  %v7879_v31 = vmul.f32 %v15244_v22, %v16114_v56  ;;  %v16115_v27 = vld [vmem:[#allocation37_spill] sm:$0xff] }
 0xf3c   :  { %v8680_v51 = vpop.f32.mrb[207].mxu0  ;;  %v7880_v28 = vmul.f32 %v15244_v22, %v16115_v27 }
 0xf3d   :  { %7969 = vst.msk [vmem:[%s15524_s20 + $0x88] sm:$0xff] %vm250_vm0, %v7937_v5  ;;  %v7800_v4 = vadd.f32 %v8678_v49, %v15242_v62  ;;  %v8681_v37 = vadd.f32 %v8680_v51, %v8679_v20 }
 0xf3f   :  { %v7906_v53 = vmul.f32 %v15246_v16, %v7800_v4  ;;  %v7803_v35 = vadd.f32 %v8681_v37, %v15242_v62 }
 0xf41   :  { %v7938_v9 = vadd.f32 %v7906_v53, %v7873_v43  ;;  %v7907_v18 = vmul.f32 %v15246_v16, %v7803_v35  ;;  %v16116_v35 = vld [vmem:[#allocation60_spill] sm:$0xff] }
 0xf43   :  { %7970 = vst.msk [vmem:[%s15524_s20 + $0x90] sm:$0xff] %vm250_vm0, %v7938_v9  ;;  %v7939_v0 = vadd.f32 %v7907_v18, %v7874_v63  ;;  %v7881_v9 = vmul.f32 %v15244_v22, %v16116_v35 }
 0xf45   :  { %7971 = vst.msk [vmem:[%s15524_s20 + $0x98] sm:$0xff] %vm250_vm0, %v7939_v0  ;;  %v16117_v0 = vld [vmem:[#allocation59_spill] sm:$0xff] }
 0xf74   :  { %v8682_v39 = vpop.f32.mrb[208].mxu0 }
 0xf75   :  { %v8683_v46 = vpop.f32.mrb[209].mxu0 }
 0xf76   :  { %v8684_v52 = vadd.f32 %v8683_v46, %v8682_v39  ;;  %v8685_v34 = vpop.f32.mrb[210].mxu0  ;;  %v7882_v39 = vmul.f32 %v15244_v22, %v16117_v0 }
 0xf77   :  { %v8686_v36 = vpop.f32.mrb[211].mxu0 }
 0xf78   :  { %v7808_v61 = vadd.f32 %v8684_v52, %v15242_v62  ;;  %v8687_v26 = vadd.f32 %v8686_v36, %v8685_v34 }
 0xf7a   :  { %v7908_v7 = vmul.f32 %v15246_v16, %v7808_v61  ;;  %v7811_v54 = vadd.f32 %v8687_v26, %v15242_v62 }
 0xf7c   :  { %v7940_v47 = vadd.f32 %v7908_v7, %v7875_v58  ;;  %v7909_v6 = vmul.f32 %v15246_v16, %v7811_v54  ;;  %v8688_v15 = vpop.f32.mrb[212].mxu0  ;;  %v16118_v54 = vld [vmem:[#allocation82_spill] sm:$0xff] }
 0xf7d   :  { %v8689_v29 = vpop.f32.mrb[213].mxu0 }
 0xf7e   :  { %7972 = vst.msk [vmem:[%s15524_s20 + $0xa0] sm:$0xff] %vm250_vm0, %v7940_v47  ;;  %v7941_v41 = vadd.f32 %v7909_v6, %v7876_v48  ;;  %v8690_v25 = vadd.f32 %v8689_v29, %v8688_v15  ;;  %v8691_v33 = vpop.f32.mrb[214].mxu0  ;;  %v7883_v47 = vmul.f32 %v15244_v22, %v16118_v54  ;;  %v16119_v15 = vld [vmem:[#allocation41_spill] sm:$0xff] }
 0xf7f   :  { %v8692_v57 = vpop.f32.mrb[215].mxu0  ;;  %v7884_v29 = vmul.f32 %v15244_v22, %v16119_v15 }
 0xf80   :  { %7973 = vst.msk [vmem:[%s15524_s20 + $0xa8] sm:$0xff] %vm250_vm0, %v7941_v41  ;;  %v7816_v21 = vadd.f32 %v8690_v25, %v15242_v62  ;;  %v8693_v24 = vadd.f32 %v8692_v57, %v8691_v33 }
 0xf82   :  { %v7910_v40 = vmul.f32 %v15246_v16, %v7816_v21  ;;  %v7819_v13 = vadd.f32 %v8693_v24, %v15242_v62 }
 0xf84   :  { %v7942_v2 = vadd.f32 %v7910_v40, %v7877_v44  ;;  %v7911_v38 = vmul.f32 %v15246_v16, %v7819_v13  ;;  %v16120_v13 = vld [vmem:[#allocation83_spill] sm:$0xff] }
 0xf86   :  { %7974 = vst.msk [vmem:[%s15524_s20 + $0xb0] sm:$0xff] %vm250_vm0, %v7942_v2  ;;  %v7943_v19 = vadd.f32 %v7911_v38, %v7878_v32  ;;  %v7885_v2 = vmul.f32 %v15244_v22, %v16120_v13 }
 0xf88   :  { %7975 = vst.msk [vmem:[%s15524_s20 + $0xb8] sm:$0xff] %vm250_vm0, %v7943_v19  ;;  %v16121_v19 = vld [vmem:[#allocation42_spill] sm:$0xff] }
 0xf8b   :  { %v8694_v3 = vpop.f32.mrb[216].mxu0 }
 0xf8c   :  { %v8695_v11 = vpop.f32.mrb[217].mxu0 }
 0xf8d   :  { %v8696_v23 = vadd.f32 %v8695_v11, %v8694_v3  ;;  %v8697_v60 = vpop.f32.mrb[218].mxu0  ;;  %v7886_v3 = vmul.f32 %v15244_v22, %v16121_v19 }
 0xf8e   :  { %v8698_v42 = vpop.f32.mrb[219].mxu0 }
 0xf8f   :  { %v7824_v1 = vadd.f32 %v8696_v23, %v15242_v62  ;;  %v8699_v50 = vadd.f32 %v8698_v42, %v8697_v60 }
 0xf91   :  { %v7912_v14 = vmul.f32 %v15246_v16, %v7824_v1  ;;  %v7827_v45 = vadd.f32 %v8699_v50, %v15242_v62 }
 0xf93   :  { %v7944_v10 = vadd.f32 %v7912_v14, %v7879_v31  ;;  %v7913_v5 = vmul.f32 %v15246_v16, %v7827_v45 }
 0xf95   :  { %7976 = vst.msk [vmem:[%s15524_s20 + $0xc0] sm:$0xff] %vm250_vm0, %v7944_v10  ;;  %v7945_v49 = vadd.f32 %v7913_v5, %v7880_v28 }
 0xf97   :  { %7977 = vst.msk [vmem:[%s15524_s20 + $0xc8] sm:$0xff] %vm250_vm0, %v7945_v49  ;;  %v8700_v20 = vpop.f32.mrb[220].mxu0 }
 0xf98   :  { %v8701_v51 = vpop.f32.mrb[221].mxu0 }
 0xf99   :  { %v8702_v4 = vadd.f32 %v8701_v51, %v8700_v20  ;;  %v8703_v37 = vpop.f32.mrb[222].mxu0 }
 0xf9a   :  { %v8704_v8 = vpop.f32.mrb[223].mxu0 }
 0xf9b   :  { %v7832_v43 = vadd.f32 %v8702_v4, %v15242_v62  ;;  %v8705_v53 = vadd.f32 %v8704_v8, %v8703_v37 }
 0xf9d   :  { %v7914_v17 = vmul.f32 %v15246_v16, %v7832_v43  ;;  %v7835_v63 = vadd.f32 %v8705_v53, %v15242_v62 }
 0xf9f   :  { %v7946_v18 = vadd.f32 %v7914_v17, %v7881_v9  ;;  %v7915_v46 = vmul.f32 %v15246_v16, %v7835_v63  ;;  %v8706_v52 = vpop.f32.mrb[224].mxu0 }
 0xfa0   :  { %v8707_v34 = vpop.f32.mrb[225].mxu0 }
 0xfa1   :  { %7978 = vst.msk [vmem:[%s15524_s20 + $0xd0] sm:$0xff] %vm250_vm0, %v7946_v18  ;;  %v7947_v36 = vadd.f32 %v7915_v46, %v7882_v39  ;;  %v8708_v61 = vadd.f32 %v8707_v34, %v8706_v52  ;;  %v8709_v26 = vpop.f32.mrb[226].mxu0 }
 0xfa2   :  { %v8710_v59 = vpop.f32.mrb[227].mxu0 }
 0xfa3   :  { %7979 = vst.msk [vmem:[%s15524_s20 + $0xd8] sm:$0xff] %vm250_vm0, %v7947_v36  ;;  %v7840_v58 = vadd.f32 %v8708_v61, %v15242_v62  ;;  %v8711_v7 = vadd.f32 %v8710_v59, %v8709_v26 }
 0xfa5   :  { %v7916_v12 = vmul.f32 %v15246_v16, %v7840_v58  ;;  %v7843_v48 = vadd.f32 %v8711_v7, %v15242_v62 }
 0xfa7   :  { %v7948_v6 = vadd.f32 %v7916_v12, %v7883_v47  ;;  %v7917_v41 = vmul.f32 %v15246_v16, %v7843_v48  ;;  %v8712_v25 = vpop.f32.mrb[228].mxu0 }
 0xfa8   :  { %v8713_v33 = vpop.f32.mrb[229].mxu0 }
 0xfa9   :  { %7980 = vst.msk [vmem:[%s15524_s20 + $0xe0] sm:$0xff] %vm250_vm0, %v7948_v6  ;;  %v7949_v57 = vadd.f32 %v7917_v41, %v7884_v29  ;;  %v8714_v21 = vadd.f32 %v8713_v33, %v8712_v25  ;;  %v8715_v24 = vpop.f32.mrb[230].mxu0 }
 0xfaa   :  { %v8716_v55 = vpop.f32.mrb[231].mxu0 }
 0xfab   :  { %7981 = vst.msk [vmem:[%s15524_s20 + $0xe8] sm:$0xff] %vm250_vm0, %v7949_v57  ;;  %v7848_v44 = vadd.f32 %v8714_v21, %v15242_v62  ;;  %v8717_v40 = vadd.f32 %v8716_v55, %v8715_v24 }
 0xfad   :  { %v7918_v30 = vmul.f32 %v15246_v16, %v7848_v44  ;;  %v7851_v32 = vadd.f32 %v8717_v40, %v15242_v62 }
 0xfaf   :  { %v7950_v38 = vadd.f32 %v7918_v30, %v7885_v2  ;;  %v7919_v11 = vmul.f32 %v15246_v16, %v7851_v32 }
 0xfb1   :  { %7982 = vst.msk [vmem:[%s15524_s20 + $0xf0] sm:$0xff] %vm250_vm0, %v7950_v38  ;;  %v7951_v23 = vadd.f32 %v7919_v11, %v7886_v3 }
 0xfb3   :  { %7983 = vst.msk [vmem:[%s15524_s20 + $0xf8] sm:$0xff] %vm250_vm0, %v7951_v23 }
 0xfb4   :  { %7988 = vsyncpa [#allocation3], 1 }

</bundles_post_ra>
